<compile_context>
chip_gen: v7x
topology: tpu7x:2x2x1
jax: 0.10.0
libtpu: 0.0.40
codegen_flags: <defaults>
</compile_context>

<pallas_src>
import functools

import jax
import jax.numpy as jnp
from jax import lax
from jax.experimental import pallas as pl
from jax.experimental.pallas import tpu as pltpu

EPS = 1e-5          # nn.BatchNorm2d default
LANE = 128          # TPU lane width; channel dims are padded to this


def _rup(c, m=LANE):
    return ((c + m - 1) // m) * m


# --------------------------- VMEM budget / tiling ---------------------------

@functools.lru_cache(maxsize=None)
def _vmem_budget():
    """(per-step tile-footprint budget, vmem_limit_bytes) - generation aware."""
    cap = None
    try:
        info = pltpu.get_tpu_info()
        cap = getattr(info, "vmem_capacity_bytes", None)
    except Exception:
        cap = None
    if cap is not None and cap <= (64 << 20):        # v7x: 64 MiB VMEM, 2 TCs
        return 18 << 20, 48 << 20
    if cap is None:                                  # unknown: conservative
        return 24 << 20, 48 << 20
    return 40 << 20, 100 << 20                       # v5e / v6e: 128 MiB VMEM


def _pick_row_tile(H, W, fp_fn, budget, *, align=8, cap=None):
    """Largest TH dividing H with (TH == H or (TH*W) % align == 0) whose
    per-step footprint fits `budget` (optionally capped for testing)."""
    divs = [d for d in range(H, 0, -1) if H % d == 0]
    aligned = [d for d in divs if d == H or (d * W) % align == 0]
    fit = [d for d in aligned if fp_fn(d) <= budget] or aligned[-1:]
    capped = [d for d in fit if cap is None or d <= cap]
    return capped[0] if capped else fit[-1]


def _const_spec(shape, index_map):
    # Constant-index operands (weights / bias / BN scale+shift): single-buffer
    # them - their block never changes across grid steps.
    try:
        return pl.BlockSpec(shape, index_map, pipeline_mode=pl.Buffered(1))
    except Exception:                                # older API: default buffering
        return pl.BlockSpec(shape, index_map)


# ----------------------------- Pallas kernels -------------------------------

def _make_conv3x3_kernel(n_in, affine, TH, W, cins):
    """One fused conv step on a (TH, W) row tile:
       [BN-apply + ReLU on producer inputs] -> 1-px halo in VMEM ->
       per-dy im2col (K = 3*Cin) -> 3 accumulating MXU matmuls into an f32
       scratch -> +bias -> per-tile BN batch-stat partials -> bf16 store."""
    HWt = TH * W
    vec_ok = (W % 8 == 0)   # (TH, W, C) -> (TH*W, C) is then a free retile

    def kernel(*refs):
        pos = 0
        xm, xt, xb, sc, sh, wr = [], [], [], [], [], []
        for i in range(n_in):
            xm.append(refs[pos]); xt.append(refs[pos + 1]); xb.append(refs[pos + 2])
            pos += 3
            if affine[i]:
                sc.append(refs[pos]); sh.append(refs[pos + 1]); pos += 2
            else:
                sc.append(None); sh.append(None)
            wr.append(refs[pos]); pos += 1
        b_ref = refs[pos]; pos += 1
        y_ref, sum_ref, sq_ref = refs[pos], refs[pos + 1], refs[pos + 2]
        pos += 3
        xp_scr = list(refs[pos:pos + n_in]); pos += n_in
        col_scr = list(refs[pos:pos + n_in]); pos += n_in
        acc_ref = refs[pos]

        r = pl.program_id(1)
        last_r = pl.num_programs(1) - 1

        first_mm = True
        for i in range(n_in):
            cin = cins[i]
            if affine[i]:
                s = sc[i][...].reshape(1, 1, cin)
                t = sh[i][...].reshape(1, 1, cin)
                act = lambda v, s=s, t=t: jnp.maximum(
                    v.astype(jnp.float32) * s + t, 0.0).astype(jnp.bfloat16)
            else:
                act = lambda v: v

            main = act(xm[i][0])                          # (TH, W, cin)
            top = act(xt[i][0])                           # (1,  W, cin)
            bot = act(xb[i][0])                           # (1,  W, cin)
            zrow = jnp.zeros_like(top)
            top = jnp.where(r > 0, top, zrow)             # zero above image top
            bot = jnp.where(r < last_r, bot, zrow)        # zero below image bottom

            # Halo tile in VMEM.  Only the two 1-px border *columns* are
            # re-zeroed each step; halo rows + interior are fully overwritten.
            xp = xp_scr[i]
            zcol = jnp.zeros((TH + 2, 1, cin), jnp.bfloat16)
            xp[:, 0:1, :] = zcol
            xp[:, W + 1:W + 2, :] = zcol
            xp[0:1, 1:W + 1, :] = top
            xp[TH + 1:TH + 2, 1:W + 1, :] = bot
            xp[1:TH + 1, 1:W + 1, :] = main

            # Per-dy im2col (K = 3*cin) + accumulating matmul: 3x smaller
            # scratch than a single K = 9*cin patch matrix.
            col = col_scr[i]
            for dy in range(3):
                for dx in range(3):
                    if vec_ok:
                        col[:, dx * cin:(dx + 1) * cin] = (
                            xp[dy:dy + TH, dx:dx + W, :].reshape(HWt, cin))
                    else:
                        # tiny deep levels (W < 8): copy row by row, no reshape
                        for ii in range(TH):
                            col[ii * W:(ii + 1) * W, dx * cin:(dx + 1) * cin] = (
                                xp[dy + ii, dx:dx + W, :])
                w_dy = wr[i][dy * 3 * cin:(dy + 1) * 3 * cin, :]
                part = jnp.dot(col[...], w_dy,
                               preferred_element_type=jnp.float32)
                if first_mm:
                    acc_ref[...] = part          # no separate zero-fill pass
                    first_mm = False
                else:
                    acc_ref[...] += part

        acc_ref[...] += b_ref[...]                         # + bias (f32)
        a = acc_ref[...]
        # BN batch-stat partials for this (batch, row-tile) grid point.
        sum_ref[0, 0] = jnp.sum(a, axis=0, keepdims=True)
        sq_ref[0, 0] = jnp.sum(a * a, axis=0, keepdims=True)
        y_ref[0] = a.astype(y_ref.dtype)

    return kernel


def _conv3x3_footprint(th, W, cins, cout):
    b = th * W * cout * 4                      # f32 accumulator scratch
    b += 2 * th * W * cout * 2                 # double-buffered output tile
    for cp in cins:
        b += 2 * th * W * cp * 2               # double-buffered input tile
        b += (th + 2) * (W + 2) * cp * 2       # halo scratch
        b += th * W * 3 * cp * 2               # per-dy im2col scratch
        b += 9 * cp * cout * 2                 # single-buffered weights
    return b


def fused_conv3x3(xs, scales, shifts, ws, b, *, H, W, cout, row_cap=None):
    """Row-tiled 3x3 "same" conv over the (virtual) channel-concat of `xs`.

    xs:      list of (N, H, W, Cp_i) bf16 images (pre-activation if the
             matching scale/shift is given, else already activated).
    scales/shifts: per-input (1, Cp_i) f32 folded-BN params or None.
    ws:      list of (9*Cp_i, Cout_p) bf16 weight slices.
    b:       (1, Cout_p) f32 bias.
    Returns (y (N, H*W, Cout_p) bf16 pre-activation,
             ch_sum (1, Cout_p) f32, ch_sumsq (1, Cout_p) f32).
    """
    n_in = len(xs)
    N = xs[0].shape[0]
    affine = tuple(s is not None for s in scales)
    cins = tuple(x.shape[-1] for x in xs)

    budget, vmem_lim = _vmem_budget()
    TH = _pick_row_tile(H, W, lambda th: _conv3x3_footprint(th, W, cins, cout),
                        budget, align=8, cap=row_cap)
    R = H // TH
    HWt = TH * W

    in_specs, args = [], []
    for i in range(n_in):
        cin = cins[i]
        in_specs.append(pl.BlockSpec((1, TH, W, cin),
                                     lambda n, r: (n, r, 0, 0)))
        in_specs.append(pl.BlockSpec(                       # top halo row
            (1, 1, W, cin),
            lambda n, r: (n, jnp.maximum(r * TH - 1, 0), 0, 0)))
        in_specs.append(pl.BlockSpec(                       # bottom halo row
            (1, 1, W, cin),
            lambda n, r: (n, jnp.minimum((r + 1) * TH, H - 1), 0, 0)))
        args += [xs[i], xs[i], xs[i]]
        if affine[i]:
            in_specs.append(_const_spec((1, cin), lambda n, r: (0, 0)))
            in_specs.append(_const_spec((1, cin), lambda n, r: (0, 0)))
            args += [scales[i], shifts[i]]
        in_specs.append(_const_spec((9 * cin, cout), lambda n, r: (0, 0)))
        args.append(ws[i])
    in_specs.append(_const_spec((1, cout), lambda n, r: (0, 0)))
    args.append(b)

    out_shape = (jax.ShapeDtypeStruct((N, H * W, cout), jnp.bfloat16),
                 jax.ShapeDtypeStruct((N, R, 1, cout), jnp.float32),
                 jax.ShapeDtypeStruct((N, R, 1, cout), jnp.float32))
    out_specs = (pl.BlockSpec((1, HWt, cout), lambda n, r: (n, r, 0)),
                 pl.BlockSpec((1, 1, 1, cout), lambda n, r: (n, r, 0, 0)),
                 pl.BlockSpec((1, 1, 1, cout), lambda n, r: (n, r, 0, 0)))
    scratch = (
        [pltpu.VMEM((TH + 2, W + 2, c), jnp.bfloat16) for c in cins]
        + [pltpu.VMEM((HWt, 3 * c), jnp.bfloat16) for c in cins]
        + [pltpu.VMEM((HWt, cout), jnp.float32)])

    flops = 2 * N * H * W * 9 * sum(cins) * cout
    bytes_acc = (sum(N * H * W * c * 2 + 9 * c * cout * 2 for c in cins)
                 + N * H * W * cout * 2 + 2 * N * R * cout * 4)

    y, psum, psq = pl.pallas_call(
        _make_conv3x3_kernel(n_in, affine, TH, W, cins),
        out_shape=out_shape,
        grid=(N, R),
        in_specs=in_specs,
        out_specs=out_specs,
        scratch_shapes=scratch,
        compiler_params=pltpu.CompilerParams(
            dimension_semantics=("parallel", "parallel"),
            vmem_limit_bytes=int(vmem_lim)),
        cost_estimate=pl.CostEstimate(flops=int(flops), transcendentals=0,
                                      bytes_accessed=int(bytes_acc)),
    )(*args)
    # Tiny per-(batch, row-tile) partial-stat reduction in JAX (keeps both
    # grid axes "parallel"; no serial accumulation inside the kernel).
    return y, jnp.sum(psum, axis=(0, 1)), jnp.sum(psq, axis=(0, 1))


def _conv1x1_kernel(x_ref, s_ref, t_ref, wt_ref, b_ref, o_ref):
    # Fused: BN-apply + ReLU of the last double-conv, then the 1x1 conv as a
    # channel-contracting matmul; output laid out (classes, HW) so the HBM
    # store is lane-dense even for n_classes == 1.
    x = jnp.maximum(x_ref[0].astype(jnp.float32) * s_ref[...] + t_ref[...],
                    0.0).astype(jnp.bfloat16)
    out = lax.dot_general(wt_ref[...], x,
                          dimension_numbers=(((1,), (1,)), ((), ())),
                          preferred_element_type=jnp.float32)
    o_ref[0] = out + b_ref[...]


def fused_conv1x1(x, scale, shift, wt, b, *, H, W, row_cap=None):
    # x: (N, H*W, Cp) bf16 pre-activation; wt: (ncls_p, Cp) bf16; b: (ncls_p, 1)
    N, HW, cp = x.shape
    ncp = wt.shape[0]
    budget, vmem_lim = _vmem_budget()
    fp = lambda th: 2 * th * W * cp * 2 + 2 * th * W * ncp * 4 + ncp * cp * 2
    TH = _pick_row_tile(H, W, fp, budget, align=LANE, cap=row_cap)
    R = H // TH
    HWt = TH * W
    flops = 2 * N * HW * cp * ncp
    bytes_acc = N * HW * cp * 2 + ncp * cp * 2 + N * ncp * HW * 4
    return pl.pallas_call(
        _conv1x1_kernel,
        out_shape=jax.ShapeDtypeStruct((N, ncp, HW), jnp.float32),
        grid=(N, R),
        in_specs=[pl.BlockSpec((1, HWt, cp), lambda n, r: (n, r, 0)),
                  _const_spec((1, cp), lambda n, r: (0, 0)),
                  _const_spec((1, cp), lambda n, r: (0, 0)),
                  _const_spec((ncp, cp), lambda n, r: (0, 0)),
                  _const_spec((ncp, 1), lambda n, r: (0, 0))],
        out_specs=pl.BlockSpec((1, ncp, HWt), lambda n, r: (n, 0, r)),
        compiler_params=pltpu.CompilerParams(
            dimension_semantics=("parallel", "parallel"),
            vmem_limit_bytes=int(vmem_lim)),
        cost_estimate=pl.CostEstimate(flops=int(flops), transcendentals=0,
                                      bytes_accessed=int(bytes_acc)),
    )(x, scale, shift, wt, b)


# ----------------------------- BN fold & JAX glue ---------------------------

def _bn_affine(ch_sum, ch_sq, count, gamma, beta):
    """Fold training-mode BatchNorm (biased batch var) into y*scale + shift."""
    mean = ch_sum / count
    # TODO(synk): E[x^2]-E[x]^2 in f32 can cancel for large-mean activations;
    #             a shifted/Welford formulation would be more robust.
    var = jnp.maximum(ch_sq / count - mean * mean, 0.0)
    scale = gamma * lax.rsqrt(var + EPS)
    shift = beta - mean * scale
    return scale, shift


def _apply_bn_relu(y_flat, scale, shift):
    return jnp.maximum(y_flat.astype(jnp.float32) * scale + shift, 0.0)


def pooled_input(y_flat, scale, shift, H, W):
    # TODO(synk): fold the 2x2 max-pool (with this BN+ReLU) into the consumer
    #             conv's input stage to drop one more HBM round trip.
    N, _, cp = y_flat.shape
    z = _apply_bn_relu(y_flat, scale, shift).reshape(N, H, W, cp)
    p = jnp.max(z.reshape(N, H // 2, 2, W // 2, 2, cp), axis=(2, 4))
    return p.astype(jnp.bfloat16)


def _interp_matrix(osz, isz):
    """1-D bilinear(align_corners=True) interpolation matrix (osz, isz)."""
    if osz > 1 and isz > 1:
        src = jnp.arange(osz, dtype=jnp.float32) * (isz - 1) / (osz - 1)
    else:
        src = jnp.zeros((osz,), jnp.float32)
    i0 = jnp.floor(src).astype(jnp.int32)
    i1 = jnp.minimum(i0 + 1, isz - 1)
    w = src - i0.astype(jnp.float32)
    return (jax.nn.one_hot(i0, isz, dtype=jnp.float32) * (1.0 - w)[:, None]
            + jax.nn.one_hot(i1, isz, dtype=jnp.float32) * w[:, None])


def upsampled_input(y_flat, scale, shift, Hin, Win, Ht, Wt):
    """BN+ReLU -> 2x bilinear(align_corners=True) upsample as two precomputed
    interpolation matmuls (no gathers) -> zero-pad to the skip's size."""
    N, _, cp = y_flat.shape
    z = _apply_bn_relu(y_flat, scale, shift).reshape(N, Hin, Win, cp)
    u = jnp.einsum("oh,nhwc->nowc", _interp_matrix(2 * Hin, Hin), z)
    u = jnp.einsum("pw,nowc->nopc", _interp_matrix(2 * Win, Win), u)
    dy, dx = Ht - u.shape[1], Wt - u.shape[2]
    u = jnp.pad(u, ((0, 0), (dy // 2, dy - dy // 2),
                    (dx // 2, dx - dx // 2), (0, 0)))
    return u.astype(jnp.bfloat16)


# ----------------------------- UNet building blocks -------------------------

def double_conv(inputs, scales, shifts, p, H, W, row_cap=None):
    """Conv3x3->BN->ReLU->Conv3x3->BN->ReLU with each BN+ReLU fused into its
    consumer conv.  Returns (pre-activation y2, folded BN2 scale, shift)."""
    N = inputs[0].shape[0]
    count = float(N * H * W)
    coutp = p["b1"].shape[-1]
    y1, su1, sq1 = fused_conv3x3(inputs, scales, shifts, p["w1"], p["b1"],
                                 H=H, W=W, cout=coutp, row_cap=row_cap)
    sc1, sh1 = _bn_affine(su1, sq1, count, p["g1"], p["bt1"])
    y1_img = y1.reshape(N, H, W, coutp)
    y2, su2, sq2 = fused_conv3x3([y1_img], [sc1], [sh1], p["w2"], p["b2"],
                                 H=H, W=W, cout=coutp, row_cap=row_cap)
    sc2, sh2 = _bn_affine(su2, sq2, count, p["g2"], p["bt2"])
    return y2, sc2, sh2


# ----------------------------- parameters -----------------------------------

def _conv3x3_params(key, cins_real, cout_real):
    """PyTorch-style init for a conv over the concat of `cins_real` channel
    groups; returns lane-padded per-group weight slices (padding is zero)."""
    cin_total = sum(cins_real)
    bound = 1.0 / (cin_total * 9) ** 0.5
    kw, kb = jax.random.split(key)
    w = jax.random.uniform(kw, (3, 3, cin_total, cout_real), jnp.float32,
                           -bound, bound)
    bb = jax.random.uniform(kb, (cout_real,), jnp.float32, -bound, bound)
    coutp = _rup(cout_real)
    ws, off = [], 0
    for c in cins_real:
        cp = _rup(c)
        wi = jnp.zeros((3, 3, cp, coutp), jnp.float32)
        wi = wi.at[:, :, :c, :cout_real].set(w[:, :, off:off + c, :])
        ws.append(wi.reshape(9 * cp, coutp).astype(jnp.bfloat16))
        off += c
    bp = jnp.zeros((1, coutp), jnp.float32).at[0, :cout_real].set(bb)
    return ws, bp


def _double_conv_params(key, cins_real, cout_real):
    k1, k2 = jax.random.split(key)
    w1, b1 = _conv3x3_params(k1, cins_real, cout_real)
    w2, b2 = _conv3x3_params(k2, [cout_real], cout_real)
    coutp = _rup(cout_real)
    g = jnp.zeros((1, coutp), jnp.float32).at[0, :cout_real].set(1.0)
    z = jnp.zeros((1, coutp), jnp.float32)
    return {"w1": w1, "b1": b1, "g1": g, "bt1": z,
            "w2": w2, "b2": b2, "g2": g, "bt2": z}


def _conv1x1_params(key, cin_real, ncls):
    bound = 1.0 / cin_real ** 0.5
    kw, kb = jax.random.split(key)
    w = jax.random.uniform(kw, (ncls, cin_real), jnp.float32, -bound, bound)
    bb = jax.random.uniform(kb, (ncls,), jnp.float32, -bound, bound)
    cp, ncp = _rup(cin_real), _rup(ncls, 8)
    wt = jnp.zeros((ncp, cp), jnp.float32).at[:ncls, :cin_real].set(w)
    bp = jnp.zeros((ncp, 1), jnp.float32).at[:ncls, 0].set(bb)
    return {"wt": wt.astype(jnp.bfloat16), "b": bp}


def init_unet_params(key, n_channels=1, n_classes=1, nf=8):
    keys = jax.random.split(key, 10)
    return {"inc": _double_conv_params(keys[0], [n_channels], nf),
            "down1": _double_conv_params(keys[1], [nf], nf * 2),
            "down2": _double_conv_params(keys[2], [nf * 2], nf * 4),
            "down3": _double_conv_params(keys[3], [nf * 4], nf * 8),
            "down4": _double_conv_params(keys[4], [nf * 8], nf * 8),
            # decoder convs see torch.cat([skip, upsampled], dim=1): weight
            # slices in that order (the concat itself is fused into the conv).
            "up1": _double_conv_params(keys[5], [nf * 8, nf * 8], nf * 4),
            "up2": _double_conv_params(keys[6], [nf * 4, nf * 4], nf * 2),
            "up3": _double_conv_params(keys[7], [nf * 2, nf * 2], nf),
            "up4": _double_conv_params(keys[8], [nf, nf], nf),
            "outc": _conv1x1_params(keys[9], nf, n_classes)}


# ----------------------------- forward ---------------------------------------

def unet_forward(x_nchw, params, *, n_classes=1, row_cap=None):
    N, Cin, H, W = x_nchw.shape
    assert H % 16 == 0 and W % 16 == 0, "UNet needs H, W divisible by 16"
    cinp = _rup(Cin)
    x = jnp.transpose(x_nchw, (0, 2, 3, 1)).astype(jnp.bfloat16)    # NCHW->NHWC
    x = jnp.pad(x, ((0, 0), (0, 0), (0, 0), (0, cinp - Cin)))

    dc = lambda xs, ss, ts, p, h, w: double_conv(xs, ss, ts, p, h, w,
                                                 row_cap=row_cap)

    # ---- encoder (each block keeps pre-activation + folded BN params) ----
    y1, s1, t1 = dc([x], [None], [None], params["inc"], H, W)
    p1 = pooled_input(y1, s1, t1, H, W)
    y2, s2, t2 = dc([p1], [None], [None], params["down1"], H // 2, W // 2)
    p2 = pooled_input(y2, s2, t2, H // 2, W // 2)
    y3, s3, t3 = dc([p2], [None], [None], params["down2"], H // 4, W // 4)
    p3 = pooled_input(y3, s3, t3, H // 4, W // 4)
    y4, s4, t4 = dc([p3], [None], [None], params["down3"], H // 8, W // 8)
    p4 = pooled_input(y4, s4, t4, H // 8, W // 8)
    y5, s5, t5 = dc([p4], [None], [None], params["down4"], H // 16, W // 16)

    # ---- decoder: skip's BN+ReLU fused into the conv, concat fused ----
    def up(y_lo, s_lo, t_lo, y_sk, s_sk, t_sk, Hs, Ws, Hl, Wl, p):
        u = upsampled_input(y_lo, s_lo, t_lo, Hl, Wl, Hs, Ws)
        skip = y_sk.reshape(y_sk.shape[0], Hs, Ws, y_sk.shape[-1])
        return dc([skip, u], [s_sk, None], [t_sk, None], p, Hs, Ws)

    d1, ds1, dt1 = up(y5, s5, t5, y4, s4, t4, H // 8, W // 8,
                      H // 16, W // 16, params["up1"])
    d2, ds2, dt2 = up(d1, ds1, dt1, y3, s3, t3, H // 4, W // 4,
                      H // 8, W // 8, params["up2"])
    d3, ds3, dt3 = up(d2, ds2, dt2, y2, s2, t2, H // 2, W // 2,
                      H // 4, W // 4, params["up3"])
    d4, ds4, dt4 = up(d3, ds3, dt3, y1, s1, t1, H, W,
                      H // 2, W // 2, params["up4"])

    out = fused_conv1x1(d4, ds4, dt4, params["outc"]["wt"],
                        params["outc"]["b"], H=H, W=W, row_cap=row_cap)
    return out[:, :n_classes, :].reshape(N, n_classes, H, W)


# ----------------------------- self-checks / main ----------------------------

def _check_conv3x3_against_lax(row_cap):
    """Validate the fused conv kernel (halo exchange, BN/ReLU fusion, fused
    two-input concat) against lax.conv_general_dilated."""
    ks = jax.random.split(jax.random.PRNGKey(1), 7)
    Np, Hc, Wc, C = 1, 16, 16, LANE
    x0 = jax.random.normal(ks[0], (Np, Hc, Wc, C), jnp.float32)
    x1 = jax.random.normal(ks[1], (Np, Hc, Wc, C), jnp.float32)
    s0 = jax.random.normal(ks[2], (1, C), jnp.float32) * 0.5 + 1.0
    t0 = jax.random.normal(ks[3], (1, C), jnp.float32) * 0.5
    w0 = jax.random.normal(ks[4], (3, 3, C, C), jnp.float32) * 0.05
    w1 = jax.random.normal(ks[5], (3, 3, C, C), jnp.float32) * 0.05
    bias = jax.random.normal(ks[6], (1, C), jnp.float32) * 0.1

    x0b, x1b = x0.astype(jnp.bfloat16), x1.astype(jnp.bfloat16)
    w0b = w0.astype(jnp.bfloat16).reshape(9 * C, C)
    w1b = w1.astype(jnp.bfloat16).reshape(9 * C, C)

    y, _, _ = fused_conv3x3([x0b, x1b], [s0, None], [t0, None], [w0b, w1b],
                            bias, H=Hc, W=Wc, cout=C, row_cap=row_cap)
    y = y.reshape(Np, Hc, Wc, C).astype(jnp.float32)

    a0 = jnp.maximum(x0b.astype(jnp.float32) * s0 + t0, 0.0
                     ).astype(jnp.bfloat16).astype(jnp.float32)
    lhs = jnp.concatenate([a0, x1b.astype(jnp.float32)], axis=-1)
    rhs = jnp.concatenate(
        [w0b.astype(jnp.float32).reshape(3, 3, C, C),
         w1b.astype(jnp.float32).reshape(3, 3, C, C)], axis=2)
    ref = lax.conv_general_dilated(
        lhs, rhs, window_strides=(1, 1), padding="SAME",
        dimension_numbers=("NHWC", "HWIO", "NHWC")) + bias.reshape(1, 1, 1, C)
    err = float(jnp.max(jnp.abs(y - ref)))
    assert err < 5e-2, f"conv3x3 mismatch (row_cap={row_cap}): {err}"


if __name__ == "__main__":
    # Unit-check the fused conv kernel untiled and with a forced 4-row tile
    # (exercises the halo exchange and the fused skip-concat path).
    _check_conv3x3_against_lax(row_cap=None)
    _check_conv3x3_against_lax(row_cap=4)

    key = jax.random.PRNGKey(0)
    kx, kp = jax.random.split(key)
    N, C, H, W = 2, 1, 16, 16              # small shapes; UNet needs H, W % 16 == 0
    x = jax.random.normal(kx, (N, C, H, W), jnp.float32)
    params = init_unet_params(kp, n_channels=C, n_classes=1, nf=8)

    fwd = jax.jit(unet_forward, static_argnames=("n_classes", "row_cap"))
    out = jax.block_until_ready(fwd(x, params))
    assert out.shape == (N, 1, H, W), out.shape
    assert bool(jnp.all(jnp.isfinite(out)))
    print("KERNEL_OK")
</pallas_src>

<mosaic_0001>
module attributes {stable_mosaic.version = 11 : i64} {
  func.func @kernel(%arg0: i32, %arg1: i32, %arg2: memref<1x16x16x128xbf16, #tpu.memory_space<vmem>>, %arg3: memref<1x1x16x128xbf16, #tpu.memory_space<vmem>>, %arg4: memref<1x1x16x128xbf16, #tpu.memory_space<vmem>>, %arg5: memref<1x128xf32, #tpu.memory_space<vmem>>, %arg6: memref<1x128xf32, #tpu.memory_space<vmem>>, %arg7: memref<1152x128xbf16, #tpu.memory_space<vmem>>, %arg8: memref<1x16x16x128xbf16, #tpu.memory_space<vmem>>, %arg9: memref<1x1x16x128xbf16, #tpu.memory_space<vmem>>, %arg10: memref<1x1x16x128xbf16, #tpu.memory_space<vmem>>, %arg11: memref<1152x128xbf16, #tpu.memory_space<vmem>>, %arg12: memref<1x128xf32, #tpu.memory_space<vmem>>, %arg13: memref<1x256x128xbf16, #tpu.memory_space<vmem>>, %arg14: memref<1x1x1x128xf32, #tpu.memory_space<vmem>>, %arg15: memref<1x1x1x128xf32, #tpu.memory_space<vmem>>, %arg16: memref<18x18x128xbf16, #tpu.memory_space<vmem>>, %arg17: memref<18x18x128xbf16, #tpu.memory_space<vmem>>, %arg18: memref<256x384xbf16, #tpu.memory_space<vmem>>, %arg19: memref<256x384xbf16, #tpu.memory_space<vmem>>, %arg20: memref<256x128xf32, #tpu.memory_space<vmem>>) attributes {dimension_semantics = [#tpu.dimension_semantics<parallel>, #tpu.dimension_semantics<parallel>], iteration_bounds = array<i64: 1, 1>, scalar_prefetch = 0 : i64, scratch_operands = 5 : i64, tpu.core_type = #tpu.core_type<tc>, window_params = [{transform_indices = @transform_0, window_bounds = array<i64: 1, 16, 16, 128>}, {transform_indices = @transform_1, window_bounds = array<i64: 1, 1, 16, 128>}, {transform_indices = @transform_2, window_bounds = array<i64: 1, 1, 16, 128>}, {pipeline_mode = #tpu.pipeline_mode<synchronous>, transform_indices = @transform_3, window_bounds = array<i64: 1, 128>}, {pipeline_mode = #tpu.pipeline_mode<synchronous>, transform_indices = @transform_4, window_bounds = array<i64: 1, 128>}, {pipeline_mode = #tpu.pipeline_mode<synchronous>, transform_indices = @transform_5, window_bounds = array<i64: 1152, 128>}, {transform_indices = @transform_6, window_bounds = array<i64: 1, 16, 16, 128>}, {transform_indices = @transform_7, window_bounds = array<i64: 1, 1, 16, 128>}, {transform_indices = @transform_8, window_bounds = array<i64: 1, 1, 16, 128>}, {pipeline_mode = #tpu.pipeline_mode<synchronous>, transform_indices = @transform_9, window_bounds = array<i64: 1152, 128>}, {pipeline_mode = #tpu.pipeline_mode<synchronous>, transform_indices = @transform_10, window_bounds = array<i64: 1, 128>}, {transform_indices = @transform_11, window_bounds = array<i64: 1, 256, 128>}, {transform_indices = @transform_12, window_bounds = array<i64: 1, 1, 1, 128>}, {transform_indices = @transform_13, window_bounds = array<i64: 1, 1, 1, 128>}]} {
    %c0 = arith.constant 0 : index
    %c0_0 = arith.constant 0 : index
    %0 = vector.load %arg5[%c0, %c0_0] : memref<1x128xf32, #tpu.memory_space<vmem>>, vector<1x128xf32>
    %1 = vector.shape_cast %0 : vector<1x128xf32> to vector<1x1x128xf32>
    %c0_1 = arith.constant 0 : index
    %c0_2 = arith.constant 0 : index
    %2 = vector.load %arg6[%c0_1, %c0_2] : memref<1x128xf32, #tpu.memory_space<vmem>>, vector<1x128xf32>
    %3 = vector.shape_cast %2 : vector<1x128xf32> to vector<1x1x128xf32>
    %c0_3 = arith.constant 0 : index
    %c0_4 = arith.constant 0 : index
    %c0_5 = arith.constant 0 : index
    %c0_6 = arith.constant 0 : index
    %4 = vector.load %arg2[%c0_3, %c0_4, %c0_5, %c0_6] : memref<1x16x16x128xbf16, #tpu.memory_space<vmem>>, vector<1x16x16x128xbf16>
    %5 = vector.shape_cast %4 : vector<1x16x16x128xbf16> to vector<16x16x128xbf16>
    %6 = arith.extf %5 : vector<16x16x128xbf16> to vector<16x16x128xf32>
    %7 = vector.broadcast %1 : vector<1x1x128xf32> to vector<16x16x128xf32>
    %8 = arith.mulf %6, %7 : vector<16x16x128xf32>
    %9 = vector.broadcast %3 : vector<1x1x128xf32> to vector<16x16x128xf32>
    %10 = arith.addf %8, %9 : vector<16x16x128xf32>
    %cst = arith.constant 0.000000e+00 : f32
    %11 = vector.broadcast %cst : f32 to vector<16x16x128xf32>
    %12 = arith.maximumf %10, %11 : vector<16x16x128xf32>
    %13 = arith.truncf %12 : vector<16x16x128xf32> to vector<16x16x128xbf16>
    %c0_7 = arith.constant 0 : index
    %c0_8 = arith.constant 0 : index
    %c0_9 = arith.constant 0 : index
    %c0_10 = arith.constant 0 : index
    %14 = vector.load %arg3[%c0_7, %c0_8, %c0_9, %c0_10] : memref<1x1x16x128xbf16, #tpu.memory_space<vmem>>, vector<1x1x16x128xbf16>
    %15 = vector.shape_cast %14 : vector<1x1x16x128xbf16> to vector<1x16x128xbf16>
    %16 = arith.extf %15 : vector<1x16x128xbf16> to vector<1x16x128xf32>
    %17 = vector.broadcast %1 : vector<1x1x128xf32> to vector<1x16x128xf32>
    %18 = arith.mulf %16, %17 : vector<1x16x128xf32>
    %19 = vector.broadcast %3 : vector<1x1x128xf32> to vector<1x16x128xf32>
    %20 = arith.addf %18, %19 : vector<1x16x128xf32>
    %cst_11 = arith.constant 0.000000e+00 : f32
    %21 = vector.broadcast %cst_11 : f32 to vector<1x16x128xf32>
    %22 = arith.maximumf %20, %21 : vector<1x16x128xf32>
    %23 = arith.truncf %22 : vector<1x16x128xf32> to vector<1x16x128xbf16>
    %c0_12 = arith.constant 0 : index
    %c0_13 = arith.constant 0 : index
    %c0_14 = arith.constant 0 : index
    %c0_15 = arith.constant 0 : index
    %24 = vector.load %arg4[%c0_12, %c0_13, %c0_14, %c0_15] : memref<1x1x16x128xbf16, #tpu.memory_space<vmem>>, vector<1x1x16x128xbf16>
    %25 = vector.shape_cast %24 : vector<1x1x16x128xbf16> to vector<1x16x128xbf16>
    %26 = arith.extf %25 : vector<1x16x128xbf16> to vector<1x16x128xf32>
    %27 = vector.broadcast %1 : vector<1x1x128xf32> to vector<1x16x128xf32>
    %28 = arith.mulf %26, %27 : vector<1x16x128xf32>
    %29 = vector.broadcast %3 : vector<1x1x128xf32> to vector<1x16x128xf32>
    %30 = arith.addf %28, %29 : vector<1x16x128xf32>
    %cst_16 = arith.constant 0.000000e+00 : f32
    %31 = vector.broadcast %cst_16 : f32 to vector<1x16x128xf32>
    %32 = arith.maximumf %30, %31 : vector<1x16x128xf32>
    %33 = arith.truncf %32 : vector<1x16x128xf32> to vector<1x16x128xbf16>
    %cst_17 = arith.constant 0.000000e+00 : bf16
    %34 = vector.broadcast %cst_17 : bf16 to vector<1x16x128xbf16>
    %c0_i32 = arith.constant 0 : i32
    %35 = arith.cmpi sgt, %arg1, %c0_i32 : i32
    %36 = arith.select %35, %23, %34 : vector<1x16x128xbf16>
    %c0_i32_18 = arith.constant 0 : i32
    %37 = arith.cmpi slt, %arg1, %c0_i32_18 : i32
    %38 = arith.select %37, %33, %34 : vector<1x16x128xbf16>
    %cst_19 = arith.constant 0.000000e+00 : bf16
    %39 = vector.broadcast %cst_19 : bf16 to vector<18x1x128xbf16>
    %c0_20 = arith.constant 0 : index
    %c0_21 = arith.constant 0 : index
    %c0_22 = arith.constant 0 : index
    %40 = vector.load %arg16[%c0_20, %c0_21, %c0_22] : memref<18x18x128xbf16, #tpu.memory_space<vmem>>, vector<18x1x128xbf16>
    tpu.vector_store %arg16[%c0_20, %c0_21, %c0_22], %39 {strides = array<i32>} : memref<18x18x128xbf16, #tpu.memory_space<vmem>>, vector<18x1x128xbf16>,
    %c0_23 = arith.constant 0 : index
    %c17 = arith.constant 17 : index
    %c0_24 = arith.constant 0 : index
    %41 = vector.load %arg16[%c0_23, %c17, %c0_24] : memref<18x18x128xbf16, #tpu.memory_space<vmem>>, vector<18x1x128xbf16>
    tpu.vector_store %arg16[%c0_23, %c17, %c0_24], %39 {strides = array<i32>} : memref<18x18x128xbf16, #tpu.memory_space<vmem>>, vector<18x1x128xbf16>,
    %c0_25 = arith.constant 0 : index
    %c1 = arith.constant 1 : index
    %c0_26 = arith.constant 0 : index
    %42 = vector.load %arg16[%c0_25, %c1, %c0_26] : memref<18x18x128xbf16, #tpu.memory_space<vmem>>, vector<1x16x128xbf16>
    tpu.vector_store %arg16[%c0_25, %c1, %c0_26], %36 {strides = array<i32>} : memref<18x18x128xbf16, #tpu.memory_space<vmem>>, vector<1x16x128xbf16>,
    %c17_27 = arith.constant 17 : index
    %c1_28 = arith.constant 1 : index
    %c0_29 = arith.constant 0 : index
    %43 = vector.load %arg16[%c17_27, %c1_28, %c0_29] : memref<18x18x128xbf16, #tpu.memory_space<vmem>>, vector<1x16x128xbf16>
    tpu.vector_store %arg16[%c17_27, %c1_28, %c0_29], %38 {strides = array<i32>} : memref<18x18x128xbf16, #tpu.memory_space<vmem>>, vector<1x16x128xbf16>,
    %c1_30 = arith.constant 1 : index
    %c1_31 = arith.constant 1 : index
    %c0_32 = arith.constant 0 : index
    %44 = vector.load %arg16[%c1_30, %c1_31, %c0_32] : memref<18x18x128xbf16, #tpu.memory_space<vmem>>, vector<16x16x128xbf16>
    tpu.vector_store %arg16[%c1_30, %c1_31, %c0_32], %13 {strides = array<i32>} : memref<18x18x128xbf16, #tpu.memory_space<vmem>>, vector<16x16x128xbf16>,
    %c0_33 = arith.constant 0 : index
    %c0_34 = arith.constant 0 : index
    %c0_35 = arith.constant 0 : index
    %45 = vector.load %arg16[%c0_33, %c0_34, %c0_35] : memref<18x18x128xbf16, #tpu.memory_space<vmem>>, vector<16x16x128xbf16>
    %46 = vector.shape_cast %45 : vector<16x16x128xbf16> to vector<256x128xbf16>
    %c0_36 = arith.constant 0 : index
    %c0_37 = arith.constant 0 : index
    %47 = vector.load %arg18[%c0_36, %c0_37] : memref<256x384xbf16, #tpu.memory_space<vmem>>, vector<256x128xbf16>
    tpu.vector_store %arg18[%c0_36, %c0_37], %46 {strides = array<i32>} : memref<256x384xbf16, #tpu.memory_space<vmem>>, vector<256x128xbf16>,
    %c0_38 = arith.constant 0 : index
    %c1_39 = arith.constant 1 : index
    %c0_40 = arith.constant 0 : index
    %48 = vector.load %arg16[%c0_38, %c1_39, %c0_40] : memref<18x18x128xbf16, #tpu.memory_space<vmem>>, vector<16x16x128xbf16>
    %49 = vector.shape_cast %48 : vector<16x16x128xbf16> to vector<256x128xbf16>
    %c0_41 = arith.constant 0 : index
    %c128 = arith.constant 128 : index
    %50 = vector.load %arg18[%c0_41, %c128] : memref<256x384xbf16, #tpu.memory_space<vmem>>, vector<256x128xbf16>
    tpu.vector_store %arg18[%c0_41, %c128], %49 {strides = array<i32>} : memref<256x384xbf16, #tpu.memory_space<vmem>>, vector<256x128xbf16>,
    %c0_42 = arith.constant 0 : index
    %c2 = arith.constant 2 : index
    %c0_43 = arith.constant 0 : index
    %51 = vector.load %arg16[%c0_42, %c2, %c0_43] : memref<18x18x128xbf16, #tpu.memory_space<vmem>>, vector<16x16x128xbf16>
    %52 = vector.shape_cast %51 : vector<16x16x128xbf16> to vector<256x128xbf16>
    %c0_44 = arith.constant 0 : index
    %c256 = arith.constant 256 : index
    %53 = vector.load %arg18[%c0_44, %c256] : memref<256x384xbf16, #tpu.memory_space<vmem>>, vector<256x128xbf16>
    tpu.vector_store %arg18[%c0_44, %c256], %52 {strides = array<i32>} : memref<256x384xbf16, #tpu.memory_space<vmem>>, vector<256x128xbf16>,
    %c0_45 = arith.constant 0 : index
    %c0_46 = arith.constant 0 : index
    %54 = vector.load %arg7[%c0_45, %c0_46] : memref<1152x128xbf16, #tpu.memory_space<vmem>>, vector<384x128xbf16>
    %c0_47 = arith.constant 0 : index
    %c0_48 = arith.constant 0 : index
    %55 = vector.load %arg18[%c0_47, %c0_48] : memref<256x384xbf16, #tpu.memory_space<vmem>>, vector<256x384xbf16>
    %cst_49 = arith.constant dense<0.000000e+00> : vector<256x128xf32>
    %56 = tpu.matmul %55, %54, %cst_49 {dimension_numbers = #tpu.dot_dimension_numbers<[1], [0], [0], [1], [0, 0, 1, 1], [], []>} : vector<256x384xbf16>, vector<384x128xbf16>, vector<256x128xf32> -> vector<256x128xf32>
    %c0_50 = arith.constant 0 : index
    %c0_51 = arith.constant 0 : index
    %57 = vector.load %arg20[%c0_50, %c0_51] : memref<256x128xf32, #tpu.memory_space<vmem>>, vector<256x128xf32>
    tpu.vector_store %arg20[%c0_50, %c0_51], %56 {strides = array<i32>} : memref<256x128xf32, #tpu.memory_space<vmem>>, vector<256x128xf32>,
    %c1_52 = arith.constant 1 : index
    %c0_53 = arith.constant 0 : index
    %c0_54 = arith.constant 0 : index
    %58 = vector.load %arg16[%c1_52, %c0_53, %c0_54] : memref<18x18x128xbf16, #tpu.memory_space<vmem>>, vector<16x16x128xbf16>
    %59 = vector.shape_cast %58 : vector<16x16x128xbf16> to vector<256x128xbf16>
    %c0_55 = arith.constant 0 : index
    %c0_56 = arith.constant 0 : index
    %60 = vector.load %arg18[%c0_55, %c0_56] : memref<256x384xbf16, #tpu.memory_space<vmem>>, vector<256x128xbf16>
    tpu.vector_store %arg18[%c0_55, %c0_56], %59 {strides = array<i32>} : memref<256x384xbf16, #tpu.memory_space<vmem>>, vector<256x128xbf16>,
    %c1_57 = arith.constant 1 : index
    %c1_58 = arith.constant 1 : index
    %c0_59 = arith.constant 0 : index
    %61 = vector.load %arg16[%c1_57, %c1_58, %c0_59] : memref<18x18x128xbf16, #tpu.memory_space<vmem>>, vector<16x16x128xbf16>
    %62 = vector.shape_cast %61 : vector<16x16x128xbf16> to vector<256x128xbf16>
    %c0_60 = arith.constant 0 : index
    %c128_61 = arith.constant 128 : index
    %63 = vector.load %arg18[%c0_60, %c128_61] : memref<256x384xbf16, #tpu.memory_space<vmem>>, vector<256x128xbf16>
    tpu.vector_store %arg18[%c0_60, %c128_61], %62 {strides = array<i32>} : memref<256x384xbf16, #tpu.memory_space<vmem>>, vector<256x128xbf16>,
    %c1_62 = arith.constant 1 : index
    %c2_63 = arith.constant 2 : index
    %c0_64 = arith.constant 0 : index
    %64 = vector.load %arg16[%c1_62, %c2_63, %c0_64] : memref<18x18x128xbf16, #tpu.memory_space<vmem>>, vector<16x16x128xbf16>
    %65 = vector.shape_cast %64 : vector<16x16x128xbf16> to vector<256x128xbf16>
    %c0_65 = arith.constant 0 : index
    %c256_66 = arith.constant 256 : index
    %66 = vector.load %arg18[%c0_65, %c256_66] : memref<256x384xbf16, #tpu.memory_space<vmem>>, vector<256x128xbf16>
    tpu.vector_store %arg18[%c0_65, %c256_66], %65 {strides = array<i32>} : memref<256x384xbf16, #tpu.memory_space<vmem>>, vector<256x128xbf16>,
    %c384 = arith.constant 384 : index
    %c0_67 = arith.constant 0 : index
    %67 = vector.load %arg7[%c384, %c0_67] : memref<1152x128xbf16, #tpu.memory_space<vmem>>, vector<384x128xbf16>
    %c0_68 = arith.constant 0 : index
    %c0_69 = arith.constant 0 : index
    %68 = vector.load %arg18[%c0_68, %c0_69] : memref<256x384xbf16, #tpu.memory_space<vmem>>, vector<256x384xbf16>
    %cst_70 = arith.constant dense<0.000000e+00> : vector<256x128xf32>
    %69 = tpu.matmul %68, %67, %cst_70 {dimension_numbers = #tpu.dot_dimension_numbers<[1], [0], [0], [1], [0, 0, 1, 1], [], []>} : vector<256x384xbf16>, vector<384x128xbf16>, vector<256x128xf32> -> vector<256x128xf32>
    %c0_71 = arith.constant 0 : index
    %c0_72 = arith.constant 0 : index
    %70 = vector.load %arg20[%c0_71, %c0_72] : memref<256x128xf32, #tpu.memory_space<vmem>>, vector<256x128xf32>
    %71 = arith.addf %70, %69 : vector<256x128xf32>
    %c0_73 = arith.constant 0 : index
    %c0_74 = arith.constant 0 : index
    %72 = vector.load %arg20[%c0_73, %c0_74] : memref<256x128xf32, #tpu.memory_space<vmem>>, vector<256x128xf32>
    tpu.vector_store %arg20[%c0_73, %c0_74], %71 {strides = array<i32>} : memref<256x128xf32, #tpu.memory_space<vmem>>, vector<256x128xf32>,
    %c2_75 = arith.constant 2 : index
    %c0_76 = arith.constant 0 : index
    %c0_77 = arith.constant 0 : index
    %73 = vector.load %arg16[%c2_75, %c0_76, %c0_77] : memref<18x18x128xbf16, #tpu.memory_space<vmem>>, vector<16x16x128xbf16>
    %74 = vector.shape_cast %73 : vector<16x16x128xbf16> to vector<256x128xbf16>
    %c0_78 = arith.constant 0 : index
    %c0_79 = arith.constant 0 : index
    %75 = vector.load %arg18[%c0_78, %c0_79] : memref<256x384xbf16, #tpu.memory_space<vmem>>, vector<256x128xbf16>
    tpu.vector_store %arg18[%c0_78, %c0_79], %74 {strides = array<i32>} : memref<256x384xbf16, #tpu.memory_space<vmem>>, vector<256x128xbf16>,
    %c2_80 = arith.constant 2 : index
    %c1_81 = arith.constant 1 : index
    %c0_82 = arith.constant 0 : index
    %76 = vector.load %arg16[%c2_80, %c1_81, %c0_82] : memref<18x18x128xbf16, #tpu.memory_space<vmem>>, vector<16x16x128xbf16>
    %77 = vector.shape_cast %76 : vector<16x16x128xbf16> to vector<256x128xbf16>
    %c0_83 = arith.constant 0 : index
    %c128_84 = arith.constant 128 : index
    %78 = vector.load %arg18[%c0_83, %c128_84] : memref<256x384xbf16, #tpu.memory_space<vmem>>, vector<256x128xbf16>
    tpu.vector_store %arg18[%c0_83, %c128_84], %77 {strides = array<i32>} : memref<256x384xbf16, #tpu.memory_space<vmem>>, vector<256x128xbf16>,
    %c2_85 = arith.constant 2 : index
    %c2_86 = arith.constant 2 : index
    %c0_87 = arith.constant 0 : index
    %79 = vector.load %arg16[%c2_85, %c2_86, %c0_87] : memref<18x18x128xbf16, #tpu.memory_space<vmem>>, vector<16x16x128xbf16>
    %80 = vector.shape_cast %79 : vector<16x16x128xbf16> to vector<256x128xbf16>
    %c0_88 = arith.constant 0 : index
    %c256_89 = arith.constant 256 : index
    %81 = vector.load %arg18[%c0_88, %c256_89] : memref<256x384xbf16, #tpu.memory_space<vmem>>, vector<256x128xbf16>
    tpu.vector_store %arg18[%c0_88, %c256_89], %80 {strides = array<i32>} : memref<256x384xbf16, #tpu.memory_space<vmem>>, vector<256x128xbf16>,
    %c768 = arith.constant 768 : index
    %c0_90 = arith.constant 0 : index
    %82 = vector.load %arg7[%c768, %c0_90] : memref<1152x128xbf16, #tpu.memory_space<vmem>>, vector<384x128xbf16>
    %c0_91 = arith.constant 0 : index
    %c0_92 = arith.constant 0 : index
    %83 = vector.load %arg18[%c0_91, %c0_92] : memref<256x384xbf16, #tpu.memory_space<vmem>>, vector<256x384xbf16>
    %cst_93 = arith.constant dense<0.000000e+00> : vector<256x128xf32>
    %84 = tpu.matmul %83, %82, %cst_93 {dimension_numbers = #tpu.dot_dimension_numbers<[1], [0], [0], [1], [0, 0, 1, 1], [], []>} : vector<256x384xbf16>, vector<384x128xbf16>, vector<256x128xf32> -> vector<256x128xf32>
    %c0_94 = arith.constant 0 : index
    %c0_95 = arith.constant 0 : index
    %85 = vector.load %arg20[%c0_94, %c0_95] : memref<256x128xf32, #tpu.memory_space<vmem>>, vector<256x128xf32>
    %86 = arith.addf %85, %84 : vector<256x128xf32>
    %c0_96 = arith.constant 0 : index
    %c0_97 = arith.constant 0 : index
    %87 = vector.load %arg20[%c0_96, %c0_97] : memref<256x128xf32, #tpu.memory_space<vmem>>, vector<256x128xf32>
    tpu.vector_store %arg20[%c0_96, %c0_97], %86 {strides = array<i32>} : memref<256x128xf32, #tpu.memory_space<vmem>>, vector<256x128xf32>,
    %c0_98 = arith.constant 0 : index
    %c0_99 = arith.constant 0 : index
    %c0_100 = arith.constant 0 : index
    %c0_101 = arith.constant 0 : index
    %88 = vector.load %arg8[%c0_98, %c0_99, %c0_100, %c0_101] : memref<1x16x16x128xbf16, #tpu.memory_space<vmem>>, vector<1x16x16x128xbf16>
    %89 = vector.shape_cast %88 : vector<1x16x16x128xbf16> to vector<16x16x128xbf16>
    %c0_102 = arith.constant 0 : index
    %c0_103 = arith.constant 0 : index
    %c0_104 = arith.constant 0 : index
    %c0_105 = arith.constant 0 : index
    %90 = vector.load %arg9[%c0_102, %c0_103, %c0_104, %c0_105] : memref<1x1x16x128xbf16, #tpu.memory_space<vmem>>, vector<1x1x16x128xbf16>
    %91 = vector.shape_cast %90 : vector<1x1x16x128xbf16> to vector<1x16x128xbf16>
    %c0_106 = arith.constant 0 : index
    %c0_107 = arith.constant 0 : index
    %c0_108 = arith.constant 0 : index
    %c0_109 = arith.constant 0 : index
    %92 = vector.load %arg10[%c0_106, %c0_107, %c0_108, %c0_109] : memref<1x1x16x128xbf16, #tpu.memory_space<vmem>>, vector<1x1x16x128xbf16>
    %93 = vector.shape_cast %92 : vector<1x1x16x128xbf16> to vector<1x16x128xbf16>
    %cst_110 = arith.constant 0.000000e+00 : bf16
    %94 = vector.broadcast %cst_110 : bf16 to vector<1x16x128xbf16>
    %c0_i32_111 = arith.constant 0 : i32
    %95 = arith.cmpi sgt, %arg1, %c0_i32_111 : i32
    %96 = arith.select %95, %91, %94 : vector<1x16x128xbf16>
    %c0_i32_112 = arith.constant 0 : i32
    %97 = arith.cmpi slt, %arg1, %c0_i32_112 : i32
    %98 = arith.select %97, %93, %94 : vector<1x16x128xbf16>
    %cst_113 = arith.constant 0.000000e+00 : bf16
    %99 = vector.broadcast %cst_113 : bf16 to vector<18x1x128xbf16>
    %c0_114 = arith.constant 0 : index
    %c0_115 = arith.constant 0 : index
    %c0_116 = arith.constant 0 : index
    %100 = vector.load %arg17[%c0_114, %c0_115, %c0_116] : memref<18x18x128xbf16, #tpu.memory_space<vmem>>, vector<18x1x128xbf16>
    tpu.vector_store %arg17[%c0_114, %c0_115, %c0_116], %99 {strides = array<i32>} : memref<18x18x128xbf16, #tpu.memory_space<vmem>>, vector<18x1x128xbf16>,
    %c0_117 = arith.constant 0 : index
    %c17_118 = arith.constant 17 : index
    %c0_119 = arith.constant 0 : index
    %101 = vector.load %arg17[%c0_117, %c17_118, %c0_119] : memref<18x18x128xbf16, #tpu.memory_space<vmem>>, vector<18x1x128xbf16>
    tpu.vector_store %arg17[%c0_117, %c17_118, %c0_119], %99 {strides = array<i32>} : memref<18x18x128xbf16, #tpu.memory_space<vmem>>, vector<18x1x128xbf16>,
    %c0_120 = arith.constant 0 : index
    %c1_121 = arith.constant 1 : index
    %c0_122 = arith.constant 0 : index
    %102 = vector.load %arg17[%c0_120, %c1_121, %c0_122] : memref<18x18x128xbf16, #tpu.memory_space<vmem>>, vector<1x16x128xbf16>
    tpu.vector_store %arg17[%c0_120, %c1_121, %c0_122], %96 {strides = array<i32>} : memref<18x18x128xbf16, #tpu.memory_space<vmem>>, vector<1x16x128xbf16>,
    %c17_123 = arith.constant 17 : index
    %c1_124 = arith.constant 1 : index
    %c0_125 = arith.constant 0 : index
    %103 = vector.load %arg17[%c17_123, %c1_124, %c0_125] : memref<18x18x128xbf16, #tpu.memory_space<vmem>>, vector<1x16x128xbf16>
    tpu.vector_store %arg17[%c17_123, %c1_124, %c0_125], %98 {strides = array<i32>} : memref<18x18x128xbf16, #tpu.memory_space<vmem>>, vector<1x16x128xbf16>,
    %c1_126 = arith.constant 1 : index
    %c1_127 = arith.constant 1 : index
    %c0_128 = arith.constant 0 : index
    %104 = vector.load %arg17[%c1_126, %c1_127, %c0_128] : memref<18x18x128xbf16, #tpu.memory_space<vmem>>, vector<16x16x128xbf16>
    tpu.vector_store %arg17[%c1_126, %c1_127, %c0_128], %89 {strides = array<i32>} : memref<18x18x128xbf16, #tpu.memory_space<vmem>>, vector<16x16x128xbf16>,
    %c0_129 = arith.constant 0 : index
    %c0_130 = arith.constant 0 : index
    %c0_131 = arith.constant 0 : index
    %105 = vector.load %arg17[%c0_129, %c0_130, %c0_131] : memref<18x18x128xbf16, #tpu.memory_space<vmem>>, vector<16x16x128xbf16>
    %106 = vector.shape_cast %105 : vector<16x16x128xbf16> to vector<256x128xbf16>
    %c0_132 = arith.constant 0 : index
    %c0_133 = arith.constant 0 : index
    %107 = vector.load %arg19[%c0_132, %c0_133] : memref<256x384xbf16, #tpu.memory_space<vmem>>, vector<256x128xbf16>
    tpu.vector_store %arg19[%c0_132, %c0_133], %106 {strides = array<i32>} : memref<256x384xbf16, #tpu.memory_space<vmem>>, vector<256x128xbf16>,
    %c0_134 = arith.constant 0 : index
    %c1_135 = arith.constant 1 : index
    %c0_136 = arith.constant 0 : index
    %108 = vector.load %arg17[%c0_134, %c1_135, %c0_136] : memref<18x18x128xbf16, #tpu.memory_space<vmem>>, vector<16x16x128xbf16>
    %109 = vector.shape_cast %108 : vector<16x16x128xbf16> to vector<256x128xbf16>
    %c0_137 = arith.constant 0 : index
    %c128_138 = arith.constant 128 : index
    %110 = vector.load %arg19[%c0_137, %c128_138] : memref<256x384xbf16, #tpu.memory_space<vmem>>, vector<256x128xbf16>
    tpu.vector_store %arg19[%c0_137, %c128_138], %109 {strides = array<i32>} : memref<256x384xbf16, #tpu.memory_space<vmem>>, vector<256x128xbf16>,
    %c0_139 = arith.constant 0 : index
    %c2_140 = arith.constant 2 : index
    %c0_141 = arith.constant 0 : index
    %111 = vector.load %arg17[%c0_139, %c2_140, %c0_141] : memref<18x18x128xbf16, #tpu.memory_space<vmem>>, vector<16x16x128xbf16>
    %112 = vector.shape_cast %111 : vector<16x16x128xbf16> to vector<256x128xbf16>
    %c0_142 = arith.constant 0 : index
    %c256_143 = arith.constant 256 : index
    %113 = vector.load %arg19[%c0_142, %c256_143] : memref<256x384xbf16, #tpu.memory_space<vmem>>, vector<256x128xbf16>
    tpu.vector_store %arg19[%c0_142, %c256_143], %112 {strides = array<i32>} : memref<256x384xbf16, #tpu.memory_space<vmem>>, vector<256x128xbf16>,
    %c0_144 = arith.constant 0 : index
    %c0_145 = arith.constant 0 : index
    %114 = vector.load %arg11[%c0_144, %c0_145] : memref<1152x128xbf16, #tpu.memory_space<vmem>>, vector<384x128xbf16>
    %c0_146 = arith.constant 0 : index
    %c0_147 = arith.constant 0 : index
    %115 = vector.load %arg19[%c0_146, %c0_147] : memref<256x384xbf16, #tpu.memory_space<vmem>>, vector<256x384xbf16>
    %cst_148 = arith.constant dense<0.000000e+00> : vector<256x128xf32>
    %116 = tpu.matmul %115, %114, %cst_148 {dimension_numbers = #tpu.dot_dimension_numbers<[1], [0], [0], [1], [0, 0, 1, 1], [], []>} : vector<256x384xbf16>, vector<384x128xbf16>, vector<256x128xf32> -> vector<256x128xf32>
    %c0_149 = arith.constant 0 : index
    %c0_150 = arith.constant 0 : index
    %117 = vector.load %arg20[%c0_149, %c0_150] : memref<256x128xf32, #tpu.memory_space<vmem>>, vector<256x128xf32>
    %118 = arith.addf %117, %116 : vector<256x128xf32>
    %c0_151 = arith.constant 0 : index
    %c0_152 = arith.constant 0 : index
    %119 = vector.load %arg20[%c0_151, %c0_152] : memref<256x128xf32, #tpu.memory_space<vmem>>, vector<256x128xf32>
    tpu.vector_store %arg20[%c0_151, %c0_152], %118 {strides = array<i32>} : memref<256x128xf32, #tpu.memory_space<vmem>>, vector<256x128xf32>,
    %c1_153 = arith.constant 1 : index
    %c0_154 = arith.constant 0 : index
    %c0_155 = arith.constant 0 : index
    %120 = vector.load %arg17[%c1_153, %c0_154, %c0_155] : memref<18x18x128xbf16, #tpu.memory_space<vmem>>, vector<16x16x128xbf16>
    %121 = vector.shape_cast %120 : vector<16x16x128xbf16> to vector<256x128xbf16>
    %c0_156 = arith.constant 0 : index
    %c0_157 = arith.constant 0 : index
    %122 = vector.load %arg19[%c0_156, %c0_157] : memref<256x384xbf16, #tpu.memory_space<vmem>>, vector<256x128xbf16>
    tpu.vector_store %arg19[%c0_156, %c0_157], %121 {strides = array<i32>} : memref<256x384xbf16, #tpu.memory_space<vmem>>, vector<256x128xbf16>,
    %c1_158 = arith.constant 1 : index
    %c1_159 = arith.constant 1 : index
    %c0_160 = arith.constant 0 : index
    %123 = vector.load %arg17[%c1_158, %c1_159, %c0_160] : memref<18x18x128xbf16, #tpu.memory_space<vmem>>, vector<16x16x128xbf16>
    %124 = vector.shape_cast %123 : vector<16x16x128xbf16> to vector<256x128xbf16>
    %c0_161 = arith.constant 0 : index
    %c128_162 = arith.constant 128 : index
    %125 = vector.load %arg19[%c0_161, %c128_162] : memref<256x384xbf16, #tpu.memory_space<vmem>>, vector<256x128xbf16>
    tpu.vector_store %arg19[%c0_161, %c128_162], %124 {strides = array<i32>} : memref<256x384xbf16, #tpu.memory_space<vmem>>, vector<256x128xbf16>,
    %c1_163 = arith.constant 1 : index
    %c2_164 = arith.constant 2 : index
    %c0_165 = arith.constant 0 : index
    %126 = vector.load %arg17[%c1_163, %c2_164, %c0_165] : memref<18x18x128xbf16, #tpu.memory_space<vmem>>, vector<16x16x128xbf16>
    %127 = vector.shape_cast %126 : vector<16x16x128xbf16> to vector<256x128xbf16>
    %c0_166 = arith.constant 0 : index
    %c256_167 = arith.constant 256 : index
    %128 = vector.load %arg19[%c0_166, %c256_167] : memref<256x384xbf16, #tpu.memory_space<vmem>>, vector<256x128xbf16>
    tpu.vector_store %arg19[%c0_166, %c256_167], %127 {strides = array<i32>} : memref<256x384xbf16, #tpu.memory_space<vmem>>, vector<256x128xbf16>,
    %c384_168 = arith.constant 384 : index
    %c0_169 = arith.constant 0 : index
    %129 = vector.load %arg11[%c384_168, %c0_169] : memref<1152x128xbf16, #tpu.memory_space<vmem>>, vector<384x128xbf16>
    %c0_170 = arith.constant 0 : index
    %c0_171 = arith.constant 0 : index
    %130 = vector.load %arg19[%c0_170, %c0_171] : memref<256x384xbf16, #tpu.memory_space<vmem>>, vector<256x384xbf16>
    %cst_172 = arith.constant dense<0.000000e+00> : vector<256x128xf32>
    %131 = tpu.matmul %130, %129, %cst_172 {dimension_numbers = #tpu.dot_dimension_numbers<[1], [0], [0], [1], [0, 0, 1, 1], [], []>} : vector<256x384xbf16>, vector<384x128xbf16>, vector<256x128xf32> -> vector<256x128xf32>
    %c0_173 = arith.constant 0 : index
    %c0_174 = arith.constant 0 : index
    %132 = vector.load %arg20[%c0_173, %c0_174] : memref<256x128xf32, #tpu.memory_space<vmem>>, vector<256x128xf32>
    %133 = arith.addf %132, %131 : vector<256x128xf32>
    %c0_175 = arith.constant 0 : index
    %c0_176 = arith.constant 0 : index
    %134 = vector.load %arg20[%c0_175, %c0_176] : memref<256x128xf32, #tpu.memory_space<vmem>>, vector<256x128xf32>
    tpu.vector_store %arg20[%c0_175, %c0_176], %133 {strides = array<i32>} : memref<256x128xf32, #tpu.memory_space<vmem>>, vector<256x128xf32>,
    %c2_177 = arith.constant 2 : index
    %c0_178 = arith.constant 0 : index
    %c0_179 = arith.constant 0 : index
    %135 = vector.load %arg17[%c2_177, %c0_178, %c0_179] : memref<18x18x128xbf16, #tpu.memory_space<vmem>>, vector<16x16x128xbf16>
    %136 = vector.shape_cast %135 : vector<16x16x128xbf16> to vector<256x128xbf16>
    %c0_180 = arith.constant 0 : index
    %c0_181 = arith.constant 0 : index
    %137 = vector.load %arg19[%c0_180, %c0_181] : memref<256x384xbf16, #tpu.memory_space<vmem>>, vector<256x128xbf16>
    tpu.vector_store %arg19[%c0_180, %c0_181], %136 {strides = array<i32>} : memref<256x384xbf16, #tpu.memory_space<vmem>>, vector<256x128xbf16>,
    %c2_182 = arith.constant 2 : index
    %c1_183 = arith.constant 1 : index
    %c0_184 = arith.constant 0 : index
    %138 = vector.load %arg17[%c2_182, %c1_183, %c0_184] : memref<18x18x128xbf16, #tpu.memory_space<vmem>>, vector<16x16x128xbf16>
    %139 = vector.shape_cast %138 : vector<16x16x128xbf16> to vector<256x128xbf16>
    %c0_185 = arith.constant 0 : index
    %c128_186 = arith.constant 128 : index
    %140 = vector.load %arg19[%c0_185, %c128_186] : memref<256x384xbf16, #tpu.memory_space<vmem>>, vector<256x128xbf16>
    tpu.vector_store %arg19[%c0_185, %c128_186], %139 {strides = array<i32>} : memref<256x384xbf16, #tpu.memory_space<vmem>>, vector<256x128xbf16>,
    %c2_187 = arith.constant 2 : index
    %c2_188 = arith.constant 2 : index
    %c0_189 = arith.constant 0 : index
    %141 = vector.load %arg17[%c2_187, %c2_188, %c0_189] : memref<18x18x128xbf16, #tpu.memory_space<vmem>>, vector<16x16x128xbf16>
    %142 = vector.shape_cast %141 : vector<16x16x128xbf16> to vector<256x128xbf16>
    %c0_190 = arith.constant 0 : index
    %c256_191 = arith.constant 256 : index
    %143 = vector.load %arg19[%c0_190, %c256_191] : memref<256x384xbf16, #tpu.memory_space<vmem>>, vector<256x128xbf16>
    tpu.vector_store %arg19[%c0_190, %c256_191], %142 {strides = array<i32>} : memref<256x384xbf16, #tpu.memory_space<vmem>>, vector<256x128xbf16>,
    %c768_192 = arith.constant 768 : index
    %c0_193 = arith.constant 0 : index
    %144 = vector.load %arg11[%c768_192, %c0_193] : memref<1152x128xbf16, #tpu.memory_space<vmem>>, vector<384x128xbf16>
    %c0_194 = arith.constant 0 : index
    %c0_195 = arith.constant 0 : index
    %145 = vector.load %arg19[%c0_194, %c0_195] : memref<256x384xbf16, #tpu.memory_space<vmem>>, vector<256x384xbf16>
    %cst_196 = arith.constant dense<0.000000e+00> : vector<256x128xf32>
    %146 = tpu.matmul %145, %144, %cst_196 {dimension_numbers = #tpu.dot_dimension_numbers<[1], [0], [0], [1], [0, 0, 1, 1], [], []>} : vector<256x384xbf16>, vector<384x128xbf16>, vector<256x128xf32> -> vector<256x128xf32>
    %c0_197 = arith.constant 0 : index
    %c0_198 = arith.constant 0 : index
    %147 = vector.load %arg20[%c0_197, %c0_198] : memref<256x128xf32, #tpu.memory_space<vmem>>, vector<256x128xf32>
    %148 = arith.addf %147, %146 : vector<256x128xf32>
    %c0_199 = arith.constant 0 : index
    %c0_200 = arith.constant 0 : index
    %149 = vector.load %arg20[%c0_199, %c0_200] : memref<256x128xf32, #tpu.memory_space<vmem>>, vector<256x128xf32>
    tpu.vector_store %arg20[%c0_199, %c0_200], %148 {strides = array<i32>} : memref<256x128xf32, #tpu.memory_space<vmem>>, vector<256x128xf32>,
    %c0_201 = arith.constant 0 : index
    %c0_202 = arith.constant 0 : index
    %150 = vector.load %arg20[%c0_201, %c0_202] : memref<256x128xf32, #tpu.memory_space<vmem>>, vector<256x128xf32>
    %c0_203 = arith.constant 0 : index
    %c0_204 = arith.constant 0 : index
    %151 = vector.load %arg12[%c0_203, %c0_204] : memref<1x128xf32, #tpu.memory_space<vmem>>, vector<1x128xf32>
    %152 = vector.broadcast %151 : vector<1x128xf32> to vector<256x128xf32>
    %153 = arith.addf %150, %152 : vector<256x128xf32>
    %c0_205 = arith.constant 0 : index
    %c0_206 = arith.constant 0 : index
    %154 = vector.load %arg20[%c0_205, %c0_206] : memref<256x128xf32, #tpu.memory_space<vmem>>, vector<256x128xf32>
    tpu.vector_store %arg20[%c0_205, %c0_206], %153 {strides = array<i32>} : memref<256x128xf32, #tpu.memory_space<vmem>>, vector<256x128xf32>,
    %c0_207 = arith.constant 0 : index
    %c0_208 = arith.constant 0 : index
    %155 = vector.load %arg20[%c0_207, %c0_208] : memref<256x128xf32, #tpu.memory_space<vmem>>, vector<256x128xf32>
    %cst_209 = arith.constant dense<0.000000e+00> : vector<128xf32>
    %156 = vector.multi_reduction <add>, %155, %cst_209 [0] : vector<256x128xf32> to vector<128xf32>
    %157 = vector.shape_cast %156 : vector<128xf32> to vector<1x128xf32>
    %c0_210 = arith.constant 0 : index
    %c0_211 = arith.constant 0 : index
    %c0_212 = arith.constant 0 : index
    %c0_213 = arith.constant 0 : index
    %158 = vector.load %arg14[%c0_210, %c0_211, %c0_212, %c0_213] : memref<1x1x1x128xf32, #tpu.memory_space<vmem>>, vector<1x1x1x128xf32>
    %159 = vector.shape_cast %158 : vector<1x1x1x128xf32> to vector<1x128xf32>
    %160 = vector.shape_cast %157 : vector<1x128xf32> to vector<1x1x1x128xf32>
    tpu.vector_store %arg14[%c0_210, %c0_211, %c0_212, %c0_213], %160 {strides = array<i32>} : memref<1x1x1x128xf32, #tpu.memory_space<vmem>>, vector<1x1x1x128xf32>,
    %161 = arith.mulf %155, %155 : vector<256x128xf32>
    %cst_214 = arith.constant dense<0.000000e+00> : vector<128xf32>
    %162 = vector.multi_reduction <add>, %161, %cst_214 [0] : vector<256x128xf32> to vector<128xf32>
    %163 = vector.shape_cast %162 : vector<128xf32> to vector<1x128xf32>
    %c0_215 = arith.constant 0 : index
    %c0_216 = arith.constant 0 : index
    %c0_217 = arith.constant 0 : index
    %c0_218 = arith.constant 0 : index
    %164 = vector.load %arg15[%c0_215, %c0_216, %c0_217, %c0_218] : memref<1x1x1x128xf32, #tpu.memory_space<vmem>>, vector<1x1x1x128xf32>
    %165 = vector.shape_cast %164 : vector<1x1x1x128xf32> to vector<1x128xf32>
    %166 = vector.shape_cast %163 : vector<1x128xf32> to vector<1x1x1x128xf32>
    tpu.vector_store %arg15[%c0_215, %c0_216, %c0_217, %c0_218], %166 {strides = array<i32>} : memref<1x1x1x128xf32, #tpu.memory_space<vmem>>, vector<1x1x1x128xf32>,
    %167 = arith.truncf %155 : vector<256x128xf32> to vector<256x128xbf16>
    %c0_219 = arith.constant 0 : index
    %c0_220 = arith.constant 0 : index
    %c0_221 = arith.constant 0 : index
    %168 = vector.load %arg13[%c0_219, %c0_220, %c0_221] : memref<1x256x128xbf16, #tpu.memory_space<vmem>>, vector<1x256x128xbf16>
    %169 = vector.shape_cast %168 : vector<1x256x128xbf16> to vector<256x128xbf16>
    %170 = vector.shape_cast %167 : vector<256x128xbf16> to vector<1x256x128xbf16>
    tpu.vector_store %arg13[%c0_219, %c0_220, %c0_221], %170 {strides = array<i32>} : memref<1x256x128xbf16, #tpu.memory_space<vmem>>, vector<1x256x128xbf16>,
    return
  }
  func.func @transform_0(%arg0: i32, %arg1: i32) -> (i32, i32, i32, i32) {
    %c0_i32 = arith.constant 0 : i32
    %c0_i32_0 = arith.constant 0 : i32
    %c0_i32_1 = arith.constant 0 : i32
    return %arg0, %arg1, %c0_i32, %c0_i32_0 : i32, i32, i32, i32
  }
  func.func @transform_1(%arg0: i32, %arg1: i32) -> (i32, i32, i32, i32) {
    %c16_i32 = arith.constant 16 : i32
    %0 = arith.muli %arg1, %c16_i32 : i32
    %c1_i32 = arith.constant 1 : i32
    %1 = arith.subi %0, %c1_i32 : i32
    %c0_i32 = arith.constant 0 : i32
    %2 = arith.maxsi %1, %c0_i32 : i32
    %c0_i32_0 = arith.constant 0 : i32
    %c0_i32_1 = arith.constant 0 : i32
    %c0_i32_2 = arith.constant 0 : i32
    return %arg0, %2, %c0_i32_0, %c0_i32_1 : i32, i32, i32, i32
  }
  func.func @transform_2(%arg0: i32, %arg1: i32) -> (i32, i32, i32, i32) {
    %c1_i32 = arith.constant 1 : i32
    %0 = arith.addi %arg1, %c1_i32 : i32
    %c16_i32 = arith.constant 16 : i32
    %1 = arith.muli %0, %c16_i32 : i32
    %c15_i32 = arith.constant 15 : i32
    %2 = arith.minsi %1, %c15_i32 : i32
    %c0_i32 = arith.constant 0 : i32
    %c0_i32_0 = arith.constant 0 : i32
    %c0_i32_1 = arith.constant 0 : i32
    return %arg0, %2, %c0_i32, %c0_i32_0 : i32, i32, i32, i32
  }
  func.func @transform_3(%arg0: i32, %arg1: i32) -> (i32, i32) {
    %c0_i32 = arith.constant 0 : i32
    %c0_i32_0 = arith.constant 0 : i32
    %c0_i32_1 = arith.constant 0 : i32
    return %c0_i32, %c0_i32_0 : i32, i32
  }
  func.func @transform_4(%arg0: i32, %arg1: i32) -> (i32, i32) {
    %c0_i32 = arith.constant 0 : i32
    %c0_i32_0 = arith.constant 0 : i32
    %c0_i32_1 = arith.constant 0 : i32
    return %c0_i32, %c0_i32_0 : i32, i32
  }
  func.func @transform_5(%arg0: i32, %arg1: i32) -> (i32, i32) {
    %c0_i32 = arith.constant 0 : i32
    %c0_i32_0 = arith.constant 0 : i32
    %c0_i32_1 = arith.constant 0 : i32
    return %c0_i32, %c0_i32_0 : i32, i32
  }
  func.func @transform_6(%arg0: i32, %arg1: i32) -> (i32, i32, i32, i32) {
    %c0_i32 = arith.constant 0 : i32
    %c0_i32_0 = arith.constant 0 : i32
    %c0_i32_1 = arith.constant 0 : i32
    return %arg0, %arg1, %c0_i32, %c0_i32_0 : i32, i32, i32, i32
  }
  func.func @transform_7(%arg0: i32, %arg1: i32) -> (i32, i32, i32, i32) {
    %c16_i32 = arith.constant 16 : i32
    %0 = arith.muli %arg1, %c16_i32 : i32
    %c1_i32 = arith.constant 1 : i32
    %1 = arith.subi %0, %c1_i32 : i32
    %c0_i32 = arith.constant 0 : i32
    %2 = arith.maxsi %1, %c0_i32 : i32
    %c0_i32_0 = arith.constant 0 : i32
    %c0_i32_1 = arith.constant 0 : i32
    %c0_i32_2 = arith.constant 0 : i32
    return %arg0, %2, %c0_i32_0, %c0_i32_1 : i32, i32, i32, i32
  }
  func.func @transform_8(%arg0: i32, %arg1: i32) -> (i32, i32, i32, i32) {
    %c1_i32 = arith.constant 1 : i32
    %0 = arith.addi %arg1, %c1_i32 : i32
    %c16_i32 = arith.constant 16 : i32
    %1 = arith.muli %0, %c16_i32 : i32
    %c15_i32 = arith.constant 15 : i32
    %2 = arith.minsi %1, %c15_i32 : i32
    %c0_i32 = arith.constant 0 : i32
    %c0_i32_0 = arith.constant 0 : i32
    %c0_i32_1 = arith.constant 0 : i32
    return %arg0, %2, %c0_i32, %c0_i32_0 : i32, i32, i32, i32
  }
  func.func @transform_9(%arg0: i32, %arg1: i32) -> (i32, i32) {
    %c0_i32 = arith.constant 0 : i32
    %c0_i32_0 = arith.constant 0 : i32
    %c0_i32_1 = arith.constant 0 : i32
    return %c0_i32, %c0_i32_0 : i32, i32
  }
  func.func @transform_10(%arg0: i32, %arg1: i32) -> (i32, i32) {
    %c0_i32 = arith.constant 0 : i32
    %c0_i32_0 = arith.constant 0 : i32
    %c0_i32_1 = arith.constant 0 : i32
    return %c0_i32, %c0_i32_0 : i32, i32
  }
  func.func @transform_11(%arg0: i32, %arg1: i32) -> (i32, i32, i32) {
    %c0_i32 = arith.constant 0 : i32
    %c0_i32_0 = arith.constant 0 : i32
    return %arg0, %arg1, %c0_i32 : i32, i32, i32
  }
  func.func @transform_12(%arg0: i32, %arg1: i32) -> (i32, i32, i32, i32) {
    %c0_i32 = arith.constant 0 : i32
    %c0_i32_0 = arith.constant 0 : i32
    %c0_i32_1 = arith.constant 0 : i32
    return %arg0, %arg1, %c0_i32, %c0_i32_0 : i32, i32, i32, i32
  }
  func.func @transform_13(%arg0: i32, %arg1: i32) -> (i32, i32, i32, i32) {
    %c0_i32 = arith.constant 0 : i32
    %c0_i32_0 = arith.constant 0 : i32
    %c0_i32_1 = arith.constant 0 : i32
    return %arg0, %arg1, %c0_i32, %c0_i32_0 : i32, i32, i32, i32
  }
}

</mosaic_0001>

<bundles_post_ra>
// kernel: tpu_custom_call.1
= control target key start
LH: loop header
LB: loop body
LE: loop exit
PB: predicated region body
PF: predicated region fallthrough
CT: control target
= control target key end

     0   :  { %19 = vsyncpa [#allocation8], 0  ;;  %s18135_s0 = inlined_call_operand.hbm [shape: bf16[1,16,16,128], index: 0, kind: input, shape index: {}]   ;;  %s18136_s1 = inlined_call_operand.hbm [shape: bf16[1,16,16,128], index: 1, kind: input, shape index: {}]   ;;  %s18137_s2 = inlined_call_operand.hbm [shape: bf16[1,16,16,128], index: 2, kind: input, shape index: {}]   ;;  %s18138_s3 = inlined_call_operand.vmem [shape: f32[1,128], index: 3, kind: input, shape index: {}]   ;;  %s18139_s4 = inlined_call_operand.vmem [shape: f32[1,128], index: 4, kind: input, shape index: {}]   ;;  %s18140_s5 = inlined_call_operand.hbm [shape: bf16[1152,128], index: 5, kind: input, shape index: {}]   ;;  %s18141_s6 = inlined_call_operand.hbm [shape: bf16[1,16,16,128], index: 6, kind: input, shape index: {}]   ;;  %s18142_s7 = inlined_call_operand.hbm [shape: bf16[1,16,16,128], index: 7, kind: input, shape index: {}]   ;;  %s18143_s8 = inlined_call_operand.hbm [shape: bf16[1,16,16,128], index: 8, kind: input, shape index: {}]   ;;  %s18144_s9 = inlined_call_operand.hbm [shape: bf16[1152,128], index: 9, kind: input, shape index: {}]   ;;  %s18145_s10 = inlined_call_operand.vmem [shape: f32[1,128], index: 10, kind: input, shape index: {}]   ;;  %s18146_s11 = inlined_call_operand.hbm [shape: bf16[1,256,128], index: 11, kind: output, shape index: {0}]   ;;  %s18147_s12 = inlined_call_operand.hbm [shape: f32[1,1,1,128], index: 12, kind: output, shape index: {1}]   ;;  %s18148_s13 = inlined_call_operand.hbm [shape: f32[1,1,1,128], index: 13, kind: output, shape index: {2}]  }
   0x1   :  { %20 = vsyncpa [#allocation11], 0 }
   0x2   :  { %21 = vsyncpa [#allocation14], 0 }
   0x3   :  { %22 = vsyncpa [#allocation17], 0 }
   0x4   :  { %23 = vsyncpa [#allocation20], 0 }
   0x5   :  { %24 = vsyncpa [#allocation9], 0 }
   0x6   :  { %25 = vsyncpa [#allocation23], 0  ;;  %s14579_s25 = smov [#allocation10]   ;;  %s14580_s27 = smov [#allocation13]  }
   0x7   :  { %s50_s26 = sshll.u32 %s14579_s25, 4  ;;  %s85_s28 = sshll.u32 %s14580_s27, 4  ;;  %s51_s26 = int_to_ptr.vmem [resolvable:$true] %s50_s26  ;;  %s14663_s28 = int_to_ptr.vmem [resolvable:$true] %s85_s28 }
   0x8   :  { %s14317_s14 = scalar_lea.hbm %s18136_s1, 128  ;;  %s14319_s19 = scalar_lea.hbm %s18136_s1, 2048 }
   0x9   :  { %p14318_p0 = scmp.ne.s32.totalorder %s18136_s1, %s14317_s14  ;;  %p14320_p1 = scmp.lt.u32.totalorder %s14319_s19, %s14317_s14 }
   0xa   :  { %p14321_p2 = scmp.lt.u32.totalorder %s14317_s14, %s18136_s1 }
   0xc   :  { %p14322_p3 = por %p14321_p2, %p14320_p1 }
   0xe   :  { %p14323_p4 = pnand %p14322_p3, %p14318_p0 }
  0x10   :  { %14326 = shalt.err (!%p14323_p4)
}
  0x11   :  { %s14327_s22 = scalar_lea.vmem %s51_s26, 128  ;;  %p14332_p6 = scmp.lt.s32.totalorder %s51_s26, %s51_s26 }
  0x12   :  { %p14328_p5 = scmp.ne.s32.totalorder %s51_s26, %s14327_s22  ;;  %p14333_p7 = scmp.lt.s32.totalorder %s14327_s22, %s14327_s22 }
  0x14   :  { %p14334_p8 = por %p14333_p7, %p14332_p6 }
  0x16   :  { %p14335_p9 = pnand %p14334_p8, %p14328_p5 }
  0x18   :  { %14338 = shalt.err (!%p14335_p9)
}
  0x19   :  { %s14581_s23 = smov 64   ;;  %s14582_s24 = smov 4  }
  0x1a   :  { %56 = dma.hbm_to_vmem [thread:$0]  %s18136_s1, 128, %s51_s26, [#allocation11], %s14581_s23, %s14581_s23, %s14582_s24  }
  0x1b   :  { %s14339_s14 = scalar_lea.hbm %s18140_s5, 9216 }
  0x1c   :  { %p14340_p10 = scmp.ne.s32.totalorder %s18140_s5, %s14339_s14  ;;  %p14343_p11 = scmp.lt.u32.totalorder %s14339_s14, %s18140_s5 }
  0x1e   :  { %p14345_p12 = pnand %p14343_p11, %p14340_p10 }
  0x20   :  { %14348 = shalt.err (!%p14345_p12)
}
  0x21   :  { %s14349_s19 = scalar_lea.vmem %s14663_s28, 9216  ;;  %p14354_p0 = scmp.lt.s32.totalorder %s14663_s28, %s14663_s28 }
  0x22   :  { %p14350_p13 = scmp.ne.s32.totalorder %s14663_s28, %s14349_s19  ;;  %p14355_p1 = scmp.lt.s32.totalorder %s14349_s19, %s14349_s19 }
  0x24   :  { %p14356_p2 = por %p14355_p1, %p14354_p0 }
  0x26   :  { %p14357_p3 = pnand %p14356_p2, %p14350_p13 }
  0x28   :  { %14360 = shalt.err (!%p14357_p3)
}
  0x29   :  { %91 = dma.hbm_to_vmem [thread:$0]  %s18140_s5, 9216, %s14663_s28, [#allocation14], %s14581_s23, %s14581_s23, %s14582_s24  }
  0x2a   :  { %s14583_s20 = smov [#allocation16]   ;;  %s14584_s22 = smov [#allocation7]  }
  0x2b   :  { %s116_s21 = sshll.u32 %s14583_s20, 4  ;;  %s31_s25 = sshll.u32 %s14584_s22, 4  ;;  %s117_s21 = int_to_ptr.vmem [resolvable:$true] %s116_s21  ;;  %s14703_s25 = int_to_ptr.vmem [resolvable:$true] %s31_s25 }
  0x2c   :  { %s14361_s30 = scalar_lea.hbm %s18142_s7, 128  ;;  %s14363_s18 = scalar_lea.hbm %s18142_s7, 2048 }
  0x2d   :  { %p14362_p4 = scmp.ne.s32.totalorder %s18142_s7, %s14361_s30  ;;  %p14364_p5 = scmp.lt.u32.totalorder %s14363_s18, %s14361_s30 }
  0x2e   :  { %p14365_p6 = scmp.lt.u32.totalorder %s14361_s30, %s18142_s7 }
  0x30   :  { %p14366_p7 = por %p14365_p6, %p14364_p5 }
  0x32   :  { %p14367_p8 = pnand %p14366_p7, %p14362_p4 }
  0x34   :  { %14370 = shalt.err (!%p14367_p8)
}
  0x35   :  { %s14371_s19 = scalar_lea.vmem %s117_s21, 128  ;;  %p14376_p10 = scmp.lt.s32.totalorder %s117_s21, %s117_s21 }
  0x36   :  { %p14372_p9 = scmp.ne.s32.totalorder %s117_s21, %s14371_s19  ;;  %p14377_p11 = scmp.lt.s32.totalorder %s14371_s19, %s14371_s19 }
  0x38   :  { %p14378_p12 = por %p14377_p11, %p14376_p10 }
  0x3a   :  { %p14379_p13 = pnand %p14378_p12, %p14372_p9 }
  0x3c   :  { %14382 = shalt.err (!%p14379_p13)
}
  0x3d   :  { %122 = dma.hbm_to_vmem [thread:$0]  %s18142_s7, 128, %s117_s21, [#allocation17], %s14581_s23, %s14581_s23, %s14582_s24  }
  0x3e   :  { %s14383_s27 = scalar_lea.hbm %s18135_s0, 2048 }
  0x3f   :  { %p14384_p0 = scmp.ne.s32.totalorder %s18135_s0, %s14383_s27  ;;  %p14387_p1 = scmp.lt.u32.totalorder %s14383_s27, %s18135_s0 }
  0x41   :  { %p14389_p2 = pnand %p14387_p1, %p14384_p0 }
  0x43   :  { %14392 = shalt.err (!%p14389_p2)
}
  0x44   :  { %s14393_s16 = scalar_lea.vmem %s14703_s25, 2048  ;;  %p14398_p4 = scmp.lt.s32.totalorder %s14703_s25, %s14703_s25 }
  0x45   :  { %p14394_p3 = scmp.ne.s32.totalorder %s14703_s25, %s14393_s16  ;;  %p14399_p5 = scmp.lt.s32.totalorder %s14393_s16, %s14393_s16 }
  0x47   :  { %p14400_p6 = por %p14399_p5, %p14398_p4 }
  0x49   :  { %p14401_p7 = pnand %p14400_p6, %p14394_p3 }
  0x4b   :  { %14404 = shalt.err (!%p14401_p7)
}
  0x4c   :  { %37 = dma.hbm_to_vmem [thread:$0]  %s18135_s0, 2048, %s14703_s25, [#allocation8], %s14581_s23, %s14581_s23, %s14582_s24  }
  0x4d   :  { %s68_s5 = scalar_lea.hbm %s18137_s2, 1920  ;;  %s14585_s28 = smov [#allocation12]  }
  0x4e   :  { %s69_s19 = sshll.u32 %s14585_s28, 4  ;;  %s14586_s1 = smov [#allocation15]   ;;  %s70_s19 = int_to_ptr.vmem [resolvable:$true] %s69_s19 }
  0x4f   :  { %s97_s26 = sshll.u32 %s14586_s1, 4  ;;  %s14429_s27 = scalar_lea.hbm %s18137_s2, 2048  ;;  %s98_s26 = int_to_ptr.vmem [resolvable:$true] %s97_s26 }
  0x50   :  { %p14406_p8 = scmp.ne.s32.totalorder %s68_s5, %s14429_s27  ;;  %p14408_p9 = scmp.lt.u32.totalorder %s68_s5, %s18137_s2 }
  0x51   :  { %p14409_p10 = scmp.lt.u32.totalorder %s14429_s27, %s14429_s27  ;;  %p14411_p12 = scmp.lt.u32.totalorder %s14429_s27, %s68_s5 }
  0x53   :  { %p14410_p11 = por %p14409_p10, %p14408_p9 }
  0x55   :  { %p14412_p13 = por %p14411_p12, %p14410_p11 }
  0x57   :  { %p14413_p0 = pnand %p14412_p13, %p14406_p8 }
  0x59   :  { %14416 = shalt.err (!%p14413_p0)
}
  0x5a   :  { %s14417_s0 = scalar_lea.vmem %s70_s19, 128  ;;  %p14422_p2 = scmp.lt.s32.totalorder %s70_s19, %s70_s19 }
  0x5b   :  { %p14418_p1 = scmp.ne.s32.totalorder %s70_s19, %s14417_s0  ;;  %p14423_p3 = scmp.lt.s32.totalorder %s14417_s0, %s14417_s0 }
  0x5d   :  { %p14424_p4 = por %p14423_p3, %p14422_p2 }
  0x5f   :  { %p14425_p5 = pnand %p14424_p4, %p14418_p1 }
  0x61   :  { %14428 = shalt.err (!%p14425_p5)
}
  0x62   :  { %75 = dma.hbm_to_vmem [thread:$0]  %s68_s5, 128, %s70_s19, [#allocation11], %s14581_s23, %s14581_s23, %s14582_s24  }
  0x63   :  { %s14758_s14 = scalar_lea.hbm %s18143_s8, 1920  ;;  %s14430_s7 = scalar_lea.hbm %s18141_s6, 2048 }
  0x64   :  { %p14431_p6 = scmp.ne.s32.totalorder %s18141_s6, %s14430_s7  ;;  %p14434_p7 = scmp.lt.u32.totalorder %s14430_s7, %s18141_s6 }
  0x66   :  { %p14436_p8 = pnand %p14434_p7, %p14431_p6 }
  0x68   :  { %14439 = shalt.err (!%p14436_p8)
}
  0x69   :  { %s14440_s5 = scalar_lea.vmem %s98_s26, 2048  ;;  %p14445_p10 = scmp.lt.s32.totalorder %s98_s26, %s98_s26 }
  0x6a   :  { %p14441_p9 = scmp.ne.s32.totalorder %s98_s26, %s14440_s5  ;;  %p14446_p11 = scmp.lt.s32.totalorder %s14440_s5, %s14440_s5 }
  0x6c   :  { %p14447_p12 = por %p14446_p11, %p14445_p10 }
  0x6e   :  { %p14448_p13 = pnand %p14447_p12, %p14441_p9 }
  0x70   :  { %14451 = shalt.err (!%p14448_p13)
}
  0x71   :  { %103 = dma.hbm_to_vmem [thread:$0]  %s18141_s6, 2048, %s98_s26, [#allocation14], %s14581_s23, %s14581_s23, %s14582_s24  }
  0x72   :  { %s14587_s20 = smov [#allocation18]   ;;  %s14588_s27 = smov [#allocation19]  }
  0x73   :  { %s135_s22 = sshll.u32 %s14587_s20, 4  ;;  %s147_s29 = sshll.u32 %s14588_s27, 4  ;;  %s136_s22 = int_to_ptr.vmem [resolvable:$true] %s135_s22  ;;  %s14775_s29 = int_to_ptr.vmem [resolvable:$true] %s147_s29 }
  0x74   :  { %s14476_s25 = scalar_lea.hbm %s18143_s8, 2048  ;;  %p14455_p1 = scmp.lt.u32.totalorder %s14758_s14, %s18143_s8 }
  0x75   :  { %p14453_p0 = scmp.ne.s32.totalorder %s14758_s14, %s14476_s25  ;;  %p14456_p2 = scmp.lt.u32.totalorder %s14476_s25, %s14476_s25 }
  0x76   :  { %p14458_p4 = scmp.lt.u32.totalorder %s14476_s25, %s14758_s14 }
  0x77   :  { %p14457_p3 = por %p14456_p2, %p14455_p1 }
  0x79   :  { %p14459_p5 = por %p14458_p4, %p14457_p3 }
  0x7b   :  { %p14460_p6 = pnand %p14459_p5, %p14453_p0 }
  0x7d   :  { %14463 = shalt.err (!%p14460_p6)
}
  0x7e   :  { %s14464_s6 = scalar_lea.vmem %s136_s22, 128  ;;  %p14469_p8 = scmp.lt.s32.totalorder %s136_s22, %s136_s22 }
  0x7f   :  { %p14465_p7 = scmp.ne.s32.totalorder %s136_s22, %s14464_s6  ;;  %p14470_p9 = scmp.lt.s32.totalorder %s14464_s6, %s14464_s6 }
  0x81   :  { %p14471_p10 = por %p14470_p9, %p14469_p8 }
  0x83   :  { %p14472_p11 = pnand %p14471_p10, %p14465_p7 }
  0x85   :  { %14475 = shalt.err (!%p14472_p11)
}
  0x86   :  { %141 = dma.hbm_to_vmem [thread:$0]  %s14758_s14, 128, %s136_s22, [#allocation17], %s14581_s23, %s14581_s23, %s14582_s24  }
  0x87   :  { %s14477_s16 = scalar_lea.hbm %s18144_s9, 9216 }
  0x88   :  { %p14478_p12 = scmp.ne.s32.totalorder %s18144_s9, %s14477_s16  ;;  %p14481_p13 = scmp.lt.u32.totalorder %s14477_s16, %s18144_s9 }
  0x8a   :  { %p14483_p0 = pnand %p14481_p13, %p14478_p12 }
  0x8c   :  { %14486 = shalt.err (!%p14483_p0)
}
  0x8d   :  { %s14487_s28 = scalar_lea.vmem %s14775_s29, 9216  ;;  %p14492_p2 = scmp.lt.s32.totalorder %s14775_s29, %s14775_s29 }
  0x8e   :  { %p14488_p1 = scmp.ne.s32.totalorder %s14775_s29, %s14487_s28  ;;  %p14493_p3 = scmp.lt.s32.totalorder %s14487_s28, %s14487_s28 }
  0x90   :  { %p14494_p4 = por %p14493_p3, %p14492_p2 }
  0x92   :  { %p14495_p5 = pnand %p14494_p4, %p14488_p1 }
  0x94   :  { %14498 = shalt.err (!%p14495_p5)
}
  0x95   :  { %153 = dma.hbm_to_vmem [thread:$0]  %s18144_s9, 9216, %s14775_s29, [#allocation20], %s14581_s23, %s14581_s23, %s14582_s24  }
  0x96   :  { %14565 = dma.done.wait [#allocation8], 2048  }
  0x97   :  { %14566 = vsyncadd [#allocation8], 4294965248 }
  0x98   :  { %14567 = dma.done.wait [#allocation11], 256  }
  0x99   :  { %14568 = vsyncadd [#allocation11], 4294967040 }
  0x9a   :  { %14569 = dma.done.wait [#allocation14], 11264  }
  0x9b   :  { %14570 = vsyncadd [#allocation14], 4294956032 }
  0x9c   :  { %14571 = dma.done.wait [#allocation17], 256  }
  0x9d   :  { %14572 = vsyncadd [#allocation17], 4294967040 }
  0x9e   :  { %14573 = dma.done.wait [#allocation20], 9216  }
  0x9f   :  { %14574 = vsyncadd [#allocation20], 4294958080  ;;  %v18150_v0 = vmov 0   ;;  %vm537_vm0 = vsmask.f32 4368  ;;  %v18162_v8 = vmov 0 }
  0xa0   :  { %v14812_v1 = vcombine.low %v18150_v0, %v18150_v0  ;;  %v11768_v2 = vcombine.high %v18150_v0, %v18150_v0  ;;  %vm420_vm1 = vsmask.f32 256  ;;  %v14072_v9 = vld [vmem:[#allocation13 + $0x40] sm:$0xff]   ;;  %v14076_v16 = vld [vmem:[#allocation13 + $0x48] sm:$0xff]   ;;  %v14080_v20 = vld [vmem:[#allocation13 + $0x50] sm:$0xff]   ;;  %vm419_vm4 = vcmask 1040384  }
  0xa1   :  { %vm14822_vm2 = vmor %vm420_vm1, %vm537_vm0  ;;  %v14073_v12 = vld [vmem:[#allocation13] sm:$0xff]   ;;  %12602 = vmatprep.subr.bf16.mxu0 %v14072_v9  ;;  %v14077_v17 = vld [vmem:[#allocation13 + $0x8] sm:$0xff]   ;;  %vm476_vm3 = vsmask.f32 7938  ;;  %v18165_v34 = vmov 0  ;;  %v18168_v35 = vmov 0 }
  0xa2   :  { %v540_v3 = vshrl.u32 %v14812_v1, 16  ;;  %v548_v4 = vshrl.u32 %v11768_v2, 16  ;;  %v551_v5 = vshll.u32 %v11768_v2, 16  ;;  %v18163_v8 = vsel %vm14822_vm2, 4294967295, %v18162_v8  ;;  %v14074_v13 = vld [vmem:[#allocation13 + $0x100] sm:$0xff]   ;;  %12603 = vmatpush3.bf16.msra.mxu0 %v14073_v12  ;;  %v14078_v18 = vld [vmem:[#allocation13 + $0x108] sm:$0xff]   ;;  %vm14831_vm5 = vmand %vm419_vm4, %vm420_vm1 }
  0xa3   :  { %18164 = vst [vmem:[#allocation32_spill] sm:$0xff] %v18163_v8  ;;  %v14075_v15 = vld [vmem:[#allocation13 + $0xc0] sm:$0xff]   ;;  %12738 = vmatprep.subr.bf16.mxu1 %v14074_v13  ;;  %12604 = vmatprep.subr.bf16.mxu0 %v14076_v16  ;;  %v14079_v19 = vld [vmem:[#allocation13 + $0xc8] sm:$0xff]   ;;  %v14081_v21 = vld [vmem:[#allocation13 + $0x10] sm:$0xff]   ;;  %v18166_v34 = vsel %vm14831_vm5, 4294967295, %v18165_v34  ;;  %v543_v45 = vshll.u32 %v14812_v1, 16 }
  0xa4   :  { %v14817_v6 = vrot.slane %v540_v3, 7  ;;  %v14819_v7 = vrot.slane %v548_v4, 7  ;;  %12739 = vmatpush3.bf16.msra.mxu1 %v14075_v15  ;;  %v14082_v22 = vld [vmem:[#allocation13 + $0x110] sm:$0xff]   ;;  %v14084_v24 = vld [vmem:[#allocation13 + $0x58] sm:$0xff]   ;;  %v14088_v28 = vld [vmem:[#allocation13 + $0x60] sm:$0xff]   ;;  %18167 = vst [vmem:[#allocation33_spill] sm:$0xff] %v18166_v34 }
  0xa5   :  { %12740 = vmatprep.subr.bf16.mxu1 %v14078_v18  ;;  %v14083_v23 = vld [vmem:[#allocation13 + $0xd0] sm:$0xff]   ;;  %v14085_v25 = vld [vmem:[#allocation13 + $0x18] sm:$0xff]   ;;  %v14089_v29 = vld [vmem:[#allocation13 + $0x20] sm:$0xff]   ;;  %vm559_vm7 = vcmask 1043456   ;;  %v18171_v2 = vmov 0  ;;  %vm1869_vm12 = vcmask 1042432  }
  0xa6   :  { %v546_v10 = vrot.slane %v14817_v6, 4  ;;  %v553_v11 = vor.u32 %v551_v5, %v14819_v7  ;;  %12605 = vmatpush3.bf16.msra.mxu0 %v14077_v17  ;;  %v14086_v26 = vld [vmem:[#allocation13 + $0x118] sm:$0xff]   ;;  %v14090_v30 = vld [vmem:[#allocation13 + $0x120] sm:$0xff]   ;;  %v14092_v32 = vld [vmem:[#allocation13 + $0x68] sm:$0xff]   ;;  %v14855_v58 = vor.u32 %v543_v45, %v14817_v6  ;;  %v18149_v59 = vrot.slane %v14819_v7, 4 }
  0xa7   :  { %12606 = vmatprep.subr.bf16.mxu0 %v14080_v20  ;;  %v14087_v27 = vld [vmem:[#allocation13 + $0xd8] sm:$0xff]   ;;  %v14091_v31 = vld [vmem:[#allocation13 + $0xe0] sm:$0xff]   ;;  %v14093_v33 = vld [vmem:[#allocation13 + $0x28] sm:$0xff]   ;;  %vm1306_vm9 = vsmask.f32 3328  ;;  %vm1870_vm13 = vcmask 1046532  }
  0xa8   :  { %v554_v14 = vsel %vm14822_vm2, %v546_v10, %v553_v11  ;;  %12741 = vmatpush3.bf16.msra.mxu1 %v14079_v19  ;;  %vm14836_vm6 = vmand %vm419_vm4, %vm476_vm3  ;;  %v14094_v36 = vld [vmem:[#allocation13 + $0x128] sm:$0xff]   ;;  %v14096_v38 = vld [vmem:[#allocation13 + $0x70] sm:$0xff]   ;;  %vm1307_vm10 = vsmask.f32 7440 }
  0xa9   :  { %564 = vst [vmem:[#allocation2 + $0x4] sm:$0xf] %v554_v14  ;;  %597 = vst [vmem:[#allocation2 + $0xd0] sm:$0xf] %v554_v14  ;;  %12742 = vmatprep.subr.bf16.mxu1 %v14082_v22  ;;  %v18169_v35 = vsel %vm14836_vm6, 4294967295, %v18168_v35  ;;  %v14095_v37 = vld [vmem:[#allocation13 + $0xe8] sm:$0xff]  }
  0xaa   :  { %12607 = vmatpush3.bf16.msra.mxu0 %v14081_v21  ;;  %18170 = vst [vmem:[#allocation34_spill] sm:$0xff] %v18169_v35  ;;  %v14097_v39 = vld [vmem:[#allocation13 + $0x30] sm:$0xff]   ;;  %v14100_v42 = vld [vmem:[#allocation13 + $0x78] sm:$0xff]   ;;  %v422_v46 = vld [vmem:[#allocation2] sm:$0x1] }
  0xab   :  { %12608 = vmatprep.subr.bf16.mxu0 %v14084_v24  ;;  %v14098_v40 = vld [vmem:[#allocation13 + $0x130] sm:$0xff]   ;;  %v14101_v43 = vld [vmem:[#allocation13 + $0x38] sm:$0xff]   ;;  %v478_v47 = vld [vmem:[#allocation2 + $0x8] sm:$0x1]  ;;  %v423_v49 = vsel %vm14831_vm5, 0, %v422_v46 }
  0xac   :  { %12743 = vmatpush3.bf16.msra.mxu1 %v14083_v23  ;;  %v14099_v41 = vld [vmem:[#allocation13 + $0xf0] sm:$0xff]   ;;  %v14102_v44 = vld [vmem:[#allocation13 + $0x138] sm:$0xff]   ;;  %v479_v50 = vsel %vm14836_vm6, 0, %v478_v47  ;;  %424 = vst [vmem:[#allocation2] sm:$0x1] %v423_v49  ;;  %v14847_v56 = vld [vmem:[#allocation13 + $0x80] sm:$0xff]  }
  0xad   :  { %12744 = vmatprep.subr.bf16.mxu1 %v14086_v26  ;;  %480 = vst [vmem:[#allocation2 + $0x8] sm:$0x1] %v479_v50  ;;  %v14103_v53 = vld [vmem:[#allocation13 + $0xf8] sm:$0xff]   ;;  %v14852_v57 = vld [vmem:[%s18138_s3] ss:$0 sm:$0xff]  ;;  %v12429_v62 = vld [vmem:[#allocation7] sm:$0xff]  }
  0xae   :  { %12609 = vmatpush3.bf16.msra.mxu0 %v14085_v25  ;;  %v14862_v61 = vld [vmem:[%s18139_s4] ss:$0 sm:$0xff]  ;;  %v425_v63 = vld [vmem:[#allocation2 + $0xc] sm:$0x1]  ;;  %v481_v1 = vld [vmem:[#allocation2 + $0x14] sm:$0x1]  ;;  %v12430_v3 = vunpack.c.l.bf16 %v12429_v62  ;;  %v12431_v4 = vunpack.c.h.bf16 %v12429_v62 }
  0xaf   :  { %12610 = vmatprep.subr.bf16.mxu0 %v14088_v28  ;;  %vm14865_vm8 = vmand %vm559_vm7, %vm476_vm3  ;;  %v426_v5 = vsel %vm14831_vm5, 0, %v425_v63  ;;  %v482_v6 = vsel %vm14836_vm6, 0, %v481_v1  ;;  %v14876_v10 = vld [vmem:[#allocation13 + $0x140] sm:$0xff]   ;;  %v12572_v11 = vld [vmem:[#allocation7 + $0x8] sm:$0xff]  }
  0xb0   :  { %12745 = vmatpush3.bf16.msra.mxu1 %v14087_v27  ;;  %v1259_v48 = vld [vmem:[#allocation2 + $0x4] sm:$0xf]  ;;  %v18172_v2 = vsel %vm14865_vm8, 4294967295, %v18171_v2  ;;  %427 = vst [vmem:[#allocation2 + $0xc] sm:$0x1] %v426_v5  ;;  %v269_v13 = vmul.f32 %v12430_v3, %v14852_v57  ;;  %v270_v14 = vmul.f32 %v12431_v4, %v14852_v57  ;;  %v12434_v15 = vunpack.c.l.bf16 %v12572_v11  ;;  %vm14914_vm11 = vmor %vm1306_vm9, %vm1307_vm10 }
  0xb1   :  { %12746 = vmatprep.subr.bf16.mxu1 %v14090_v30  ;;  %v1319_v51 = vshll.u32 %v1259_v48, 16  ;;  %v1323_v52 = vshrl.u32 %v1259_v48, 16  ;;  %18173 = vst [vmem:[#allocation35_spill] sm:$0xff] %v18172_v2  ;;  %483 = vst [vmem:[#allocation2 + $0x14] sm:$0x1] %v482_v6  ;;  %v12435_v16 = vunpack.c.h.bf16 %v12572_v11  ;;  %v12573_v26 = vld [vmem:[#allocation7 + $0x10] sm:$0xff]  }
  0xb2   :  { %12611 = vmatpush3.bf16.msra.mxu0 %v14089_v29  ;;  %v428_v12 = vld [vmem:[#allocation2 + $0x18] sm:$0x1]  ;;  %v484_v17 = vld [vmem:[#allocation2 + $0x20] sm:$0x1]  ;;  %v307_v24 = vadd.f32 %v14862_v61, %v269_v13  ;;  %v308_v25 = vadd.f32 %v14862_v61, %v270_v14  ;;  %v431_v27 = vld [vmem:[#allocation2 + $0x24] sm:$0x1]  ;;  %v271_v28 = vmul.f32 %v12434_v15, %v14852_v57  ;;  %v12438_v30 = vunpack.c.l.bf16 %v12573_v26 }
  0xb3   :  { %12612 = vmatprep.subr.bf16.mxu0 %v14092_v32  ;;  %v14845_v54 = vrot.slane %v1319_v51, 5  ;;  %v1325_v55 = vrot.slane %v1323_v52, 4  ;;  %v561_v18 = vld [vmem:[#allocation2] sm:$0xf]  ;;  %v429_v20 = vsel %vm14831_vm5, 0, %v428_v12  ;;  %v485_v21 = vsel %vm14836_vm6, 0, %v484_v17  ;;  %vm15470_vm14 = vmor %vm1869_vm12, %vm1870_vm13 }
  0xb4   :  { %12747 = vmatpush3.bf16.msra.mxu1 %v14091_v31  ;;  %v565_v19 = vld [vmem:[#allocation2 + $0x8] sm:$0x1]  ;;  %v562_v22 = vsel %vm14865_vm8, %v14855_v58, %v561_v18  ;;  %430 = vst [vmem:[#allocation2 + $0x18] sm:$0x1] %v429_v20  ;;  %486 = vst [vmem:[#allocation2 + $0x20] sm:$0x1] %v485_v21  ;;  %v272_v29 = vmul.f32 %v12435_v16, %v14852_v57  ;;  %v12439_v31 = vunpack.c.h.bf16 %v12573_v26 }
  0xb5   :  { %12748 = vmatprep.subr.bf16.mxu1 %v14094_v36  ;;  %v1326_v60 = vor.u32 %v1325_v55, %v14845_v54  ;;  %v566_v23 = vsel %vm14831_vm5, %v18149_v59, %v565_v19  ;;  %563 = vst [vmem:[#allocation2] sm:$0xf] %v562_v22  ;;  %v487_v32 = vld [vmem:[#allocation2 + $0x2c] sm:$0x1]  ;;  %v340_v36 = vmax.f32 %v308_v25, 0.0  ;;  %v14906_v52 = vld [vmem:[#allocation7 + $0x20] sm:$0xff]  }
  0xb6   :  { %12613 = vmatpush3.bf16.msra.mxu0 %v14093_v33  ;;  %567 = vst [vmem:[#allocation2 + $0x8] sm:$0x1] %v566_v23  ;;  %v339_v33 = vmax.f32 %v307_v24, 0.0  ;;  %v12446_v13 = vunpack.c.l.bf16 %v14906_v52  ;;  %v12447_v14 = vunpack.c.h.bf16 %v14906_v52  ;;  %v14170_v59 = vld [vmem:[#allocation13 + $0x1f0] sm:$0xff]  }
  0xb7   :  { %12614 = vmatprep.subr.bf16.mxu0 %v14096_v38  ;;  %v14874_v9 = vrot.slane %v1326_v60, 4  ;;  %v488_v38 = vsel %vm14836_vm6, 0, %v487_v32  ;;  %v12365_v45 = vpack.c.bf16 %v340_v36, %v340_v36  ;;  %v1002_v21 = vld [vmem:[#allocation2 + $0xc] sm:$0xf] }
  0xb8   :  { %12749 = vmatpush3.bf16.msra.mxu1 %v14095_v37  ;;  %v432_v37 = vsel %vm14831_vm5, 0, %v431_v27  ;;  %489 = vst [vmem:[#allocation2 + $0x2c] sm:$0x1] %v488_v38 }
  0xb9   :  { %12750 = vmatprep.subr.bf16.mxu1 %v14098_v40  ;;  %v309_v40 = vadd.f32 %v14862_v61, %v271_v28  ;;  %433 = vst [vmem:[#allocation2 + $0x24] sm:$0x1] %v432_v37  ;;  %v690_v60 = vshrl.u32 %v12365_v45, 16  ;;  %v693_v62 = vshll.u32 %v12365_v45, 16 }
  0xba   :  { %12615 = vmatpush3.bf16.msra.mxu0 %v14097_v39  ;;  %v12574_v39 = vld [vmem:[#allocation7 + $0x18] sm:$0xff]  }
  0xbb   :  { %12616 = vmatprep.subr.bf16.mxu0 %v14100_v42  ;;  %v273_v42 = vmul.f32 %v12438_v30, %v14852_v57  ;;  %v12442_v46 = vunpack.c.l.bf16 %v12574_v39  ;;  %v12443_v47 = vunpack.c.h.bf16 %v12574_v39  ;;  %v341_v48 = vmax.f32 %v309_v40, 0.0  ;;  %v1009_v40 = vld [vmem:[#allocation2 + $0x18] sm:$0xf]  ;;  %v1013_v45 = vld [vmem:[#allocation2 + $0x20] sm:$0x1] }
  0xbc   :  { %12751 = vmatpush3.bf16.msra.mxu1 %v14099_v41  ;;  %v310_v41 = vadd.f32 %v14862_v61, %v272_v29  ;;  %v1258_v5 = vld [vmem:[#allocation2] sm:$0xf]  ;;  %v692_v20 = vrot.slane %v690_v60, 7  ;;  %v1006_v29 = vld [vmem:[#allocation2 + $0x14] sm:$0x1] }
  0xbd   :  { %12752 = vmatprep.subr.bf16.mxu1 %v14102_v44  ;;  %v12364_v44 = vpack.c.bf16 %v339_v33, %v339_v33  ;;  %v311_v50 = vadd.f32 %v14862_v61, %v273_v42  ;;  %v12366_v63 = vpack.c.bf16 %v341_v48, %v341_v48  ;;  %v1260_v6 = vld [vmem:[#allocation2 + $0x8] sm:$0x1]  ;;  %v275_v11 = vmul.f32 %v12442_v46, %v14852_v57 }
  0xbe   :  { %12617 = vmatpush3.bf16.msra.mxu0 %v14101_v43  ;;  %v274_v43 = vmul.f32 %v12439_v31, %v14852_v57  ;;  %v342_v49 = vmax.f32 %v310_v41, 0.0  ;;  %v276_v12 = vmul.f32 %v12443_v47, %v14852_v57  ;;  %v1310_v15 = vshrl.u32 %v1258_v5, 16 }
  0xbf   :  { %13418 = vmatprep.subr.bf16.mxu0 %v14847_v56  ;;  %v685_v55 = vshll.u32 %v12364_v44, 16  ;;  %v343_v3 = vmax.f32 %v311_v50, 0.0  ;;  %v1313_v16 = vshll.u32 %v1258_v5, 16  ;;  %v1329_v17 = vshll.u32 %v1260_v6, 16  ;;  %v490_v5 = vld [vmem:[#allocation2 + $0x38] sm:$0x1] }
  0xc0   :  { %12753 = vmatpush3.bf16.msra.mxu1 %v14103_v53  ;;  %v312_v51 = vadd.f32 %v14862_v61, %v274_v43  ;;  %v682_v53 = vshrl.u32 %v12364_v44, 16  ;;  %v12367_v1 = vpack.c.bf16 %v342_v49, %v342_v49  ;;  %v699_v22 = vshrl.u32 %v12366_v63, 16 }
  0xc1   :  { %13466 = vmatprep.subr.bf16.mxu1 %v14876_v10  ;;  %v702_v23 = vshll.u32 %v12366_v63, 16  ;;  %v1312_v25 = vrot.slane %v1310_v15, 4  ;;  %v1315_v26 = vrot.slane %v1313_v16, 5  ;;  %v1331_v27 = vrot.slane %v1329_v17, 5  ;;  %v1016_v16 = vld [vmem:[#allocation2 + $0x24] sm:$0xf] }
  0xc2   :  { %v344_v4 = vmax.f32 %v312_v51, 0.0  ;;  %v684_v18 = vrot.slane %v682_v53, 7  ;;  %v707_v24 = vshrl.u32 %v12367_v1, 16  ;;  %v695_v31 = vor.u32 %v693_v62, %v692_v20  ;;  %v14104_v62 = vld [vmem:[#allocation2] sm:$0xff]   ;;  %v14111_v17 = vld [vmem:[#allocation13 + $0x88] sm:$0xff]  }
  0xc3   :  { %v697_v32 = vrot.slane %v692_v20, 4  ;;  %v701_v33 = vrot.slane %v699_v22, 7  ;;  %v1316_v36 = vor.u32 %v1315_v26, %v1312_v25  ;;  %v1332_v37 = vsel %vm14914_vm11, %v14874_v9, %v1331_v27  ;;  %v14949_v25 = vld [vmem:[#allocation7 + $0x28] sm:$0xff]  }
  0xc4   :  { %v687_v28 = vor.u32 %v685_v55, %v684_v18  ;;  %v688_v30 = vrot.slane %v684_v18, 4  ;;  %v709_v39 = vrot.slane %v707_v24, 7  ;;  %v710_v47 = vshll.u32 %v12367_v1, 16  ;;  %v434_v55 = vld [vmem:[#allocation2 + $0x30] sm:$0x1] }
  0xc5   :  { %v1007_v42 = vsel %vm14831_vm5, %v697_v32, %v1006_v29  ;;  %v704_v43 = vor.u32 %v702_v23, %v701_v33  ;;  %v705_v44 = vrot.slane %v701_v33, 4  ;;  %v1317_v46 = vrot.slane %v1316_v36, 4 }
  0xc6   :  { %v1003_v38 = vsel %vm14865_vm8, %v687_v28, %v1002_v21  ;;  %v696_v41 = vsel %vm14822_vm2, %v688_v30, %v695_v31  ;;  %1008 = vst [vmem:[#allocation2 + $0x14] sm:$0x1] %v1007_v42  ;;  %v714_v9 = vrot.slane %v709_v39, 4  ;;  %v12368_v48 = vpack.c.bf16 %v343_v3, %v343_v3 }
  0xc7   :  { %1004 = vst [vmem:[#allocation2 + $0xc] sm:$0xf] %v1003_v38  ;;  %1005 = vst [vmem:[#allocation2 + $0x10] sm:$0xf] %v696_v41  ;;  %v1010_v49 = vsel %vm14865_vm8, %v704_v43, %v1009_v40  ;;  %v12369_v50 = vpack.c.bf16 %v344_v4, %v344_v4  ;;  %v313_v51 = vadd.f32 %v14862_v61, %v275_v11  ;;  %v435_v22 = vsel %vm14831_vm5, 0, %v434_v55 }
  0xc8   :  { %v314_v53 = vadd.f32 %v14862_v61, %v276_v12  ;;  %v1322_v60 = vsel %vm14914_vm11, %v1317_v46, %v14845_v54  ;;  %v712_v63 = vor.u32 %v710_v47, %v709_v39  ;;  %1011 = vst [vmem:[#allocation2 + $0x18] sm:$0xf] %v1010_v49  ;;  %v1014_v1 = vsel %vm14831_vm5, %v714_v9, %v1013_v45 }
  0xc9   :  { %v716_v3 = vshrl.u32 %v12368_v48, 16  ;;  %v11819_v6 = vcombine.low %v1322_v60, %v1332_v37  ;;  %1015 = vst [vmem:[#allocation2 + $0x20] sm:$0x1] %v1014_v1  ;;  %v719_v4 = vshll.u32 %v12368_v48, 16  ;;  %v724_v15 = vshrl.u32 %v12369_v50, 16  ;;  %v14123_v60 = vld [vmem:[#allocation13 + $0x98] sm:$0xff]  }
  0xca   :  { %v727_v11 = vshll.u32 %v12369_v50, 16  ;;  %v713_v12 = vsel %vm14822_vm2, %v705_v44, %v712_v63  ;;  %v345_v54 = vmax.f32 %v313_v51, 0.0  ;;  %v346_v20 = vmax.f32 %v314_v53, 0.0  ;;  %436 = vst [vmem:[#allocation2 + $0x30] sm:$0x1] %v435_v22 }
  0xcb   :  { %v14938_v18 = vrot.slane %v716_v3, 7  ;;  %2336 = vmatprep.mubr.bf16.mxu0 %v11819_v6  ;;  %1012 = vst [vmem:[#allocation2 + $0x1c] sm:$0xf] %v713_v12  ;;  %v14940_v21 = vrot.slane %v724_v15, 7  ;;  %v491_v23 = vsel %vm14836_vm6, 0, %v490_v5  ;;  %v277_v24 = vmul.f32 %v12446_v13, %v14852_v57 }
  0xcc   :  { %2337 = vmatmul.mubr.bf16.vlgmr.msra.gmra.mrb[0].mxu0 %v14104_v62  ;;  %492 = vst [vmem:[#allocation2 + $0x38] sm:$0x1] %v491_v23  ;;  %v14952_v29 = vpack.c.bf16 %v345_v54, %v345_v54  ;;  %v14954_v30 = vpack.c.bf16 %v346_v20, %v346_v20  ;;  %v278_v31 = vmul.f32 %v12447_v14, %v14852_v57  ;;  %v14117_v14 = vld [vmem:[#allocation13 + $0x90] sm:$0xff]   ;;  %v12450_v46 = vunpack.c.l.bf16 %v14949_v25 }
  0xcd   :  { %v721_v28 = vor.u32 %v719_v4, %v14938_v18  ;;  %13419 = vmatpush3.bf16.msra.mxu0 %v14847_v56  ;;  %v2804_v32 = vld [vmem:[#allocation2 + $0x14] sm:$0x1]  ;;  %v14961_v37 = vor.u32 %v727_v11, %v14940_v21  ;;  %v14964_v38 = vadd.f32 %v14862_v61, %v277_v24  ;;  %v12451_v6 = vunpack.c.h.bf16 %v14949_v25 }
  0xce   :  { %v2802_v26 = vld [vmem:[#allocation2 + $0xc] sm:$0xf]  ;;  %v2803_v13 = vld [vmem:[#allocation2 + $0x10] sm:$0xf]  ;;  %v2870_v41 = vshll.u32 %v2804_v32, 16  ;;  %13420 = vmatprep.subr.bf16.mxu0 %v14111_v17  ;;  %v14969_v45 = vadd.f32 %v14862_v61, %v278_v31  ;;  %v14129_v31 = vld [vmem:[#allocation13 + $0xa0] sm:$0xff]  }
  0xcf   :  { %v1261_v27 = vld [vmem:[#allocation2 + $0xc] sm:$0xf]  ;;  %v2851_v33 = vshrl.u32 %v2802_v26, 16  ;;  %v2854_v36 = vshll.u32 %v2802_v26, 16  ;;  %v2860_v39 = vshll.u32 %v2803_v13, 16  ;;  %v2864_v40 = vshrl.u32 %v2803_v13, 16 }
  0xd0   :  { %v1017_v52 = vsel %vm14865_vm8, %v721_v28, %v1016_v16  ;;  %v1262_v43 = vld [vmem:[#allocation2 + $0x10] sm:$0xf]  ;;  %v1263_v44 = vld [vmem:[#allocation2 + $0x14] sm:$0x1]  ;;  %v2872_v48 = vrot.slane %v2870_v41, 5  ;;  %v1334_v49 = vshrl.u32 %v1261_v27, 16 }
  0xd1   :  { %v2853_v42 = vrot.slane %v2851_v33, 4  ;;  %v2856_v56 = vrot.slane %v2854_v36, 5  ;;  %1018 = vst [vmem:[#allocation2 + $0x24] sm:$0xf] %v1017_v52  ;;  %v2862_v47 = vrot.slane %v2860_v39, 5  ;;  %v2866_v9 = vrot.slane %v2864_v40, 4  ;;  %13421 = vmatpush3.bf16.msra.mxu0 %v14111_v17 }
  0xd2   :  { %v1337_v51 = vshll.u32 %v1261_v27, 16  ;;  %v1343_v53 = vshll.u32 %v1262_v43, 16  ;;  %v1347_v55 = vshrl.u32 %v1262_v43, 16  ;;  %v1336_v63 = vrot.slane %v1334_v49, 4  ;;  %v2805_v3 = vld [vmem:[#allocation2 + $0x18] sm:$0xf]  ;;  %13422 = vmatprep.subr.bf16.mxu0 %v14117_v14 }
  0xd3   :  { %v2857_v50 = vor.u32 %v2856_v56, %v2853_v42  ;;  %v2867_v62 = vor.u32 %v2866_v9, %v2862_v47  ;;  %v1353_v1 = vshll.u32 %v1263_v44, 16  ;;  %v2806_v5 = vld [vmem:[#allocation2 + $0x1c] sm:$0xf]  ;;  %v2807_v12 = vld [vmem:[#allocation2 + $0x20] sm:$0x1]  ;;  %v2875_v22 = vshrl.u32 %v2805_v3, 16 }
  0xd4   :  { %v1339_v15 = vrot.slane %v1337_v51, 5  ;;  %v1345_v11 = vrot.slane %v1343_v53, 5  ;;  %v1349_v16 = vrot.slane %v1347_v55, 4  ;;  %v2878_v23 = vshll.u32 %v2805_v3, 16  ;;  %v1264_v28 = vld [vmem:[#allocation2 + $0x18] sm:$0xf] }
  0xd5   :  { %v2858_v4 = vrot.slane %v2857_v50, 4  ;;  %v2868_v54 = vrot.slane %v2867_v62, 4  ;;  %v1355_v20 = vrot.slane %v1353_v1, 5  ;;  %v2884_v27 = vshll.u32 %v2806_v5, 16  ;;  %13423 = vmatpush3.bf16.msra.mxu0 %v14117_v14  ;;  %v14107_v32 = vld [vmem:[#allocation2 + $0xc] sm:$0xff]  }
  0xd6   :  { %v1340_v24 = vor.u32 %v1339_v15, %v1336_v63  ;;  %v1350_v26 = vor.u32 %v1349_v16, %v1345_v11  ;;  %v2877_v33 = vrot.slane %v2875_v22, 4  ;;  %v2880_v36 = vrot.slane %v2878_v23, 5  ;;  %v1265_v40 = vld [vmem:[#allocation2 + $0x1c] sm:$0xf]  ;;  %13424 = vmatprep.subr.bf16.mxu0 %v14123_v60  ;;  %v14112_v43 = vld [vmem:[#allocation13 + $0x148] sm:$0xff]   ;;  %v14118_v23 = vld [vmem:[#allocation13 + $0x150] sm:$0xff]  }
  0xd7   :  { %v2863_v17 = vsel %vm14914_vm11, %v2858_v4, %v2862_v47  ;;  %v2873_v13 = vsel %vm14914_vm11, %v2868_v54, %v2872_v48  ;;  %v2888_v39 = vshrl.u32 %v2806_v5, 16  ;;  %v2886_v56 = vrot.slane %v2884_v27, 5  ;;  %v14108_v44 = vld [vmem:[#allocation2 + $0xc] sm:$0xff]   ;;  %v1266_v51 = vld [vmem:[#allocation2 + $0x20] sm:$0x1] }
  0xd8   :  { %v11907_v41 = vcombine.low %v2863_v17, %v2873_v13  ;;  %v1341_v52 = vrot.slane %v1340_v24, 4  ;;  %v1351_v42 = vrot.slane %v1350_v26, 4  ;;  %v2881_v47 = vor.u32 %v2880_v36, %v2877_v33  ;;  %v2808_v5 = vld [vmem:[#allocation2 + $0x24] sm:$0xf]  ;;  %v1020_v22 = vld [vmem:[#allocation2 + $0x2c] sm:$0x1] }
  0xd9   :  { %v2890_v9 = vrot.slane %v2888_v39, 4  ;;  %v2894_v49 = vshll.u32 %v2807_v12, 16  ;;  %v1358_v14 = vshrl.u32 %v1264_v28, 16  ;;  %v1361_v53 = vshll.u32 %v1264_v28, 16  ;;  %13425 = vmatpush3.bf16.msra.mxu0 %v14123_v60  ;;  %v1267_v27 = vld [vmem:[#allocation2 + $0x24] sm:$0xf] }
  0xda   :  { %3874 = vmatprep.mubr.bf16.mxu1 %v11907_v41  ;;  %v1346_v48 = vsel %vm14914_vm11, %v1341_v52, %v1345_v11  ;;  %v1356_v50 = vsel %vm14914_vm11, %v1351_v42, %v1355_v20  ;;  %v1367_v55 = vshll.u32 %v1265_v40, 16  ;;  %v2882_v63 = vrot.slane %v2881_v47, 4  ;;  %13426 = vmatprep.subr.bf16.mxu0 %v14129_v31  ;;  %v14135_v28 = vld [vmem:[#allocation13 + $0xa8] sm:$0xff]   ;;  %v14124_v47 = vld [vmem:[#allocation13 + $0x158] sm:$0xff]  }
  0xdb   :  { %3875 = vmatmul.mubr.bf16.vlgmr.msra.gmra.mrb[0].mxu1 %v14107_v32  ;;  %v11820_v62 = vcombine.low %v1346_v48, %v1356_v50  ;;  %v2891_v1 = vor.u32 %v2890_v9, %v2886_v56  ;;  %v2896_v3 = vrot.slane %v2894_v49, 5  ;;  %v1360_v4 = vrot.slane %v1358_v14, 4  ;;  %v14109_v32 = vld [vmem:[#allocation2 + $0x18] sm:$0xff]  }
  0xdc   :  { %13467 = vmatpush3.bf16.msra.mxu1 %v14876_v10  ;;  %v1363_v15 = vrot.slane %v1361_v53, 5  ;;  %v1369_v16 = vrot.slane %v1367_v55, 5  ;;  %v1371_v11 = vshrl.u32 %v1265_v40, 16  ;;  %v2887_v12 = vsel %vm14914_vm11, %v2882_v63, %v2886_v56  ;;  %v437_v14 = vld [vmem:[#allocation2 + $0x3c] sm:$0x1] }
  0xdd   :  { %2344 = vmatprep.mubr.bf16.mxu0 %v11820_v62  ;;  %v2892_v54 = vrot.slane %v2891_v1, 4  ;;  %v1377_v20 = vshll.u32 %v1266_v51, 16  ;;  %v722_v60 = vrot.slane %v14938_v18, 4  ;;  %13468 = vmatprep.subr.bf16.mxu1 %v14112_v43  ;;  %v731_v10 = vrot.slane %v14940_v21, 4  ;;  %v14110_v55 = vld [vmem:[#allocation2 + $0x18] sm:$0xff]  }
  0xde   :  { %2345 = vmatmul.mubr.bf16.gmra.mrb[4].mxu0 %v14108_v44  ;;  %v1364_v17 = vor.u32 %v1363_v15, %v1360_v4  ;;  %v1373_v24 = vrot.slane %v1371_v11, 4  ;;  %v2899_v26 = vshrl.u32 %v2808_v5, 16  ;;  %v2902_v36 = vshll.u32 %v2808_v5, 16  ;;  %v1023_v15 = vld [vmem:[#allocation2 + $0x30] sm:$0xf] }
  0xdf   :  { %v2897_v13 = vsel %vm14914_vm11, %v2892_v54, %v2896_v3  ;;  %v1379_v33 = vrot.slane %v1377_v20, 5  ;;  %v730_v18 = vsel %vm14822_vm2, %v722_v60, %v14961_v37  ;;  %13427 = vmatpush3.bf16.msra.mxu0 %v14129_v31  ;;  %v1021_v21 = vsel %vm14831_vm5, %v731_v10, %v1020_v22  ;;  %v493_v60 = vld [vmem:[#allocation2 + $0x44] sm:$0x1] }
  0xe0   :  { %v11908_v39 = vcombine.low %v2887_v12, %v2897_v13  ;;  %v1365_v40 = vrot.slane %v1364_v17, 4  ;;  %v1374_v41 = vor.u32 %v1373_v24, %v1369_v16  ;;  %1019 = vst [vmem:[#allocation2 + $0x28] sm:$0xf] %v730_v18  ;;  %13469 = vmatpush3.bf16.msra.mxu1 %v14112_v43  ;;  %13428 = vmatprep.subr.bf16.mxu0 %v14135_v28  ;;  %1022 = vst [vmem:[#allocation2 + $0x2c] sm:$0x1] %v1021_v21 }
  0xe1   :  { %v2901_v52 = vrot.slane %v2899_v26, 4  ;;  %v2904_v42 = vrot.slane %v2902_v36, 5  ;;  %v1382_v56 = vshrl.u32 %v1267_v27, 16  ;;  %v1385_v44 = vshll.u32 %v1267_v27, 16  ;;  %13470 = vmatprep.subr.bf16.mxu1 %v14118_v23 }
  0xe2   :  { %3882 = vmatprep.mubr.bf16.mxu1 %v11908_v39  ;;  %v1370_v37 = vsel %vm14914_vm11, %v1365_v40, %v1369_v16  ;;  %v1375_v31 = vrot.slane %v1374_v41, 4  ;;  %v733_v9 = vshrl.u32 %v14952_v29, 16  ;;  %v736_v49 = vshll.u32 %v14952_v29, 16  ;;  %v14130_v16 = vld [vmem:[#allocation13 + $0x160] sm:$0xff]  }
  0xe3   :  { %3883 = vmatmul.mubr.bf16.gmra.mrb[4].mxu1 %v14109_v32  ;;  %v2905_v43 = vor.u32 %v2904_v42, %v2901_v52  ;;  %v1384_v48 = vrot.slane %v1382_v56, 4  ;;  %v1387_v50 = vrot.slane %v1385_v44, 5  ;;  %v741_v51 = vshrl.u32 %v14954_v30, 16  ;;  %13429 = vmatpush3.bf16.msra.mxu0 %v14135_v28 }
  0xe4   :  { %v1380_v53 = vsel %vm14914_vm11, %v1375_v31, %v1379_v33  ;;  %v735_v62 = vrot.slane %v733_v9, 7  ;;  %v744_v63 = vshll.u32 %v14954_v30, 16  ;;  %v347_v1 = vmax.f32 %v14964_v38, 0.0  ;;  %13471 = vmatpush3.bf16.msra.mxu1 %v14118_v23  ;;  %v1027_v23 = vld [vmem:[#allocation2 + $0x38] sm:$0x1] }
  0xe5   :  { %v11821_v3 = vcombine.low %v1370_v37, %v1380_v53  ;;  %v15002_v29 = vrot.slane %v2905_v43, 4  ;;  %v1388_v5 = vor.u32 %v1387_v50, %v1384_v48  ;;  %v743_v4 = vrot.slane %v741_v51, 7  ;;  %13472 = vmatprep.subr.bf16.mxu1 %v14124_v47  ;;  %v14136_v43 = vld [vmem:[#allocation13 + $0x168] sm:$0xff]  }
  0xe6   :  { %v738_v11 = vor.u32 %v736_v49, %v735_v62  ;;  %v739_v12 = vrot.slane %v735_v62, 4  ;;  %v348_v54 = vmax.f32 %v14969_v45, 0.0  ;;  %v438_v20 = vsel %vm14831_vm5, 0, %v437_v14  ;;  %v440_v49 = vld [vmem:[#allocation2 + $0x48] sm:$0x1]  ;;  %v15027_v14 = vld [vmem:[#allocation7 + $0x30] sm:$0xff]  }
  0xe7   :  { %2352 = vmatprep.mubr.bf16.mxu0 %v11821_v3  ;;  %v2809_v30 = vld [vmem:[#allocation2 + $0x28] sm:$0xf]  ;;  %v15007_v38 = vrot.slane %v1388_v5, 4  ;;  %v746_v22 = vor.u32 %v744_v63, %v743_v4  ;;  %439 = vst [vmem:[#allocation2 + $0x3c] sm:$0x1] %v438_v20  ;;  %v15009_v17 = vpack.c.bf16 %v347_v1, %v347_v1  ;;  %v279_v24 = vmul.f32 %v12450_v46, %v14852_v57 }
  0xe8   :  { %2353 = vmatmul.mubr.bf16.gmra.mrb[8].mxu0 %v14110_v55  ;;  %v2810_v10 = vld [vmem:[#allocation2 + $0x2c] sm:$0x1]  ;;  %v2908_v45 = vshll.u32 %v2809_v30, 16  ;;  %v2912_v26 = vshrl.u32 %v2809_v30, 16  ;;  %v1268_v27 = vld [vmem:[#allocation2 + $0x28] sm:$0xf]  ;;  %v1024_v28 = vsel %vm14865_vm8, %v738_v11, %v1023_v15  ;;  %v15016_v13 = vpack.c.bf16 %v348_v54, %v348_v54  ;;  %13473 = vmatpush3.bf16.msra.mxu1 %v14124_v47 }
  0xe9   :  { %v2918_v32 = vshll.u32 %v2810_v10, 16  ;;  %v1269_v33 = vld [vmem:[#allocation2 + $0x2c] sm:$0x1]  ;;  %v1391_v18 = vshll.u32 %v1268_v27, 16  ;;  %v1395_v36 = vshrl.u32 %v1268_v27, 16  ;;  %v747_v39 = vsel %vm14822_vm2, %v739_v12, %v746_v22  ;;  %13474 = vmatprep.subr.bf16.mxu1 %v14130_v16  ;;  %v14113_v3 = vld [vmem:[#allocation2 + $0x24] sm:$0xff]  }
  0xea   :  { %1025 = vst [vmem:[#allocation2 + $0x30] sm:$0xf] %v1024_v28  ;;  %v2910_v46 = vrot.slane %v2908_v45, 5  ;;  %v2914_v40 = vrot.slane %v2912_v26, 4  ;;  %v1401_v41 = vshll.u32 %v1269_v33, 16  ;;  %v748_v21 = vrot.slane %v743_v4, 4 }
  0xeb   :  { %1026 = vst [vmem:[#allocation2 + $0x34] sm:$0xf] %v747_v39  ;;  %v2920_v52 = vrot.slane %v2918_v32, 5  ;;  %v1393_v42 = vrot.slane %v1391_v18, 5  ;;  %v1397_v56 = vrot.slane %v1395_v36, 4  ;;  %v494_v44 = vsel %vm14836_vm6, 0, %v493_v60 }
  0xec   :  { %v2911_v47 = vsel %vm14914_vm11, %v15002_v29, %v2910_v46  ;;  %v2915_v37 = vor.u32 %v2914_v40, %v2910_v46  ;;  %v1403_v31 = vrot.slane %v1401_v41, 5  ;;  %v1028_v9 = vsel %vm14831_vm5, %v748_v21, %v1027_v23  ;;  %495 = vst [vmem:[#allocation2 + $0x44] sm:$0x1] %v494_v44  ;;  %13475 = vmatpush3.bf16.msra.mxu1 %v14130_v16  ;;  %v14114_v5 = vld [vmem:[#allocation2 + $0x24] sm:$0xff]  }
  0xed   :  { %v1394_v48 = vsel %vm14914_vm11, %v15007_v38, %v1393_v42  ;;  %v1398_v50 = vor.u32 %v1397_v56, %v1393_v42  ;;  %1029 = vst [vmem:[#allocation2 + $0x38] sm:$0x1] %v1028_v9  ;;  %v750_v51 = vshrl.u32 %v15009_v17, 16  ;;  %v753_v53 = vshll.u32 %v15009_v17, 16  ;;  %13476 = vmatprep.subr.bf16.mxu1 %v14136_v43 }
  0xee   :  { %v2916_v55 = vrot.slane %v2915_v37, 4  ;;  %v758_v62 = vshrl.u32 %v15016_v13, 16  ;;  %v761_v63 = vshll.u32 %v15016_v13, 16  ;;  %v280_v1 = vmul.f32 %v12451_v6, %v14852_v57  ;;  %v1030_v9 = vld [vmem:[#allocation2 + $0x3c] sm:$0xf] }
  0xef   :  { %v1399_v29 = vrot.slane %v1398_v50, 4  ;;  %v15039_v4 = vrot.slane %v750_v51, 7  ;;  %v15042_v15 = vadd.f32 %v14862_v61, %v279_v24  ;;  %v441_v16 = vsel %vm14831_vm5, 0, %v440_v49  ;;  %v496_v51 = vld [vmem:[#allocation2 + $0x50] sm:$0x1] }
  0xf0   :  { %v2921_v11 = vsel %vm14914_vm11, %v2916_v55, %v2920_v52  ;;  %v15049_v25 = vadd.f32 %v14862_v61, %v280_v1  ;;  %442 = vst [vmem:[#allocation2 + $0x48] sm:$0x1] %v441_v16  ;;  %v12454_v6 = vunpack.c.l.bf16 %v15027_v14  ;;  %v12455_v20 = vunpack.c.h.bf16 %v15027_v14  ;;  %13477 = vmatpush3.bf16.msra.mxu1 %v14136_v43 }
  0xf1   :  { %v2811_v12 = vld [vmem:[#allocation2 + $0x30] sm:$0xf]  ;;  %v11909_v60 = vcombine.low %v2911_v47, %v2921_v11  ;;  %v1404_v30 = vsel %vm14914_vm11, %v1399_v29, %v1403_v31  ;;  %v755_v40 = vor.u32 %v753_v53, %v15039_v4  ;;  %v756_v50 = vrot.slane %v15039_v4, 4 }
  0xf2   :  { %v1270_v54 = vld [vmem:[#allocation2 + $0x30] sm:$0xf]  ;;  %v2812_v38 = vld [vmem:[#allocation2 + $0x34] sm:$0xf]  ;;  %v2923_v22 = vshrl.u32 %v2811_v12, 16  ;;  %v2926_v23 = vshll.u32 %v2811_v12, 16  ;;  %v11822_v17 = vcombine.low %v1394_v48, %v1404_v30  ;;  %v281_v41 = vmul.f32 %v12454_v6, %v14852_v57 }
  0xf3   :  { %v2932_v24 = vshll.u32 %v2812_v38, 16  ;;  %v2936_v10 = vshrl.u32 %v2812_v38, 16  ;;  %v1271_v45 = vld [vmem:[#allocation2 + $0x34] sm:$0xf]  ;;  %v1406_v26 = vshrl.u32 %v1270_v54, 16  ;;  %3890 = vmatprep.mubr.bf16.mxu1 %v11909_v60  ;;  %v1409_v32 = vshll.u32 %v1270_v54, 16 }
  0xf4   :  { %v2925_v27 = vrot.slane %v2923_v22, 4  ;;  %v2928_v28 = vrot.slane %v2926_v23, 5  ;;  %v1415_v33 = vshll.u32 %v1271_v45, 16  ;;  %3891 = vmatmul.mubr.bf16.gmra.mrb[8].mxu1 %v14113_v3  ;;  %2360 = vmatprep.mubr.bf16.mxu0 %v11822_v17  ;;  %v2813_v18 = vld [vmem:[#allocation2 + $0x38] sm:$0x1]  ;;  %v1419_v37 = vshrl.u32 %v1271_v45, 16 }
  0xf5   :  { %v2934_v36 = vrot.slane %v2932_v24, 5  ;;  %v2938_v39 = vrot.slane %v2936_v10, 4  ;;  %v1272_v46 = vld [vmem:[#allocation2 + $0x38] sm:$0x1]  ;;  %2361 = vmatmul.mubr.bf16.gmra.mrb[12].mxu0 %v14114_v5  ;;  %v2942_v52 = vshll.u32 %v2813_v18, 16  ;;  %v1408_v42 = vrot.slane %v1406_v26, 4 }
  0xf6   :  { %v2929_v21 = vor.u32 %v2928_v28, %v2925_v27  ;;  %v1411_v56 = vrot.slane %v1409_v32, 5  ;;  %v1417_v47 = vrot.slane %v1415_v33, 5  ;;  %v1425_v31 = vshll.u32 %v1272_v46, 16  ;;  %v1034_v29 = vld [vmem:[#allocation2 + $0x44] sm:$0x1]  ;;  %v14115_v6 = vld [vmem:[#allocation2 + $0x30] sm:$0xff]  }
  0xf7   :  { %v2939_v44 = vor.u32 %v2938_v39, %v2934_v36  ;;  %v2944_v43 = vrot.slane %v2942_v52, 5  ;;  %v1421_v53 = vrot.slane %v1419_v37, 4  ;;  %v760_v3 = vrot.slane %v758_v62, 7  ;;  %v443_v62 = vld [vmem:[#allocation2 + $0x54] sm:$0x1]  ;;  %v15072_v24 = vld [vmem:[#allocation7 + $0x38] sm:$0xff]  }
  0xf8   :  { %v2930_v49 = vrot.slane %v2929_v21, 4  ;;  %v1412_v48 = vor.u32 %v1411_v56, %v1408_v42  ;;  %v1427_v1 = vrot.slane %v1425_v31, 5  ;;  %v1031_v11 = vsel %vm14865_vm8, %v755_v40, %v1030_v9  ;;  %v499_v38 = vld [vmem:[#allocation2 + $0x5c] sm:$0x1]  ;;  %v15078_v26 = vld [vmem:[#allocation7 + $0x40] sm:$0xff]  }
  0xf9   :  { %v2940_v55 = vrot.slane %v2939_v44, 4  ;;  %v349_v12 = vmax.f32 %v15042_v15, 0.0  ;;  %v1422_v4 = vor.u32 %v1421_v53, %v1417_v47  ;;  %v763_v60 = vor.u32 %v761_v63, %v760_v3  ;;  %1032 = vst [vmem:[#allocation2 + $0x3c] sm:$0xf] %v1031_v11  ;;  %v15080_v27 = vld [vmem:[#allocation7 + $0x48] sm:$0xff]   ;;  %v14141_v18 = vld [vmem:[#allocation13 + $0xb0] sm:$0xff]  }
  0xfa   :  { %v2935_v5 = vsel %vm14914_vm11, %v2930_v49, %v2934_v36  ;;  %v1413_v16 = vrot.slane %v1412_v48, 4  ;;  %v765_v30 = vrot.slane %v760_v3, 4  ;;  %v350_v17 = vmax.f32 %v15049_v25, 0.0  ;;  %v14116_v39 = vld [vmem:[#allocation2 + $0x30] sm:$0xff]   ;;  %13430 = vmatprep.subr.bf16.mxu0 %v14141_v18  ;;  %v1037_v3 = vld [vmem:[#allocation2 + $0x48] sm:$0xf] }
  0xfb   :  { %v2945_v54 = vsel %vm14914_vm11, %v2940_v55, %v2944_v43  ;;  %v497_v15 = vsel %vm14836_vm6, 0, %v496_v51  ;;  %v1423_v10 = vrot.slane %v1422_v4, 4  ;;  %v764_v13 = vsel %vm14822_vm2, %v756_v50, %v763_v60  ;;  %13431 = vmatpush3.bf16.msra.mxu0 %v14141_v18  ;;  %v15105_v4 = vld [vmem:[%s18138_s3] ss:$0 sm:$0xff] }
  0xfc   :  { %v11910_v22 = vcombine.low %v2935_v5, %v2945_v54  ;;  %v1418_v23 = vsel %vm14914_vm11, %v1413_v16, %v1417_v47  ;;  %v1035_v63 = vsel %vm14831_vm5, %v765_v30, %v1034_v29  ;;  %498 = vst [vmem:[#allocation2 + $0x50] sm:$0x1] %v497_v15  ;;  %v12374_v45 = vpack.c.bf16 %v349_v12, %v349_v12  ;;  %v14142_v5 = vld [vmem:[#allocation13 + $0x170] sm:$0xff]  }
  0xfd   :  { %1033 = vst [vmem:[#allocation2 + $0x40] sm:$0xf] %v764_v13  ;;  %1036 = vst [vmem:[#allocation2 + $0x44] sm:$0x1] %v1035_v63  ;;  %v12375_v25 = vpack.c.bf16 %v350_v17, %v350_v17  ;;  %v282_v28 = vmul.f32 %v12455_v20, %v14852_v57  ;;  %v319_v32 = vadd.f32 %v14862_v61, %v281_v41  ;;  %v444_v33 = vsel %vm14831_vm5, 0, %v443_v62 }
  0xfe   :  { %3898 = vmatprep.mubr.bf16.mxu1 %v11910_v22  ;;  %v1428_v36 = vsel %vm14914_vm11, %v1423_v10, %v1427_v1  ;;  %v767_v46 = vshrl.u32 %v12374_v45, 16  ;;  %v770_v40 = vshll.u32 %v12374_v45, 16  ;;  %445 = vst [vmem:[#allocation2 + $0x54] sm:$0x1] %v444_v33  ;;  %v500_v21 = vsel %vm14836_vm6, 0, %v499_v38  ;;  %13478 = vmatprep.subr.bf16.mxu1 %v14142_v5 }
  0xff   :  { %3899 = vmatmul.mubr.bf16.gmra.mrb[12].mxu1 %v14115_v6  ;;  %v11823_v52 = vcombine.low %v1418_v23, %v1428_v36  ;;  %v775_v14 = vshrl.u32 %v12375_v25, 16  ;;  %v778_v57 = vshll.u32 %v12375_v25, 16  ;;  %v15093_v20 = vadd.f32 %v14862_v61, %v282_v28  ;;  %501 = vst [vmem:[#allocation2 + $0x5c] sm:$0x1] %v500_v21 }
 0x100   :  { %v769_v41 = vrot.slane %v767_v46, 7  ;;  %v351_v42 = vmax.f32 %v319_v32, 0.0  ;;  %v12458_v56 = vunpack.c.l.bf16 %v15072_v24  ;;  %v12459_v44 = vunpack.c.h.bf16 %v15072_v24  ;;  %v2814_v47 = vld [vmem:[#allocation2 + $0x3c] sm:$0xf]  ;;  %13479 = vmatpush3.bf16.msra.mxu1 %v14142_v5 }
 0x101   :  { %2368 = vmatprep.mubr.bf16.mxu0 %v11823_v52  ;;  %v1273_v37 = vld [vmem:[#allocation2 + $0x3c] sm:$0xf]  ;;  %v12462_v31 = vunpack.c.l.bf16 %v15078_v26  ;;  %v12463_v9 = vunpack.c.h.bf16 %v15078_v26  ;;  %v12466_v49 = vunpack.c.l.bf16 %v15080_v27  ;;  %v12467_v61 = vunpack.c.h.bf16 %v15080_v27 }
 0x102   :  { %2369 = vmatmul.mubr.bf16.gmra.mrb[16].mxu0 %v14116_v39  ;;  %v2947_v43 = vshrl.u32 %v2814_v47, 16  ;;  %v2950_v48 = vshll.u32 %v2814_v47, 16  ;;  %v1430_v50 = vshrl.u32 %v1273_v37, 16  ;;  %v1433_v51 = vshll.u32 %v1273_v37, 16 }
 0x103   :  { %v772_v55 = vor.u32 %v770_v40, %v769_v41  ;;  %v773_v53 = vrot.slane %v769_v41, 4  ;;  %v777_v1 = vrot.slane %v775_v14, 7  ;;  %v352_v29 = vmax.f32 %v15093_v20, 0.0  ;;  %v1041_v46 = vld [vmem:[#allocation2 + $0x50] sm:$0x1] }
 0x104   :  { %v2815_v16 = vld [vmem:[#allocation2 + $0x40] sm:$0xf]  ;;  %v2816_v11 = vld [vmem:[#allocation2 + $0x44] sm:$0x1]  ;;  %v2949_v12 = vrot.slane %v2947_v43, 4  ;;  %v2952_v54 = vrot.slane %v2950_v48, 5  ;;  %v12376_v6 = vpack.c.bf16 %v351_v42, %v351_v42  ;;  %v283_v60 = vmul.f32 %v15105_v4, %v12458_v56 }
 0x105   :  { %v2956_v30 = vshll.u32 %v2815_v16, 16  ;;  %v2960_v62 = vshrl.u32 %v2815_v16, 16  ;;  %v2966_v38 = vshll.u32 %v2816_v11, 16  ;;  %v780_v22 = vor.u32 %v778_v57, %v777_v1  ;;  %v1274_v17 = vld [vmem:[#allocation2 + $0x40] sm:$0xf] }
 0x106   :  { %v2953_v23 = vor.u32 %v2952_v54, %v2949_v12  ;;  %v1275_v15 = vld [vmem:[#allocation2 + $0x44] sm:$0x1]  ;;  %v1432_v10 = vrot.slane %v1430_v50, 4  ;;  %v1435_v13 = vrot.slane %v1433_v51, 5  ;;  %v1038_v63 = vsel %vm14865_vm8, %v772_v55, %v1037_v3  ;;  %v1044_v55 = vld [vmem:[#allocation2 + $0x54] sm:$0xf] }
 0x107   :  { %v2958_v45 = vrot.slane %v2956_v30, 5  ;;  %v2962_v25 = vrot.slane %v2960_v62, 4  ;;  %v2968_v28 = vrot.slane %v2966_v38, 5  ;;  %v1439_v32 = vshll.u32 %v1274_v17, 16  ;;  %1039 = vst [vmem:[#allocation2 + $0x48] sm:$0xf] %v1038_v63 }
 0x108   :  { %v2954_v33 = vrot.slane %v2953_v23, 4  ;;  %v1436_v18 = vor.u32 %v1435_v13, %v1432_v10  ;;  %v1443_v36 = vshrl.u32 %v1274_v17, 16  ;;  %v1449_v39 = vshll.u32 %v1275_v15, 16  ;;  %v14119_v3 = vld [vmem:[#allocation2 + $0x3c] sm:$0xff]  }
 0x109   :  { %v2963_v40 = vor.u32 %v2962_v25, %v2958_v45  ;;  %v1441_v21 = vrot.slane %v1439_v32, 5  ;;  %v781_v52 = vsel %vm14822_vm2, %v773_v53, %v780_v22  ;;  %v782_v14 = vrot.slane %v777_v1, 4  ;;  %v14120_v15 = vld [vmem:[#allocation2 + $0x3c] sm:$0xff]  }
 0x10a   :  { %v2959_v57 = vsel %vm14914_vm11, %v2954_v33, %v2958_v45  ;;  %v1437_v20 = vrot.slane %v1436_v18, 4  ;;  %v1445_v41 = vrot.slane %v1443_v36, 4  ;;  %v1451_v42 = vrot.slane %v1449_v39, 5  ;;  %1040 = vst [vmem:[#allocation2 + $0x4c] sm:$0xf] %v781_v52 }
 0x10b   :  { %v2964_v56 = vrot.slane %v2963_v40, 4  ;;  %v1042_v47 = vsel %vm14831_vm5, %v782_v14, %v1041_v46  ;;  %v15116_v37 = vpack.c.bf16 %v352_v29, %v352_v29  ;;  %v784_v43 = vshrl.u32 %v12376_v6, 16 }
 0x10c   :  { %v1442_v48 = vsel %vm14914_vm11, %v1437_v20, %v1441_v21  ;;  %v1446_v50 = vor.u32 %v1445_v41, %v1441_v21  ;;  %1043 = vst [vmem:[#allocation2 + $0x50] sm:$0x1] %v1042_v47  ;;  %v787_v51 = vshll.u32 %v12376_v6, 16  ;;  %v284_v53 = vmul.f32 %v15105_v4, %v12459_v44  ;;  %v15132_v6 = vld [vmem:[%s18139_s4] ss:$0 sm:$0xff] }
 0x10d   :  { %v2969_v1 = vsel %vm14914_vm11, %v2964_v56, %v2968_v28  ;;  %v15125_v5 = vrot.slane %v784_v43, 7  ;;  %v792_v29 = vshrl.u32 %v15116_v37, 16  ;;  %v795_v16 = vshll.u32 %v15116_v37, 16 }
 0x10e   :  { %v11911_v11 = vcombine.low %v2959_v57, %v2969_v1  ;;  %v1447_v12 = vrot.slane %v1446_v50, 4  ;;  %v2817_v54 = vld [vmem:[#allocation2 + $0x48] sm:$0xf]  ;;  %v321_v24 = vadd.f32 %v15132_v6, %v283_v60  ;;  %v15136_v44 = vadd.f32 %v15132_v6, %v284_v53 }
 0x10f   :  { %v2971_v30 = vshrl.u32 %v2817_v54, 16  ;;  %v2974_v62 = vshll.u32 %v2817_v54, 16  ;;  %v1276_v38 = vld [vmem:[#allocation2 + $0x48] sm:$0xf]  ;;  %v789_v22 = vor.u32 %v787_v51, %v15125_v5  ;;  %v285_v23 = vmul.f32 %v15105_v4, %v12462_v31 }
 0x110   :  { %3906 = vmatprep.mubr.bf16.mxu1 %v11911_v11  ;;  %v1452_v17 = vsel %vm14914_vm11, %v1447_v12, %v1451_v42  ;;  %v1454_v10 = vshrl.u32 %v1276_v38, 16  ;;  %v1457_v13 = vshll.u32 %v1276_v38, 16  ;;  %v790_v60 = vrot.slane %v15125_v5, 4  ;;  %v446_v11 = vld [vmem:[#allocation2 + $0x60] sm:$0x1]  ;;  %v14147_v12 = vld [vmem:[#allocation13 + $0xb8] sm:$0xff]  }
 0x111   :  { %3907 = vmatmul.mubr.bf16.gmra.mrb[16].mxu1 %v14119_v3  ;;  %v11824_v63 = vcombine.low %v1442_v48, %v1452_v17  ;;  %v2818_v45 = vld [vmem:[#allocation2 + $0x4c] sm:$0xf]  ;;  %v2973_v25 = vrot.slane %v2971_v30, 4  ;;  %v2976_v28 = vrot.slane %v2974_v62, 5  ;;  %v1045_v32 = vsel %vm14865_vm8, %v789_v22, %v1044_v55  ;;  %v1048_v48 = vld [vmem:[#allocation2 + $0x5c] sm:$0x1]  ;;  %13432 = vmatprep.subr.bf16.mxu0 %v14147_v12 }
 0x112   :  { %v2980_v33 = vshll.u32 %v2818_v45, 16  ;;  %v2984_v18 = vshrl.u32 %v2818_v45, 16  ;;  %v1277_v31 = vld [vmem:[#allocation2 + $0x4c] sm:$0xf]  ;;  %v1456_v36 = vrot.slane %v1454_v10, 4  ;;  %v286_v39 = vmul.f32 %v15105_v4, %v12463_v9  ;;  %13433 = vmatpush3.bf16.msra.mxu0 %v14147_v12 }
 0x113   :  { %1046 = vst [vmem:[#allocation2 + $0x54] sm:$0xf] %v1045_v32  ;;  %2376 = vmatprep.mubr.bf16.mxu0 %v11824_v63  ;;  %v2819_v46 = vld [vmem:[#allocation2 + $0x50] sm:$0x1]  ;;  %v2977_v40 = vor.u32 %v2976_v28, %v2973_v25  ;;  %v1459_v52 = vrot.slane %v1457_v13, 5  ;;  %v1463_v14 = vshll.u32 %v1277_v31, 16  ;;  %v15151_v57 = vadd.f32 %v15132_v6, %v285_v23 }
 0x114   :  { %v1278_v21 = vld [vmem:[#allocation2 + $0x50] sm:$0x1]  ;;  %2377 = vmatmul.mubr.bf16.gmra.mrb[20].mxu0 %v14120_v15  ;;  %v2982_v20 = vrot.slane %v2980_v33, 5  ;;  %v2986_v41 = vrot.slane %v2984_v18, 4  ;;  %v2990_v42 = vshll.u32 %v2819_v46, 16  ;;  %v1467_v56 = vshrl.u32 %v1277_v31, 16 }
 0x115   :  { %v2978_v47 = vrot.slane %v2977_v40, 4  ;;  %v1460_v37 = vor.u32 %v1459_v52, %v1456_v36  ;;  %v1465_v43 = vrot.slane %v1463_v14, 5  ;;  %v1473_v26 = vshll.u32 %v1278_v21, 16  ;;  %v502_v15 = vld [vmem:[#allocation2 + $0x68] sm:$0x1] }
 0x116   :  { %v2987_v9 = vor.u32 %v2986_v41, %v2982_v20  ;;  %v2992_v50 = vrot.slane %v2990_v42, 5  ;;  %v1469_v51 = vrot.slane %v1467_v56, 4  ;;  %v794_v55 = vrot.slane %v792_v29, 7  ;;  %v14121_v63 = vld [vmem:[#allocation2 + $0x48] sm:$0xff]   ;;  %v505_v40 = vld [vmem:[#allocation2 + $0x74] sm:$0x1] }
 0x117   :  { %v2983_v53 = vsel %vm14914_vm11, %v2978_v47, %v2982_v20  ;;  %v1461_v1 = vrot.slane %v1460_v37, 4  ;;  %v1475_v3 = vrot.slane %v1473_v26, 5  ;;  %v353_v5 = vmax.f32 %v321_v24, 0.0  ;;  %v14122_v31 = vld [vmem:[#allocation2 + $0x48] sm:$0xff]  }
 0x118   :  { %v2988_v54 = vrot.slane %v2987_v9, 4  ;;  %v1470_v30 = vor.u32 %v1469_v51, %v1465_v43  ;;  %v797_v62 = vor.u32 %v795_v16, %v794_v55  ;;  %v799_v38 = vrot.slane %v794_v55, 4  ;;  %v449_v46 = vld [vmem:[#allocation2 + $0x6c] sm:$0x1]  ;;  %v15175_v55 = vld [vmem:[#allocation7 + $0x50] sm:$0xff]  }
 0x119   :  { %v1466_v22 = vsel %vm14914_vm11, %v1461_v1, %v1465_v43  ;;  %v12378_v10 = vpack.c.bf16 %v353_v5, %v353_v5  ;;  %v324_v29 = vadd.f32 %v15132_v6, %v286_v39  ;;  %v287_v13 = vmul.f32 %v15105_v4, %v12466_v49 }
 0x11a   :  { %v2820_v23 = vld [vmem:[#allocation2 + $0x54] sm:$0xf]  ;;  %v2993_v24 = vsel %vm14914_vm11, %v2988_v54, %v2992_v50  ;;  %v1471_v16 = vrot.slane %v1470_v30, 4  ;;  %v798_v45 = vsel %vm14822_vm2, %v790_v60, %v797_v62  ;;  %v1049_v25 = vsel %vm14831_vm5, %v799_v38, %v1048_v48 }
 0x11b   :  { %v1279_v17 = vld [vmem:[#allocation2 + $0x54] sm:$0xf]  ;;  %v11912_v28 = vcombine.low %v2983_v53, %v2993_v24  ;;  %1047 = vst [vmem:[#allocation2 + $0x58] sm:$0xf] %v798_v45  ;;  %1050 = vst [vmem:[#allocation2 + $0x5c] sm:$0x1] %v1049_v25  ;;  %v288_v30 = vmul.f32 %v15105_v4, %v12467_v61  ;;  %v15187_v62 = vadd.f32 %v15132_v6, %v287_v13 }
 0x11c   :  { %v2995_v32 = vshrl.u32 %v2820_v23, 16  ;;  %v2998_v33 = vshll.u32 %v2820_v23, 16  ;;  %v1478_v18 = vshrl.u32 %v1279_v17, 16  ;;  %v1476_v49 = vsel %vm14914_vm11, %v1471_v16, %v1475_v3 }
 0x11d   :  { %v1481_v36 = vshll.u32 %v1279_v17, 16  ;;  %v354_v39 = vmax.f32 %v15136_v44, 0.0  ;;  %v447_v60 = vsel %vm14831_vm5, 0, %v446_v11  ;;  %3914 = vmatprep.mubr.bf16.mxu1 %v11912_v28  ;;  %v11825_v21 = vcombine.low %v1466_v22, %v1476_v49 }
 0x11e   :  { %v2997_v52 = vrot.slane %v2995_v32, 4  ;;  %v3000_v14 = vrot.slane %v2998_v33, 5  ;;  %v1480_v20 = vrot.slane %v1478_v18, 4  ;;  %448 = vst [vmem:[#allocation2 + $0x60] sm:$0x1] %v447_v60  ;;  %3915 = vmatmul.mubr.bf16.gmra.mrb[20].mxu1 %v14121_v63  ;;  %v503_v42 = vsel %vm14836_vm6, 0, %v502_v15 }
 0x11f   :  { %v1483_v41 = vrot.slane %v1481_v36, 5  ;;  %v12379_v56 = vpack.c.bf16 %v354_v39, %v354_v39  ;;  %v801_v47 = vshrl.u32 %v12378_v10, 16  ;;  %2384 = vmatprep.mubr.bf16.mxu0 %v11825_v21  ;;  %504 = vst [vmem:[#allocation2 + $0x68] sm:$0x1] %v503_v42  ;;  %v804_v37 = vshll.u32 %v12378_v10, 16 }
 0x120   :  { %v3001_v44 = vor.u32 %v3000_v14, %v2997_v52  ;;  %v355_v43 = vmax.f32 %v15151_v57, 0.0  ;;  %v356_v26 = vmax.f32 %v324_v29, 0.0  ;;  %2385 = vmatmul.mubr.bf16.gmra.mrb[24].mxu0 %v14122_v31  ;;  %v450_v1 = vsel %vm14831_vm5, 0, %v449_v46  ;;  %v14148_v46 = vld [vmem:[#allocation13 + $0x178] sm:$0xff]  }
 0x121   :  { %v1484_v48 = vor.u32 %v1483_v41, %v1480_v20  ;;  %v803_v9 = vrot.slane %v801_v47, 7  ;;  %v809_v50 = vshrl.u32 %v12379_v56, 16  ;;  %v812_v51 = vshll.u32 %v12379_v56, 16  ;;  %451 = vst [vmem:[#allocation2 + $0x6c] sm:$0x1] %v450_v1  ;;  %13480 = vmatprep.subr.bf16.mxu1 %v14148_v46 }
 0x122   :  { %v3002_v53 = vrot.slane %v3001_v44, 4  ;;  %v506_v3 = vsel %vm14836_vm6, 0, %v505_v40  ;;  %v15181_v5 = vpack.c.bf16 %v355_v43, %v355_v43  ;;  %v2821_v11 = vld [vmem:[#allocation2 + $0x58] sm:$0xf]  ;;  %v2822_v12 = vld [vmem:[#allocation2 + $0x5c] sm:$0x1]  ;;  %v12381_v54 = vpack.c.bf16 %v356_v26, %v356_v26  ;;  %13481 = vmatpush3.bf16.msra.mxu1 %v14148_v46 }
 0x123   :  { %v806_v57 = vor.u32 %v804_v37, %v803_v9  ;;  %507 = vst [vmem:[#allocation2 + $0x74] sm:$0x1] %v506_v3  ;;  %v3004_v38 = vshll.u32 %v2821_v11, 16  ;;  %v3008_v22 = vshrl.u32 %v2821_v11, 16  ;;  %v3014_v23 = vshll.u32 %v2822_v12, 16  ;;  %v14126_v11 = vld [vmem:[#allocation2 + $0x54] sm:$0xff]  }
 0x124   :  { %v1280_v17 = vld [vmem:[#allocation2 + $0x58] sm:$0xf]  ;;  %v12470_v15 = vunpack.c.l.bf16 %v15175_v55  ;;  %v1281_v10 = vld [vmem:[#allocation2 + $0x5c] sm:$0x1]  ;;  %v1485_v29 = vrot.slane %v1484_v48, 4  ;;  %v326_v16 = vadd.f32 %v15132_v6, %v288_v30  ;;  %v807_v13 = vrot.slane %v803_v9, 4 }
 0x125   :  { %v1487_v24 = vshll.u32 %v1280_v17, 16  ;;  %v1491_v63 = vshrl.u32 %v1280_v17, 16  ;;  %v3006_v45 = vrot.slane %v3004_v38, 5  ;;  %v3010_v25 = vrot.slane %v3008_v22, 4  ;;  %v1051_v18 = vld [vmem:[#allocation2 + $0x60] sm:$0xf] }
 0x126   :  { %v3016_v27 = vrot.slane %v3014_v23, 5  ;;  %v1497_v28 = vshll.u32 %v1281_v10, 16  ;;  %v811_v33 = vrot.slane %v809_v50, 7  ;;  %v1052_v39 = vsel %vm14865_vm8, %v806_v57, %v1051_v18  ;;  %v1055_v60 = vld [vmem:[#allocation2 + $0x68] sm:$0x1]  ;;  %v14125_v9 = vld [vmem:[#allocation2 + $0x54] sm:$0xff]  }
 0x127   :  { %v1489_v61 = vrot.slane %v1487_v24, 5  ;;  %v1493_v32 = vrot.slane %v1491_v63, 4  ;;  %v3007_v49 = vsel %vm14914_vm11, %v3002_v53, %v3006_v45  ;;  %v3011_v31 = vor.u32 %v3010_v25, %v3006_v45  ;;  %1053 = vst [vmem:[#allocation2 + $0x60] sm:$0xf] %v1052_v39  ;;  %v452_v47 = vld [vmem:[#allocation2 + $0x78] sm:$0x1] }
 0x128   :  { %v1499_v36 = vrot.slane %v1497_v28, 5  ;;  %v814_v52 = vor.u32 %v812_v51, %v811_v33  ;;  %v816_v14 = vrot.slane %v811_v33, 4  ;;  %v818_v41 = vshrl.u32 %v15181_v5, 16  ;;  %v508_v1 = vld [vmem:[#allocation2 + $0x80] sm:$0x1]  ;;  %v15216_v63 = vld [vmem:[#allocation7 + $0x58] sm:$0xff]  }
 0x129   :  { %v1490_v40 = vsel %vm14914_vm11, %v1485_v29, %v1489_v61  ;;  %v1494_v21 = vor.u32 %v1493_v32, %v1489_v61  ;;  %v3012_v20 = vrot.slane %v3011_v31, 4  ;;  %v821_v42 = vshll.u32 %v15181_v5, 16  ;;  %v1058_v12 = vld [vmem:[#allocation2 + $0x6c] sm:$0xf] }
 0x12a   :  { %v826_v56 = vshrl.u32 %v12381_v54, 16  ;;  %v815_v37 = vsel %vm14822_vm2, %v807_v13, %v814_v52  ;;  %v1056_v43 = vsel %vm14831_vm5, %v816_v14, %v1055_v60  ;;  %v829_v26 = vshll.u32 %v12381_v54, 16  ;;  %v1062_v10 = vld [vmem:[#allocation2 + $0x74] sm:$0x1] }
 0x12b   :  { %v1495_v44 = vrot.slane %v1494_v21, 4  ;;  %v3017_v48 = vsel %vm14914_vm11, %v3012_v20, %v3016_v27  ;;  %1054 = vst [vmem:[#allocation2 + $0x64] sm:$0xf] %v815_v37  ;;  %1057 = vst [vmem:[#allocation2 + $0x68] sm:$0x1] %v1056_v43  ;;  %v820_v50 = vrot.slane %v818_v41, 7  ;;  %v12471_v28 = vunpack.c.h.bf16 %v15175_v55 }
 0x12c   :  { %v828_v51 = vrot.slane %v826_v56, 7  ;;  %v357_v53 = vmax.f32 %v15187_v62, 0.0  ;;  %v11913_v3 = vcombine.low %v3007_v49, %v3017_v48  ;;  %v358_v57 = vmax.f32 %v326_v16, 0.0 }
 0x12d   :  { %v1500_v5 = vsel %vm14914_vm11, %v1495_v44, %v1499_v36  ;;  %v453_v54 = vsel %vm14831_vm5, 0, %v452_v47  ;;  %v823_v38 = vor.u32 %v821_v42, %v820_v50  ;;  %v824_v22 = vrot.slane %v820_v50, 4 }
 0x12e   :  { %v11826_v30 = vcombine.low %v1490_v40, %v1500_v5  ;;  %v831_v23 = vor.u32 %v829_v26, %v828_v51  ;;  %454 = vst [vmem:[#allocation2 + $0x78] sm:$0x1] %v453_v54  ;;  %3922 = vmatprep.mubr.bf16.mxu1 %v11913_v3  ;;  %v833_v17 = vrot.slane %v828_v51, 4  ;;  %v509_v62 = vsel %vm14836_vm6, 0, %v508_v1  ;;  %v2823_v16 = vld [vmem:[#allocation2 + $0x60] sm:$0xf] }
 0x12f   :  { %v15212_v29 = vpack.c.bf16 %v357_v53, %v357_v53  ;;  %v15214_v24 = vpack.c.bf16 %v358_v57, %v358_v57  ;;  %3923 = vmatmul.mubr.bf16.gmra.mrb[24].mxu1 %v14125_v9  ;;  %v1282_v45 = vld [vmem:[#allocation2 + $0x60] sm:$0xf]  ;;  %v1059_v27 = vsel %vm14865_vm8, %v823_v38, %v1058_v12  ;;  %510 = vst [vmem:[#allocation2 + $0x80] sm:$0x1] %v509_v62  ;;  %v3019_v32 = vshrl.u32 %v2823_v16, 16 }
 0x130   :  { %2392 = vmatprep.mubr.bf16.mxu0 %v11826_v30  ;;  %v832_v25 = vsel %vm14822_vm2, %v824_v22, %v831_v23  ;;  %v289_v61 = vmul.f32 %v15105_v4, %v12470_v15  ;;  %v3022_v13 = vshll.u32 %v2823_v16, 16  ;;  %v1502_v33 = vshrl.u32 %v1282_v45, 16  ;;  %1060 = vst [vmem:[#allocation2 + $0x6c] sm:$0xf] %v1059_v27 }
 0x131   :  { %2393 = vmatmul.mubr.bf16.gmra.mrb[28].mxu0 %v14126_v11  ;;  %v1505_v18 = vshll.u32 %v1282_v45, 16  ;;  %1061 = vst [vmem:[#allocation2 + $0x70] sm:$0xf] %v832_v25  ;;  %v1063_v49 = vsel %vm14831_vm5, %v833_v17, %v1062_v10  ;;  %v835_v31 = vshrl.u32 %v15212_v29, 16  ;;  %v838_v36 = vshll.u32 %v15212_v29, 16 }
 0x132   :  { %v843_v39 = vshrl.u32 %v15214_v24, 16  ;;  %v2824_v60 = vld [vmem:[#allocation2 + $0x64] sm:$0xf]  ;;  %v2825_v55 = vld [vmem:[#allocation2 + $0x68] sm:$0x1]  ;;  %v3021_v46 = vrot.slane %v3019_v32, 4  ;;  %v290_v40 = vmul.f32 %v15105_v4, %v12471_v28  ;;  %v15233_v21 = vadd.f32 %v15132_v6, %v289_v61 }
 0x133   :  { %v3024_v15 = vrot.slane %v3022_v13, 5  ;;  %1064 = vst [vmem:[#allocation2 + $0x74] sm:$0x1] %v1063_v49  ;;  %v3028_v52 = vshll.u32 %v2824_v60, 16  ;;  %v3032_v14 = vshrl.u32 %v2824_v60, 16  ;;  %v3038_v20 = vshll.u32 %v2825_v55, 16 }
 0x134   :  { %v12474_v41 = vunpack.c.l.bf16 %v15216_v63  ;;  %v1283_v56 = vld [vmem:[#allocation2 + $0x64] sm:$0xf]  ;;  %v1284_v47 = vld [vmem:[#allocation2 + $0x68] sm:$0x1]  ;;  %v1504_v44 = vrot.slane %v1502_v33, 4  ;;  %v1507_v37 = vrot.slane %v1505_v18, 5  ;;  %v15237_v43 = vadd.f32 %v15132_v6, %v290_v40 }
 0x135   :  { %v3025_v42 = vor.u32 %v3024_v15, %v3021_v46  ;;  %v3030_v26 = vrot.slane %v3028_v52, 5  ;;  %v3034_v48 = vrot.slane %v3032_v14, 4  ;;  %v3040_v9 = vrot.slane %v3038_v20, 5  ;;  %v14127_v62 = vld [vmem:[#allocation2 + $0x60] sm:$0xff]  }
 0x136   :  { %v1511_v50 = vshll.u32 %v1283_v56, 16  ;;  %v1508_v53 = vor.u32 %v1507_v37, %v1504_v44  ;;  %v1515_v1 = vshrl.u32 %v1283_v56, 16  ;;  %v1521_v3 = vshll.u32 %v1284_v47, 16  ;;  %v14152_v15 = vld [vmem:[#allocation13 + $0x1c0] sm:$0xff]  }
 0x137   :  { %v3026_v51 = vrot.slane %v3025_v42, 4  ;;  %v3035_v5 = vor.u32 %v3034_v48, %v3030_v26  ;;  %v2826_v12 = vld [vmem:[#allocation2 + $0x6c] sm:$0xf]  ;;  %v12475_v54 = vunpack.c.h.bf16 %v15216_v63  ;;  %v15241_v30 = vmul.f32 %v15105_v4, %v12474_v41  ;;  %12874 = vmatprep.subr.bf16.mxu0 %v14152_v15  ;;  %v14154_v37 = vld [vmem:[#allocation13 + $0x200] sm:$0xff]  }
 0x138   :  { %v1513_v11 = vrot.slane %v1511_v50, 5  ;;  %v2827_v57 = vld [vmem:[#allocation2 + $0x70] sm:$0xf]  ;;  %v1509_v22 = vrot.slane %v1508_v53, 4  ;;  %v1517_v23 = vrot.slane %v1515_v1, 4  ;;  %v1523_v17 = vrot.slane %v1521_v3, 5  ;;  %13514 = vmatprep.subr.bf16.mxu1 %v14154_v37 }
 0x139   :  { %v3031_v38 = vsel %vm14914_vm11, %v3026_v51, %v3030_v26  ;;  %v3036_v10 = vrot.slane %v3035_v5, 4  ;;  %v3043_v45 = vshrl.u32 %v2826_v12, 16  ;;  %v3046_v25 = vshll.u32 %v2826_v12, 16  ;;  %v1285_v33 = vld [vmem:[#allocation2 + $0x6c] sm:$0xf]  ;;  %v14128_v48 = vld [vmem:[#allocation2 + $0x60] sm:$0xff]  }
 0x13a   :  { %v2828_v16 = vld [vmem:[#allocation2 + $0x74] sm:$0x1]  ;;  %v3052_v27 = vshll.u32 %v2827_v57, 16  ;;  %v1514_v28 = vsel %vm14914_vm11, %v1509_v22, %v1513_v11  ;;  %v1518_v61 = vor.u32 %v1517_v23, %v1513_v11  ;;  %v3056_v32 = vshrl.u32 %v2827_v57, 16  ;;  %v1286_v46 = vld [vmem:[#allocation2 + $0x70] sm:$0xf] }
 0x13b   :  { %v3062_v13 = vshll.u32 %v2828_v16, 16  ;;  %v3041_v18 = vsel %vm14914_vm11, %v3036_v10, %v3040_v9  ;;  %v3045_v49 = vrot.slane %v3043_v45, 4  ;;  %v3048_v60 = vrot.slane %v3046_v25, 5  ;;  %v1287_v41 = vld [vmem:[#allocation2 + $0x74] sm:$0x1] }
 0x13c   :  { %v3054_v55 = vrot.slane %v3052_v27, 5  ;;  %v11914_v40 = vcombine.low %v3031_v38, %v3041_v18  ;;  %v1519_v52 = vrot.slane %v1518_v61, 4  ;;  %v3058_v14 = vrot.slane %v3056_v32, 4  ;;  %v1065_v27 = vld [vmem:[#allocation2 + $0x78] sm:$0xf]  ;;  %v12583_v37 = vld [vmem:[#allocation7 + $0x60] sm:$0xff]  }
 0x13d   :  { %v3064_v20 = vrot.slane %v3062_v13, 5  ;;  %v3049_v42 = vor.u32 %v3048_v60, %v3045_v49  ;;  %v1526_v56 = vshrl.u32 %v1285_v33, 16  ;;  %v1529_v47 = vshll.u32 %v1285_v33, 16  ;;  %v511_v61 = vld [vmem:[#allocation2 + $0x8c] sm:$0x1] }
 0x13e   :  { %v1535_v44 = vshll.u32 %v1286_v46, 16  ;;  %3930 = vmatprep.mubr.bf16.mxu1 %v11914_v40  ;;  %v1524_v26 = vsel %vm14914_vm11, %v1519_v52, %v1523_v17  ;;  %v3059_v9 = vor.u32 %v3058_v14, %v3054_v55  ;;  %v1539_v50 = vshrl.u32 %v1286_v46, 16  ;;  %v14131_v13 = vld [vmem:[#allocation2 + $0x6c] sm:$0xff]   ;;  %v514_v40 = vld [vmem:[#allocation2 + $0x98] sm:$0x1] }
 0x13f   :  { %v1545_v51 = vshll.u32 %v1287_v41, 16  ;;  %3931 = vmatmul.mubr.bf16.gmra.mrb[28].mxu1 %v14127_v62  ;;  %v11827_v53 = vcombine.low %v1514_v28, %v1524_v26  ;;  %v3050_v1 = vrot.slane %v3049_v42, 4  ;;  %v1528_v3 = vrot.slane %v1526_v56, 4  ;;  %v455_v62 = vld [vmem:[#allocation2 + $0x84] sm:$0x1]  ;;  %v14132_v14 = vld [vmem:[#allocation2 + $0x6c] sm:$0xff]  }
 0x140   :  { %v1531_v5 = vrot.slane %v1529_v47, 5  ;;  %v3060_v11 = vrot.slane %v3059_v9, 4  ;;  %v1537_v12 = vrot.slane %v1535_v44, 5  ;;  %v1541_v57 = vrot.slane %v1539_v50, 4  ;;  %v461_v26 = vld [vmem:[#allocation2 + $0x9c] sm:$0x1] }
 0x141   :  { %v1547_v38 = vrot.slane %v1545_v51, 5  ;;  %2400 = vmatprep.mubr.bf16.mxu0 %v11827_v53  ;;  %v3055_v22 = vsel %vm14914_vm11, %v3050_v1, %v3054_v55  ;;  %v837_v17 = vrot.slane %v835_v31, 7  ;;  %v845_v10 = vrot.slane %v843_v39, 7  ;;  %v1069_v39 = vld [vmem:[#allocation2 + $0x80] sm:$0x1] }
 0x142   :  { %v1532_v23 = vor.u32 %v1531_v5, %v1528_v3  ;;  %2401 = vmatmul.mubr.bf16.gmra.mrb[32].mxu0 %v14128_v48  ;;  %v3065_v16 = vsel %vm14914_vm11, %v3060_v11, %v3064_v20  ;;  %v1542_v45 = vor.u32 %v1541_v57, %v1537_v12  ;;  %v846_v25 = vshll.u32 %v15214_v24, 16  ;;  %v517_v53 = vld [vmem:[#allocation2 + $0xa4] sm:$0x1]  ;;  %v15290_v57 = vld [vmem:[#allocation7 + $0x68] sm:$0xff]  }
 0x143   :  { %v359_v28 = vmax.f32 %v15233_v21, 0.0  ;;  %v11915_v32 = vcombine.low %v3055_v22, %v3065_v16  ;;  %v840_v31 = vor.u32 %v838_v36, %v837_v17  ;;  %v841_v18 = vrot.slane %v837_v17, 4  ;;  %v458_v36 = vld [vmem:[#allocation2 + $0x90] sm:$0x1] }
 0x144   :  { %v1533_v33 = vrot.slane %v1532_v23, 4  ;;  %v1543_v49 = vrot.slane %v1542_v45, 4  ;;  %v848_v60 = vor.u32 %v846_v25, %v845_v10  ;;  %v850_v55 = vrot.slane %v845_v10, 4 }
 0x145   :  { %v360_v46 = vmax.f32 %v15237_v43, 0.0  ;;  %3938 = vmatprep.mubr.bf16.mxu1 %v11915_v32  ;;  %v1066_v21 = vsel %vm14865_vm8, %v840_v31, %v1065_v27  ;;  %v456_v15 = vsel %vm14831_vm5, 0, %v455_v62  ;;  %v512_v29 = vsel %vm14836_vm6, 0, %v511_v61 }
 0x146   :  { %v1538_v24 = vsel %vm14914_vm11, %v1533_v33, %v1537_v12  ;;  %v1548_v52 = vsel %vm14914_vm11, %v1543_v49, %v1547_v38  ;;  %v849_v43 = vsel %vm14822_vm2, %v841_v18, %v848_v60  ;;  %1067 = vst [vmem:[#allocation2 + $0x78] sm:$0xf] %v1066_v21  ;;  %v1070_v20 = vsel %vm14831_vm5, %v850_v55, %v1069_v39 }
 0x147   :  { %457 = vst [vmem:[#allocation2 + $0x84] sm:$0x1] %v456_v15  ;;  %513 = vst [vmem:[#allocation2 + $0x8c] sm:$0x1] %v512_v29  ;;  %v12384_v41 = vpack.c.bf16 %v359_v28, %v359_v28  ;;  %3939 = vmatmul.mubr.bf16.gmra.mrb[32].mxu1 %v14131_v13  ;;  %v11828_v42 = vcombine.low %v1538_v24, %v1548_v52  ;;  %v12385_v56 = vpack.c.bf16 %v360_v46, %v360_v46 }
 0x148   :  { %1068 = vst [vmem:[#allocation2 + $0x7c] sm:$0xf] %v849_v43  ;;  %1071 = vst [vmem:[#allocation2 + $0x80] sm:$0x1] %v1070_v20  ;;  %v292_v47 = vmul.f32 %v15105_v4, %v12475_v54  ;;  %v329_v44 = vadd.f32 %v15132_v6, %v15241_v30  ;;  %v459_v50 = vsel %vm14831_vm5, 0, %v458_v36  ;;  %v515_v51 = vsel %vm14836_vm6, 0, %v514_v40 }
 0x149   :  { %v852_v48 = vshrl.u32 %v12384_v41, 16  ;;  %v855_v9 = vshll.u32 %v12384_v41, 16  ;;  %2408 = vmatprep.mubr.bf16.mxu0 %v11828_v42  ;;  %v860_v1 = vshrl.u32 %v12385_v56, 16  ;;  %v863_v3 = vshll.u32 %v12385_v56, 16  ;;  %460 = vst [vmem:[#allocation2 + $0x90] sm:$0x1] %v459_v50 }
 0x14a   :  { %v330_v63 = vadd.f32 %v15132_v6, %v292_v47  ;;  %v361_v54 = vmax.f32 %v329_v44, 0.0  ;;  %516 = vst [vmem:[#allocation2 + $0x98] sm:$0x1] %v515_v51  ;;  %2409 = vmatmul.mubr.bf16.gmra.mrb[36].mxu0 %v14132_v14  ;;  %v12478_v5 = vunpack.c.l.bf16 %v12583_v37  ;;  %v12479_v11 = vunpack.c.h.bf16 %v12583_v37 }
 0x14b   :  { %v854_v30 = vrot.slane %v852_v48, 7  ;;  %v462_v12 = vsel %vm14831_vm5, 0, %v461_v26  ;;  %v862_v38 = vrot.slane %v860_v1, 7  ;;  %v518_v23 = vsel %vm14836_vm6, 0, %v517_v53 }
 0x14c   :  { %v362_v22 = vmax.f32 %v330_v63, 0.0  ;;  %463 = vst [vmem:[#allocation2 + $0x9c] sm:$0x1] %v462_v12  ;;  %v15294_v10 = vpack.c.bf16 %v361_v54, %v361_v54  ;;  %v293_v62 = vmul.f32 %v15105_v4, %v12478_v5  ;;  %519 = vst [vmem:[#allocation2 + $0xa4] sm:$0x1] %v518_v23  ;;  %v294_v28 = vmul.f32 %v15105_v4, %v12479_v11 }
 0x14d   :  { %v858_v17 = vrot.slane %v854_v30, 4  ;;  %v2829_v16 = vld [vmem:[#allocation2 + $0x78] sm:$0xf]  ;;  %v857_v25 = vor.u32 %v855_v9, %v854_v30  ;;  %v865_v27 = vor.u32 %v863_v3, %v862_v38  ;;  %v12482_v61 = vunpack.c.l.bf16 %v15290_v57 }
 0x14e   :  { %v1288_v45 = vld [vmem:[#allocation2 + $0x78] sm:$0xf]  ;;  %v3067_v33 = vshrl.u32 %v2829_v16, 16  ;;  %v3070_v31 = vshll.u32 %v2829_v16, 16  ;;  %v15299_v18 = vpack.c.bf16 %v362_v22, %v362_v22  ;;  %v12483_v39 = vunpack.c.h.bf16 %v15290_v57  ;;  %v1072_v9 = vld [vmem:[#allocation2 + $0x84] sm:$0xf] }
 0x14f   :  { %v2830_v32 = vld [vmem:[#allocation2 + $0x7c] sm:$0xf]  ;;  %v2831_v13 = vld [vmem:[#allocation2 + $0x80] sm:$0x1]  ;;  %v866_v46 = vsel %vm14822_vm2, %v858_v17, %v865_v27  ;;  %v15305_v36 = vadd.f32 %v15132_v6, %v293_v62  ;;  %v295_v40 = vmul.f32 %v15105_v4, %v12482_v61  ;;  %v1550_v20 = vshrl.u32 %v1288_v45, 16 }
 0x150   :  { %v3076_v49 = vshll.u32 %v2830_v32, 16  ;;  %v3080_v60 = vshrl.u32 %v2830_v32, 16  ;;  %v3086_v55 = vshll.u32 %v2831_v13, 16  ;;  %v3069_v24 = vrot.slane %v3067_v33, 4  ;;  %v1289_v15 = vld [vmem:[#allocation2 + $0x7c] sm:$0xf] }
 0x151   :  { %v3072_v21 = vrot.slane %v3070_v31, 5  ;;  %v1290_v29 = vld [vmem:[#allocation2 + $0x80] sm:$0x1]  ;;  %1075 = vst [vmem:[#allocation2 + $0x88] sm:$0xf] %v866_v46  ;;  %v1553_v42 = vshll.u32 %v1288_v45, 16  ;;  %v1073_v30 = vsel %vm14865_vm8, %v857_v25, %v1072_v9  ;;  %v15318_v16 = vadd.f32 %v15132_v6, %v294_v28 }
 0x152   :  { %v3078_v52 = vrot.slane %v3076_v49, 5  ;;  %v3082_v14 = vrot.slane %v3080_v60, 4  ;;  %v3088_v43 = vrot.slane %v3086_v55, 5  ;;  %v1559_v56 = vshll.u32 %v1289_v15, 16  ;;  %v1076_v3 = vld [vmem:[#allocation2 + $0x8c] sm:$0x1] }
 0x153   :  { %v3073_v41 = vor.u32 %v3072_v21, %v3069_v24  ;;  %v1563_v47 = vshrl.u32 %v1289_v15, 16  ;;  %v1552_v37 = vrot.slane %v1550_v20, 4  ;;  %v1569_v26 = vshll.u32 %v1290_v29, 16  ;;  %v14133_v12 = vld [vmem:[#allocation2 + $0x78] sm:$0xff]   ;;  %1074 = vst [vmem:[#allocation2 + $0x84] sm:$0xf] %v1073_v30 }
 0x154   :  { %v3083_v44 = vor.u32 %v3082_v14, %v3078_v52  ;;  %v867_v48 = vrot.slane %v862_v38, 4  ;;  %v1555_v51 = vrot.slane %v1553_v42, 5  ;;  %v1561_v53 = vrot.slane %v1559_v56, 5  ;;  %v14134_v46 = vld [vmem:[#allocation2 + $0x78] sm:$0xff]   ;;  %v15331_v24 = vld [vmem:[#allocation7 + $0x70] sm:$0xff]  }
 0x155   :  { %v3074_v50 = vrot.slane %v3073_v41, 4  ;;  %v1565_v1 = vrot.slane %v1563_v47, 4  ;;  %v1571_v54 = vrot.slane %v1569_v26, 5  ;;  %v869_v22 = vshrl.u32 %v15294_v10, 16 }
 0x156   :  { %v3084_v63 = vrot.slane %v3083_v44, 4  ;;  %v1077_v5 = vsel %vm14831_vm5, %v867_v48, %v1076_v3  ;;  %v1556_v57 = vor.u32 %v1555_v51, %v1552_v37  ;;  %v296_v45 = vmul.f32 %v15105_v4, %v12483_v39 }
 0x157   :  { %v3079_v11 = vsel %vm14914_vm11, %v3074_v50, %v3078_v52  ;;  %v1566_v38 = vor.u32 %v1565_v1, %v1561_v53  ;;  %1078 = vst [vmem:[#allocation2 + $0x8c] sm:$0x1] %v1077_v5  ;;  %v15322_v25 = vadd.f32 %v15132_v6, %v295_v40  ;;  %v871_v60 = vrot.slane %v869_v22, 7  ;;  %v1079_v52 = vld [vmem:[#allocation2 + $0x90] sm:$0xf] }
 0x158   :  { %v3089_v23 = vsel %vm14914_vm11, %v3084_v63, %v3088_v43  ;;  %v2833_v17 = vld [vmem:[#allocation2 + $0x88] sm:$0xf]  ;;  %v1557_v61 = vrot.slane %v1556_v57, 4  ;;  %v872_v39 = vshll.u32 %v15294_v10, 16  ;;  %v877_v20 = vshrl.u32 %v15299_v18, 16 }
 0x159   :  { %v1292_v62 = vld [vmem:[#allocation2 + $0x88] sm:$0xf]  ;;  %v11916_v27 = vcombine.low %v3079_v11, %v3089_v23  ;;  %v1567_v32 = vrot.slane %v1566_v38, 4  ;;  %v3100_v13 = vshll.u32 %v2833_v17, 16  ;;  %v3104_v33 = vshrl.u32 %v2833_v17, 16 }
 0x15a   :  { %v1583_v31 = vshll.u32 %v1292_v62, 16  ;;  %v1587_v49 = vshrl.u32 %v1292_v62, 16  ;;  %v1562_v55 = vsel %vm14914_vm11, %v1557_v61, %v1561_v53  ;;  %v874_v14 = vor.u32 %v872_v39, %v871_v60  ;;  %v2832_v42 = vld [vmem:[#allocation2 + $0x84] sm:$0xf]  ;;  %v1083_v62 = vld [vmem:[#allocation2 + $0x98] sm:$0x1] }
 0x15b   :  { %3946 = vmatprep.mubr.bf16.mxu1 %v11916_v27  ;;  %v1572_v28 = vsel %vm14914_vm11, %v1567_v32, %v1571_v54  ;;  %v15328_v4 = vrot.slane %v3100_v13, 5  ;;  %v3106_v15 = vrot.slane %v3104_v33, 4  ;;  %v875_v43 = vrot.slane %v871_v60, 4  ;;  %v1291_v50 = vld [vmem:[#allocation2 + $0x84] sm:$0xf] }
 0x15c   :  { %3947 = vmatmul.mubr.bf16.gmra.mrb[36].mxu1 %v14133_v12  ;;  %v11829_v21 = vcombine.low %v1562_v55, %v1572_v28  ;;  %v15333_v29 = vrot.slane %v1583_v31, 5  ;;  %v1589_v40 = vrot.slane %v1587_v49, 4  ;;  %v880_v41 = vshll.u32 %v15299_v18, 16 }
 0x15d   :  { %v3107_v10 = vor.u32 %v3106_v15, %v15328_v4  ;;  %v15340_v44 = vadd.f32 %v15132_v6, %v296_v45  ;;  %v12486_v37 = vunpack.c.l.bf16 %v15331_v24  ;;  %v3091_v26 = vshrl.u32 %v2832_v42, 16 }
 0x15e   :  { %2416 = vmatprep.mubr.bf16.mxu0 %v11829_v21  ;;  %v2834_v56 = vld [vmem:[#allocation2 + $0x8c] sm:$0x1]  ;;  %v1590_v47 = vor.u32 %v1589_v40, %v15333_v29  ;;  %v3094_v48 = vshll.u32 %v2832_v42, 16  ;;  %v1080_v18 = vsel %vm14865_vm8, %v874_v14, %v1079_v52  ;;  %v1574_v1 = vshrl.u32 %v1291_v50, 16  ;;  %v15365_v52 = vld [vmem:[%s18138_s3] ss:$0 sm:$0xff] }
 0x15f   :  { %2417 = vmatmul.mubr.bf16.gmra.mrb[40].mxu0 %v14134_v46  ;;  %v3110_v9 = vshll.u32 %v2834_v56, 16  ;;  %v3108_v51 = vrot.slane %v3107_v10, 4  ;;  %v1293_v53 = vld [vmem:[#allocation2 + $0x8c] sm:$0x1]  ;;  %v1577_v3 = vshll.u32 %v1291_v50, 16  ;;  %v3093_v54 = vrot.slane %v3091_v26, 4 }
 0x160   :  { %v1591_v63 = vrot.slane %v1590_v47, 4  ;;  %1081 = vst [vmem:[#allocation2 + $0x90] sm:$0xf] %v1080_v18  ;;  %v3096_v30 = vrot.slane %v3094_v48, 5  ;;  %v1593_v5 = vshll.u32 %v1293_v53, 16  ;;  %v1576_v11 = vrot.slane %v1574_v1, 4 }
 0x161   :  { %v3112_v6 = vrot.slane %v3110_v9, 5  ;;  %v1579_v12 = vrot.slane %v1577_v3, 5  ;;  %v879_v57 = vrot.slane %v877_v20, 7  ;;  %v363_v38 = vmax.f32 %v15305_v36, 0.0  ;;  %v14137_v36 = vld [vmem:[#allocation2 + $0x84] sm:$0xff]  }
 0x162   :  { %v3097_v22 = vor.u32 %v3096_v30, %v3093_v54  ;;  %v1595_v17 = vrot.slane %v1593_v5, 5  ;;  %v364_v45 = vmax.f32 %v15318_v16, 0.0  ;;  %v365_v60 = vmax.f32 %v15322_v25, 0.0  ;;  %v14138_v20 = vld [vmem:[#allocation2 + $0x84] sm:$0xff]   ;;  %v1086_v3 = vld [vmem:[#allocation2 + $0x9c] sm:$0xf] }
 0x163   :  { %v3113_v23 = vsel %vm14914_vm11, %v3108_v51, %v3112_v6  ;;  %v1580_v27 = vor.u32 %v1579_v12, %v1576_v11  ;;  %v882_v61 = vor.u32 %v880_v41, %v879_v57  ;;  %v884_v32 = vrot.slane %v879_v57, 4  ;;  %v520_v51 = vld [vmem:[#allocation2 + $0xb0] sm:$0x1] }
 0x164   :  { %v12388_v13 = vpack.c.bf16 %v363_v38, %v363_v38  ;;  %v3098_v33 = vrot.slane %v3097_v22, 4  ;;  %v1596_v31 = vsel %vm14914_vm11, %v1591_v63, %v1595_v17  ;;  %v12389_v49 = vpack.c.bf16 %v364_v45, %v364_v45  ;;  %v12586_v38 = vld [vmem:[#allocation7 + $0x78] sm:$0xff]  }
 0x165   :  { %v1581_v55 = vrot.slane %v1580_v27, 4  ;;  %v883_v28 = vsel %vm14822_vm2, %v875_v43, %v882_v61  ;;  %v1084_v46 = vsel %vm14831_vm5, %v884_v32, %v1083_v62  ;;  %v15359_v40 = vpack.c.bf16 %v365_v60, %v365_v60 }
 0x166   :  { %v886_v16 = vshrl.u32 %v12388_v13, 16  ;;  %v3103_v39 = vsel %vm14914_vm11, %v3098_v33, %v15328_v4  ;;  %1082 = vst [vmem:[#allocation2 + $0x94] sm:$0xf] %v883_v28  ;;  %1085 = vst [vmem:[#allocation2 + $0x98] sm:$0x1] %v1084_v46  ;;  %v12487_v25 = vunpack.c.h.bf16 %v15331_v24  ;;  %v297_v14 = vmul.f32 %v15365_v52, %v12486_v37 }
 0x167   :  { %v2835_v21 = vld [vmem:[#allocation2 + $0x90] sm:$0xf]  ;;  %v11917_v43 = vcombine.low %v3103_v39, %v3113_v23  ;;  %v1586_v4 = vsel %vm14914_vm11, %v1581_v55, %v15333_v29  ;;  %v464_v24 = vld [vmem:[#allocation2 + $0xa8] sm:$0x1]  ;;  %v889_v50 = vshll.u32 %v12388_v13, 16  ;;  %v894_v18 = vshrl.u32 %v12389_v49, 16 }
 0x168   :  { %v1294_v15 = vld [vmem:[#allocation2 + $0x90] sm:$0xf]  ;;  %v3115_v41 = vshrl.u32 %v2835_v21, 16  ;;  %v3118_v42 = vshll.u32 %v2835_v21, 16  ;;  %v11830_v56 = vcombine.low %v1586_v4, %v1596_v31  ;;  %v888_v26 = vrot.slane %v886_v16, 7 }
 0x169   :  { %v1598_v10 = vshrl.u32 %v1294_v15, 16  ;;  %v1601_v47 = vshll.u32 %v1294_v15, 16  ;;  %3954 = vmatprep.mubr.bf16.mxu1 %v11917_v43  ;;  %v897_v29 = vshll.u32 %v12389_v49, 16  ;;  %v896_v30 = vrot.slane %v894_v18, 7  ;;  %v1090_v21 = vld [vmem:[#allocation2 + $0xa4] sm:$0x1] }
 0x16a   :  { %v3117_v48 = vrot.slane %v3115_v41, 4  ;;  %v3120_v9 = vrot.slane %v3118_v42, 5  ;;  %3955 = vmatmul.mubr.bf16.gmra.mrb[40].mxu1 %v14137_v36  ;;  %2424 = vmatprep.mubr.bf16.mxu0 %v11830_v56  ;;  %v892_v1 = vrot.slane %v888_v26, 4  ;;  %v891_v54 = vor.u32 %v889_v50, %v888_v26  ;;  %v15389_v36 = vld [vmem:[%s18139_s4] ss:$0 sm:$0xff] }
 0x16b   :  { %v1600_v37 = vrot.slane %v1598_v10, 4  ;;  %v1603_v53 = vrot.slane %v1601_v47, 5  ;;  %2425 = vmatmul.mubr.bf16.gmra.mrb[44].mxu0 %v14138_v20  ;;  %v366_v6 = vmax.f32 %v15340_v44, 0.0  ;;  %v465_v11 = vsel %vm14831_vm5, 0, %v464_v24  ;;  %v3347_v0 = vld [vmem:[#allocation2 + $0x90] sm:$0xe] }
 0x16c   :  { %v3121_v63 = vor.u32 %v3120_v9, %v3117_v48  ;;  %v521_v12 = vsel %vm14836_vm6, 0, %v520_v51  ;;  %v298_v57 = vmul.f32 %v15365_v52, %v12487_v25  ;;  %v899_v62 = vor.u32 %v897_v29, %v896_v30  ;;  %466 = vst [vmem:[#allocation2 + $0xa8] sm:$0x1] %v465_v11 }
 0x16d   :  { %v1604_v5 = vor.u32 %v1603_v53, %v1600_v37  ;;  %v2836_v22 = vld [vmem:[#allocation2 + $0x94] sm:$0xf]  ;;  %v2837_v23 = vld [vmem:[#allocation2 + $0x98] sm:$0x1]  ;;  %v1087_v45 = vsel %vm14865_vm8, %v891_v54, %v1086_v3  ;;  %522 = vst [vmem:[#allocation2 + $0xb0] sm:$0x1] %v521_v12  ;;  %v15384_v60 = vpack.c.bf16 %v366_v6, %v366_v6  ;;  %v15392_v55 = vadd.f32 %v15389_v36, %v297_v14 }
 0x16e   :  { %v3122_v17 = vrot.slane %v3121_v63, 4  ;;  %v903_v44 = vshrl.u32 %v15359_v40, 16  ;;  %v3124_v27 = vshll.u32 %v2836_v22, 16  ;;  %v3128_v61 = vshrl.u32 %v2836_v22, 16  ;;  %1088 = vst [vmem:[#allocation2 + $0x9c] sm:$0xf] %v1087_v45 }
 0x16f   :  { %v3134_v32 = vshll.u32 %v2837_v23, 16  ;;  %v15380_v13 = vrot.slane %v1604_v5, 4  ;;  %v1295_v33 = vld [vmem:[#allocation2 + $0x94] sm:$0xf]  ;;  %v1296_v31 = vld [vmem:[#allocation2 + $0x98] sm:$0x1]  ;;  %v900_v49 = vsel %vm14822_vm2, %v892_v1, %v899_v62  ;;  %v12490_v28 = vunpack.c.l.bf16 %v12586_v38 }
 0x170   :  { %v3126_v46 = vrot.slane %v3124_v27, 5  ;;  %v3130_v16 = vrot.slane %v3128_v61, 4  ;;  %v1607_v39 = vshll.u32 %v1295_v33, 16  ;;  %1089 = vst [vmem:[#allocation2 + $0xa0] sm:$0xf] %v900_v49  ;;  %v12491_v15 = vunpack.c.h.bf16 %v12586_v38  ;;  %v14139_v54 = vld [vmem:[#allocation2 + $0x90] sm:$0xff]  }
 0x171   :  { %v1611_v25 = vshrl.u32 %v1295_v33, 16  ;;  %v1617_v43 = vshll.u32 %v1296_v31, 16  ;;  %v901_v4 = vrot.slane %v896_v30, 4  ;;  %v15394_v20 = vrot.slane %v903_v44, 7  ;;  %v14140_v61 = vld [vmem:[#allocation2 + $0x90] sm:$0xff]  }
 0x172   :  { %v3131_v41 = vor.u32 %v3130_v16, %v3126_v46  ;;  %v3136_v42 = vrot.slane %v3134_v32, 5  ;;  %v1609_v56 = vrot.slane %v1607_v39, 5  ;;  %v906_v10 = vshll.u32 %v15359_v40, 16 }
 0x173   :  { %v3127_v14 = vsel %vm14914_vm11, %v3122_v17, %v3126_v46  ;;  %v1613_v47 = vrot.slane %v1611_v25, 4  ;;  %v1619_v26 = vrot.slane %v1617_v43, 5  ;;  %v1091_v24 = vsel %vm14831_vm5, %v901_v4, %v1090_v21  ;;  %v1093_v51 = vld [vmem:[#allocation2 + $0xa8] sm:$0xf] }
 0x174   :  { %v3132_v48 = vrot.slane %v3131_v41, 4  ;;  %1092 = vst [vmem:[#allocation2 + $0xa4] sm:$0x1] %v1091_v24  ;;  %v908_v9 = vor.u32 %v906_v10, %v15394_v20  ;;  %v909_v50 = vrot.slane %v15394_v20, 4  ;;  %v911_v18 = vshrl.u32 %v15384_v60, 16 }
 0x175   :  { %v1610_v40 = vsel %vm14914_vm11, %v15380_v13, %v1609_v56  ;;  %v1614_v37 = vor.u32 %v1613_v47, %v1609_v56  ;;  %v2838_v53 = vld [vmem:[#allocation2 + $0x9c] sm:$0xf]  ;;  %v15408_v29 = vadd.f32 %v15389_v36, %v298_v57  ;;  %v299_v3 = vmul.f32 %v15365_v52, %v12490_v28 }
 0x176   :  { %v1297_v1 = vld [vmem:[#allocation2 + $0x9c] sm:$0xf]  ;;  %v3137_v63 = vsel %vm14914_vm11, %v3132_v48, %v3136_v42  ;;  %v3139_v30 = vshrl.u32 %v2838_v53, 16  ;;  %v3142_v6 = vshll.u32 %v2838_v53, 16  ;;  %v1094_v22 = vsel %vm14865_vm8, %v908_v9, %v1093_v51  ;;  %v1097_v51 = vld [vmem:[#allocation2 + $0xb0] sm:$0x1] }
 0x177   :  { %v1622_v5 = vshrl.u32 %v1297_v1, 16  ;;  %v11918_v11 = vcombine.low %v3127_v14, %v3137_v63  ;;  %v1615_v12 = vrot.slane %v1614_v37, 4  ;;  %v2839_v38 = vld [vmem:[#allocation2 + $0xa0] sm:$0xf]  ;;  %v300_v23 = vmul.f32 %v15365_v52, %v12491_v15  ;;  %1095 = vst [vmem:[#allocation2 + $0xa8] sm:$0xf] %v1094_v22 }
 0x178   :  { %v3141_v17 = vrot.slane %v3139_v30, 4  ;;  %v3144_v57 = vrot.slane %v3142_v6, 5  ;;  %v3148_v62 = vshll.u32 %v2839_v38, 16  ;;  %v3152_v45 = vshrl.u32 %v2839_v38, 16  ;;  %v1298_v44 = vld [vmem:[#allocation2 + $0xa0] sm:$0xf] }
 0x179   :  { %3962 = vmatprep.mubr.bf16.mxu1 %v11918_v11  ;;  %v1620_v27 = vsel %vm14914_vm11, %v1615_v12, %v1619_v26  ;;  %v1624_v32 = vrot.slane %v1622_v5, 4  ;;  %v1625_v13 = vshll.u32 %v1297_v1, 16  ;;  %v1631_v33 = vshll.u32 %v1298_v44, 16  ;;  %v523_v22 = vld [vmem:[#allocation2 + $0xbc] sm:$0x1] }
 0x17a   :  { %3963 = vmatmul.mubr.bf16.gmra.mrb[44].mxu1 %v14139_v54  ;;  %v11831_v31 = vcombine.low %v1610_v40, %v1620_v27  ;;  %v3145_v49 = vor.u32 %v3144_v57, %v3141_v17  ;;  %v3150_v28 = vrot.slane %v3148_v62, 5  ;;  %v3154_v46 = vrot.slane %v3152_v45, 4  ;;  %v14143_v40 = vld [vmem:[#allocation2 + $0x9c] sm:$0xff]  }
 0x17b   :  { %v2840_v52 = vld [vmem:[#allocation2 + $0xa4] sm:$0x1]  ;;  %v1627_v39 = vrot.slane %v1625_v13, 5  ;;  %v1633_v21 = vrot.slane %v1631_v33, 5  ;;  %v15419_v15 = vadd.f32 %v15389_v36, %v299_v3  ;;  %v15422_v25 = vadd.f32 %v15389_v36, %v300_v23  ;;  %v467_v36 = vld [vmem:[#allocation2 + $0xb4] sm:$0x1] }
 0x17c   :  { %v1299_v16 = vld [vmem:[#allocation2 + $0xa4] sm:$0x1]  ;;  %2432 = vmatprep.mubr.bf16.mxu0 %v11831_v31  ;;  %v3146_v43 = vrot.slane %v3145_v49, 4  ;;  %v3155_v4 = vor.u32 %v3154_v46, %v3150_v28  ;;  %v3158_v41 = vshll.u32 %v2840_v52, 16  ;;  %v1635_v42 = vshrl.u32 %v1298_v44, 16 }
 0x17d   :  { %2433 = vmatmul.mubr.bf16.gmra.mrb[48].mxu0 %v14140_v61  ;;  %v1628_v56 = vor.u32 %v1627_v39, %v1624_v32  ;;  %v1641_v10 = vshll.u32 %v1299_v16, 16  ;;  %v913_v14 = vrot.slane %v911_v18, 7  ;;  %v914_v47 = vshll.u32 %v15384_v60, 16  ;;  %v14144_v32 = vld [vmem:[#allocation2 + $0x9c] sm:$0xff]   ;;  %v526_v46 = vld [vmem:[#allocation2 + $0xc8] sm:$0x1] }
 0x17e   :  { %v3151_v26 = vsel %vm14914_vm11, %v3146_v43, %v3150_v28  ;;  %v3156_v24 = vrot.slane %v3155_v4, 4  ;;  %v3160_v48 = vrot.slane %v3158_v41, 5  ;;  %v1637_v9 = vrot.slane %v1635_v42, 4  ;;  %v2841_v63 = vld [vmem:[#allocation2 + $0xa8] sm:$0xf] }
 0x17f   :  { %v1629_v37 = vrot.slane %v1628_v56, 4  ;;  %v1643_v53 = vrot.slane %v1641_v10, 5  ;;  %v916_v1 = vor.u32 %v914_v47, %v913_v14  ;;  %v918_v3 = vrot.slane %v913_v14, 4  ;;  %v1300_v6 = vld [vmem:[#allocation2 + $0xa8] sm:$0xf] }
 0x180   :  { %v3161_v54 = vsel %vm14914_vm11, %v3156_v24, %v3160_v48  ;;  %v1638_v18 = vor.u32 %v1637_v9, %v1633_v21  ;;  %v3163_v30 = vshrl.u32 %v2841_v63, 16  ;;  %v3166_v60 = vshll.u32 %v2841_v63, 16 }
 0x181   :  { %v11919_v5 = vcombine.low %v3151_v26, %v3161_v54  ;;  %v1634_v11 = vsel %vm14914_vm11, %v1629_v37, %v1633_v21  ;;  %v917_v12 = vsel %vm14822_vm2, %v909_v50, %v916_v1  ;;  %v1098_v38 = vsel %vm14831_vm5, %v918_v3, %v1097_v51  ;;  %v470_v50 = vld [vmem:[#allocation2 + $0xc0] sm:$0x1] }
 0x182   :  { %v1639_v23 = vrot.slane %v1638_v18, 4  ;;  %1096 = vst [vmem:[#allocation2 + $0xac] sm:$0xf] %v917_v12  ;;  %1099 = vst [vmem:[#allocation2 + $0xb0] sm:$0x1] %v1098_v38  ;;  %v3165_v17 = vrot.slane %v3163_v30, 4 }
 0x183   :  { %v3168_v57 = vrot.slane %v3166_v60, 5  ;;  %v1646_v62 = vshrl.u32 %v1300_v6, 16  ;;  %3970 = vmatprep.mubr.bf16.mxu1 %v11919_v5  ;;  %v1649_v45 = vshll.u32 %v1300_v6, 16  ;;  %v367_v44 = vmax.f32 %v15392_v55, 0.0 }
 0x184   :  { %v368_v27 = vmax.f32 %v15408_v29, 0.0  ;;  %v468_v20 = vsel %vm14831_vm5, 0, %v467_v36  ;;  %3971 = vmatmul.mubr.bf16.gmra.mrb[48].mxu1 %v14143_v40  ;;  %v1644_v61 = vsel %vm14914_vm11, %v1639_v23, %v1643_v53  ;;  %v524_v31 = vsel %vm14836_vm6, 0, %v523_v22 }
 0x185   :  { %v3169_v13 = vor.u32 %v3168_v57, %v3165_v17  ;;  %v1648_v33 = vrot.slane %v1646_v62, 4  ;;  %469 = vst [vmem:[#allocation2 + $0xb4] sm:$0x1] %v468_v20  ;;  %v11832_v49 = vcombine.low %v1634_v11, %v1644_v61  ;;  %v1651_v28 = vrot.slane %v1649_v45, 5  ;;  %525 = vst [vmem:[#allocation2 + $0xbc] sm:$0x1] %v524_v31 }
 0x186   :  { %v12392_v55 = vpack.c.bf16 %v367_v44, %v367_v44  ;;  %v12393_v29 = vpack.c.bf16 %v368_v27, %v368_v27  ;;  %v369_v16 = vmax.f32 %v15419_v15, 0.0  ;;  %v370_v39 = vmax.f32 %v15422_v25, 0.0  ;;  %v1774_v61 = vld [vmem:[#allocation2 + $0x4] sm:$0xf] }
 0x187   :  { %v15445_v52 = vrot.slane %v3169_v13, 4  ;;  %v471_v21 = vsel %vm14831_vm5, 0, %v470_v50  ;;  %2440 = vmatprep.mubr.bf16.mxu0 %v11832_v49  ;;  %v1652_v43 = vor.u32 %v1651_v28, %v1648_v33  ;;  %v527_v10 = vsel %vm14836_vm6, 0, %v526_v46  ;;  %v1773_v50 = vld [vmem:[#allocation2] sm:$0xe] }
 0x188   :  { %v920_v4 = vshrl.u32 %v12392_v55, 16  ;;  %v923_v41 = vshll.u32 %v12392_v55, 16  ;;  %v928_v42 = vshrl.u32 %v12393_v29, 16  ;;  %472 = vst [vmem:[#allocation2 + $0xc0] sm:$0x1] %v471_v21  ;;  %2441 = vmatmul.mubr.bf16.gmra.mrb[52].mxu0 %v14144_v32  ;;  %v931_v56 = vshll.u32 %v12393_v29, 16 }
 0x189   :  { %v2842_v14 = vld [vmem:[#allocation2 + $0xac] sm:$0xf]  ;;  %v2843_v47 = vld [vmem:[#allocation2 + $0xb0] sm:$0x1]  ;;  %528 = vst [vmem:[#allocation2 + $0xc8] sm:$0x1] %v527_v10  ;;  %v12394_v48 = vpack.c.bf16 %v369_v16, %v369_v16  ;;  %v12395_v37 = vpack.c.bf16 %v370_v39, %v370_v39 }
 0x18a   :  { %v3172_v15 = vshll.u32 %v2842_v14, 16  ;;  %v3176_v26 = vshrl.u32 %v2842_v14, 16  ;;  %v3182_v25 = vshll.u32 %v2843_v47, 16  ;;  %v1301_v24 = vld [vmem:[#allocation2 + $0xac] sm:$0xf]  ;;  %v1653_v51 = vrot.slane %v1652_v43, 4 }
 0x18b   :  { %v1302_v9 = vld [vmem:[#allocation2 + $0xb0] sm:$0x1]  ;;  %v1655_v36 = vshll.u32 %v1301_v24, 16  ;;  %v1659_v40 = vshrl.u32 %v1301_v24, 16  ;;  %v922_v30 = vrot.slane %v920_v4, 7  ;;  %v930_v60 = vrot.slane %v928_v42, 7 }
 0x18c   :  { %v3174_v53 = vrot.slane %v3172_v15, 5  ;;  %v3178_v1 = vrot.slane %v3176_v26, 4  ;;  %v3184_v3 = vrot.slane %v3182_v25, 5  ;;  %v1665_v63 = vshll.u32 %v1302_v9, 16  ;;  %v1100_v12 = vld [vmem:[#allocation2 + $0xb4] sm:$0xf] }
 0x18d   :  { %v1657_v54 = vrot.slane %v1655_v36, 5  ;;  %v1661_v18 = vrot.slane %v1659_v40, 4  ;;  %v937_v38 = vshrl.u32 %v12394_v48, 16  ;;  %v925_v17 = vor.u32 %v923_v41, %v922_v30  ;;  %v1104_v62 = vld [vmem:[#allocation2 + $0xbc] sm:$0x1]  ;;  %v14145_v46 = vld [vmem:[#allocation2 + $0xa8] sm:$0xff]  }
 0x18e   :  { %v3175_v6 = vsel %vm14914_vm11, %v15445_v52, %v3174_v53  ;;  %v3179_v5 = vor.u32 %v3178_v1, %v3174_v53  ;;  %v1667_v11 = vrot.slane %v1665_v63, 5  ;;  %v926_v57 = vrot.slane %v922_v30, 4  ;;  %v1775_v28 = vld [vmem:[#allocation2 + $0x8] sm:$0x1]  ;;  %v1777_v55 = vld [vmem:[#allocation2 + $0x10] sm:$0xf] }
 0x18f   :  { %v1658_v22 = vsel %vm14914_vm11, %v1653_v51, %v1657_v54  ;;  %v1662_v23 = vor.u32 %v1661_v18, %v1657_v54  ;;  %v933_v44 = vor.u32 %v931_v56, %v930_v60  ;;  %v935_v27 = vrot.slane %v930_v60, 4  ;;  %v1107_v49 = vld [vmem:[#allocation2 + $0xc0] sm:$0xf]  ;;  %v14146_v4 = vld [vmem:[#allocation2 + $0xa8] sm:$0xff]   ;;  %v1778_v10 = vld [vmem:[#allocation2 + $0x14] sm:$0x1] }
 0x190   :  { %v3180_v45 = vrot.slane %v3179_v5, 4  ;;  %v939_v20 = vrot.slane %v937_v38, 7  ;;  %v1101_v13 = vsel %vm14865_vm8, %v925_v17, %v1100_v12  ;;  %v940_v33 = vshll.u32 %v12394_v48, 16  ;;  %v1776_v56 = vld [vmem:[#allocation2 + $0xc] sm:$0xe] }
 0x191   :  { %v1663_v32 = vrot.slane %v1662_v23, 4  ;;  %v945_v31 = vshrl.u32 %v12395_v37, 16  ;;  %v934_v52 = vsel %vm14822_vm2, %v926_v57, %v933_v44  ;;  %1102 = vst [vmem:[#allocation2 + $0xb4] sm:$0xf] %v1101_v13  ;;  %v1105_v16 = vsel %vm14831_vm5, %v935_v27, %v1104_v62  ;;  %v1111_v15 = vld [vmem:[#allocation2 + $0xc8] sm:$0x1] }
 0x192   :  { %v3185_v29 = vsel %vm14914_vm11, %v3180_v45, %v3184_v3  ;;  %v943_v39 = vrot.slane %v939_v20, 4  ;;  %1103 = vst [vmem:[#allocation2 + $0xb8] sm:$0xf] %v934_v52  ;;  %1106 = vst [vmem:[#allocation2 + $0xbc] sm:$0x1] %v1105_v16  ;;  %v942_v41 = vor.u32 %v940_v33, %v939_v20  ;;  %v948_v47 = vshll.u32 %v12395_v37, 16 }
 0x193   :  { %v11920_v21 = vcombine.low %v3175_v6, %v3185_v29  ;;  %v1668_v43 = vsel %vm14914_vm11, %v1663_v32, %v1667_v11  ;;  %v947_v42 = vrot.slane %v945_v31, 7  ;;  %v11835_v24 = vrot.slane %v1773_v50, 9  ;;  %v15478_v18 = vld [vmem:[#allocation2 + $0xc] sm:$0xe] }
 0x194   :  { %v11833_v14 = vcombine.low %v1658_v22, %v1668_v43  ;;  %v1108_v25 = vsel %vm14865_vm8, %v942_v41, %v1107_v49  ;;  %v1874_v48 = vrot.slane %v1774_v61, 5  ;;  %v1877_v36 = vrot.slane %v1775_v28, 5 }
 0x195   :  { %3978 = vmatprep.mubr.bf16.mxu1 %v11920_v21  ;;  %v952_v26 = vrot.slane %v947_v42, 4  ;;  %v950_v9 = vor.u32 %v948_v47, %v947_v42  ;;  %1109 = vst [vmem:[#allocation2 + $0xc0] sm:$0xf] %v1108_v25  ;;  %v11836_v40 = vrot.slane %v1776_v56, 9  ;;  %v1881_v37 = vrot.slane %v1777_v55, 5 }
 0x196   :  { %3979 = vmatmul.mubr.bf16.gmra.mrb[52].mxu1 %v14145_v46  ;;  %2448 = vmatprep.mubr.bf16.mxu0 %v11833_v14  ;;  %v1876_v1 = vrot.slane %v1874_v48, 4  ;;  %v1884_v3 = vrot.slane %v1778_v10, 5  ;;  %v15482_v6 = vsel %vm15470_vm14, %v11835_v24, %v1874_v48  ;;  %v11923_v44 = vrot.slane %v15478_v18, 9  ;;  %v3315_v47 = vld [vmem:[#allocation2 + $0x10] sm:$0xf] }
 0x197   :  { %2449 = vmatmul.mubr.bf16.gmra.mrb[56].mxu0 %v14146_v4  ;;  %v1112_v53 = vsel %vm14831_vm5, %v952_v26, %v1111_v15  ;;  %v951_v63 = vsel %vm14822_vm2, %v943_v39, %v950_v9  ;;  %v1883_v54 = vrot.slane %v1881_v37, 4  ;;  %v15490_v23 = vsel %vm15470_vm14, %v11836_v40, %v1881_v37  ;;  %v3316_v48 = vld [vmem:[#allocation2 + $0x14] sm:$0x1]  ;;  %v3317_v9 = vld [vmem:[#allocation2 + $0x18] sm:$0xe] }
 0x198   :  { %1113 = vst [vmem:[#allocation2 + $0xc8] sm:$0x1] %v1112_v53  ;;  %v2844_v30 = vld [vmem:[#allocation2 + $0xb4] sm:$0xf]  ;;  %1110 = vst [vmem:[#allocation2 + $0xc4] sm:$0xf] %v951_v63  ;;  %v15486_v5 = vsel %vm15470_vm14, %v1876_v1, %v1877_v36 }
 0x199   :  { %v1303_v60 = vld [vmem:[#allocation2 + $0xb4] sm:$0xf]  ;;  %v2845_v11 = vld [vmem:[#allocation2 + $0xb8] sm:$0xf]  ;;  %v2846_v12 = vld [vmem:[#allocation2 + $0xbc] sm:$0x1]  ;;  %v15494_v17 = vsel %vm15470_vm14, %v1883_v54, %v1884_v3  ;;  %v11851_v32 = vcombine.low %v15482_v6, %v15486_v5 }
 0x19a   :  { %v3187_v38 = vshrl.u32 %v2844_v30, 16  ;;  %v3190_v22 = vshll.u32 %v2844_v30, 16  ;;  %v3196_v57 = vshll.u32 %v2845_v11, 16  ;;  %v3200_v62 = vshrl.u32 %v2845_v11, 16  ;;  %v1304_v50 = vld [vmem:[#allocation2 + $0xb8] sm:$0xf] }
 0x19b   :  { %v3206_v45 = vshll.u32 %v2846_v12, 16  ;;  %v1305_v61 = vld [vmem:[#allocation2 + $0xbc] sm:$0x1]  ;;  %v1670_v31 = vshrl.u32 %v1303_v60, 16  ;;  %v11852_v49 = vcombine.low %v15490_v23, %v15494_v17  ;;  %v1673_v55 = vshll.u32 %v1303_v60, 16  ;;  %v14149_v40 = vld [vmem:[#allocation2 + $0xb4] sm:$0xff]  }
 0x19c   :  { %v3189_v27 = vrot.slane %v3187_v38, 4  ;;  %v3192_v20 = vrot.slane %v3190_v22, 5  ;;  %v3198_v13 = vrot.slane %v3196_v57, 5  ;;  %v3202_v33 = vrot.slane %v3200_v62, 4  ;;  %v2847_v43 = vld [vmem:[#allocation2 + $0xc0] sm:$0xf] }
 0x19d   :  { %v1679_v29 = vshll.u32 %v1304_v50, 16  ;;  %v1683_v46 = vshrl.u32 %v1304_v50, 16  ;;  %v3208_v16 = vrot.slane %v3206_v45, 5  ;;  %v1672_v39 = vrot.slane %v1670_v31, 4  ;;  %v3318_v60 = vld [vmem:[#allocation2 + $0x1c] sm:$0xf] }
 0x19e   :  { %v3193_v28 = vor.u32 %v3192_v20, %v3189_v27  ;;  %v3203_v52 = vor.u32 %v3202_v33, %v3198_v13  ;;  %v1689_v21 = vshll.u32 %v1305_v61, 16  ;;  %v1675_v41 = vrot.slane %v1673_v55, 5  ;;  %v3319_v11 = vld [vmem:[#allocation2 + $0x20] sm:$0x1]  ;;  %v1779_v45 = vld [vmem:[#allocation2 + $0x18] sm:$0xe] }
 0x19f   :  { %v1681_v42 = vrot.slane %v1679_v29, 5  ;;  %v1685_v56 = vrot.slane %v1683_v46, 4  ;;  %v2848_v10 = vld [vmem:[#allocation2 + $0xc4] sm:$0xf]  ;;  %v2849_v14 = vld [vmem:[#allocation2 + $0xc8] sm:$0x1] }
 0x1a0   :  { %v3194_v4 = vrot.slane %v3193_v28, 4  ;;  %v3204_v15 = vrot.slane %v3203_v52, 4  ;;  %v1691_v26 = vrot.slane %v1689_v21, 5  ;;  %v3211_v25 = vshrl.u32 %v2847_v43, 16  ;;  %v15505_v12 = vpop.f32.mrb[0].mxu0  ;;  %v14150_v29 = vld [vmem:[#allocation2 + $0xb4] sm:$0xff]  }
 0x1a1   :  { %v3214_v24 = vshll.u32 %v2847_v43, 16  ;;  %v1676_v37 = vor.u32 %v1675_v41, %v1672_v39  ;;  %v1686_v53 = vor.u32 %v1685_v56, %v1681_v42  ;;  %v3220_v1 = vshll.u32 %v2848_v10, 16  ;;  %18178 = vst [vmem:[#allocation36_spill] sm:$0xff] %v15505_v12  ;;  %v1780_v27 = vld [vmem:[#allocation2 + $0x1c] sm:$0xf]  ;;  %v15507_v20 = vpop.f32.mrb[1].mxu0 }
 0x1a2   :  { %v3199_v36 = vsel %vm14914_vm11, %v3194_v4, %v3198_v13  ;;  %v3209_v3 = vsel %vm14914_vm11, %v3204_v15, %v3208_v16  ;;  %v3213_v63 = vrot.slane %v3211_v25, 4  ;;  %v3224_v30 = vshrl.u32 %v2848_v10, 16  ;;  %18179 = vst [vmem:[#allocation37_spill] sm:$0xff] %v15507_v20  ;;  %v15509_v31 = vpop.f32.mrb[2].mxu0  ;;  %v1781_v16 = vld [vmem:[#allocation2 + $0x20] sm:$0x1] }
 0x1a3   :  { %v3216_v54 = vrot.slane %v3214_v24, 5  ;;  %v11921_v38 = vcombine.low %v3199_v36, %v3209_v3  ;;  %v1677_v22 = vrot.slane %v1676_v37, 4  ;;  %v1687_v57 = vrot.slane %v1686_v53, 4  ;;  %18180 = vst [vmem:[#allocation38_spill] sm:$0xff] %v15509_v31  ;;  %v1782_v41 = vld [vmem:[#allocation2 + $0x24] sm:$0xe] }
 0x1a4   :  { %v3222_v62 = vrot.slane %v3220_v1, 5  ;;  %v3226_v61 = vrot.slane %v3224_v30, 4  ;;  %v3230_v13 = vshll.u32 %v2849_v14, 16  ;;  %v3412_v33 = vrot.slane %v3315_v47, 5  ;;  %v1783_v56 = vld [vmem:[#allocation2 + $0x28] sm:$0xf] }
 0x1a5   :  { %v3217_v50 = vor.u32 %v3216_v54, %v3213_v63  ;;  %3986 = vmatprep.mubr.bf16.mxu1 %v11921_v38  ;;  %v1682_v28 = vsel %vm14914_vm11, %v1677_v22, %v1681_v42  ;;  %v1692_v55 = vsel %vm14914_vm11, %v1687_v57, %v1691_v26  ;;  %v3415_v46 = vrot.slane %v3316_v48, 5  ;;  %v1784_v15 = vld [vmem:[#allocation2 + $0x2c] sm:$0x1]  ;;  %v3320_v26 = vld [vmem:[#allocation2 + $0x24] sm:$0xe]  ;;  %v15519_v25 = vpop.f32.mrb[3].mxu0 }
 0x1a6   :  { %v11924_v52 = vrot.slane %v3317_v9, 9  ;;  %3987 = vmatmul.mubr.bf16.gmra.mrb[56].mxu1 %v14149_v40  ;;  %v11834_v39 = vcombine.low %v1682_v28, %v1692_v55  ;;  %v3227_v43 = vor.u32 %v3226_v61, %v3222_v62  ;;  %v3232_v4 = vrot.slane %v3230_v13, 5  ;;  %18181 = vst [vmem:[#allocation39_spill] sm:$0xff] %v15519_v25  ;;  %v3321_v40 = vld [vmem:[#allocation2 + $0x28] sm:$0xf]  ;;  %v14151_v54 = vld [vmem:[#allocation2 + $0xc0] sm:$0xff]  }
 0x1a7   :  { %v3218_v21 = vrot.slane %v3217_v50, 4  ;;  %v3413_v10 = vsel %vm15470_vm14, %v11923_v44, %v3412_v33  ;;  %v3414_v42 = vrot.slane %v3412_v33, 4  ;;  %v3419_v14 = vrot.slane %v3318_v60, 5  ;;  %v3322_v1 = vld [vmem:[#allocation2 + $0x2c] sm:$0x1]  ;;  %v14153_v13 = vld [vmem:[#allocation13 + $0x180] sm:$0xff]  }
 0x1a8   :  { %v3422_v47 = vrot.slane %v3319_v11, 5  ;;  %2456 = vmatprep.mubr.bf16.mxu0 %v11834_v39  ;;  %v3228_v48 = vrot.slane %v3227_v43, 4  ;;  %v11837_v9 = vrot.slane %v1779_v45, 9  ;;  %v1888_v36 = vrot.slane %v1780_v27, 5  ;;  %v3323_v3 = vld [vmem:[#allocation2 + $0x30] sm:$0xe] }
 0x1a9   :  { %v3223_v24 = vsel %vm14914_vm11, %v3218_v21, %v3222_v62  ;;  %2457 = vmatmul.mubr.bf16.gmra.mrb[60].mxu0 %v14150_v29  ;;  %v3416_v18 = vsel %vm15470_vm14, %v3414_v42, %v3415_v46  ;;  %v15527_v44 = vsel %vm15470_vm14, %v11924_v52, %v3419_v14  ;;  %v3421_v37 = vrot.slane %v3419_v14, 4  ;;  %v3324_v38 = vld [vmem:[#allocation2 + $0x34] sm:$0xf]  ;;  %v3325_v22 = vld [vmem:[#allocation2 + $0x38] sm:$0x1]  ;;  %v14155_v39 = vld [vmem:[#allocation13 + $0x1c8] sm:$0xff]  }
 0x1aa   :  { %v1891_v53 = vrot.slane %v1781_v16, 5  ;;  %v3233_v63 = vsel %vm14914_vm11, %v3228_v48, %v3232_v4  ;;  %13434 = vmatprep.mubr.bf16.mxu0 %v11851_v32  ;;  %v11939_v30 = vcombine.low %v3413_v10, %v3416_v18  ;;  %v1889_v60 = vsel %vm15470_vm14, %v11837_v9, %v1888_v36  ;;  %v1785_v50 = vld [vmem:[#allocation2 + $0x30] sm:$0xe]  ;;  %v1786_v61 = vld [vmem:[#allocation2 + $0x34] sm:$0xf] }
 0x1ab   :  { %v1890_v11 = vrot.slane %v1888_v36, 4  ;;  %v11922_v57 = vcombine.low %v3223_v24, %v3233_v63  ;;  %v15538_v62 = vsel %vm15470_vm14, %v3421_v37, %v3422_v47  ;;  %v11838_v45 = vrot.slane %v1782_v41, 9  ;;  %v1787_v28 = vld [vmem:[#allocation2 + $0x38] sm:$0x1]  ;;  %v1788_v55 = vld [vmem:[#allocation2 + $0x3c] sm:$0xe] }
 0x1ac   :  { %v1895_v27 = vrot.slane %v1783_v56, 5  ;;  %v11940_v6 = vcombine.low %v15527_v44, %v15538_v62  ;;  %v1898_v32 = vrot.slane %v1784_v15, 5  ;;  %v11925_v33 = vrot.slane %v3320_v26, 9  ;;  %v1789_v29 = vld [vmem:[#allocation2 + $0x40] sm:$0xf]  ;;  %v14156_v36 = vld [vmem:[#allocation13 + $0x188] sm:$0xff]  }
 0x1ad   :  { %v1892_v5 = vsel %vm15470_vm14, %v1890_v11, %v1891_v53  ;;  %3994 = vmatprep.mubr.bf16.mxu1 %v11922_v57  ;;  %v3426_v21 = vrot.slane %v3321_v40, 5  ;;  %v3429_v43 = vrot.slane %v3322_v1, 5  ;;  %v11926_v4 = vrot.slane %v3323_v3, 9  ;;  %v1790_v10 = vld [vmem:[#allocation2 + $0x44] sm:$0x1]  ;;  %v14158_v57 = vld [vmem:[#allocation13 + $0x1d0] sm:$0xff]  }
 0x1ae   :  { %v11853_v46 = vcombine.low %v1889_v60, %v1892_v5  ;;  %v15546_v52 = vsel %vm15470_vm14, %v11838_v45, %v1895_v27  ;;  %v1897_v16 = vrot.slane %v1895_v27, 4  ;;  %3995 = vmatmul.mubr.bf16.gmra.mrb[60].mxu1 %v14151_v54  ;;  %v3433_v41 = vrot.slane %v3324_v38, 5  ;;  %v3326_v26 = vld [vmem:[#allocation2 + $0x3c] sm:$0xe]  ;;  %v3327_v24 = vld [vmem:[#allocation2 + $0x40] sm:$0xf] }
 0x1af   :  { %v3436_v56 = vrot.slane %v3325_v22, 5  ;;  %13482 = vmatprep.mubr.bf16.mxu1 %v11939_v30  ;;  %v15554_v14 = vsel %vm15470_vm14, %v11925_v33, %v3426_v21  ;;  %v3428_v47 = vrot.slane %v3426_v21, 4  ;;  %v11839_v15 = vrot.slane %v1785_v50, 9  ;;  %v15556_v48 = vld [vmem:[#allocation2 + $0x44] sm:$0x1]  ;;  %v15571_v11 = vpop.f32.mrb[0].mxu1 }
 0x1b0   :  { %v15550_v42 = vsel %vm15470_vm14, %v1897_v16, %v1898_v32  ;;  %v15562_v40 = vsel %vm15470_vm14, %v11926_v4, %v3433_v41  ;;  %v3435_v18 = vrot.slane %v3433_v41, 4  ;;  %v1902_v37 = vrot.slane %v1786_v61, 5  ;;  %v3329_v53 = vld [vmem:[#allocation2 + $0x48] sm:$0xe]  ;;  %v3330_v1 = vld [vmem:[#allocation2 + $0x4c] sm:$0xf] }
 0x1b1   :  { %v11854_v9 = vcombine.low %v15546_v52, %v15550_v42  ;;  %13435 = vmatmul.mubr.bf16.vlgmr.msra.gmra.mrb[64].mxu0 %v11852_v49  ;;  %v3430_v3 = vsel %vm15470_vm14, %v3428_v47, %v3429_v43  ;;  %v1905_v63 = vrot.slane %v1787_v28, 5  ;;  %v11840_v54 = vrot.slane %v1788_v55, 9  ;;  %v15569_v60 = vld [vmem:[#allocation2 + $0x50] sm:$0x1]  ;;  %v15574_v22 = vld [vmem:[#allocation13 + $0x208] sm:$0xff]   ;;  %v15584_v27 = vpop.f32.mrb[1].mxu1 }
 0x1b2   :  { %v1909_v30 = vrot.slane %v1789_v29, 5  ;;  %12875 = vmatpush3.bf16.msra.mxu0 %v14153_v13  ;;  %13438 = vmatprep.mubr.bf16.mxu0 %v11853_v46  ;;  %v11941_v38 = vcombine.low %v15554_v14, %v3430_v3  ;;  %v15578_v23 = vsel %vm15470_vm14, %v3435_v18, %v3436_v56  ;;  %v15582_v17 = vsel %vm15470_vm14, %v11839_v15, %v1902_v37  ;;  %v1791_v45 = vld [vmem:[#allocation2 + $0x48] sm:$0xe]  ;;  %v1792_v32 = vld [vmem:[#allocation2 + $0x4c] sm:$0xf]  ;;  %v14159_v55 = vld [vmem:[#allocation13 + $0x190] sm:$0xff]  }
 0x1b3   :  { %v1904_v49 = vrot.slane %v1902_v37, 4  ;;  %12876 = vmatprep.subr.bf16.mxu0 %v14155_v39  ;;  %v11942_v50 = vcombine.low %v15562_v40, %v15578_v23  ;;  %v1912_v5 = vrot.slane %v1790_v10, 5  ;;  %v15592_v33 = vld [vmem:[#allocation2 + $0x50] sm:$0x1]  ;;  %v11927_v29 = vrot.slane %v3326_v26, 9  ;;  %v15597_v21 = vpop.f32.mrb[2].mxu1 }
 0x1b4   :  { %v15590_v61 = vsel %vm15470_vm14, %v11840_v54, %v1909_v30  ;;  %v1911_v13 = vrot.slane %v1909_v30, 4  ;;  %v3440_v46 = vrot.slane %v3327_v24, 5  ;;  %v3443_v16 = vrot.slane %v15556_v48, 5  ;;  %v1794_v39 = vld [vmem:[#allocation2 + $0x54] sm:$0xe]  ;;  %v14161_v47 = vld [vmem:[#allocation13 + $0x1d8] sm:$0xff]  }
 0x1b5   :  { %v1906_v28 = vsel %vm15470_vm14, %v1904_v49, %v1905_v63  ;;  %v11928_v41 = vrot.slane %v3329_v53, 9  ;;  %v3447_v56 = vrot.slane %v3330_v1, 5  ;;  %v1795_v10 = vld [vmem:[#allocation2 + $0x58] sm:$0xf]  ;;  %v1796_v14 = vld [vmem:[#allocation2 + $0x5c] sm:$0x1] }
 0x1b6   :  { %v11855_v43 = vcombine.low %v15582_v17, %v1906_v28  ;;  %v15602_v4 = vsel %vm15470_vm14, %v1911_v13, %v1912_v5  ;;  %13483 = vmatmul.mubr.bf16.vlgmr.msra.gmra.mrb[64].mxu1 %v11940_v6  ;;  %12877 = vmatpush3.bf16.msra.mxu0 %v14156_v36  ;;  %v15611_v26 = vsel %vm15470_vm14, %v11927_v29, %v3440_v46  ;;  %v3442_v24 = vrot.slane %v3440_v46, 4  ;;  %v15613_v48 = vld [vmem:[#allocation13 + $0x210] sm:$0xff]   ;;  %v3333_v53 = vld [vmem:[#allocation2 + $0x58] sm:$0xf]  ;;  %v15616_v1 = vld [vmem:[#allocation2 + $0x5c] sm:$0x1] }
 0x1b7   :  { %v11856_v15 = vcombine.low %v15590_v61, %v15602_v4  ;;  %v3450_v18 = vrot.slane %v15569_v60, 5  ;;  %v3332_v37 = vld [vmem:[#allocation2 + $0x54] sm:$0xe]  ;;  %v14316_v3 = vld [vmem:[#allocation13 + $0x200] sm:$0xff]   ;;  %13486 = vmatprep.mubr.bf16.mxu1 %v11941_v38  ;;  %v15620_v44 = vsel %vm15470_vm14, %v11928_v41, %v3447_v56  ;;  %v3449_v62 = vrot.slane %v3447_v56, 4  ;;  %v15622_v30 = vpop.f32.mrb[3].mxu1  ;;  %12878 = vmatprep.subr.bf16.mxu0 %v14158_v57 }
 0x1b8   :  { %13515 = vmatpush3.bf16.msra.mxu1 %v14316_v3  ;;  %v11841_v6 = vrot.slane %v1791_v45, 9  ;;  %v1916_v36 = vrot.slane %v1792_v32, 5  ;;  %v3335_v63 = vld [vmem:[#allocation2 + $0x60] sm:$0xe]  ;;  %v3336_v54 = vld [vmem:[#allocation2 + $0x64] sm:$0xf]  ;;  %v3444_v60 = vsel %vm15470_vm14, %v3442_v24, %v3443_v16 }
 0x1b9   :  { %13516 = vmatprep.subr.bf16.mxu1 %v15574_v22  ;;  %v1919_v17 = vrot.slane %v15592_v33, 5  ;;  %v11842_v38 = vrot.slane %v1794_v39, 9  ;;  %v1923_v49 = vrot.slane %v1795_v10, 5  ;;  %v14162_v13 = vld [vmem:[#allocation13 + $0x198] sm:$0xff]   ;;  %v15628_v5 = vld [vmem:[#allocation2 + $0x68] sm:$0x1]  ;;  %13439 = vmatmul.mubr.bf16.gmra.mrb[68].mxu0 %v11854_v9  ;;  %v11943_v45 = vcombine.low %v15611_v26, %v3444_v60 }
 0x1ba   :  { %v15630_v28 = vpop.f32.mrb[4].mxu0  ;;  %v15638_v57 = vsel %vm15470_vm14, %v3449_v62, %v3450_v18  ;;  %v15642_v32 = vsel %vm15470_vm14, %v11841_v6, %v1916_v36  ;;  %v1918_v33 = vrot.slane %v1916_v36, 4  ;;  %v1797_v29 = vld [vmem:[#allocation2 + $0x60] sm:$0xe]  ;;  %v1798_v46 = vld [vmem:[#allocation2 + $0x64] sm:$0xf]  ;;  %13442 = vmatprep.mubr.bf16.mxu0 %v11855_v43  ;;  %12879 = vmatpush3.bf16.msra.mxu0 %v14159_v55 }
 0x1bb   :  { %18182 = vst [vmem:[#allocation40_spill] sm:$0xff] %v15630_v28  ;;  %v15644_v16 = vpop.f32.mrb[5].mxu0  ;;  %v11944_v52 = vcombine.low %v15620_v44, %v15638_v57  ;;  %v15650_v42 = vsel %vm15470_vm14, %v11842_v38, %v1923_v49  ;;  %v1925_v9 = vrot.slane %v1923_v49, 4  ;;  %v1926_v39 = vrot.slane %v1796_v14, 5  ;;  %v15652_v41 = vld [vmem:[#allocation13 + $0x218] sm:$0xff]   ;;  %v14164_v26 = vld [vmem:[#allocation13 + $0x1e0] sm:$0xff]   ;;  %12880 = vmatprep.subr.bf16.mxu0 %v14161_v47 }
 0x1bc   :  { %18183 = vst [vmem:[#allocation41_spill] sm:$0xff] %v15644_v16  ;;  %v15654_v56 = vld [vmem:[#allocation2 + $0x68] sm:$0x1]  ;;  %v1800_v10 = vld [vmem:[#allocation2 + $0x6c] sm:$0xe]  ;;  %13517 = vmatpush3.bf16.msra.mxu1 %v15574_v22  ;;  %v1920_v55 = vsel %vm15470_vm14, %v1918_v33, %v1919_v17  ;;  %v11929_v43 = vrot.slane %v3332_v37, 9 }
 0x1bd   :  { %v3454_v24 = vrot.slane %v3333_v53, 5  ;;  %v3457_v18 = vrot.slane %v15616_v1, 5  ;;  %v1801_v3 = vld [vmem:[#allocation2 + $0x70] sm:$0xf]  ;;  %v15660_v62 = vpop.f32.mrb[6].mxu0  ;;  %13518 = vmatprep.subr.bf16.mxu1 %v15613_v48  ;;  %v11857_v14 = vcombine.low %v15642_v32, %v1920_v55  ;;  %v15666_v6 = vsel %vm15470_vm14, %v1925_v9, %v1926_v39  ;;  %v14165_v17 = vld [vmem:[#allocation13 + $0x1a0] sm:$0xff]  }
 0x1be   :  { %18184 = vst [vmem:[#allocation42_spill] sm:$0xff] %v15660_v62  ;;  %v11930_v22 = vrot.slane %v3335_v63, 9  ;;  %v3461_v36 = vrot.slane %v3336_v54, 5  ;;  %v1802_v60 = vld [vmem:[#allocation2 + $0x74] sm:$0x1]  ;;  %v3464_v1 = vrot.slane %v15628_v5, 5  ;;  %13487 = vmatmul.mubr.bf16.gmra.mrb[68].mxu1 %v11942_v50  ;;  %12881 = vmatpush3.bf16.msra.mxu0 %v14162_v13 }
 0x1bf   :  { %v15672_v37 = vsel %vm15470_vm14, %v11929_v43, %v3454_v24  ;;  %v3456_v53 = vrot.slane %v3454_v24, 4  ;;  %v3338_v38 = vld [vmem:[#allocation2 + $0x6c] sm:$0xe]  ;;  %v3339_v49 = vld [vmem:[#allocation2 + $0x70] sm:$0xf]  ;;  %v11843_v9 = vrot.slane %v1797_v29, 9  ;;  %13490 = vmatprep.mubr.bf16.mxu1 %v11943_v45  ;;  %12882 = vmatprep.subr.bf16.mxu0 %v14164_v26 }
 0x1c0   :  { %v15675_v32 = vld [vmem:[#allocation2 + $0x74] sm:$0x1]  ;;  %v14167_v33 = vld [vmem:[#allocation13 + $0x1e8] sm:$0xff]   ;;  %v15682_v63 = vsel %vm15470_vm14, %v11930_v22, %v3461_v36  ;;  %v3463_v54 = vrot.slane %v3461_v36, 4  ;;  %v1930_v39 = vrot.slane %v1798_v46, 5  ;;  %v15684_v55 = vld [vmem:[#allocation13 + $0x220] sm:$0xff]   ;;  %13519 = vmatpush3.bf16.msra.mxu1 %v15613_v48 }
 0x1c1   :  { %v3341_v5 = vld [vmem:[#allocation2 + $0x78] sm:$0xe]  ;;  %v3342_v43 = vld [vmem:[#allocation2 + $0x7c] sm:$0xf]  ;;  %v15686_v24 = vpop.f32.mrb[7].mxu0  ;;  %v15691_v40 = vsel %vm15470_vm14, %v3456_v53, %v3457_v18  ;;  %v1933_v23 = vrot.slane %v15654_v56, 5  ;;  %13520 = vmatprep.subr.bf16.mxu1 %v15652_v41  ;;  %13443 = vmatmul.mubr.bf16.gmra.mrb[72].mxu0 %v11856_v15 }
 0x1c2   :  { %18185 = vst [vmem:[#allocation43_spill] sm:$0xff] %v15686_v24  ;;  %v11844_v50 = vrot.slane %v1800_v10, 9  ;;  %v1937_v13 = vrot.slane %v1801_v3, 5  ;;  %v15694_v22 = vld [vmem:[#allocation2 + $0x80] sm:$0x1]  ;;  %v15696_v29 = vpop.f32.mrb[4].mxu1  ;;  %v11945_v46 = vcombine.low %v15672_v37, %v15691_v40  ;;  %v15703_v48 = vsel %vm15470_vm14, %v3463_v54, %v3464_v1  ;;  %13446 = vmatprep.mubr.bf16.mxu0 %v11857_v14  ;;  %12883 = vmatpush3.bf16.msra.mxu0 %v14165_v17 }
 0x1c3   :  { %v15707_v45 = vsel %vm15470_vm14, %v11843_v9, %v1930_v39  ;;  %v1932_v56 = vrot.slane %v1930_v39, 4  ;;  %v1803_v10 = vld [vmem:[#allocation2 + $0x78] sm:$0xe]  ;;  %v1804_v18 = vld [vmem:[#allocation2 + $0x7c] sm:$0xf]  ;;  %v14168_v3 = vld [vmem:[#allocation13 + $0x1a8] sm:$0xff]   ;;  %12884 = vmatprep.subr.bf16.mxu0 %v14167_v33 }
 0x1c4   :  { %v15709_v36 = vpop.f32.mrb[5].mxu1  ;;  %v15718_v53 = vsel %vm15470_vm14, %v11844_v50, %v1937_v13  ;;  %v1939_v1 = vrot.slane %v1937_v13, 4  ;;  %v1940_v54 = vrot.slane %v1802_v60, 5  ;;  %v15720_v9 = vld [vmem:[#allocation2 + $0x80] sm:$0x1]  ;;  %v11931_v39 = vrot.slane %v3338_v38, 9  ;;  %13521 = vmatpush3.bf16.msra.mxu1 %v15652_v41 }
 0x1c5   :  { %v15724_v26 = vsel %vm15470_vm14, %v1932_v56, %v1933_v23  ;;  %v3468_v61 = vrot.slane %v3339_v49, 5  ;;  %v3471_v4 = vrot.slane %v15675_v32, 5  ;;  %v1806_v15 = vld [vmem:[#allocation2 + $0x84] sm:$0xe]  ;;  %v15727_v40 = vld [vmem:[#allocation13 + $0x228] sm:$0xff]   ;;  %v15729_v50 = vpop.f32.mrb[6].mxu1  ;;  %13522 = vmatprep.subr.bf16.mxu1 %v15684_v55 }
 0x1c6   :  { %v11859_v14 = vcombine.low %v15707_v45, %v15724_v26  ;;  %v15736_v60 = vsel %vm15470_vm14, %v1939_v1, %v1940_v54  ;;  %v11932_v17 = vrot.slane %v3341_v5, 9  ;;  %v3475_v38 = vrot.slane %v3342_v43, 5  ;;  %v1807_v49 = vld [vmem:[#allocation2 + $0x88] sm:$0xf]  ;;  %v1808_v23 = vld [vmem:[#allocation2 + $0x8c] sm:$0x1]  ;;  %13491 = vmatmul.mubr.bf16.gmra.mrb[72].mxu1 %v11944_v52  ;;  %12885 = vmatpush3.bf16.msra.mxu0 %v14168_v3 }
 0x1c7   :  { %v15742_v13 = vsel %vm15470_vm14, %v11931_v39, %v3468_v61  ;;  %v3470_v41 = vrot.slane %v3468_v61, 4  ;;  %v3478_v45 = vrot.slane %v15694_v22, 5  ;;  %v3344_v56 = vld [vmem:[#allocation2 + $0x84] sm:$0xe]  ;;  %v3345_v1 = vld [vmem:[#allocation2 + $0x88] sm:$0xf]  ;;  %13494 = vmatprep.mubr.bf16.mxu1 %v11945_v46  ;;  %12886 = vmatprep.subr.bf16.mxu0 %v14170_v59 }
 0x1c8   :  { %v15746_v54 = vld [vmem:[#allocation2 + $0x8c] sm:$0x1]  ;;  %v15750_v5 = vsel %vm15470_vm14, %v11932_v17, %v3475_v38  ;;  %v3477_v33 = vrot.slane %v3475_v38, 4  ;;  %v11845_v43 = vrot.slane %v1803_v10, 9  ;;  %v1944_v26 = vrot.slane %v1804_v18, 5  ;;  %v14171_v39 = vld [vmem:[#allocation13 + $0x1b0] sm:$0xff]   ;;  %13523 = vmatpush3.bf16.msra.mxu1 %v15684_v55 }
 0x1c9   :  { %v3348_v32 = vld [vmem:[#allocation2 + $0x94] sm:$0xf]  ;;  %v15757_v22 = vsel %vm15470_vm14, %v3470_v41, %v3471_v4  ;;  %v1947_v61 = vrot.slane %v15720_v9, 5  ;;  %v11846_v37 = vrot.slane %v1806_v15, 9  ;;  %v1951_v47 = vrot.slane %v1807_v49, 5  ;;  %v15764_v18 = vpop.f32.mrb[7].mxu1  ;;  %13524 = vmatprep.subr.bf16.mxu1 %v15727_v40 }
 0x1ca   :  { %v15760_v17 = vld [vmem:[#allocation2 + $0x98] sm:$0x1]  ;;  %v15762_v10 = vld [vmem:[#allocation13 + $0x230] sm:$0xff]   ;;  %v15770_v57 = vsel %vm15470_vm14, %v3477_v33, %v3478_v45  ;;  %v15775_v52 = vsel %vm15470_vm14, %v11845_v43, %v1944_v26  ;;  %v1946_v3 = vrot.slane %v1944_v26, 4  ;;  %v1954_v41 = vrot.slane %v1808_v23, 5  ;;  %12887 = vmatpush3.bf16.msra.mxu0 %v14171_v39 }
 0x1cb   :  { %v1809_v9 = vld [vmem:[#allocation2 + $0x90] sm:$0xe]  ;;  %v1810_v4 = vld [vmem:[#allocation2 + $0x94] sm:$0xf]  ;;  %v14173_v15 = vld [vmem:[#allocation13 + $0x1f8] sm:$0xff]   ;;  %v15781_v38 = vsel %vm15470_vm14, %v11846_v37, %v1951_v47  ;;  %v1953_v49 = vrot.slane %v1951_v47, 4  ;;  %v18186_v43 = vcombine.low %v15650_v42, %v15666_v6 }
 0x1cc   :  { %v1811_v55 = vld [vmem:[#allocation2 + $0x98] sm:$0x1]  ;;  %v1812_v45 = vld [vmem:[#allocation2 + $0x9c] sm:$0xe]  ;;  %v1813_v33 = vld [vmem:[#allocation2 + $0xa0] sm:$0xf]  ;;  %v15789_v26 = vsel %vm15470_vm14, %v1946_v3, %v1947_v61  ;;  %13525 = vmatpush3.bf16.msra.mxu1 %v15727_v40  ;;  %12888 = vmatprep.subr.bf16.mxu0 %v14173_v15 }
 0x1cd   :  { %13447 = vmatmul.mubr.bf16.gmra.mrb[76].mxu0 %v18186_v43  ;;  %v11933_v46 = vrot.slane %v3344_v56, 9  ;;  %v3482_v44 = vrot.slane %v3345_v1, 5  ;;  %v3485_v37 = vrot.slane %v15746_v54, 5  ;;  %v14174_v47 = vld [vmem:[#allocation13 + $0x1b8] sm:$0xff]   ;;  %v11861_v23 = vcombine.low %v15775_v52, %v15789_v26  ;;  %v1814_v6 = vld [vmem:[#allocation2 + $0xa4] sm:$0x1]  ;;  %13526 = vmatprep.subr.bf16.mxu1 %v15762_v10 }
 0x1ce   :  { %13450 = vmatprep.mubr.bf16.mxu0 %v11859_v14  ;;  %v15796_v59 = vsel %vm15470_vm14, %v1953_v49, %v1954_v41  ;;  %v11934_v25 = vrot.slane %v3347_v0, 9  ;;  %v3489_v42 = vrot.slane %v3348_v32, 5  ;;  %v15798_v43 = vld [vmem:[#allocation13 + $0x238] sm:$0xff]   ;;  %v14177_v61 = vld [vmem:[#allocation19 + $0x40] sm:$0xff]   ;;  %v3492_v54 = vrot.slane %v15760_v17, 5  ;;  %v15815_v26 = vpop.f32.mrb[8].mxu0  ;;  %12889 = vmatpush3.bf16.msra.mxu0 %v14174_v47 }
 0x1cf   :  { %v15804_v14 = vsel %vm15470_vm14, %v11933_v46, %v3482_v44  ;;  %v3484_v1 = vrot.slane %v3482_v44, 4  ;;  %v3350_v52 = vld [vmem:[#allocation2 + $0x9c] sm:$0xe]  ;;  %v3351_v0 = vld [vmem:[#allocation2 + $0xa0] sm:$0xf]  ;;  %v11847_v49 = vrot.slane %v1809_v9, 9  ;;  %13010 = vmatprep.subr.bf16.mxu0 %v14177_v61 }
 0x1d0   :  { %v15808_v32 = vld [vmem:[#allocation2 + $0xa4] sm:$0x1]  ;;  %v15812_v39 = vsel %vm15470_vm14, %v11934_v25, %v3489_v42  ;;  %v3491_v3 = vrot.slane %v3489_v42, 4  ;;  %v1958_v41 = vrot.slane %v1810_v4, 5  ;;  %v3353_v46 = vld [vmem:[#allocation2 + $0xa8] sm:$0xe]  ;;  %v18189_v25 = vcombine.low %v15682_v63, %v15703_v48  ;;  %13527 = vmatpush3.bf16.msra.mxu1 %v15762_v10 }
 0x1d1   :  { %v3354_v44 = vld [vmem:[#allocation2 + $0xac] sm:$0xf]  ;;  %18187 = vst [vmem:[#allocation44_spill] sm:$0xff] %v15815_v26  ;;  %v15819_v40 = vsel %vm15470_vm14, %v3484_v1, %v3485_v37  ;;  %v1961_v17 = vrot.slane %v1811_v55, 5  ;;  %v11848_v56 = vrot.slane %v1812_v45, 9  ;;  %v1965_v15 = vrot.slane %v1813_v33, 5  ;;  %13528 = vmatprep.subr.bf16.mxu1 %v15798_v43 }
 0x1d2   :  { %v3355_v31 = vld [vmem:[#allocation2 + $0xb0] sm:$0x1]  ;;  %v15821_v24 = vpop.f32.mrb[9].mxu0  ;;  %13495 = vmatmul.mubr.bf16.gmra.mrb[76].mxu1 %v18189_v25  ;;  %v15830_v4 = vsel %vm15470_vm14, %v3491_v3, %v3492_v54  ;;  %v15834_v37 = vsel %vm15470_vm14, %v11847_v49, %v1958_v41  ;;  %v1960_v55 = vrot.slane %v1958_v41, 4  ;;  %v1815_v45 = vld [vmem:[#allocation2 + $0xa8] sm:$0xe]  ;;  %v18191_v63 = vcombine.low %v15742_v13, %v15757_v22 }
 0x1d3   :  { %18188 = vst [vmem:[#allocation45_spill] sm:$0xff] %v15821_v24  ;;  %v1816_v33 = vld [vmem:[#allocation2 + $0xac] sm:$0xf]  ;;  %v15836_v42 = vld [vmem:[#allocation19 + $0x80] sm:$0xff]   ;;  %v15838_v1 = vpop.f32.mrb[10].mxu0  ;;  %v15847_v54 = vsel %vm15470_vm14, %v11848_v56, %v1965_v15  ;;  %v1967_v3 = vrot.slane %v1965_v15, 4 }
 0x1d4   :  { %18190 = vst [vmem:[#allocation46_spill] sm:$0xff] %v15838_v1  ;;  %13498 = vmatprep.mubr.bf16.mxu1 %v18191_v63  ;;  %v1968_v49 = vrot.slane %v1814_v6, 5  ;;  %v1817_v47 = vld [vmem:[#allocation2 + $0xb0] sm:$0x1]  ;;  %v15852_v41 = vsel %vm15470_vm14, %v1960_v55, %v1961_v17  ;;  %v11935_v25 = vrot.slane %v3350_v52, 9  ;;  %v3496_v9 = vrot.slane %v3351_v0, 5  ;;  %13529 = vmatpush3.bf16.msra.mxu1 %v15798_v43 }
 0x1d5   :  { %v3499_v13 = vrot.slane %v15808_v32, 5  ;;  %v1818_v22 = vld [vmem:[#allocation2 + $0xb4] sm:$0xe]  ;;  %v15856_v63 = vpop.f32.mrb[11].mxu0  ;;  %v18193_v6 = vcombine.low %v15718_v53, %v15736_v60  ;;  %v11863_v10 = vcombine.low %v15834_v37, %v15852_v41  ;;  %v11936_v52 = vrot.slane %v3353_v46, 9  ;;  %v15878_v61 = vpop.f32.mrb[8].mxu1  ;;  %13562 = vmatprep.subr.bf16.mxu1 %v15836_v42 }
 0x1d6   :  { %18192 = vst [vmem:[#allocation47_spill] sm:$0xff] %v15856_v63  ;;  %v15865_v56 = vsel %vm15470_vm14, %v1967_v3, %v1968_v49  ;;  %v3503_v0 = vrot.slane %v3354_v44, 5  ;;  %v1819_v32 = vld [vmem:[#allocation2 + $0xb8] sm:$0xf]  ;;  %v1820_v17 = vld [vmem:[#allocation2 + $0xbc] sm:$0x1]  ;;  %v15871_v15 = vsel %vm15470_vm14, %v11935_v25, %v3496_v9 }
 0x1d7   :  { %13451 = vmatmul.mubr.bf16.gmra.mrb[80].mxu0 %v18193_v6  ;;  %v3498_v53 = vrot.slane %v3496_v9, 4  ;;  %v3506_v60 = vrot.slane %v3355_v31, 5  ;;  %v3356_v55 = vld [vmem:[#allocation2 + $0xb4] sm:$0xe]  ;;  %v3357_v37 = vld [vmem:[#allocation2 + $0xb8] sm:$0xf] }
 0x1d8   :  { %13454 = vmatprep.mubr.bf16.mxu0 %v11861_v23  ;;  %v3358_v41 = vld [vmem:[#allocation2 + $0xbc] sm:$0x1]  ;;  %v15875_v3 = vsel %vm15470_vm14, %v11936_v52, %v3503_v0  ;;  %v3505_v46 = vrot.slane %v3503_v0, 4  ;;  %v11849_v44 = vrot.slane %v1815_v45, 9  ;;  %v1972_v49 = vrot.slane %v1816_v33, 5  ;;  %v15885_v52 = vpop.f32.mrb[9].mxu1 }
 0x1d9   :  { %v3359_v23 = vld [vmem:[#allocation2 + $0xc0] sm:$0xe]  ;;  %v3360_v6 = vld [vmem:[#allocation2 + $0xc4] sm:$0xf]  ;;  %v15882_v9 = vsel %vm15470_vm14, %v3498_v53, %v3499_v13  ;;  %v1975_v31 = vrot.slane %v1817_v47, 5  ;;  %v11850_v25 = vrot.slane %v1818_v22, 9  ;;  %v18194_v22 = vcombine.low %v15750_v5, %v15770_v57 }
 0x1da   :  { %v1979_v48 = vrot.slane %v1819_v32, 5  ;;  %v11951_v45 = vcombine.low %v15871_v15, %v15882_v9  ;;  %v15891_v33 = vsel %vm15470_vm14, %v3505_v46, %v3506_v60  ;;  %v15895_v43 = vsel %vm15470_vm14, %v11849_v44, %v1972_v49  ;;  %v3361_v0 = vld [vmem:[#allocation2 + $0xc8] sm:$0x1]  ;;  %v15897_v47 = vpop.f32.mrb[10].mxu1  ;;  %v4405_v46 = vld [vmem:[#allocation2 + $0x18] sm:$0xf] }
 0x1db   :  { %v1974_v13 = vrot.slane %v1972_v49, 4  ;;  %13499 = vmatmul.mubr.bf16.gmra.mrb[80].mxu1 %v18194_v22  ;;  %v1982_v60 = vrot.slane %v1820_v17, 5  ;;  %v4406_v44 = vld [vmem:[#allocation2 + $0x1c] sm:$0xf]  ;;  %v18195_v49 = vcombine.low %v15804_v14, %v15819_v40  ;;  %v11937_v5 = vrot.slane %v3356_v55, 9 }
 0x1dc   :  { %v15906_v15 = vsel %vm15470_vm14, %v11850_v25, %v1979_v48  ;;  %v1981_v53 = vrot.slane %v1979_v48, 4  ;;  %v3510_v57 = vrot.slane %v3357_v37, 5  ;;  %v3513_v22 = vrot.slane %v3358_v41, 5  ;;  %v4407_v63 = vld [vmem:[#allocation2 + $0x20] sm:$0x1] }
 0x1dd   :  { %13502 = vmatprep.mubr.bf16.mxu1 %v18195_v49  ;;  %v15913_v9 = vsel %vm15470_vm14, %v1974_v13, %v1975_v31  ;;  %v11938_v17 = vrot.slane %v3359_v23, 9  ;;  %v3517_v25 = vrot.slane %v3360_v6, 5  ;;  %v18196_v14 = vcombine.low %v15781_v38, %v15796_v59  ;;  %v4917_v31 = vld [vmem:[#allocation2 + $0x18] sm:$0xe]  ;;  %v4919_v13 = vld [vmem:[#allocation2 + $0x20] sm:$0x1] }
 0x1de   :  { %v11865_v32 = vcombine.low %v15895_v43, %v15913_v9  ;;  %v15919_v48 = vsel %vm15470_vm14, %v1981_v53, %v1982_v60  ;;  %v15928_v55 = vsel %vm15470_vm14, %v11937_v5, %v3510_v57  ;;  %v3512_v37 = vrot.slane %v3510_v57, 4  ;;  %v4918_v43 = vld [vmem:[#allocation2 + $0x1c] sm:$0xf]  ;;  %v4920_v53 = vld [vmem:[#allocation2 + $0x24] sm:$0xe]  ;;  %v15934_v49 = vpop.f32.mrb[11].mxu1 }
 0x1df   :  { %13455 = vmatmul.mubr.bf16.gmra.mrb[84].mxu0 %v18196_v14  ;;  %v3520_v41 = vrot.slane %v3361_v0, 5  ;;  %v15932_v23 = vsel %vm15470_vm14, %v11938_v17, %v3517_v25  ;;  %v3519_v6 = vrot.slane %v3517_v25, 4  ;;  %v4454_v38 = vshrl.u32 %v4405_v46, 16  ;;  %v4921_v60 = vld [vmem:[#allocation2 + $0x28] sm:$0xf] }
 0x1e0   :  { %13458 = vmatprep.mubr.bf16.mxu0 %v11863_v10  ;;  %v4457_v59 = vshll.u32 %v4405_v46, 16  ;;  %v15938_v9 = vsel %vm15470_vm14, %v3512_v37, %v3513_v22  ;;  %v4463_v0 = vshll.u32 %v4406_v44, 16  ;;  %v4467_v5 = vshrl.u32 %v4406_v44, 16  ;;  %v4922_v14 = vld [vmem:[#allocation2 + $0x2c] sm:$0x1]  ;;  %v15948_v44 = vpop.f32.mrb[12].mxu0 }
 0x1e1   :  { %v4473_v57 = vshll.u32 %v4407_v63, 16  ;;  %v15944_v17 = vsel %vm15470_vm14, %v3519_v6, %v3520_v41  ;;  %v4456_v46 = vrot.slane %v4454_v38, 4  ;;  %v4408_v40 = vld [vmem:[#allocation2 + $0x24] sm:$0xf]  ;;  %v4409_v26 = vld [vmem:[#allocation2 + $0x28] sm:$0xf]  ;;  %v18198_v63 = vcombine.low %v15812_v39, %v15830_v4 }
 0x1e2   :  { %v4459_v25 = vrot.slane %v4457_v59, 5  ;;  %v4465_v24 = vrot.slane %v4463_v0, 5  ;;  %v4469_v22 = vrot.slane %v4467_v5, 4  ;;  %18197 = vst [vmem:[#allocation48_spill] sm:$0xff] %v15948_v44  ;;  %v12011_v62 = vrot.slane %v4917_v31, 9  ;;  %v15953_v38 = vpop.f32.mrb[13].mxu0 }
 0x1e3   :  { %v4475_v37 = vrot.slane %v4473_v57, 5  ;;  %13503 = vmatmul.mubr.bf16.gmra.mrb[84].mxu1 %v18198_v63  ;;  %v5015_v41 = vrot.slane %v4918_v43, 5  ;;  %v5018_v6 = vrot.slane %v4919_v13, 5  ;;  %18199 = vst [vmem:[#allocation49_spill] sm:$0xff] %v15953_v38  ;;  %v12012_v20 = vrot.slane %v4920_v53, 9  ;;  %v15955_v5 = vpop.f32.mrb[14].mxu0 }
 0x1e4   :  { %v4460_v10 = vor.u32 %v4459_v25, %v4456_v46  ;;  %13506 = vmatprep.mubr.bf16.mxu1 %v11951_v45  ;;  %v4470_v59 = vor.u32 %v4469_v22, %v4465_v24  ;;  %v5022_v1 = vrot.slane %v4921_v60, 5  ;;  %v5025_v0 = vrot.slane %v4922_v14, 5  ;;  %18200 = vst [vmem:[#allocation50_spill] sm:$0xff] %v15955_v5  ;;  %v4410_v4 = vld [vmem:[#allocation2 + $0x2c] sm:$0x1]  ;;  %v15961_v13 = vpop.f32.mrb[15].mxu0 }
 0x1e5   :  { %v15959_v44 = vsel %vm15470_vm14, %v12011_v62, %v5015_v41  ;;  %v5017_v39 = vrot.slane %v5015_v41, 4  ;;  %v4478_v46 = vshrl.u32 %v4408_v40, 16  ;;  %v4923_v31 = vld [vmem:[#allocation2 + $0x30] sm:$0xe]  ;;  %v4924_v43 = vld [vmem:[#allocation2 + $0x34] sm:$0xf]  ;;  %v18202_v45 = vcombine.low %v15847_v54, %v15865_v56 }
 0x1e6   :  { %v4461_v57 = vrot.slane %v4460_v10, 4  ;;  %18201 = vst [vmem:[#allocation51_spill] sm:$0xff] %v15961_v13  ;;  %v4471_v53 = vrot.slane %v4470_v59, 4  ;;  %v15968_v60 = vsel %vm15470_vm14, %v12012_v20, %v5022_v1  ;;  %v5024_v14 = vrot.slane %v5022_v1, 4  ;;  %v15970_v62 = vpop.f32.mrb[12].mxu1 }
 0x1e7   :  { %13459 = vmatmul.mubr.bf16.gmra.mrb[88].mxu0 %v18202_v45  ;;  %v4481_v10 = vshll.u32 %v4408_v40, 16  ;;  %v15976_v22 = vsel %vm15470_vm14, %v5017_v39, %v5018_v6  ;;  %v4480_v63 = vrot.slane %v4478_v46, 4  ;;  %v4487_v54 = vshll.u32 %v4409_v26, 16  ;;  %v4925_v56 = vld [vmem:[#allocation2 + $0x38] sm:$0x1]  ;;  %v15986_v59 = vpop.f32.mrb[13].mxu1 }
 0x1e8   :  { %13462 = vmatprep.mubr.bf16.mxu0 %v11865_v32  ;;  %v4466_v25 = vsel %vm14914_vm11, %v4461_v57, %v4465_v24  ;;  %v4926_v41 = vld [vmem:[#allocation2 + $0x3c] sm:$0xe]  ;;  %v4476_v20 = vsel %vm14914_vm11, %v4471_v53, %v4475_v37  ;;  %v15984_v32 = vsel %vm15470_vm14, %v5024_v14, %v5025_v0  ;;  %v4927_v24 = vld [vmem:[#allocation2 + $0x40] sm:$0xf]  ;;  %v4491_v46 = vshrl.u32 %v4409_v26, 16  ;;  %v15990_v38 = vpop.f32.mrb[14].mxu1 }
 0x1e9   :  { %v4483_v40 = vrot.slane %v4481_v10, 5  ;;  %v11995_v6 = vcombine.low %v4466_v25, %v4476_v20  ;;  %v4489_v39 = vrot.slane %v4487_v54, 5  ;;  %v4928_v45 = vld [vmem:[#allocation2 + $0x44] sm:$0x1]  ;;  %v4497_v37 = vshll.u32 %v4410_v4, 16  ;;  %v14183_v57 = vld [vmem:[#allocation19 + $0x48] sm:$0xff]  }
 0x1ea   :  { %v12013_v53 = vrot.slane %v4923_v31, 9  ;;  %v5029_v5 = vrot.slane %v4924_v43, 5  ;;  %v4411_v1 = vld [vmem:[#allocation2 + $0x30] sm:$0xf]  ;;  %v18203_v0 = vcombine.low %v15875_v3, %v15891_v33  ;;  %v4493_v14 = vrot.slane %v4491_v46, 4 }
 0x1eb   :  { %v4484_v13 = vor.u32 %v4483_v40, %v4480_v63  ;;  %v5032_v10 = vrot.slane %v4925_v56, 5  ;;  %v12014_v25 = vrot.slane %v4926_v41, 9  ;;  %v5036_v20 = vrot.slane %v4927_v24, 5  ;;  %v4412_v12 = vld [vmem:[#allocation2 + $0x34] sm:$0xf] }
 0x1ec   :  { %13507 = vmatmul.mubr.bf16.gmra.mrb[88].mxu1 %v18203_v0  ;;  %v18204_v26 = vcombine.low %v15928_v55, %v15938_v9  ;;  %v4499_v4 = vrot.slane %v4497_v37, 5  ;;  %v16000_v31 = vsel %vm15470_vm14, %v12013_v53, %v5029_v5  ;;  %v5031_v43 = vrot.slane %v5029_v5, 4  ;;  %v4413_v54 = vld [vmem:[#allocation2 + $0x38] sm:$0x1]  ;;  %v4929_v41 = vld [vmem:[#allocation2 + $0x48] sm:$0xe] }
 0x1ed   :  { %v4485_v63 = vrot.slane %v4484_v13, 4  ;;  %v4494_v40 = vor.u32 %v4493_v14, %v4489_v39  ;;  %v16004_v3 = vsel %vm15470_vm14, %v12014_v25, %v5036_v20  ;;  %v5038_v33 = vrot.slane %v5036_v20, 4  ;;  %v4930_v24 = vld [vmem:[#allocation2 + $0x4c] sm:$0xf]  ;;  %v4932_v0 = vld [vmem:[#allocation2 + $0x54] sm:$0xe] }
 0x1ee   :  { %13510 = vmatprep.mubr.bf16.mxu1 %v18204_v26  ;;  %v5039_v56 = vrot.slane %v4928_v45, 5  ;;  %v18205_v55 = vcombine.low %v15906_v15, %v15919_v48  ;;  %v16013_v5 = vsel %vm15470_vm14, %v5031_v43, %v5032_v10  ;;  %v4502_v13 = vshrl.u32 %v4411_v1, 16  ;;  %v4931_v48 = vld [vmem:[#allocation2 + $0x50] sm:$0x1]  ;;  %v14176_v14 = vld [vmem:[#allocation2 + $0x18] sm:$0xff]  }
 0x1ef   :  { %v4490_v9 = vsel %vm14914_vm11, %v4485_v63, %v4489_v39  ;;  %v4505_v46 = vshll.u32 %v4411_v1, 16  ;;  %v4495_v37 = vrot.slane %v4494_v40, 4  ;;  %v4511_v15 = vshll.u32 %v4412_v12, 16  ;;  %v4933_v1 = vld [vmem:[#allocation2 + $0x58] sm:$0xf] }
 0x1f0   :  { %13463 = vmatmul.mubr.bf16.gmra.mrb[92].mxu0 %v18205_v55  ;;  %v16019_v53 = vsel %vm15470_vm14, %v5038_v33, %v5039_v56  ;;  %v4504_v10 = vrot.slane %v4502_v13, 4  ;;  %v4515_v20 = vshrl.u32 %v4412_v12, 16  ;;  %v4521_v43 = vshll.u32 %v4413_v54, 16  ;;  %v16025_v33 = vpop.f32.mrb[15].mxu1  ;;  %v4934_v28 = vld [vmem:[#allocation2 + $0x5c] sm:$0x1] }
 0x1f1   :  { %5477 = vmatprep.mubr.bf16.mxu0 %v11995_v6  ;;  %v4507_v25 = vrot.slane %v4505_v46, 5  ;;  %v14178_v6 = vld [vmem:[#allocation19] sm:$0xff]   ;;  %v4500_v26 = vsel %vm14914_vm11, %v4495_v37, %v4499_v4  ;;  %v4513_v63 = vrot.slane %v4511_v15, 5  ;;  %v12015_v40 = vrot.slane %v4929_v41, 9  ;;  %v4414_v4 = vld [vmem:[#allocation2 + $0x3c] sm:$0xf] }
 0x1f2   :  { %v11996_v56 = vcombine.low %v4490_v9, %v4500_v26  ;;  %v4517_v45 = vrot.slane %v4515_v20, 4  ;;  %v5043_v16 = vrot.slane %v4930_v24, 5  ;;  %v18206_v13 = vcombine.low %v15932_v23, %v15944_v17  ;;  %v4415_v15 = vld [vmem:[#allocation2 + $0x40] sm:$0xf]  ;;  %v14184_v23 = vld [vmem:[#allocation19 + $0x8] sm:$0xff]  }
 0x1f3   :  { %v4508_v55 = vor.u32 %v4507_v25, %v4504_v10  ;;  %v4523_v12 = vrot.slane %v4521_v43, 5  ;;  %v5046_v46 = vrot.slane %v4931_v48, 5  ;;  %v12016_v39 = vrot.slane %v4932_v0, 9  ;;  %v4416_v10 = vld [vmem:[#allocation2 + $0x44] sm:$0x1] }
 0x1f4   :  { %13511 = vmatmul.mubr.bf16.gmra.mrb[92].mxu1 %v18206_v13  ;;  %v5050_v8 = vrot.slane %v4933_v1, 5  ;;  %v18207_v54 = vcombine.low %v15959_v44, %v15976_v22  ;;  %v4518_v9 = vor.u32 %v4517_v45, %v4513_v63  ;;  %v16035_v37 = vsel %vm15470_vm14, %v12015_v40, %v5043_v16  ;;  %v4935_v22 = vld [vmem:[#allocation2 + $0x60] sm:$0xe]  ;;  %v4936_v45 = vld [vmem:[#allocation2 + $0x64] sm:$0xf] }
 0x1f5   :  { %v4509_v41 = vrot.slane %v4508_v55, 4  ;;  %v5045_v24 = vrot.slane %v5043_v16, 4  ;;  %v5053_v0 = vrot.slane %v4934_v28, 5  ;;  %v16043_v44 = vadd.f32 %v15584_v27, %v15571_v11  ;;  %v4938_v26 = vld [vmem:[#allocation2 + $0x6c] sm:$0xe] }
 0x1f6   :  { %13530 = vmatprep.mubr.bf16.mxu1 %v18207_v54  ;;  %v16039_v17 = vsel %vm15470_vm14, %v12016_v39, %v5050_v8  ;;  %v5052_v48 = vrot.slane %v5050_v8, 4  ;;  %v4519_v16 = vrot.slane %v4518_v9, 4  ;;  %v4526_v1 = vshrl.u32 %v4414_v4, 16  ;;  %v4937_v39 = vld [vmem:[#allocation2 + $0x68] sm:$0x1]  ;;  %v16051_v8 = vld [vmem:[#allocation19 + $0x88] sm:$0xff]  }
 0x1f7   :  { %18208 = vst [vmem:[#allocation52_spill] sm:$0xff] %v16043_v44  ;;  %v4514_v25 = vsel %vm14914_vm11, %v4509_v41, %v4513_v63  ;;  %v16049_v20 = vsel %vm15470_vm14, %v5045_v24, %v5046_v46  ;;  %v4529_v28 = vshll.u32 %v4414_v4, 16  ;;  %v4939_v63 = vld [vmem:[#allocation2 + $0x70] sm:$0xf]  ;;  %v4545_v54 = vshll.u32 %v4416_v10, 16  ;;  %v14189_v9 = vld [vmem:[#allocation19 + $0x50] sm:$0xff]  }
 0x1f8   :  { %5478 = vmatmul.mubr.bf16.vlgmr.msra.gmra.mrb[96].mxu0 %v14176_v14  ;;  %v16057_v27 = vsel %vm15470_vm14, %v5052_v48, %v5053_v0  ;;  %v4535_v14 = vshll.u32 %v4415_v15, 16  ;;  %v4524_v43 = vsel %vm14914_vm11, %v4519_v16, %v4523_v12  ;;  %v4528_v40 = vrot.slane %v4526_v1, 4  ;;  %v4940_v41 = vld [vmem:[#allocation2 + $0x74] sm:$0x1]  ;;  %v14180_v24 = vld [vmem:[#allocation2 + $0x24] sm:$0xff]  }
 0x1f9   :  { %13011 = vmatpush3.bf16.msra.mxu0 %v14178_v6  ;;  %5485 = vmatprep.mubr.bf16.mxu0 %v11996_v56  ;;  %v4539_v56 = vshrl.u32 %v4415_v15, 16  ;;  %v11997_v55 = vcombine.low %v4514_v25, %v4524_v43  ;;  %v4531_v13 = vrot.slane %v4529_v28, 5  ;;  %v16067_v48 = vadd.f32 %v15622_v30, %v15597_v21  ;;  %v4417_v0 = vld [vmem:[#allocation2 + $0x48] sm:$0xf]  ;;  %v16072_v15 = vld [vmem:[#allocation19 + $0x90] sm:$0xff]   ;;  %v16074_v6 = vpop.f32.mrb[16].mxu0 }
 0x1fa   :  { %13012 = vmatprep.subr.bf16.mxu0 %v14183_v57  ;;  %v16063_v46 = vrot.slane %v4535_v14, 5  ;;  %v12017_v12 = vrot.slane %v4935_v22, 9  ;;  %v5057_v57 = vrot.slane %v4936_v45, 5  ;;  %v18210_v16 = vcombine.low %v15968_v60, %v15984_v32  ;;  %v4418_v14 = vld [vmem:[#allocation2 + $0x4c] sm:$0xf]  ;;  %v14190_v43 = vld [vmem:[#allocation19 + $0x10] sm:$0xff]  }
 0x1fb   :  { %v4541_v4 = vrot.slane %v4539_v56, 4  ;;  %18209 = vst [vmem:[#allocation53_spill] sm:$0xff] %v16067_v48  ;;  %v4532_v25 = vor.u32 %v4531_v13, %v4528_v40  ;;  %v4547_v10 = vrot.slane %v4545_v54, 5  ;;  %v5060_v1 = vrot.slane %v4937_v39, 5  ;;  %v14195_v56 = vld [vmem:[#allocation19 + $0x58] sm:$0xff]   ;;  %v14191_v48 = vld [vmem:[#allocation19 + $0xa0] sm:$0xff]  }
 0x1fc   :  { %13531 = vmatmul.mubr.bf16.vlgmr.msra.gmra.mrb[64].mxu1 %v18210_v16  ;;  %v12018_v28 = vrot.slane %v4938_v26, 9  ;;  %v18211_v21 = vcombine.low %v16000_v31, %v16013_v5  ;;  %v16083_v60 = vsel %vm15470_vm14, %v12017_v12, %v5057_v57  ;;  %v5059_v32 = vrot.slane %v5057_v57, 4  ;;  %v4419_v22 = vld [vmem:[#allocation2 + $0x50] sm:$0x1]  ;;  %v4941_v31 = vld [vmem:[#allocation2 + $0x78] sm:$0xe] }
 0x1fd   :  { %13013 = vmatpush3.bf16.msra.mxu0 %v14184_v23  ;;  %13563 = vmatpush3.bf16.msra.mxu1 %v15836_v42  ;;  %v4542_v30 = vor.u32 %v4541_v4, %v16063_v46  ;;  %v5064_v23 = vrot.slane %v4939_v63, 5  ;;  %v4533_v45 = vrot.slane %v4532_v25, 4  ;;  %v5067_v39 = vrot.slane %v4940_v41, 5  ;;  %v16090_v5 = vpop.f32.mrb[17].mxu0  ;;  %v4942_v41 = vld [vmem:[#allocation2 + $0x7c] sm:$0xf] }
 0x1fe   :  { %13534 = vmatprep.mubr.bf16.mxu1 %v18211_v21  ;;  %13564 = vmatprep.subr.bf16.mxu1 %v16051_v8  ;;  %v16088_v42 = vadd.f32 %v15709_v36, %v15696_v29  ;;  %v4550_v26 = vshrl.u32 %v4417_v0, 16  ;;  %v16094_v13 = vsel %vm15470_vm14, %v5059_v32, %v5060_v1  ;;  %v16100_v4 = vld [vmem:[#allocation2 + $0x80] sm:$0x1]  ;;  %v4944_v12 = vld [vmem:[#allocation2 + $0x84] sm:$0xe]  ;;  %v14196_v16 = vld [vmem:[#allocation19 + $0x18] sm:$0xff]  }
 0x1ff   :  { %13014 = vmatprep.subr.bf16.mxu0 %v14189_v9  ;;  %v4543_v40 = vrot.slane %v4542_v30, 4  ;;  %v16098_v63 = vsel %vm15470_vm14, %v12018_v28, %v5064_v23  ;;  %v5066_v54 = vrot.slane %v5064_v23, 4  ;;  %v4538_v29 = vsel %vm14914_vm11, %v4533_v45, %v16063_v46  ;;  %v4945_v57 = vld [vmem:[#allocation2 + $0x88] sm:$0xf]  ;;  %v16107_v25 = vpop.f32.mrb[18].mxu0  ;;  %v16109_v1 = vpop.f32.mrb[16].mxu1 }
 0x200   :  { %18212 = vst [vmem:[#allocation54_spill] sm:$0xff] %v16088_v42  ;;  %5486 = vmatmul.mubr.bf16.gmra.mrb[100].mxu0 %v14180_v24  ;;  %v4552_v9 = vrot.slane %v4550_v26, 4  ;;  %v4553_v24 = vshll.u32 %v4417_v0, 16  ;;  %v4559_v21 = vshll.u32 %v4418_v14, 16  ;;  %v4563_v0 = vshrl.u32 %v4418_v14, 16  ;;  %v16118_v30 = vpop.f32.mrb[19].mxu0 }
 0x201   :  { %5493 = vmatprep.mubr.bf16.mxu0 %v11997_v55  ;;  %13015 = vmatpush3.bf16.msra.mxu0 %v14190_v43  ;;  %v14182_v55 = vld [vmem:[#allocation2 + $0x30] sm:$0xff]   ;;  %v4548_v28 = vsel %vm14914_vm11, %v4543_v40, %v4547_v10  ;;  %v16116_v46 = vsel %vm15470_vm14, %v5066_v54, %v5067_v39  ;;  %v4946_v43 = vld [vmem:[#allocation2 + $0x8c] sm:$0x1]  ;;  %v16120_v32 = vpop.f32.mrb[17].mxu1  ;;  %v4569_v26 = vshll.u32 %v4419_v22, 16  ;;  %v12019_v36 = vrot.slane %v4941_v31, 9 }
 0x202   :  { %13565 = vmatpush3.bf16.msra.mxu1 %v16051_v8  ;;  %13016 = vmatprep.subr.bf16.mxu0 %v14195_v56  ;;  %v11998_v23 = vcombine.low %v4538_v29, %v4548_v28  ;;  %v14187_v8 = vld [vmem:[#allocation19 + $0x98] sm:$0xff]   ;;  %v4555_v10 = vrot.slane %v4553_v24, 5  ;;  %v4420_v40 = vld [vmem:[#allocation2 + $0x54] sm:$0xf]  ;;  %v16125_v39 = vpop.f32.mrb[18].mxu1  ;;  %v4561_v54 = vrot.slane %v4559_v21, 5  ;;  %v16129_v56 = vadd.f32 %v15764_v18, %v15729_v50 }
 0x203   :  { %13566 = vmatprep.subr.bf16.mxu1 %v16072_v15  ;;  %v4565_v14 = vrot.slane %v4563_v0, 4  ;;  %v16131_v11 = vpop.f32.mrb[19].mxu1  ;;  %v18214_v29 = vcombine.low %v16004_v3, %v16019_v53  ;;  %v4571_v45 = vrot.slane %v4569_v26, 5  ;;  %v5071_v24 = vrot.slane %v4942_v41, 5  ;;  %v16141_v3 = vpop.f32.mrb[20].mxu0 }
 0x204   :  { %18213 = vst [vmem:[#allocation55_spill] sm:$0xff] %v16129_v56  ;;  %v4556_v28 = vor.u32 %v4555_v10, %v4552_v9  ;;  %v5074_v22 = vrot.slane %v16100_v4, 5  ;;  %v18215_v21 = vcombine.low %v16035_v37, %v16049_v20  ;;  %v12020_v18 = vrot.slane %v4944_v12, 9  ;;  %v4421_v56 = vld [vmem:[#allocation2 + $0x58] sm:$0xf]  ;;  %v16155_v10 = vpop.f32.mrb[21].mxu0 }
 0x205   :  { %13535 = vmatmul.mubr.bf16.gmra.mrb[68].mxu1 %v18214_v29  ;;  %13017 = vmatpush3.bf16.msra.mxu0 %v14196_v16  ;;  %v4566_v50 = vor.u32 %v4565_v14, %v4561_v54  ;;  %v5078_v31 = vrot.slane %v4945_v57, 5  ;;  %v5081_v0 = vrot.slane %v4946_v43, 5  ;;  %v16145_v41 = vsel %vm15470_vm14, %v12019_v36, %v5071_v24  ;;  %v4422_v20 = vld [vmem:[#allocation2 + $0x5c] sm:$0x1]  ;;  %v4948_v43 = vld [vmem:[#allocation2 + $0x94] sm:$0xf] }
 0x206   :  { %13538 = vmatprep.mubr.bf16.mxu1 %v18215_v21  ;;  %13567 = vmatpush3.bf16.msra.mxu1 %v16072_v15  ;;  %v4557_v53 = vrot.slane %v4556_v28, 4  ;;  %v5073_v4 = vrot.slane %v5071_v24, 4  ;;  %v16149_v37 = vadd.f32 %v15885_v52, %v15878_v61  ;;  %v4947_v15 = vld [vmem:[#allocation2 + $0x90] sm:$0xe]  ;;  %v4574_v16 = vshrl.u32 %v4420_v40, 16  ;;  %v16163_v14 = vld [vmem:[#allocation19 + $0xa8] sm:$0xff]  }
 0x207   :  { %13568 = vmatprep.subr.bf16.mxu1 %v14187_v8  ;;  %v4567_v9 = vrot.slane %v4566_v50, 4  ;;  %v16153_v12 = vsel %vm15470_vm14, %v12020_v18, %v5078_v31  ;;  %v5080_v57 = vrot.slane %v5078_v31, 4  ;;  %v4577_v52 = vshll.u32 %v4420_v40, 16  ;;  %v4949_v26 = vld [vmem:[#allocation2 + $0x98] sm:$0x1]  ;;  %v14186_v29 = vld [vmem:[#allocation2 + $0x3c] sm:$0xff]  }
 0x208   :  { %18216 = vst [vmem:[#allocation56_spill] sm:$0xff] %v16149_v37  ;;  %5494 = vmatmul.mubr.bf16.gmra.mrb[104].mxu0 %v14182_v55  ;;  %v4562_v36 = vsel %vm14914_vm11, %v4557_v53, %v4561_v54  ;;  %v16161_v61 = vsel %vm15470_vm14, %v5073_v4, %v5074_v22  ;;  %v4583_v55 = vshll.u32 %v4421_v56, 16  ;;  %v4576_v24 = vrot.slane %v4574_v16, 4  ;;  %v4950_v22 = vld [vmem:[#allocation2 + $0x9c] sm:$0xe]  ;;  %v16173_v40 = vpop.f32.mrb[22].mxu0 }
 0x209   :  { %5501 = vmatprep.mubr.bf16.mxu0 %v11998_v23  ;;  %v4572_v28 = vsel %vm14914_vm11, %v4567_v9, %v4571_v45  ;;  %v16171_v54 = vsel %vm15470_vm14, %v5080_v57, %v5081_v0  ;;  %v4951_v21 = vld [vmem:[#allocation2 + $0xa0] sm:$0xf]  ;;  %v4579_v18 = vrot.slane %v4577_v52, 5  ;;  %v4952_v45 = vld [vmem:[#allocation2 + $0xa4] sm:$0x1]  ;;  %v16179_v53 = vpop.f32.mrb[23].mxu0  ;;  %v16185_v57 = vadd.f32 %v15934_v49, %v15897_v47 }
 0x20a   :  { %13569 = vmatpush3.bf16.msra.mxu1 %v14187_v8  ;;  %v11999_v50 = vcombine.low %v4562_v36, %v4572_v28  ;;  %v16177_v31 = vrot.slane %v4583_v55, 5  ;;  %v16181_v4 = vpop.f32.mrb[20].mxu1  ;;  %v4587_v0 = vshrl.u32 %v4421_v56, 16  ;;  %v4593_v9 = vshll.u32 %v4422_v20, 16  ;;  %v4423_v36 = vld [vmem:[#allocation2 + $0x60] sm:$0xf] }
 0x20b   :  { %13570 = vmatprep.subr.bf16.mxu1 %v14191_v48  ;;  %18217 = vst [vmem:[#allocation57_spill] sm:$0xff] %v16185_v57  ;;  %v12021_v16 = vrot.slane %v4947_v15, 9  ;;  %v16187_v28 = vpop.f32.mrb[21].mxu1  ;;  %v18218_v52 = vcombine.low %v16039_v17, %v16057_v27  ;;  %v4580_v55 = vor.u32 %v4579_v18, %v4576_v24  ;;  %v5085_v8 = vrot.slane %v4948_v43, 5  ;;  %v4424_v44 = vld [vmem:[#allocation2 + $0x64] sm:$0xf] }
 0x20c   :  { %v5088_v23 = vrot.slane %v4949_v26, 5  ;;  %v12022_v37 = vrot.slane %v4950_v22, 9  ;;  %v16192_v42 = vpop.f32.mrb[22].mxu1  ;;  %v18219_v56 = vcombine.low %v16083_v60, %v16094_v13  ;;  %v4589_v47 = vrot.slane %v4587_v0, 4  ;;  %v4425_v26 = vld [vmem:[#allocation2 + $0x68] sm:$0x1] }
 0x20d   :  { %13539 = vmatmul.mubr.bf16.gmra.mrb[72].mxu1 %v18218_v52  ;;  %v4595_v49 = vrot.slane %v4593_v9, 5  ;;  %v5092_v20 = vrot.slane %v4951_v21, 5  ;;  %v5095_v15 = vrot.slane %v4952_v45, 5  ;;  %v4581_v57 = vrot.slane %v4580_v55, 4  ;;  %v4953_v60 = vld [vmem:[#allocation2 + $0xa8] sm:$0xe] }
 0x20e   :  { %13542 = vmatprep.mubr.bf16.mxu1 %v18219_v56  ;;  %13571 = vmatpush3.bf16.msra.mxu1 %v14191_v48  ;;  %v16199_v17 = vsel %vm15470_vm14, %v12021_v16, %v5085_v8  ;;  %v5087_v27 = vrot.slane %v5085_v8, 4  ;;  %v16204_v43 = vadd.f32 %v15986_v59, %v15970_v62  ;;  %v14197_v13 = vld [vmem:[#allocation19 + $0xb0] sm:$0xff]   ;;  %v14201_v48 = vld [vmem:[#allocation19 + $0x60] sm:$0xff]   ;;  %v4590_v24 = vor.u32 %v4589_v47, %v16177_v31  ;;  %v4954_v8 = vld [vmem:[#allocation2 + $0xac] sm:$0xf]  ;;  %v16218_v16 = vpop.f32.mrb[23].mxu1 }
 0x20f   :  { %13572 = vmatprep.subr.bf16.mxu1 %v16163_v14  ;;  %v16209_v22 = vsel %vm15470_vm14, %v12022_v37, %v5092_v20  ;;  %v5094_v21 = vrot.slane %v5092_v20, 4  ;;  %v4598_v18 = vshrl.u32 %v4423_v36, 16  ;;  %v4586_v62 = vsel %vm14914_vm11, %v4581_v57, %v16177_v31  ;;  %v4955_v0 = vld [vmem:[#allocation2 + $0xb0] sm:$0x1]  ;;  %v4956_v9 = vld [vmem:[#allocation2 + $0xb4] sm:$0xe]  ;;  %13018 = vmatprep.subr.bf16.mxu0 %v14201_v48 }
 0x210   :  { %18220 = vst [vmem:[#allocation58_spill] sm:$0xff] %v16204_v43  ;;  %5502 = vmatmul.mubr.bf16.gmra.mrb[108].mxu0 %v14186_v29  ;;  %v16216_v59 = vsel %vm15470_vm14, %v5087_v27, %v5088_v23  ;;  %v4601_v45 = vshll.u32 %v4423_v36, 16  ;;  %v4607_v29 = vshll.u32 %v4424_v44, 16  ;;  %v14202_v37 = vld [vmem:[#allocation19 + $0x20] sm:$0xff]   ;;  %v14188_v52 = vld [vmem:[#allocation2 + $0x48] sm:$0xff]   ;;  %v4591_v55 = vrot.slane %v4590_v24, 4 }
 0x211   :  { %5509 = vmatprep.mubr.bf16.mxu0 %v11999_v50  ;;  %v16224_v31 = vsel %vm15470_vm14, %v5094_v21, %v5095_v15  ;;  %v4600_v23 = vrot.slane %v4598_v18, 4  ;;  %v4957_v57 = vld [vmem:[#allocation2 + $0xb8] sm:$0xf]  ;;  %v4611_v20 = vshrl.u32 %v4424_v44, 16  ;;  %v4958_v27 = vld [vmem:[#allocation2 + $0xbc] sm:$0x1]  ;;  %13019 = vmatpush3.bf16.msra.mxu0 %v14202_v37  ;;  %v18222_v18 = vcombine.low %v16098_v63, %v16116_v46 }
 0x212   :  { %13573 = vmatpush3.bf16.msra.mxu1 %v16163_v14  ;;  %v4603_v56 = vrot.slane %v4601_v45, 5  ;;  %v16229_v47 = vrot.slane %v4607_v29, 5  ;;  %v14199_v48 = vld [vmem:[#allocation19 + $0xb8] sm:$0xff]   ;;  %v4596_v24 = vsel %vm14914_vm11, %v4591_v55, %v4595_v49  ;;  %v4617_v15 = vshll.u32 %v4425_v26, 16  ;;  %v16240_v43 = vpop.f32.mrb[24].mxu0  ;;  %v16242_v37 = vpop.f32.mrb[24].mxu1 }
 0x213   :  { %13574 = vmatprep.subr.bf16.mxu1 %v14197_v13  ;;  %v16235_v14 = vadd.f32 %v16025_v33, %v15990_v38  ;;  %v12023_v21 = vrot.slane %v4953_v60, 9  ;;  %v12000_v45 = vcombine.low %v4586_v62, %v4596_v24  ;;  %v4613_v44 = vrot.slane %v4611_v20, 4  ;;  %v4426_v50 = vld [vmem:[#allocation2 + $0x6c] sm:$0xf]  ;;  %v4427_v63 = vld [vmem:[#allocation2 + $0x70] sm:$0xf] }
 0x214   :  { %v4604_v29 = vor.u32 %v4603_v56, %v4600_v23  ;;  %v5099_v36 = vrot.slane %v4954_v8, 5  ;;  %v18223_v49 = vcombine.low %v16145_v41, %v16161_v61  ;;  %v4619_v38 = vrot.slane %v4617_v15, 5  ;;  %v4428_v23 = vld [vmem:[#allocation2 + $0x74] sm:$0x1]  ;;  %v16262_v20 = vpop.f32.mrb[25].mxu0 }
 0x215   :  { %18221 = vst [vmem:[#allocation59_spill] sm:$0xff] %v16235_v14  ;;  %13543 = vmatmul.mubr.bf16.gmra.mrb[76].mxu1 %v18222_v18  ;;  %v5102_v33 = vrot.slane %v4955_v0, 5  ;;  %v12024_v26 = vrot.slane %v4956_v9, 9  ;;  %v5106_v60 = vrot.slane %v4957_v57, 5  ;;  %v4614_v62 = vor.u32 %v4613_v44, %v16229_v47  ;;  %v16252_v56 = vld [vmem:[#allocation19 + $0x140] sm:$0xff]  }
 0x216   :  { %13546 = vmatprep.mubr.bf16.mxu1 %v18223_v49  ;;  %13575 = vmatpush3.bf16.msra.mxu1 %v14197_v13  ;;  %v4605_v46 = vrot.slane %v4604_v29, 4  ;;  %v16250_v8 = vsel %vm15470_vm14, %v12023_v21, %v5099_v36  ;;  %v5101_v55 = vrot.slane %v5099_v36, 4  ;;  %v5109_v13 = vrot.slane %v4958_v27, 5  ;;  %v4959_v9 = vld [vmem:[#allocation2 + $0xc0] sm:$0xe]  ;;  %v16264_v36 = vpop.f32.mrb[25].mxu1 }
 0x217   :  { %13576 = vmatprep.subr.bf16.mxu1 %v14199_v48  ;;  %v16256_v41 = vsel %vm15470_vm14, %v12024_v26, %v5106_v60  ;;  %v5108_v61 = vrot.slane %v5106_v60, 4  ;;  %v16260_v0 = vadd.f32 %v16120_v32, %v16109_v1  ;;  %v4960_v57 = vld [vmem:[#allocation2 + $0xc4] sm:$0xf]  ;;  %v4615_v24 = vrot.slane %v4614_v62, 4  ;;  %v4961_v21 = vld [vmem:[#allocation2 + $0xc8] sm:$0x1] }
 0x218   :  { %5510 = vmatmul.mubr.bf16.gmra.mrb[112].mxu0 %v14188_v52  ;;  %v4610_v52 = vsel %vm14914_vm11, %v4605_v46, %v16229_v47  ;;  %v16271_v15 = vsel %vm15470_vm14, %v5101_v55, %v5102_v33  ;;  %v4622_v27 = vshrl.u32 %v4426_v50, 16  ;;  %v473_v1 = vld [vmem:[#allocation2 + $0xcc] sm:$0x1]  ;;  %v16273_v32 = vpop.f32.mrb[26].mxu0  ;;  %v16275_v18 = vpop.f32.mrb[26].mxu1  ;;  %v14192_v29 = vld [vmem:[#allocation2 + $0x54] sm:$0xff]  }
 0x219   :  { %18224 = vst [vmem:[#allocation60_spill] sm:$0xff] %v16260_v0  ;;  %5517 = vmatprep.mubr.bf16.mxu0 %v12000_v45  ;;  %v16281_v44 = vsel %vm15470_vm14, %v5108_v61, %v5109_v13  ;;  %v4625_v47 = vshll.u32 %v4426_v50, 16  ;;  %v4631_v49 = vshll.u32 %v4427_v63, 16  ;;  %v529_v26 = vld [vmem:[#allocation2 + $0xd4] sm:$0x1]  ;;  %v16283_v33 = vpop.f32.mrb[27].mxu0  ;;  %v4620_v60 = vsel %vm14914_vm11, %v4615_v24, %v4619_v38 }
 0x21a   :  { %13577 = vmatpush3.bf16.msra.mxu1 %v14199_v48  ;;  %18225 = vst [vmem:[#allocation61_spill] sm:$0xff] %v16283_v33  ;;  %v4624_v62 = vrot.slane %v4622_v27, 4  ;;  %v4635_v55 = vshrl.u32 %v4427_v63, 16  ;;  %v12001_v45 = vcombine.low %v4610_v52, %v4620_v60  ;;  %v4641_v13 = vshll.u32 %v4428_v23, 16  ;;  %v16290_v50 = vld [vmem:[#allocation2 + $0xd0] sm:$0xf] }
 0x21b   :  { %13610 = vmatprep.subr.bf16.mxu1 %v16252_v56  ;;  %v4627_v0 = vrot.slane %v4625_v47, 5  ;;  %v4633_v61 = vrot.slane %v4631_v49, 5  ;;  %v16292_v14 = vpop.f32.mrb[27].mxu1  ;;  %v18226_v48 = vcombine.low %v16153_v12, %v16171_v54  ;;  %v16299_v24 = vadd.f32 %v16131_v11, %v16125_v39  ;;  %v4429_v46 = vld [vmem:[#allocation2 + $0x78] sm:$0xf]  ;;  %v16306_v54 = vpop.f32.mrb[28].mxu0 }
 0x21c   :  { %v4637_v38 = vrot.slane %v4635_v55, 4  ;;  %v12025_v63 = vrot.slane %v4959_v9, 9  ;;  %v5113_v27 = vrot.slane %v4960_v57, 5  ;;  %v18228_v52 = vcombine.low %v16199_v17, %v16216_v59  ;;  %v4430_v12 = vld [vmem:[#allocation2 + $0x7c] sm:$0xf] }
 0x21d   :  { %13547 = vmatmul.mubr.bf16.gmra.mrb[80].mxu1 %v18226_v48  ;;  %18227 = vst [vmem:[#allocation62_spill] sm:$0xff] %v16299_v24  ;;  %v4628_v23 = vor.u32 %v4627_v0, %v4624_v62  ;;  %v4643_v47 = vrot.slane %v4641_v13, 5  ;;  %v5116_v49 = vrot.slane %v4961_v21, 5  ;;  %v474_v60 = vsel %vm14831_vm5, 0, %v473_v1  ;;  %v4431_v59 = vld [vmem:[#allocation2 + $0x80] sm:$0x1] }
 0x21e   :  { %13550 = vmatprep.mubr.bf16.mxu1 %v18228_v52  ;;  %v4638_v55 = vor.u32 %v4637_v38, %v4633_v61  ;;  %v16310_v11 = vsel %vm15470_vm14, %v12025_v63, %v5113_v27  ;;  %v5115_v39 = vrot.slane %v5113_v27, 4  ;;  %475 = vst [vmem:[#allocation2 + $0xcc] sm:$0x1] %v474_v60  ;;  %v530_v17 = vsel %vm14836_vm6, 0, %v529_v26  ;;  %v5903_v0 = vld [vmem:[#allocation3] sm:$0x1] }
 0x21f   :  { %v4629_v9 = vrot.slane %v4628_v23, 4  ;;  %531 = vst [vmem:[#allocation2 + $0xd4] sm:$0x1] %v530_v17  ;;  %v18153_v57 = vrot.slane %v16290_v50, 5  ;;  %v16317_v21 = vadd.f32 %v16187_v28, %v16181_v4  ;;  %v4646_v1 = vshrl.u32 %v4429_v46, 16  ;;  %v16319_v62 = vpop.f32.mrb[29].mxu0 }
 0x220   :  { %5518 = vmatmul.mubr.bf16.gmra.mrb[116].mxu0 %v14192_v29  ;;  %v4639_v13 = vrot.slane %v4638_v55, 4  ;;  %v16323_v48 = vsel %vm15470_vm14, %v5115_v39, %v5116_v49  ;;  %v4649_v26 = vshll.u32 %v4429_v46, 16  ;;  %v4655_v38 = vshll.u32 %v4430_v12, 16  ;;  %v5957_v29 = vld [vmem:[#allocation3 + $0x8] sm:$0x1]  ;;  %v16325_v63 = vpop.f32.mrb[30].mxu0 }
 0x221   :  { %18229 = vst [vmem:[#allocation63_spill] sm:$0xff] %v16317_v21  ;;  %5525 = vmatprep.mubr.bf16.mxu0 %v12001_v45  ;;  %v4634_v27 = vsel %vm14914_vm11, %v4629_v9, %v4633_v61  ;;  %v16333_v28 = vrot.slane %v18153_v57, 4  ;;  %v4648_v45 = vrot.slane %v4646_v1, 4  ;;  %v5863_v52 = vld [vmem:[#allocation15] sm:$0xf]  ;;  %v4659_v55 = vshrl.u32 %v4430_v12, 16 }
 0x222   :  { %v5906_v23 = vld [vmem:[#allocation3 + $0xc] sm:$0x1]  ;;  %v4644_v46 = vsel %vm14914_vm11, %v4639_v13, %v4643_v47  ;;  %v4651_v49 = vrot.slane %v4649_v26, 5  ;;  %v16337_v60 = vrot.slane %v4655_v38, 5  ;;  %v5960_v39 = vld [vmem:[#allocation3 + $0x14] sm:$0x1]  ;;  %v16343_v57 = vadd.f32 %v16218_v16, %v16192_v42 }
 0x223   :  { %v16339_v17 = vpop.f32.mrb[31].mxu0  ;;  %v14194_v61 = vld [vmem:[#allocation2 + $0x60] sm:$0xff]   ;;  %v12002_v9 = vcombine.low %v4634_v27, %v4644_v46  ;;  %v4665_v4 = vshll.u32 %v4431_v59, 16  ;;  %v5904_v1 = vsel %vm14831_vm5, 0, %v5903_v0  ;;  %v16347_v24 = vpop.f32.mrb[28].mxu1  ;;  %v18231_v47 = vcombine.low %v16209_v22, %v16224_v31 }
 0x224   :  { %18230 = vst [vmem:[#allocation64_spill] sm:$0xff] %v16343_v57  ;;  %v4652_v12 = vor.u32 %v4651_v49, %v4648_v45  ;;  %v4661_v13 = vrot.slane %v4659_v55, 4  ;;  %5905 = vst [vmem:[#allocation3] sm:$0x1] %v5904_v1  ;;  %v5958_v26 = vsel %vm14836_vm6, 0, %v5957_v29  ;;  %v18232_v59 = vmov 0  }
 0x225   :  { %13551 = vmatmul.mubr.bf16.gmra.mrb[84].mxu1 %v18231_v47  ;;  %v16355_v38 = vrot.slane %v18232_v59, 7  ;;  %v5864_v42 = vld [vmem:[#allocation15 + $0x4] sm:$0xf]  ;;  %v16357_v16 = vpop.f32.mrb[29].mxu1  ;;  %v18234_v0 = vcombine.low %v16250_v8, %v16271_v15  ;;  %v594_v27 = vld [vmem:[#allocation2 + $0xcc] sm:$0xf] }
 0x226   :  { %v4667_v46 = vrot.slane %v4665_v4, 5  ;;  %5959 = vst [vmem:[#allocation3 + $0x8] sm:$0x1] %v5958_v26  ;;  %v5907_v22 = vsel %vm14831_vm5, 0, %v5906_v23  ;;  %v5961_v31 = vsel %vm14836_vm6, 0, %v5960_v39  ;;  %v6067_v29 = vshrl.u32 %v5863_v52, 16 }
 0x227   :  { %18233 = vst [vmem:[#allocation65_spill] sm:$0xff] %v16355_v38  ;;  %13554 = vmatprep.mubr.bf16.mxu1 %v18234_v0  ;;  %v4432_v45 = vld [vmem:[#allocation2 + $0x84] sm:$0xf]  ;;  %v595_v49 = vsel %vm14865_vm8, %v14855_v58, %v594_v27  ;;  %v598_v55 = vld [vmem:[#allocation2 + $0xd4] sm:$0x1]  ;;  %v4653_v1 = vrot.slane %v4652_v12, 4  ;;  %v4662_v8 = vor.u32 %v4661_v13, %v16337_v60 }
 0x228   :  { %v16371_v15 = vrot.slane %v16355_v38, 4  ;;  %5908 = vst [vmem:[#allocation3 + $0xc] sm:$0x1] %v5907_v22  ;;  %5962 = vst [vmem:[#allocation3 + $0x14] sm:$0x1] %v5961_v31  ;;  %5526 = vmatmul.mubr.bf16.gmra.mrb[120].mxu0 %v14194_v61  ;;  %v18236_v23 = vrot.slane %v14819_v7, 4 }
 0x229   :  { %v4433_v4 = vld [vmem:[#allocation2 + $0x88] sm:$0xf]  ;;  %596 = vst [vmem:[#allocation2 + $0xcc] sm:$0xf] %v595_v49  ;;  %v6069_v47 = vrot.slane %v6067_v29, 7  ;;  %v6070_v26 = vshll.u32 %v5863_v52, 16  ;;  %5533 = vmatprep.mubr.bf16.mxu0 %v12002_v9  ;;  %v4658_v12 = vsel %vm14914_vm11, %v4653_v1, %v16337_v60  ;;  %v16388_v9 = vadd.f32 %v16264_v36, %v16242_v37 }
 0x22a   :  { %18235 = vst [vmem:[#allocation66_spill] sm:$0xff] %v16371_v15  ;;  %v599_v39 = vsel %vm14831_vm5, %v18236_v23, %v598_v55  ;;  %v6075_v58 = vshrl.u32 %v5864_v42, 16  ;;  %v16377_v59 = vpop.f32.mrb[30].mxu1  ;;  %v4663_v13 = vrot.slane %v4662_v8, 4  ;;  %v6026_v7 = vsel %vm14822_vm2, %v16371_v15, %v16355_v38  ;;  %v4434_v27 = vld [vmem:[#allocation2 + $0x8c] sm:$0x1] }
 0x22b   :  { %600 = vst [vmem:[#allocation2 + $0xd4] sm:$0x1] %v599_v39  ;;  %v6078_v0 = vshll.u32 %v5864_v42, 16  ;;  %v14198_v22 = vld [vmem:[#allocation2 + $0x6c] sm:$0xff]   ;;  %6034 = vst [vmem:[#allocation3 + $0x4] sm:$0xf] %v6026_v7  ;;  %v6072_v52 = vor.u32 %v6070_v26, %v6069_v47  ;;  %v18239_v37 = vcombine.low %v16256_v41, %v16281_v44 }
 0x22c   :  { %6062 = vst [vmem:[#allocation3 + $0xd0] sm:$0xf] %v6026_v7  ;;  %v6073_v31 = vrot.slane %v6069_v47, 4  ;;  %v6077_v29 = vrot.slane %v6075_v58, 7  ;;  %18238 = vst [vmem:[#allocation67_spill] sm:$0xff] %v16388_v9  ;;  %v14207_v49 = vld [vmem:[#allocation19 + $0x68] sm:$0xff]   ;;  %v4668_v55 = vsel %vm14914_vm11, %v4663_v13, %v4667_v46 }
 0x22d   :  { %v16390_v60 = vpop.f32.mrb[31].mxu1  ;;  %v4670_v1 = vshrl.u32 %v4432_v45, 16  ;;  %v4673_v8 = vshll.u32 %v4432_v45, 16  ;;  %v4679_v42 = vshll.u32 %v4433_v4, 16  ;;  %v5909_v23 = vld [vmem:[#allocation3 + $0x18] sm:$0x1]  ;;  %v12003_v57 = vcombine.low %v4658_v12, %v4668_v55  ;;  %13020 = vmatprep.subr.bf16.mxu0 %v14207_v49  ;;  %13555 = vmatmul.mubr.bf16.gmra.mrb[88].mxu1 %v18239_v37 }
 0x22e   :  { %v14208_v39 = vld [vmem:[#allocation19 + $0x28] sm:$0xff]   ;;  %v6080_v26 = vor.u32 %v6078_v0, %v6077_v29  ;;  %v6082_v47 = vrot.slane %v6077_v29, 4  ;;  %v4683_v58 = vshrl.u32 %v4433_v4, 16  ;;  %v5865_v21 = vld [vmem:[#allocation15 + $0x8] sm:$0xf]  ;;  %v18240_v12 = vcombine.low %v16310_v11, %v16323_v48 }
 0x22f   :  { %v6031_v7 = vld [vmem:[#allocation3] sm:$0xf]  ;;  %v6035_v46 = vld [vmem:[#allocation3 + $0x8] sm:$0x1]  ;;  %v4672_v45 = vrot.slane %v4670_v1, 4  ;;  %v4675_v13 = vrot.slane %v4673_v8, 5  ;;  %13021 = vmatpush3.bf16.msra.mxu0 %v14208_v39  ;;  %v16414_v8 = vadd.f32 %v16292_v14, %v16275_v18 }
 0x230   :  { %v5963_v33 = vld [vmem:[#allocation3 + $0x20] sm:$0x1]  ;;  %v6032_v36 = vsel %vm14865_vm8, %v16355_v38, %v6031_v7  ;;  %v4681_v9 = vrot.slane %v4679_v42, 5  ;;  %13558 = vmatprep.mubr.bf16.mxu1 %v18240_v12  ;;  %v6036_v4 = vsel %vm14831_vm5, %v16371_v15, %v6035_v46  ;;  %v6081_v41 = vsel %vm14822_vm2, %v6073_v31, %v6080_v26  ;;  %v6387_v44 = vld [vmem:[#allocation3 + $0xc] sm:$0xf]  ;;  %5534 = vmatmul.mubr.bf16.gmra.mrb[124].mxu0 %v14198_v22  ;;  %v12666_v26 = vpop.f32.mrb[32].mxu0 }
 0x231   :  { %6033 = vst [vmem:[#allocation3] sm:$0xf] %v6032_v36  ;;  %v6391_v0 = vld [vmem:[#allocation3 + $0x14] sm:$0x1]  ;;  %v4685_v29 = vrot.slane %v4683_v58, 4  ;;  %v4689_v49 = vshll.u32 %v4434_v27, 16  ;;  %v6388_v1 = vsel %vm14865_vm8, %v6072_v52, %v6387_v44  ;;  %v4676_v48 = vor.u32 %v4675_v13, %v4672_v45  ;;  %5541 = vmatprep.mubr.bf16.mxu0 %v12003_v57 }
 0x232   :  { %v4962_v55 = vld [vmem:[#allocation2 + $0xcc] sm:$0xe]  ;;  %6037 = vst [vmem:[#allocation3 + $0x8] sm:$0x1] %v6036_v4  ;;  %6390 = vst [vmem:[#allocation3 + $0x10] sm:$0xf] %v6081_v41  ;;  %v6392_v11 = vsel %vm14831_vm5, %v6082_v47, %v6391_v0 }
 0x233   :  { %v5866_v42 = vld [vmem:[#allocation15 + $0xc] sm:$0xf]  ;;  %v4964_v31 = vld [vmem:[#allocation2 + $0xd4] sm:$0x1]  ;;  %v12026_v39 = vrot.slane %v4962_v55, 9  ;;  %v4686_v27 = vor.u32 %v4685_v29, %v4681_v9  ;;  %v4691_v7 = vrot.slane %v4689_v49, 5 }
 0x234   :  { %6389 = vst [vmem:[#allocation3 + $0xc] sm:$0xf] %v6388_v1  ;;  %6393 = vst [vmem:[#allocation3 + $0x14] sm:$0x1] %v6392_v11  ;;  %v5910_v52 = vsel %vm14831_vm5, 0, %v5909_v23  ;;  %v5123_v58 = vrot.slane %v4964_v31, 5 }
 0x235   :  { %v7156_v47 = vld [vmem:[#allocation3 + $0x4] sm:$0xf]  ;;  %v4677_v37 = vrot.slane %v4676_v48, 4  ;;  %5911 = vst [vmem:[#allocation3 + $0x18] sm:$0x1] %v5910_v52  ;;  %v5964_v14 = vsel %vm14836_vm6, 0, %v5963_v33 }
 0x236   :  { %v6084_v18 = vshrl.u32 %v5865_v21, 16  ;;  %v18241_v22 = vrot.slane %v16290_v50, 5  ;;  %v7253_v46 = vrot.slane %v7156_v47, 5  ;;  %v4687_v45 = vrot.slane %v4686_v27, 4  ;;  %5965 = vst [vmem:[#allocation3 + $0x20] sm:$0x1] %v5964_v14 }
 0x237   :  { %v6087_v13 = vshll.u32 %v5865_v21, 16  ;;  %v12667_v23 = vpop.f32.mrb[33].mxu0  ;;  %v5124_v57 = vsel %vm15470_vm14, %v16333_v28, %v5123_v58  ;;  %v4682_v12 = vsel %vm14914_vm11, %v4677_v37, %v4681_v9  ;;  %v6092_v33 = vshrl.u32 %v5866_v42, 16  ;;  %v5912_v41 = vld [vmem:[#allocation3 + $0x24] sm:$0x1] }
 0x238   :  { %v5121_v36 = vsel %vm15470_vm14, %v12026_v39, %v18241_v22  ;;  %v6086_v4 = vrot.slane %v6084_v18, 7  ;;  %v14200_v50 = vld [vmem:[#allocation2 + $0x78] sm:$0xff]   ;;  %v7255_v0 = vrot.slane %v7253_v46, 4  ;;  %v4692_v29 = vsel %vm14914_vm11, %v4687_v45, %v4691_v7  ;;  %v5966_v31 = vld [vmem:[#allocation3 + $0x2c] sm:$0x1] }
 0x239   :  { %v12042_v44 = vcombine.low %v5121_v36, %v5124_v57  ;;  %v6095_v49 = vshll.u32 %v5866_v42, 16  ;;  %v7155_v55 = vld [vmem:[#allocation3] sm:$0xe]  ;;  %v12004_v21 = vcombine.low %v4682_v12, %v4692_v29  ;;  %v6094_v48 = vrot.slane %v6092_v33, 7  ;;  %v7157_v28 = vld [vmem:[#allocation3 + $0x8] sm:$0x1]  ;;  %5542 = vmatmul.mubr.bf16.gmra.mrb[128].mxu0 %v14200_v50 }
 0x23a   :  { %v6089_v1 = vor.u32 %v6087_v13, %v6086_v4  ;;  %v6090_v11 = vrot.slane %v6086_v4, 4  ;;  %v12099_v39 = vrot.slane %v7155_v55, 9  ;;  %v7159_v9 = vld [vmem:[#allocation3 + $0x10] sm:$0xf]  ;;  %v16431_v27 = vld [vmem:[#allocation15 + $0x10] sm:$0xf]  ;;  %v16439_v42 = vadd.f32 %v16357_v16, %v16347_v24 }
 0x23b   :  { %13559 = vmatmul.mubr.bf16.gmra.mrb[92].mxu1 %v12042_v44  ;;  %v16433_v52 = vld [vmem:[#allocation15 + $0x14] sm:$0xf]  ;;  %v5913_v58 = vsel %vm14831_vm5, 0, %v5912_v41  ;;  %v16443_v7 = vadd.f32 %v16390_v60, %v16377_v59  ;;  %v7256_v47 = vrot.slane %v7157_v28, 5  ;;  %v7158_v37 = vld [vmem:[#allocation3 + $0xc] sm:$0xe]  ;;  %v6097_v22 = vor.u32 %v6095_v49, %v6094_v48  ;;  %5549 = vmatprep.mubr.bf16.mxu0 %v12004_v21 }
 0x23c   :  { %v7160_v14 = vld [vmem:[#allocation3 + $0x14] sm:$0x1]  ;;  %v7260_v18 = vrot.slane %v7159_v9, 5  ;;  %5914 = vst [vmem:[#allocation3 + $0x24] sm:$0x1] %v5913_v58  ;;  %v16445_v36 = vadd.f32 %v12667_v23, %v12666_v26  ;;  %v7254_v45 = vsel %vm15470_vm14, %v12099_v39, %v7253_v46  ;;  %v12100_v13 = vrot.slane %v7158_v37, 9 }
 0x23d   :  { %v7263_v57 = vrot.slane %v7160_v14, 5  ;;  %v6099_v24 = vrot.slane %v6094_v48, 4  ;;  %v6394_v16 = vld [vmem:[#allocation3 + $0x18] sm:$0xf]  ;;  %v16449_v12 = vpop.f32.mrb[34].mxu0  ;;  %v7257_v59 = vsel %vm15470_vm14, %v7255_v0, %v7256_v47  ;;  %v6098_v4 = vsel %vm14822_vm2, %v6090_v11, %v6097_v22  ;;  %v14204_v50 = vld [vmem:[#allocation2 + $0x84] sm:$0xff]  }
 0x23e   :  { %v7262_v60 = vrot.slane %v7260_v18, 4  ;;  %v6395_v26 = vsel %vm14865_vm8, %v6089_v1, %v6394_v16  ;;  %v6398_v23 = vld [vmem:[#allocation3 + $0x20] sm:$0x1]  ;;  %v4435_v33 = vld [vmem:[#allocation2 + $0x90] sm:$0xf]  ;;  %v16457_v46 = vpop.f32.mrb[35].mxu0  ;;  %v12115_v41 = vcombine.low %v7254_v45, %v7257_v59  ;;  %v7261_v44 = vsel %vm15470_vm14, %v12100_v13, %v7260_v18 }
 0x23f   :  { %6396 = vst [vmem:[#allocation3 + $0x18] sm:$0xf] %v6395_v26  ;;  %6397 = vst [vmem:[#allocation3 + $0x1c] sm:$0xf] %v6098_v4  ;;  %v6399_v0 = vsel %vm14831_vm5, %v6099_v24, %v6398_v23  ;;  %v16463_v29 = vld [vmem:[#allocation19 + $0x148] sm:$0xff]   ;;  %v5967_v49 = vsel %vm14836_vm6, 0, %v5966_v31 }
 0x240   :  { %v4436_v55 = vld [vmem:[#allocation2 + $0x94] sm:$0xf]  ;;  %v4437_v21 = vld [vmem:[#allocation2 + $0x98] sm:$0x1]  ;;  %v16467_v1 = vpop.f32.mrb[32].mxu1  ;;  %v7264_v11 = vsel %vm15470_vm14, %v7262_v60, %v7263_v57  ;;  %v6101_v48 = vshrl.u32 %v16431_v27, 16  ;;  %13578 = vmatprep.mubr.bf16.mxu1 %v12115_v41 }
 0x241   :  { %6400 = vst [vmem:[#allocation3 + $0x20] sm:$0x1] %v6399_v0  ;;  %5968 = vst [vmem:[#allocation3 + $0x2c] sm:$0x1] %v5967_v49  ;;  %v6104_v28 = vshll.u32 %v16431_v27, 16  ;;  %v6109_v39 = vshrl.u32 %v16433_v52, 16  ;;  %v12116_v31 = vcombine.low %v7261_v44, %v7264_v11  ;;  %5550 = vmatmul.mubr.bf16.gmra.mrb[132].mxu0 %v14204_v50 }
 0x242   :  { %v5915_v9 = vld [vmem:[#allocation3 + $0x30] sm:$0x1]  ;;  %v16474_v58 = vpop.f32.mrb[33].mxu1  ;;  %v6112_v47 = vshll.u32 %v16433_v52, 16  ;;  %v4694_v37 = vshrl.u32 %v4435_v33, 16  ;;  %v4697_v14 = vshll.u32 %v4435_v33, 16 }
 0x243   :  { %v16477_v18 = vld [vmem:[#allocation15 + $0x18] sm:$0xf]  ;;  %v5969_v22 = vld [vmem:[#allocation3 + $0x38] sm:$0x1]  ;;  %v16479_v45 = vpop.f32.mrb[34].mxu1  ;;  %v6103_v13 = vrot.slane %v6101_v48, 7  ;;  %13579 = vmatmul.mubr.bf16.vlgmr.msra.gmra.mrb[64].mxu1 %v12116_v31 }
 0x244   :  { %v6111_v57 = vrot.slane %v6109_v39, 7  ;;  %v4703_v24 = vshll.u32 %v4436_v55, 16  ;;  %v4707_v27 = vshrl.u32 %v4436_v55, 16  ;;  %v6401_v16 = vld [vmem:[#allocation3 + $0x24] sm:$0xf]  ;;  %v4696_v59 = vrot.slane %v4694_v37, 4  ;;  %13611 = vmatpush3.bf16.msra.mxu1 %v16252_v56 }
 0x245   :  { %v4699_v60 = vrot.slane %v4697_v14, 5  ;;  %v4713_v4 = vshll.u32 %v4437_v21, 16  ;;  %v5916_v26 = vsel %vm14831_vm5, 0, %v5915_v9  ;;  %v6106_v52 = vor.u32 %v6104_v28, %v6103_v13  ;;  %v16484_v44 = vpop.f32.mrb[35].mxu1  ;;  %13612 = vmatprep.subr.bf16.mxu1 %v16463_v29  ;;  %v16487_v21 = vld [vmem:[#allocation15 + $0x1c] sm:$0xf] }
 0x246   :  { %v6107_v23 = vrot.slane %v6103_v13, 4  ;;  %v6114_v33 = vor.u32 %v6112_v47, %v6111_v57  ;;  %v6116_v41 = vrot.slane %v6111_v57, 4  ;;  %5917 = vst [vmem:[#allocation3 + $0x30] sm:$0x1] %v5916_v26  ;;  %v4705_v49 = vrot.slane %v4703_v24, 5  ;;  %v14209_v48 = vld [vmem:[#allocation19 + $0x150] sm:$0xff]  }
 0x247   :  { %v4700_v0 = vor.u32 %v4699_v60, %v4696_v59  ;;  %v4709_v55 = vrot.slane %v4707_v27, 4  ;;  %v4715_v11 = vrot.slane %v4713_v4, 5  ;;  %v7161_v39 = vld [vmem:[#allocation3 + $0x18] sm:$0xe]  ;;  %v7162_v9 = vld [vmem:[#allocation3 + $0x1c] sm:$0xf]  ;;  %v6402_v28 = vsel %vm14865_vm8, %v6106_v52, %v6401_v16 }
 0x248   :  { %v6115_v56 = vsel %vm14822_vm2, %v6107_v23, %v6114_v33  ;;  %v5970_v50 = vsel %vm14836_vm6, 0, %v5969_v22  ;;  %v6118_v31 = vshrl.u32 %v16477_v18, 16  ;;  %v5918_v47 = vld [vmem:[#allocation3 + $0x3c] sm:$0x1]  ;;  %v7163_v37 = vld [vmem:[#allocation3 + $0x20] sm:$0x1]  ;;  %v16498_v27 = vadd.f32 %v16457_v46, %v16449_v12  ;;  %13613 = vmatpush3.bf16.msra.mxu1 %v16463_v29 }
 0x249   :  { %v12101_v14 = vrot.slane %v7161_v39, 9  ;;  %v7267_v13 = vrot.slane %v7162_v9, 5  ;;  %6403 = vst [vmem:[#allocation3 + $0x24] sm:$0xf] %v6402_v28  ;;  %6404 = vst [vmem:[#allocation3 + $0x28] sm:$0xf] %v6115_v56  ;;  %v4710_v24 = vor.u32 %v4709_v55, %v4705_v49  ;;  %13614 = vmatprep.subr.bf16.mxu1 %v14209_v48 }
 0x24a   :  { %v6405_v57 = vld [vmem:[#allocation3 + $0x2c] sm:$0x1]  ;;  %5971 = vst [vmem:[#allocation3 + $0x38] sm:$0x1] %v5970_v50  ;;  %18242 = vst [vmem:[#allocation68_spill] sm:$0xff] %v16498_v27  ;;  %v7270_v59 = vrot.slane %v7163_v37, 5 }
 0x24b   :  { %v6406_v16 = vsel %vm14831_vm5, %v6116_v41, %v6405_v57  ;;  %v4701_v22 = vrot.slane %v4700_v0, 4  ;;  %v6120_v60 = vrot.slane %v6118_v31, 7  ;;  %v16503_v4 = vld [vmem:[#allocation15 + $0x20] sm:$0xf]  ;;  %v5972_v26 = vld [vmem:[#allocation3 + $0x44] sm:$0x1]  ;;  %v7268_v23 = vsel %vm15470_vm14, %v12101_v14, %v7267_v13 }
 0x24c   :  { %v16505_v52 = vpop.f32.mrb[36].mxu0  ;;  %v7269_v33 = vrot.slane %v7267_v13, 4  ;;  %6407 = vst [vmem:[#allocation3 + $0x2c] sm:$0x1] %v6406_v16  ;;  %v4711_v12 = vrot.slane %v4710_v24, 4  ;;  %v14206_v46 = vld [vmem:[#allocation2 + $0x90] sm:$0xff]   ;;  %13615 = vmatpush3.bf16.msra.mxu1 %v14209_v48 }
 0x24d   :  { %v6121_v55 = vshll.u32 %v16477_v18, 16  ;;  %v14211_v41 = vld [vmem:[#allocation19 + $0x158] sm:$0xff]   ;;  %v16510_v39 = vpop.f32.mrb[37].mxu0  ;;  %v4706_v29 = vsel %vm14914_vm11, %v4701_v22, %v4705_v49  ;;  %v6124_v0 = vrot.slane %v6120_v60, 4  ;;  %v6126_v9 = vshrl.u32 %v16487_v21, 16 }
 0x24e   :  { %v6129_v56 = vshll.u32 %v16487_v21, 16  ;;  %v5872_v28 = vld [vmem:[#allocation15 + $0x24] sm:$0xf]  ;;  %v16516_v50 = vpop.f32.mrb[38].mxu0  ;;  %v7271_v31 = vsel %vm15470_vm14, %v7269_v33, %v7270_v59  ;;  %v4716_v18 = vsel %vm14914_vm11, %v4711_v12, %v4715_v11  ;;  %v6408_v14 = vld [vmem:[#allocation3 + $0x30] sm:$0xf]  ;;  %13616 = vmatprep.subr.bf16.mxu1 %v14211_v41 }
 0x24f   :  { %v6123_v37 = vor.u32 %v6121_v55, %v6120_v60  ;;  %v5919_v13 = vsel %vm14831_vm5, 0, %v5918_v47  ;;  %v16524_v49 = vpop.f32.mrb[39].mxu0  ;;  %v12117_v57 = vcombine.low %v7268_v23, %v7271_v31  ;;  %v12005_v24 = vcombine.low %v4706_v29, %v4716_v18  ;;  %v4438_v47 = vld [vmem:[#allocation2 + $0x9c] sm:$0xf]  ;;  %v16532_v33 = vpop.f32.mrb[36].mxu1 }
 0x250   :  { %v6128_v16 = vrot.slane %v6126_v9, 7  ;;  %5920 = vst [vmem:[#allocation3 + $0x3c] sm:$0x1] %v5919_v13  ;;  %v5973_v21 = vsel %vm14836_vm6, 0, %v5972_v26  ;;  %v6135_v11 = vshrl.u32 %v16503_v4, 16  ;;  %v6138_v22 = vshll.u32 %v16503_v4, 16  ;;  %13617 = vmatpush3.bf16.msra.mxu1 %v14211_v41 }
 0x251   :  { %v6409_v59 = vsel %vm14865_vm8, %v6123_v37, %v6408_v14  ;;  %5974 = vst [vmem:[#allocation3 + $0x44] sm:$0x1] %v5973_v21  ;;  %v6143_v60 = vshrl.u32 %v5872_v28, 16  ;;  %13582 = vmatprep.mubr.bf16.mxu1 %v12117_v57  ;;  %v7164_v23 = vld [vmem:[#allocation3 + $0x24] sm:$0xe]  ;;  %5557 = vmatprep.mubr.bf16.mxu0 %v12005_v24  ;;  %v6146_v48 = vshll.u32 %v5872_v28, 16  ;;  %v16536_v29 = vadd.f32 %v16474_v58, %v16467_v1 }
 0x252   :  { %v7165_v12 = vld [vmem:[#allocation3 + $0x28] sm:$0xf]  ;;  %v6131_v55 = vor.u32 %v6129_v56, %v6128_v16  ;;  %v6133_v26 = vrot.slane %v6128_v16, 4  ;;  %6410 = vst [vmem:[#allocation3 + $0x30] sm:$0xf] %v6409_v59  ;;  %v12102_v9 = vrot.slane %v7164_v23, 9  ;;  %5558 = vmatmul.mubr.bf16.gmra.mrb[136].mxu0 %v14206_v46 }
 0x253   :  { %18243 = vst [vmem:[#allocation69_spill] sm:$0xff] %v16536_v29  ;;  %v7274_v31 = vrot.slane %v7165_v12, 5  ;;  %v6412_v4 = vld [vmem:[#allocation3 + $0x38] sm:$0x1]  ;;  %v6137_v18 = vrot.slane %v6135_v11, 7  ;;  %v6145_v37 = vrot.slane %v6143_v60, 7 }
 0x254   :  { %v7166_v14 = vld [vmem:[#allocation3 + $0x2c] sm:$0x1]  ;;  %v6132_v13 = vsel %vm14822_vm2, %v6124_v0, %v6131_v55  ;;  %v6413_v56 = vsel %vm14831_vm5, %v6133_v26, %v6412_v4  ;;  %v4439_v57 = vld [vmem:[#allocation2 + $0xa0] sm:$0xf]  ;;  %v4718_v24 = vshrl.u32 %v4438_v47, 16  ;;  %v4721_v28 = vshll.u32 %v4438_v47, 16 }
 0x255   :  { %v7275_v1 = vsel %vm15470_vm14, %v12102_v9, %v7274_v31  ;;  %v7276_v58 = vrot.slane %v7274_v31, 4  ;;  %v7277_v16 = vrot.slane %v7166_v14, 5  ;;  %6411 = vst [vmem:[#allocation3 + $0x34] sm:$0xf] %v6132_v13  ;;  %6414 = vst [vmem:[#allocation3 + $0x38] sm:$0x1] %v6413_v56  ;;  %v6140_v46 = vor.u32 %v6138_v22, %v6137_v18 }
 0x256   :  { %v4440_v21 = vld [vmem:[#allocation2 + $0xa4] sm:$0x1]  ;;  %v16544_v59 = vpop.f32.mrb[37].mxu1  ;;  %v6141_v11 = vrot.slane %v6137_v18, 4  ;;  %v6148_v0 = vor.u32 %v6146_v48, %v6145_v37  ;;  %v6150_v60 = vrot.slane %v6145_v37, 4  ;;  %v4720_v23 = vrot.slane %v4718_v24, 4 }
 0x257   :  { %v16546_v12 = vld [vmem:[#allocation15 + $0x28] sm:$0xf]  ;;  %v5921_v55 = vld [vmem:[#allocation3 + $0x48] sm:$0x1]  ;;  %v16548_v47 = vpop.f32.mrb[38].mxu1  ;;  %v7278_v41 = vsel %vm15470_vm14, %v7276_v58, %v7277_v16  ;;  %v4723_v9 = vrot.slane %v4721_v28, 5 }
 0x258   :  { %v6415_v26 = vld [vmem:[#allocation3 + $0x3c] sm:$0xf]  ;;  %v4727_v31 = vshll.u32 %v4439_v57, 16  ;;  %v4731_v4 = vshrl.u32 %v4439_v57, 16  ;;  %v16552_v22 = vld [vmem:[#allocation15 + $0x2c] sm:$0xf]  ;;  %v12118_v13 = vcombine.low %v7275_v1, %v7278_v41  ;;  %v6149_v48 = vsel %vm14822_vm2, %v6141_v11, %v6148_v0 }
 0x259   :  { %v14213_v14 = vld [vmem:[#allocation19 + $0x70] sm:$0xff]   ;;  %v6416_v18 = vsel %vm14865_vm8, %v6140_v46, %v6415_v26  ;;  %v6419_v37 = vld [vmem:[#allocation3 + $0x44] sm:$0x1]  ;;  %v4737_v56 = vshll.u32 %v4440_v21, 16  ;;  %v5975_v24 = vld [vmem:[#allocation3 + $0x50] sm:$0x1]  ;;  %v4724_v28 = vor.u32 %v4723_v9, %v4720_v23  ;;  %v16564_v21 = vadd.f32 %v16484_v44, %v16479_v45 }
 0x25a   :  { %v16558_v15 = vpop.f32.mrb[39].mxu1  ;;  %v7167_v58 = vld [vmem:[#allocation3 + $0x30] sm:$0xe]  ;;  %6417 = vst [vmem:[#allocation3 + $0x3c] sm:$0xf] %v6416_v18  ;;  %v6420_v57 = vsel %vm14831_vm5, %v6150_v60, %v6419_v37  ;;  %v4729_v16 = vrot.slane %v4727_v31, 5  ;;  %13022 = vmatprep.subr.bf16.mxu0 %v14213_v14  ;;  %13583 = vmatmul.mubr.bf16.gmra.mrb[68].mxu1 %v12118_v13  ;;  %v16579_v13 = vadd.f32 %v16524_v49, %v16516_v50 }
 0x25b   :  { %6418 = vst [vmem:[#allocation3 + $0x40] sm:$0xf] %v6149_v48  ;;  %v4733_v1 = vrot.slane %v4731_v4, 4  ;;  %v5924_v41 = vld [vmem:[#allocation3 + $0x54] sm:$0x1]  ;;  %v12103_v11 = vrot.slane %v7167_v58, 9 }
 0x25c   :  { %6421 = vst [vmem:[#allocation3 + $0x44] sm:$0x1] %v6420_v57  ;;  %v4739_v46 = vrot.slane %v4737_v56, 5  ;;  %18244 = vst [vmem:[#allocation70_spill] sm:$0xff] %v16564_v21  ;;  %v5922_v0 = vsel %vm14831_vm5, 0, %v5921_v55  ;;  %v14214_v48 = vld [vmem:[#allocation19 + $0x30] sm:$0xff]   ;;  %v16575_v55 = vadd.f32 %v16510_v39, %v16505_v52 }
 0x25d   :  { %v5978_v26 = vld [vmem:[#allocation3 + $0x5c] sm:$0x1]  ;;  %v4725_v18 = vrot.slane %v4724_v28, 4  ;;  %v4734_v60 = vor.u32 %v4733_v1, %v4729_v16  ;;  %5923 = vst [vmem:[#allocation3 + $0x48] sm:$0x1] %v5922_v0  ;;  %v5976_v23 = vsel %vm14836_vm6, 0, %v5975_v24  ;;  %13023 = vmatpush3.bf16.msra.mxu0 %v14214_v48 }
 0x25e   :  { %v6152_v9 = vshrl.u32 %v16546_v12, 16  ;;  %v14215_v31 = vld [vmem:[#allocation19 + $0x160] sm:$0xff]   ;;  %v7168_v4 = vld [vmem:[#allocation3 + $0x34] sm:$0xf]  ;;  %5977 = vst [vmem:[#allocation3 + $0x50] sm:$0x1] %v5976_v23 }
 0x25f   :  { %v7169_v14 = vld [vmem:[#allocation3 + $0x38] sm:$0x1]  ;;  %v6155_v45 = vshll.u32 %v16546_v12, 16  ;;  %v6160_v44 = vshrl.u32 %v16552_v22, 16  ;;  %v7281_v37 = vrot.slane %v7168_v4, 5  ;;  %v4730_v24 = vsel %vm14914_vm11, %v4725_v18, %v4729_v16  ;;  %v14210_v57 = vld [vmem:[#allocation2 + $0x9c] sm:$0xff]   ;;  %13618 = vmatprep.subr.bf16.mxu1 %v14215_v31 }
 0x260   :  { %v7284_v56 = vrot.slane %v7169_v14, 5  ;;  %v4735_v58 = vrot.slane %v4734_v60, 4  ;;  %v5875_v28 = vld [vmem:[#allocation15 + $0x30] sm:$0xf]  ;;  %v16583_v12 = vpop.f32.mrb[40].mxu0  ;;  %v6154_v1 = vrot.slane %v6152_v9, 7  ;;  %13619 = vmatpush3.bf16.msra.mxu1 %v14215_v31 }
 0x261   :  { %v6162_v0 = vrot.slane %v6160_v44, 7  ;;  %v6163_v52 = vshll.u32 %v16552_v22, 16  ;;  %v5925_v39 = vsel %vm14831_vm5, 0, %v5924_v41  ;;  %v7282_v50 = vsel %vm15470_vm14, %v12103_v11, %v7281_v37  ;;  %v5876_v48 = vld [vmem:[#allocation15 + $0x34] sm:$0xf]  ;;  %v16594_v41 = vpop.f32.mrb[41].mxu0 }
 0x262   :  { %v7283_v49 = vrot.slane %v7281_v37, 4  ;;  %v4740_v16 = vsel %vm14914_vm11, %v4735_v58, %v4739_v46  ;;  %5926 = vst [vmem:[#allocation3 + $0x54] sm:$0x1] %v5925_v39  ;;  %v5979_v18 = vsel %vm14836_vm6, 0, %v5978_v26  ;;  %v7170_v60 = vld [vmem:[#allocation3 + $0x3c] sm:$0xe]  ;;  %v6157_v22 = vor.u32 %v6155_v45, %v6154_v1 }
 0x263   :  { %v7171_v23 = vld [vmem:[#allocation3 + $0x40] sm:$0xf]  ;;  %v12006_v9 = vcombine.low %v4730_v24, %v4740_v16  ;;  %v6158_v4 = vrot.slane %v6154_v1, 4  ;;  %v6165_v14 = vor.u32 %v6163_v52, %v6162_v0  ;;  %5980 = vst [vmem:[#allocation3 + $0x5c] sm:$0x1] %v5979_v18  ;;  %v12104_v44 = vrot.slane %v7170_v60, 9 }
 0x264   :  { %v7285_v11 = vsel %vm15470_vm14, %v7283_v49, %v7284_v56  ;;  %v7172_v31 = vld [vmem:[#allocation3 + $0x44] sm:$0x1]  ;;  %v7288_v46 = vrot.slane %v7171_v23, 5  ;;  %v6167_v37 = vrot.slane %v6162_v0, 4  ;;  %v16598_v58 = vpop.f32.mrb[42].mxu0  ;;  %v6169_v1 = vshrl.u32 %v5875_v28, 16 }
 0x265   :  { %v12119_v39 = vcombine.low %v7282_v50, %v7285_v11  ;;  %v7291_v26 = vrot.slane %v7172_v31, 5  ;;  %5565 = vmatprep.mubr.bf16.mxu0 %v12006_v9  ;;  %v6166_v45 = vsel %vm14822_vm2, %v6158_v4, %v6165_v14  ;;  %v6422_v24 = vld [vmem:[#allocation3 + $0x48] sm:$0xf]  ;;  %v4441_v52 = vld [vmem:[#allocation2 + $0xa8] sm:$0xf]  ;;  %v6172_v49 = vshll.u32 %v5875_v28, 16 }
 0x266   :  { %v7289_v16 = vsel %vm15470_vm14, %v12104_v44, %v7288_v46  ;;  %v7290_v18 = vrot.slane %v7288_v46, 4  ;;  %5566 = vmatmul.mubr.bf16.gmra.mrb[140].mxu0 %v14210_v57  ;;  %v6423_v56 = vsel %vm14865_vm8, %v6157_v22, %v6422_v24  ;;  %6425 = vst [vmem:[#allocation3 + $0x4c] sm:$0xf] %v6166_v45  ;;  %v6426_v0 = vld [vmem:[#allocation3 + $0x50] sm:$0x1]  ;;  %v6171_v23 = vrot.slane %v6169_v1, 7 }
 0x267   :  { %v4442_v50 = vld [vmem:[#allocation2 + $0xac] sm:$0xf]  ;;  %13586 = vmatprep.mubr.bf16.mxu1 %v12119_v39  ;;  %6424 = vst [vmem:[#allocation3 + $0x48] sm:$0xf] %v6423_v56  ;;  %v6427_v60 = vsel %vm14831_vm5, %v6167_v37, %v6426_v0  ;;  %v6177_v9 = vshrl.u32 %v5876_v48, 16  ;;  %v6180_v4 = vshll.u32 %v5876_v48, 16  ;;  %v16614_v22 = vadd.f32 %v16544_v59, %v16532_v33 }
 0x268   :  { %v4443_v14 = vld [vmem:[#allocation2 + $0xb0] sm:$0x1]  ;;  %v16608_v11 = vpop.f32.mrb[43].mxu0  ;;  %v7292_v57 = vsel %vm15470_vm14, %v7290_v18, %v7291_v26  ;;  %6428 = vst [vmem:[#allocation3 + $0x50] sm:$0x1] %v6427_v60  ;;  %v4742_v28 = vshrl.u32 %v4441_v52, 16  ;;  %v6174_v39 = vor.u32 %v6172_v49, %v6171_v23 }
 0x269   :  { %v4745_v31 = vshll.u32 %v4441_v52, 16  ;;  %v5927_v44 = vld [vmem:[#allocation3 + $0x60] sm:$0x1]  ;;  %v12120_v46 = vcombine.low %v7289_v16, %v7292_v57  ;;  %v6175_v37 = vrot.slane %v6171_v23, 4  ;;  %v6179_v45 = vrot.slane %v6177_v9, 7  ;;  %v16648_v29 = vpop.f32.mrb[44].mxu0 }
 0x26a   :  { %v6429_v24 = vld [vmem:[#allocation3 + $0x54] sm:$0xf]  ;;  %v6433_v48 = vld [vmem:[#allocation3 + $0x5c] sm:$0x1]  ;;  %v4744_v1 = vrot.slane %v4742_v28, 4  ;;  %v4751_v0 = vshll.u32 %v4442_v50, 16  ;;  %v16620_v23 = vadd.f32 %v16558_v15, %v16548_v47 }
 0x26b   :  { %v4747_v56 = vrot.slane %v4745_v31, 5  ;;  %v4755_v38 = vshrl.u32 %v4442_v50, 16  ;;  %13587 = vmatmul.mubr.bf16.gmra.mrb[72].mxu1 %v12120_v46  ;;  %v6182_v26 = vor.u32 %v6180_v4, %v6179_v45  ;;  %v6184_v18 = vrot.slane %v6179_v45, 4  ;;  %v5981_v60 = vld [vmem:[#allocation3 + $0x68] sm:$0x1]  ;;  %v14217_v21 = vld [vmem:[#allocation19 + $0x168] sm:$0xff]  }
 0x26c   :  { %v6430_v33 = vsel %vm14865_vm8, %v6174_v39, %v6429_v24  ;;  %v4761_v59 = vshll.u32 %v4443_v14, 16  ;;  %v4753_v16 = vrot.slane %v4751_v0, 5  ;;  %18245 = vst [vmem:[#allocation71_spill] sm:$0xff] %v16620_v23  ;;  %v5877_v9 = vld [vmem:[#allocation15 + $0x38] sm:$0xf]  ;;  %v5928_v14 = vsel %vm14831_vm5, 0, %v5927_v44  ;;  %13620 = vmatprep.subr.bf16.mxu1 %v14217_v21 }
 0x26d   :  { %6431 = vst [vmem:[#allocation3 + $0x54] sm:$0xf] %v6430_v33  ;;  %v4748_v52 = vor.u32 %v4747_v56, %v4744_v1  ;;  %v4757_v49 = vrot.slane %v4755_v38, 4  ;;  %v5878_v57 = vld [vmem:[#allocation15 + $0x3c] sm:$0xf]  ;;  %v6183_v50 = vsel %vm14822_vm2, %v6175_v37, %v6182_v26  ;;  %v6434_v4 = vsel %vm14831_vm5, %v6184_v18, %v6433_v48  ;;  %v12814_v38 = vpop.f32.mrb[40].mxu1  ;;  %13621 = vmatpush3.bf16.msra.mxu1 %v14217_v21 }
 0x26e   :  { %v7174_v28 = vld [vmem:[#allocation3 + $0x4c] sm:$0xf]  ;;  %v4763_v31 = vrot.slane %v4761_v59, 5  ;;  %v5984_v39 = vld [vmem:[#allocation3 + $0x74] sm:$0x1]  ;;  %v5982_v37 = vsel %vm14836_vm6, 0, %v5981_v60 }
 0x26f   :  { %v5930_v46 = vld [vmem:[#allocation3 + $0x6c] sm:$0x1]  ;;  %v7173_v45 = vld [vmem:[#allocation3 + $0x48] sm:$0xe]  ;;  %v7295_v24 = vrot.slane %v7174_v28, 5  ;;  %v4749_v15 = vrot.slane %v4748_v52, 4  ;;  %v4758_v47 = vor.u32 %v4757_v49, %v4753_v16 }
 0x270   :  { %6432 = vst [vmem:[#allocation3 + $0x58] sm:$0xf] %v6183_v50  ;;  %6435 = vst [vmem:[#allocation3 + $0x5c] sm:$0x1] %v6434_v4  ;;  %v12815_v1 = vpop.f32.mrb[41].mxu1  ;;  %v12105_v48 = vrot.slane %v7173_v45, 9 }
 0x271   :  { %5929 = vst [vmem:[#allocation3 + $0x60] sm:$0x1] %v5928_v14  ;;  %v7175_v56 = vld [vmem:[#allocation3 + $0x50] sm:$0x1]  ;;  %5983 = vst [vmem:[#allocation3 + $0x68] sm:$0x1] %v5982_v37  ;;  %v4754_v59 = vsel %vm14914_vm11, %v4749_v15, %v4753_v16 }
 0x272   :  { %v6186_v0 = vshrl.u32 %v5877_v9, 16  ;;  %v6189_v26 = vshll.u32 %v5877_v9, 16  ;;  %v6194_v44 = vshrl.u32 %v5878_v57, 16  ;;  %v7297_v18 = vrot.slane %v7295_v24, 4  ;;  %v14212_v50 = vld [vmem:[#allocation2 + $0xa8] sm:$0xff]   ;;  %v16632_v52 = vpop.f32.mrb[42].mxu1 }
 0x273   :  { %v7298_v33 = vrot.slane %v7175_v56, 5  ;;  %v4759_v28 = vrot.slane %v4758_v47, 4  ;;  %v7296_v49 = vsel %vm15470_vm14, %v12105_v48, %v7295_v24  ;;  %v6197_v14 = vshll.u32 %v5878_v57, 16  ;;  %v5879_v45 = vld [vmem:[#allocation15 + $0x40] sm:$0xf]  ;;  %v16636_v37 = vpop.f32.mrb[43].mxu1 }
 0x274   :  { %v6188_v60 = vrot.slane %v6186_v0, 7  ;;  %v6196_v4 = vrot.slane %v6194_v44, 7  ;;  %v16642_v16 = vld [vmem:[#allocation15 + $0x44] sm:$0xf]  ;;  %v5931_v15 = vsel %vm14831_vm5, 0, %v5930_v46  ;;  %v5985_v24 = vsel %vm14836_vm6, 0, %v5984_v39 }
 0x275   :  { %v7299_v9 = vsel %vm15470_vm14, %v7297_v18, %v7298_v33  ;;  %v4764_v56 = vsel %vm14914_vm11, %v4759_v28, %v4763_v31  ;;  %v7176_v48 = vld [vmem:[#allocation3 + $0x54] sm:$0xe]  ;;  %5932 = vst [vmem:[#allocation3 + $0x6c] sm:$0x1] %v5931_v15  ;;  %5986 = vst [vmem:[#allocation3 + $0x74] sm:$0x1] %v5985_v24 }
 0x276   :  { %v12121_v47 = vcombine.low %v7296_v49, %v7299_v9  ;;  %v12007_v57 = vcombine.low %v4754_v59, %v4764_v56  ;;  %v6191_v0 = vor.u32 %v6189_v26, %v6188_v60  ;;  %v6192_v44 = vrot.slane %v6188_v60, 4  ;;  %v4444_v28 = vld [vmem:[#allocation2 + $0xb4] sm:$0xf]  ;;  %v4445_v15 = vld [vmem:[#allocation2 + $0xb8] sm:$0xf] }
 0x277   :  { %v12106_v18 = vrot.slane %v7176_v48, 9  ;;  %v6199_v33 = vor.u32 %v6197_v14, %v6196_v4  ;;  %v6201_v23 = vrot.slane %v6196_v4, 4  ;;  %v6203_v31 = vshrl.u32 %v5879_v45, 16  ;;  %v7177_v46 = vld [vmem:[#allocation3 + $0x58] sm:$0xf] }
 0x278   :  { %13590 = vmatprep.mubr.bf16.mxu1 %v12121_v47  ;;  %v7178_v27 = vld [vmem:[#allocation3 + $0x5c] sm:$0x1]  ;;  %5573 = vmatprep.mubr.bf16.mxu0 %v12007_v57  ;;  %v6436_v39 = vld [vmem:[#allocation3 + $0x60] sm:$0xf]  ;;  %v16652_v59 = vadd.f32 %v16594_v41, %v16583_v12  ;;  %v16656_v26 = vadd.f32 %v16608_v11, %v16598_v58  ;;  %v16658_v49 = vadd.f32 %v12815_v1, %v12814_v38  ;;  %v7302_v60 = vrot.slane %v7177_v46, 5  ;;  %v12685_v38 = vpop.f32.mrb[45].mxu0 }
 0x279   :  { %v7305_v4 = vrot.slane %v7178_v27, 5  ;;  %5574 = vmatmul.mubr.bf16.gmra.mrb[144].mxu0 %v14212_v50  ;;  %v6200_v14 = vsel %vm14822_vm2, %v6192_v44, %v6199_v33  ;;  %v6437_v9 = vsel %vm14865_vm8, %v6191_v0, %v6436_v39  ;;  %v6440_v56 = vld [vmem:[#allocation3 + $0x68] sm:$0x1]  ;;  %v6205_v41 = vrot.slane %v6203_v31, 7  ;;  %v4446_v27 = vld [vmem:[#allocation2 + $0xbc] sm:$0x1] }
 0x27a   :  { %18246 = vst [vmem:[#allocation72_spill] sm:$0xff] %v16656_v26  ;;  %18247 = vst [vmem:[#allocation73_spill] sm:$0xff] %v16658_v49  ;;  %v6441_v12 = vsel %vm14831_vm5, %v6201_v23, %v6440_v56  ;;  %v6206_v58 = vshll.u32 %v5879_v45, 16  ;;  %v6211_v11 = vshrl.u32 %v16642_v16, 16  ;;  %v7303_v1 = vsel %vm15470_vm14, %v12106_v18, %v7302_v60  ;;  %v5933_v48 = vld [vmem:[#allocation3 + $0x78] sm:$0x1] }
 0x27b   :  { %6438 = vst [vmem:[#allocation3 + $0x60] sm:$0xf] %v6437_v9  ;;  %6439 = vst [vmem:[#allocation3 + $0x64] sm:$0xf] %v6200_v14  ;;  %v7304_v50 = vrot.slane %v7302_v60, 4  ;;  %v6214_v24 = vshll.u32 %v16642_v16, 16  ;;  %v16678_v16 = vadd.f32 %v16636_v37, %v16632_v52 }
 0x27c   :  { %6442 = vst [vmem:[#allocation3 + $0x68] sm:$0x1] %v6441_v12  ;;  %v4766_v47 = vshrl.u32 %v4444_v28, 16  ;;  %v5987_v57 = vld [vmem:[#allocation3 + $0x80] sm:$0x1]  ;;  %v16670_v0 = vpop.f32.mrb[46].mxu0  ;;  %v6208_v23 = vor.u32 %v6206_v58, %v6205_v41 }
 0x27d   :  { %v6209_v44 = vrot.slane %v6205_v41, 4  ;;  %v6213_v45 = vrot.slane %v6211_v11, 7  ;;  %v4769_v33 = vshll.u32 %v4444_v28, 16  ;;  %v16672_v31 = vpop.f32.mrb[47].mxu0  ;;  %v7306_v21 = vsel %vm15470_vm14, %v7304_v50, %v7305_v4  ;;  %v6443_v46 = vld [vmem:[#allocation3 + $0x6c] sm:$0xf] }
 0x27e   :  { %v6447_v18 = vld [vmem:[#allocation3 + $0x74] sm:$0x1]  ;;  %v4768_v39 = vrot.slane %v4766_v47, 4  ;;  %v4775_v60 = vshll.u32 %v4445_v15, 16  ;;  %18248 = vst [vmem:[#allocation74_spill] sm:$0xff] %v16678_v16  ;;  %v12122_v14 = vcombine.low %v7303_v1, %v7306_v21  ;;  %v6444_v12 = vsel %vm14865_vm8, %v6208_v23, %v6443_v46  ;;  %v16682_v28 = vpop.f32.mrb[44].mxu1 }
 0x27f   :  { %v6216_v9 = vor.u32 %v6214_v24, %v6213_v45  ;;  %v6218_v56 = vrot.slane %v6213_v45, 4  ;;  %6445 = vst [vmem:[#allocation3 + $0x6c] sm:$0xf] %v6444_v12  ;;  %v4771_v41 = vrot.slane %v4769_v33, 5  ;;  %v4779_v4 = vshrl.u32 %v4445_v15, 16 }
 0x280   :  { %v4777_v58 = vrot.slane %v4775_v60, 5  ;;  %v4785_v11 = vshll.u32 %v4446_v27, 16  ;;  %v5881_v50 = vld [vmem:[#allocation15 + $0x48] sm:$0xf]  ;;  %13591 = vmatmul.mubr.bf16.gmra.mrb[76].mxu1 %v12122_v14  ;;  %v5882_v37 = vld [vmem:[#allocation15 + $0x4c] sm:$0xf] }
 0x281   :  { %v6217_v47 = vsel %vm14822_vm2, %v6209_v44, %v6216_v9  ;;  %v6448_v52 = vsel %vm14831_vm5, %v6218_v56, %v6447_v18  ;;  %v5934_v1 = vsel %vm14831_vm5, 0, %v5933_v48  ;;  %v5988_v24 = vsel %vm14836_vm6, 0, %v5987_v57  ;;  %v5936_v23 = vld [vmem:[#allocation3 + $0x84] sm:$0x1]  ;;  %v5990_v16 = vld [vmem:[#allocation3 + $0x8c] sm:$0x1] }
 0x282   :  { %v7179_v45 = vld [vmem:[#allocation3 + $0x60] sm:$0xe]  ;;  %v7180_v33 = vld [vmem:[#allocation3 + $0x64] sm:$0xf]  ;;  %6446 = vst [vmem:[#allocation3 + $0x70] sm:$0xf] %v6217_v47  ;;  %v4772_v15 = vor.u32 %v4771_v41, %v4768_v39  ;;  %v16693_v44 = vadd.f32 %v12685_v38, %v16648_v29 }
 0x283   :  { %6449 = vst [vmem:[#allocation3 + $0x74] sm:$0x1] %v6448_v52  ;;  %v4781_v27 = vrot.slane %v4779_v4, 4  ;;  %v4787_v21 = vrot.slane %v4785_v11, 5  ;;  %5935 = vst [vmem:[#allocation3 + $0x78] sm:$0x1] %v5934_v1 }
 0x284   :  { %5989 = vst [vmem:[#allocation3 + $0x80] sm:$0x1] %v5988_v24  ;;  %v7181_v46 = vld [vmem:[#allocation3 + $0x68] sm:$0x1]  ;;  %v12107_v18 = vrot.slane %v7179_v45, 9  ;;  %v7309_v60 = vrot.slane %v7180_v33, 5 }
 0x285   :  { %v6220_v48 = vshrl.u32 %v5881_v50, 16  ;;  %v6223_v14 = vshll.u32 %v5881_v50, 16  ;;  %v7312_v9 = vrot.slane %v7181_v46, 5  ;;  %v4773_v57 = vrot.slane %v4772_v15, 4  ;;  %v12821_v47 = vpop.f32.mrb[45].mxu1  ;;  %v14216_v1 = vld [vmem:[#allocation2 + $0xb4] sm:$0xff]  }
 0x286   :  { %v4782_v56 = vor.u32 %v4781_v27, %v4777_v58  ;;  %v6228_v12 = vshrl.u32 %v5882_v37, 16  ;;  %v7310_v39 = vsel %vm15470_vm14, %v12107_v18, %v7309_v60  ;;  %v7311_v41 = vrot.slane %v7309_v60, 4  ;;  %v16697_v52 = vpop.f32.mrb[46].mxu1  ;;  %v5883_v24 = vld [vmem:[#allocation15 + $0x50] sm:$0xf] }
 0x287   :  { %v6222_v4 = vrot.slane %v6220_v48, 7  ;;  %v6231_v11 = vshll.u32 %v5882_v37, 16  ;;  %v4778_v29 = vsel %vm14914_vm11, %v4773_v57, %v4777_v58  ;;  %v5937_v45 = vsel %vm14831_vm5, 0, %v5936_v23  ;;  %v7182_v15 = vld [vmem:[#allocation3 + $0x6c] sm:$0xe] }
 0x288   :  { %v4783_v38 = vrot.slane %v4782_v56, 4  ;;  %v6230_v50 = vrot.slane %v6228_v12, 7  ;;  %v7313_v33 = vsel %vm15470_vm14, %v7311_v41, %v7312_v9  ;;  %v16705_v18 = vld [vmem:[#allocation15 + $0x54] sm:$0xf]  ;;  %5938 = vst [vmem:[#allocation3 + $0x84] sm:$0x1] %v5937_v45  ;;  %v16713_v45 = vadd.f32 %v16672_v31, %v16670_v0 }
 0x289   :  { %v6225_v27 = vor.u32 %v6223_v14, %v6222_v4  ;;  %v6226_v46 = vrot.slane %v6222_v4, 4  ;;  %v5991_v37 = vsel %vm14836_vm6, 0, %v5990_v16  ;;  %v12123_v58 = vcombine.low %v7310_v39, %v7313_v33  ;;  %v4447_v23 = vld [vmem:[#allocation2 + $0xc0] sm:$0xf]  ;;  %v14219_v56 = vld [vmem:[#allocation19 + $0x78] sm:$0xff]  }
 0x28a   :  { %v12108_v60 = vrot.slane %v7182_v15, 9  ;;  %v4788_v48 = vsel %vm14914_vm11, %v4783_v38, %v4787_v21  ;;  %v6233_v57 = vor.u32 %v6231_v11, %v6230_v50  ;;  %5992 = vst [vmem:[#allocation3 + $0x8c] sm:$0x1] %v5991_v37  ;;  %v7183_v12 = vld [vmem:[#allocation3 + $0x70] sm:$0xf]  ;;  %v6235_v14 = vrot.slane %v6230_v50, 4  ;;  %13024 = vmatprep.subr.bf16.mxu0 %v14219_v56 }
 0x28b   :  { %v7184_v9 = vld [vmem:[#allocation3 + $0x74] sm:$0x1]  ;;  %v12008_v41 = vcombine.low %v4778_v29, %v4788_v48  ;;  %v6237_v4 = vshrl.u32 %v5883_v24, 16  ;;  %18249 = vst [vmem:[#allocation75_spill] sm:$0xff] %v16713_v45  ;;  %v4448_v49 = vld [vmem:[#allocation2 + $0xc4] sm:$0xf]  ;;  %13594 = vmatprep.mubr.bf16.mxu1 %v12123_v58  ;;  %v16718_v33 = vadd.f32 %v12821_v47, %v16682_v28 }
 0x28c   :  { %v7316_v16 = vrot.slane %v7183_v12, 5  ;;  %v7319_v39 = vrot.slane %v7184_v9, 5  ;;  %v6234_v21 = vsel %vm14822_vm2, %v6226_v46, %v6233_v57  ;;  %v6450_v11 = vld [vmem:[#allocation3 + $0x78] sm:$0xf]  ;;  %v6454_v38 = vld [vmem:[#allocation3 + $0x80] sm:$0x1] }
 0x28d   :  { %5581 = vmatprep.mubr.bf16.mxu0 %v12008_v41  ;;  %v6451_v29 = vsel %vm14865_vm8, %v6225_v27, %v6450_v11  ;;  %6453 = vst [vmem:[#allocation3 + $0x7c] sm:$0xf] %v6234_v21  ;;  %v6455_v0 = vsel %vm14831_vm5, %v6235_v14, %v6454_v38  ;;  %v6239_v31 = vrot.slane %v6237_v4, 7  ;;  %v6240_v50 = vshll.u32 %v5883_v24, 16  ;;  %v12824_v15 = vpop.f32.mrb[47].mxu1  ;;  %v14220_v37 = vld [vmem:[#allocation19 + $0x38] sm:$0xff]  }
 0x28e   :  { %v7317_v46 = vsel %vm15470_vm14, %v12108_v60, %v7316_v16  ;;  %v7318_v58 = vrot.slane %v7316_v16, 4  ;;  %5582 = vmatmul.mubr.bf16.gmra.mrb[148].mxu0 %v14216_v1  ;;  %6452 = vst [vmem:[#allocation3 + $0x78] sm:$0xf] %v6451_v29  ;;  %6456 = vst [vmem:[#allocation3 + $0x80] sm:$0x1] %v6455_v0  ;;  %v6245_v28 = vshrl.u32 %v16705_v18, 16 }
 0x28f   :  { %v6248_v47 = vshll.u32 %v16705_v18, 16  ;;  %v4449_v27 = vld [vmem:[#allocation2 + $0xc8] sm:$0x1]  ;;  %v14221_v48 = vld [vmem:[#allocation19 + $0x170] sm:$0xff]   ;;  %v6242_v57 = vor.u32 %v6240_v50, %v6239_v31  ;;  %v6243_v56 = vrot.slane %v6239_v31, 4  ;;  %v4790_v12 = vshrl.u32 %v4447_v23, 16  ;;  %13025 = vmatpush3.bf16.msra.mxu0 %v14220_v37 }
 0x290   :  { %v4793_v9 = vshll.u32 %v4447_v23, 16  ;;  %v12690_v24 = vpop.f32.mrb[48].mxu0  ;;  %v7320_v41 = vsel %vm15470_vm14, %v7318_v58, %v7319_v39  ;;  %v6247_v60 = vrot.slane %v6245_v28, 7  ;;  %v6457_v14 = vld [vmem:[#allocation3 + $0x84] sm:$0xf]  ;;  %v4799_v1 = vshll.u32 %v4448_v49, 16  ;;  %13622 = vmatprep.subr.bf16.mxu1 %v14221_v48 }
 0x291   :  { %v4803_v4 = vshrl.u32 %v4448_v49, 16  ;;  %v12691_v16 = vpop.f32.mrb[49].mxu0  ;;  %v12124_v21 = vcombine.low %v7317_v46, %v7320_v41  ;;  %v6458_v18 = vsel %vm14865_vm8, %v6242_v57, %v6457_v14  ;;  %v6461_v11 = vld [vmem:[#allocation3 + $0x8c] sm:$0x1]  ;;  %v4792_v38 = vrot.slane %v4790_v12, 4  ;;  %13623 = vmatpush3.bf16.msra.mxu1 %v14221_v48  ;;  %v18274_v45 = vld [vmem:[#allocation47_spill] sm:$0xff] }
 0x292   :  { %v4795_v29 = vrot.slane %v4793_v9, 5  ;;  %v5885_v0 = vld [vmem:[#allocation15 + $0x58] sm:$0xf]  ;;  %v6250_v23 = vor.u32 %v6248_v47, %v6247_v60  ;;  %v6252_v31 = vrot.slane %v6247_v60, 4  ;;  %6459 = vst [vmem:[#allocation3 + $0x84] sm:$0xf] %v6458_v18  ;;  %v16733_v28 = vadd.f32 %v12824_v15, %v16697_v52 }
 0x293   :  { %v4801_v50 = vrot.slane %v4799_v1, 5  ;;  %v4805_v39 = vrot.slane %v4803_v4, 4  ;;  %v12693_v37 = vpop.f32.mrb[50].mxu0  ;;  %13595 = vmatmul.mubr.bf16.gmra.mrb[80].mxu1 %v12124_v21  ;;  %v4809_v49 = vshll.u32 %v4449_v27, 16  ;;  %v5886_v46 = vld [vmem:[#allocation15 + $0x5c] sm:$0xf]  ;;  %v16741_v21 = vadd.f32 %v12691_v16, %v12690_v24 }
 0x294   :  { %v4796_v58 = vor.u32 %v4795_v29, %v4792_v38  ;;  %18250 = vst [vmem:[#allocation76_spill] sm:$0xff] %v16733_v28  ;;  %v5939_v41 = vld [vmem:[#allocation3 + $0x90] sm:$0x1]  ;;  %v5993_v57 = vld [vmem:[#allocation3 + $0x98] sm:$0x1]  ;;  %v6254_v14 = vshrl.u32 %v5885_v0, 16  ;;  %v6251_v48 = vsel %vm14822_vm2, %v6243_v56, %v6250_v23  ;;  %v6462_v47 = vsel %vm14831_vm5, %v6252_v31, %v6461_v11 }
 0x295   :  { %v7186_v12 = vld [vmem:[#allocation3 + $0x7c] sm:$0xf]  ;;  %v4806_v9 = vor.u32 %v4805_v39, %v4801_v50  ;;  %v5940_v60 = vsel %vm14831_vm5, 0, %v5939_v41  ;;  %v12694_v1 = vpop.f32.mrb[51].mxu0  ;;  %v7185_v27 = vld [vmem:[#allocation3 + $0x78] sm:$0xe] }
 0x296   :  { %v7187_v4 = vld [vmem:[#allocation3 + $0x80] sm:$0x1]  ;;  %v7323_v52 = vrot.slane %v7186_v12, 5  ;;  %6460 = vst [vmem:[#allocation3 + $0x88] sm:$0xf] %v6251_v48  ;;  %v4797_v15 = vrot.slane %v4796_v58, 4  ;;  %v16743_v18 = vadd.f32 %v12694_v1, %v12693_v37 }
 0x297   :  { %6463 = vst [vmem:[#allocation3 + $0x8c] sm:$0x1] %v6462_v47  ;;  %5941 = vst [vmem:[#allocation3 + $0x90] sm:$0x1] %v5940_v60  ;;  %v12109_v56 = vrot.slane %v7185_v27, 9  ;;  %v7326_v38 = vrot.slane %v7187_v4, 5 }
 0x298   :  { %18251 = vst [vmem:[#allocation77_spill] sm:$0xff] %v16741_v21  ;;  %18252 = vst [vmem:[#allocation78_spill] sm:$0xff] %v16743_v18  ;;  %v4807_v29 = vrot.slane %v4806_v9, 4  ;;  %v4811_v11 = vrot.slane %v4809_v49, 5  ;;  %v14218_v23 = vld [vmem:[#allocation2 + $0xc0] sm:$0xff]   ;;  %v7325_v31 = vrot.slane %v7323_v52, 4  ;;  %v4802_v39 = vsel %vm14914_vm11, %v4797_v15, %v4801_v50 }
 0x299   :  { %v5994_v41 = vsel %vm14836_vm6, 0, %v5993_v57  ;;  %v6256_v12 = vrot.slane %v6254_v14, 7  ;;  %v5887_v48 = vld [vmem:[#allocation15 + $0x60] sm:$0xf]  ;;  %v12826_v58 = vpop.f32.mrb[48].mxu1  ;;  %v7324_v24 = vsel %vm15470_vm14, %v12109_v56, %v7323_v52  ;;  %v6257_v37 = vshll.u32 %v5885_v0, 16 }
 0x29a   :  { %v4812_v16 = vsel %vm14914_vm11, %v4807_v29, %v4811_v11  ;;  %5995 = vst [vmem:[#allocation3 + $0x98] sm:$0x1] %v5994_v41  ;;  %v6262_v49 = vshrl.u32 %v5886_v46, 16  ;;  %v5888_v47 = vld [vmem:[#allocation15 + $0x64] sm:$0xf]  ;;  %v7327_v50 = vsel %vm15470_vm14, %v7325_v31, %v7326_v38  ;;  %v6265_v14 = vshll.u32 %v5886_v46, 16 }
 0x29b   :  { %v5942_v9 = vld [vmem:[#allocation3 + $0x9c] sm:$0x1]  ;;  %v7188_v60 = vld [vmem:[#allocation3 + $0x84] sm:$0xe]  ;;  %v12009_v1 = vcombine.low %v4802_v39, %v4812_v16  ;;  %v6260_v57 = vrot.slane %v6256_v12, 4  ;;  %v12125_v4 = vcombine.low %v7324_v24, %v7327_v50  ;;  %v6259_v18 = vor.u32 %v6257_v37, %v6256_v12  ;;  %v12827_v56 = vpop.f32.mrb[49].mxu1 }
 0x29c   :  { %v5996_v27 = vld [vmem:[#allocation3 + $0xa4] sm:$0x1]  ;;  %v12110_v15 = vrot.slane %v7188_v60, 9  ;;  %v6264_v52 = vrot.slane %v6262_v49, 7  ;;  %v5943_v0 = vsel %vm14831_vm5, 0, %v5942_v9  ;;  %v6271_v11 = vshrl.u32 %v5887_v48, 16 }
 0x29d   :  { %5589 = vmatprep.mubr.bf16.mxu0 %v12009_v1  ;;  %v5997_v29 = vsel %vm14836_vm6, 0, %v5996_v27  ;;  %v6274_v41 = vshll.u32 %v5887_v48, 16  ;;  %v4450_v38 = vld [vmem:[#allocation2 + $0xcc] sm:$0xf]  ;;  %13598 = vmatprep.mubr.bf16.mxu1 %v12125_v4  ;;  %v7189_v31 = vld [vmem:[#allocation3 + $0x88] sm:$0xf]  ;;  %v16759_v16 = vadd.f32 %v12827_v56, %v12826_v58 }
 0x29e   :  { %v7190_v39 = vld [vmem:[#allocation3 + $0x8c] sm:$0x1]  ;;  %5590 = vmatmul.mubr.bf16.gmra.mrb[152].mxu0 %v14218_v23  ;;  %v6267_v46 = vor.u32 %v6265_v14, %v6264_v52  ;;  %v6269_v24 = vrot.slane %v6264_v52, 4  ;;  %5944 = vst [vmem:[#allocation3 + $0x9c] sm:$0x1] %v5943_v0  ;;  %v6279_v12 = vshrl.u32 %v5888_v47, 16 }
 0x29f   :  { %5998 = vst [vmem:[#allocation3 + $0xa4] sm:$0x1] %v5997_v29  ;;  %18253 = vst [vmem:[#allocation79_spill] sm:$0xff] %v16759_v16  ;;  %v4451_v37 = vld [vmem:[#allocation2 + $0xd0] sm:$0xf]  ;;  %v7330_v49 = vrot.slane %v7189_v31, 5 }
 0x2a0   :  { %v7333_v9 = vrot.slane %v7190_v39, 5  ;;  %v6464_v50 = vld [vmem:[#allocation3 + $0x90] sm:$0xf]  ;;  %v6273_v60 = vrot.slane %v6271_v11, 7  ;;  %v6282_v1 = vshll.u32 %v5888_v47, 16  ;;  %v6268_v48 = vsel %vm14822_vm2, %v6260_v57, %v6267_v46  ;;  %v12829_v52 = vpop.f32.mrb[50].mxu1 }
 0x2a1   :  { %v6465_v27 = vsel %vm14865_vm8, %v6259_v18, %v6464_v50  ;;  %v6281_v23 = vrot.slane %v6279_v12, 7  ;;  %v4452_v14 = vld [vmem:[#allocation2 + $0xd4] sm:$0x1]  ;;  %v4814_v4 = vshrl.u32 %v4450_v38, 16  ;;  %v14223_v0 = vld [vmem:[#allocation19 + $0x178] sm:$0xff]   ;;  %v7331_v58 = vsel %vm15470_vm14, %v12110_v15, %v7330_v49  ;;  %v12830_v46 = vpop.f32.mrb[51].mxu1 }
 0x2a2   :  { %v7332_v56 = vrot.slane %v7330_v49, 4  ;;  %6466 = vst [vmem:[#allocation3 + $0x90] sm:$0xf] %v6465_v27  ;;  %6467 = vst [vmem:[#allocation3 + $0x94] sm:$0xf] %v6268_v48  ;;  %v6276_v11 = vor.u32 %v6274_v41, %v6273_v60  ;;  %v6277_v47 = vrot.slane %v6273_v60, 4  ;;  %13624 = vmatprep.subr.bf16.mxu1 %v14223_v0 }
 0x2a3   :  { %v6468_v29 = vld [vmem:[#allocation3 + $0x98] sm:$0x1]  ;;  %v6284_v31 = vor.u32 %v6282_v1, %v6281_v23  ;;  %v6286_v39 = vrot.slane %v6281_v23, 4  ;;  %v4816_v18 = vrot.slane %v4814_v4, 4  ;;  %v12696_v12 = vpop.f32.mrb[52].mxu0  ;;  %v4817_v15 = vshll.u32 %v4450_v38, 16  ;;  %13625 = vmatpush3.bf16.msra.mxu1 %v14223_v0 }
 0x2a4   :  { %v6469_v57 = vsel %vm14831_vm5, %v6269_v24, %v6468_v29  ;;  %v7334_v50 = vsel %vm15470_vm14, %v7332_v56, %v7333_v9  ;;  %v4823_v49 = vshll.u32 %v4451_v37, 16  ;;  %v4827_v27 = vshrl.u32 %v4451_v37, 16  ;;  %v5889_v48 = vld [vmem:[#allocation15 + $0x68] sm:$0xf]  ;;  %v12697_v41 = vpop.f32.mrb[53].mxu0  ;;  %v18256_v37 = vld [vmem:[#allocation40_spill] sm:$0xff] }
 0x2a5   :  { %6470 = vst [vmem:[#allocation3 + $0x98] sm:$0x1] %v6469_v57  ;;  %v12126_v60 = vcombine.low %v7331_v58, %v7334_v50  ;;  %v6285_v24 = vsel %vm14822_vm2, %v6277_v47, %v6284_v31  ;;  %v4833_v1 = vshll.u32 %v4452_v14, 16  ;;  %v16773_v23 = vadd.f32 %v12830_v46, %v12829_v52  ;;  %v5890_v4 = vld [vmem:[#allocation15 + $0x6c] sm:$0xf]  ;;  %v12699_v16 = vpop.f32.mrb[54].mxu0 }
 0x2a6   :  { %v5945_v29 = vld [vmem:[#allocation3 + $0xa8] sm:$0x1]  ;;  %v6471_v21 = vld [vmem:[#allocation3 + $0x9c] sm:$0xf]  ;;  %6474 = vst [vmem:[#allocation3 + $0xa0] sm:$0xf] %v6285_v24  ;;  %v16775_v57 = vadd.f32 %v12697_v41, %v12696_v12 }
 0x2a7   :  { %18254 = vst [vmem:[#allocation80_spill] sm:$0xff] %v16773_v23  ;;  %v6475_v9 = vld [vmem:[#allocation3 + $0xa4] sm:$0x1]  ;;  %v4819_v56 = vrot.slane %v4817_v15, 5  ;;  %v4825_v38 = vrot.slane %v4823_v49, 5  ;;  %13599 = vmatmul.mubr.bf16.gmra.mrb[84].mxu1 %v12126_v60  ;;  %v6472_v14 = vsel %vm14865_vm8, %v6276_v11, %v6471_v21  ;;  %v4829_v58 = vrot.slane %v4827_v27, 4 }
 0x2a8   :  { %18255 = vst [vmem:[#allocation81_spill] sm:$0xff] %v16775_v57  ;;  %v18257_v0 = vld [vmem:[#allocation41_spill] sm:$0xff]  ;;  %v6476_v52 = vsel %vm14831_vm5, %v6286_v39, %v6475_v9  ;;  %v4835_v47 = vrot.slane %v4833_v1, 5  ;;  %v5999_v31 = vld [vmem:[#allocation3 + $0xb0] sm:$0x1]  ;;  %v5946_v12 = vsel %vm14831_vm5, 0, %v5945_v29 }
 0x2a9   :  { %v16779_v28 = vadd.f32 %v18257_v0, %v18256_v37  ;;  %6473 = vst [vmem:[#allocation3 + $0x9c] sm:$0xf] %v6472_v14  ;;  %6477 = vst [vmem:[#allocation3 + $0xa4] sm:$0x1] %v6476_v52  ;;  %v4820_v46 = vor.u32 %v4819_v56, %v4816_v18  ;;  %v6000_v50 = vsel %vm14836_vm6, 0, %v5999_v31  ;;  %v6288_v15 = vshrl.u32 %v5889_v48, 16 }
 0x2aa   :  { %v12700_v49 = vpop.f32.mrb[55].mxu0  ;;  %v7191_v41 = vld [vmem:[#allocation3 + $0x90] sm:$0xe]  ;;  %v7192_v60 = vld [vmem:[#allocation3 + $0x94] sm:$0xf]  ;;  %v4830_v21 = vor.u32 %v4829_v58, %v4825_v38  ;;  %v6291_v11 = vshll.u32 %v5889_v48, 16 }
 0x2ab   :  { %5947 = vst [vmem:[#allocation3 + $0xa8] sm:$0x1] %v5946_v12  ;;  %6001 = vst [vmem:[#allocation3 + $0xb0] sm:$0x1] %v6000_v50  ;;  %v6296_v39 = vshrl.u32 %v5890_v4, 16  ;;  %v16789_v27 = vadd.f32 %v12700_v49, %v12699_v16  ;;  %v12111_v24 = vrot.slane %v7191_v41, 9 }
 0x2ac   :  { %v7337_v1 = vrot.slane %v7192_v60, 5  ;;  %v4821_v18 = vrot.slane %v4820_v46, 4  ;;  %v6290_v9 = vrot.slane %v6288_v15, 7  ;;  %v5891_v56 = vld [vmem:[#allocation15 + $0x70] sm:$0xf]  ;;  %v4831_v37 = vrot.slane %v4830_v21, 4 }
 0x2ad   :  { %18258 = vst [vmem:[#allocation40_spill] sm:$0xff] %v16789_v27  ;;  %v7193_v29 = vld [vmem:[#allocation3 + $0x98] sm:$0x1]  ;;  %v6298_v0 = vrot.slane %v6296_v39, 7  ;;  %v6299_v14 = vshll.u32 %v5890_v4, 16  ;;  %v6305_v52 = vshrl.u32 %v5891_v56, 16 }
 0x2ae   :  { %v7338_v31 = vsel %vm15470_vm14, %v12111_v24, %v7337_v1  ;;  %v7339_v58 = vrot.slane %v7337_v1, 4  ;;  %v7340_v12 = vrot.slane %v7193_v29, 5  ;;  %v4826_v48 = vsel %vm14914_vm11, %v4821_v18, %v4825_v38  ;;  %v14222_v16 = vld [vmem:[#allocation2 + $0xcc] sm:$0xff]   ;;  %v7195_v49 = vld [vmem:[#allocation3 + $0xa0] sm:$0xf]  ;;  %v12832_v4 = vpop.f32.mrb[52].mxu1 }
 0x2af   :  { %v5948_v50 = vld [vmem:[#allocation3 + $0xb4] sm:$0x1]  ;;  %v4836_v46 = vsel %vm14914_vm11, %v4831_v37, %v4835_v47  ;;  %v6293_v15 = vor.u32 %v6291_v11, %v6290_v9  ;;  %v6294_v41 = vrot.slane %v6290_v9, 4  ;;  %v6301_v60 = vor.u32 %v6299_v14, %v6298_v0  ;;  %v6002_v21 = vld [vmem:[#allocation3 + $0xbc] sm:$0x1]  ;;  %v12833_v27 = vpop.f32.mrb[53].mxu1 }
 0x2b0   :  { %v7341_v39 = vsel %vm15470_vm14, %v7339_v58, %v7340_v12  ;;  %v7344_v24 = vrot.slane %v7195_v49, 5  ;;  %v12010_v1 = vcombine.low %v4826_v48, %v4836_v46  ;;  %v6303_v29 = vrot.slane %v6298_v0, 4  ;;  %v5892_v23 = vld [vmem:[#allocation15 + $0x74] sm:$0xf]  ;;  %v7196_v57 = vld [vmem:[#allocation3 + $0xa4] sm:$0x1] }
 0x2b1   :  { %v12127_v38 = vcombine.low %v7338_v31, %v7341_v39  ;;  %v7194_v18 = vld [vmem:[#allocation3 + $0x9c] sm:$0xe]  ;;  %v6302_v26 = vsel %vm14822_vm2, %v6294_v41, %v6301_v60  ;;  %v5949_v47 = vsel %vm14831_vm5, 0, %v5948_v50  ;;  %v6003_v11 = vsel %vm14836_vm6, 0, %v6002_v21  ;;  %v6643_v9 = vld [vmem:[#allocation3] sm:$0xf] }
 0x2b2   :  { %v12112_v37 = vrot.slane %v7194_v18, 9  ;;  %v7346_v14 = vrot.slane %v7344_v24, 4  ;;  %v7347_v58 = vrot.slane %v7196_v57, 5  ;;  %5597 = vmatprep.mubr.bf16.mxu0 %v12010_v1  ;;  %v6478_v0 = vld [vmem:[#allocation3 + $0xa8] sm:$0xf]  ;;  %v6307_v31 = vrot.slane %v6305_v52, 7 }
 0x2b3   :  { %6481 = vst [vmem:[#allocation3 + $0xac] sm:$0xf] %v6302_v26  ;;  %5950 = vst [vmem:[#allocation3 + $0xb4] sm:$0x1] %v5949_v47  ;;  %13602 = vmatprep.mubr.bf16.mxu1 %v12127_v38  ;;  %5598 = vmatmul.mubr.bf16.gmra.mrb[156].mxu0 %v14222_v16  ;;  %v6479_v12 = vsel %vm14865_vm8, %v6293_v15, %v6478_v0  ;;  %v6482_v48 = vld [vmem:[#allocation3 + $0xb0] sm:$0x1] }
 0x2b4   :  { %6004 = vst [vmem:[#allocation3 + $0xbc] sm:$0x1] %v6003_v11  ;;  %v6308_v50 = vshll.u32 %v5891_v56, 16  ;;  %v6313_v49 = vshrl.u32 %v5892_v23, 16  ;;  %v6316_v46 = vshll.u32 %v5892_v23, 16  ;;  %v12835_v41 = vpop.f32.mrb[54].mxu1  ;;  %v7345_v60 = vsel %vm15470_vm14, %v12112_v37, %v7344_v24 }
 0x2b5   :  { %v7348_v57 = vsel %vm15470_vm14, %v7346_v14, %v7347_v58  ;;  %6480 = vst [vmem:[#allocation3 + $0xa8] sm:$0xf] %v6479_v12  ;;  %v6483_v26 = vsel %vm14831_vm5, %v6303_v29, %v6482_v48  ;;  %v6311_v52 = vrot.slane %v6307_v31, 4  ;;  %v6644_v16 = vld [vmem:[#allocation3 + $0x4] sm:$0xf]  ;;  %v14225_v39 = vld [vmem:[#allocation19 + $0x100] sm:$0xff]   ;;  %v16813_v23 = vadd.f32 %v12833_v27, %v12832_v4 }
 0x2b6   :  { %v6645_v21 = vld [vmem:[#allocation3 + $0x8] sm:$0x1]  ;;  %v12128_v15 = vcombine.low %v7345_v60, %v7348_v57  ;;  %6484 = vst [vmem:[#allocation3 + $0xb0] sm:$0x1] %v6483_v26  ;;  %v6310_v56 = vor.u32 %v6308_v50, %v6307_v31  ;;  %v6315_v1 = vrot.slane %v6313_v49, 7  ;;  %v12836_v38 = vpop.f32.mrb[55].mxu1  ;;  %13146 = vmatprep.subr.bf16.mxu0 %v14225_v39 }
 0x2b7   :  { %18259 = vst [vmem:[#allocation41_spill] sm:$0xff] %v16813_v23  ;;  %v6692_v18 = vshrl.u32 %v6643_v9, 16  ;;  %v6695_v24 = vshll.u32 %v6643_v9, 16  ;;  %v6701_v47 = vshll.u32 %v6644_v16, 16  ;;  %v6705_v11 = vshrl.u32 %v6644_v16, 16  ;;  %v18261_v9 = vld [vmem:[#allocation36_spill] sm:$0xff] }
 0x2b8   :  { %13603 = vmatmul.mubr.bf16.gmra.mrb[88].mxu1 %v12128_v15  ;;  %v6318_v37 = vor.u32 %v6316_v46, %v6315_v1  ;;  %v6320_v14 = vrot.slane %v6315_v1, 4  ;;  %v6711_v29 = vshll.u32 %v6645_v21, 16  ;;  %v16815_v58 = vadd.f32 %v12836_v38, %v12835_v41  ;;  %v18262_v49 = vld [vmem:[#allocation37_spill] sm:$0xff]  ;;  %v18263_v26 = vld [vmem:[#allocation42_spill] sm:$0xff]  ;;  %v18264_v46 = vld [vmem:[#allocation43_spill] sm:$0xff] }
 0x2b9   :  { %v6694_v0 = vrot.slane %v6692_v18, 4  ;;  %v6697_v12 = vrot.slane %v6695_v24, 5  ;;  %v6703_v48 = vrot.slane %v6701_v47, 5  ;;  %v6707_v60 = vrot.slane %v6705_v11, 4  ;;  %v18265_v41 = vld [vmem:[#allocation38_spill] sm:$0xff]  ;;  %v18266_v21 = vld [vmem:[#allocation39_spill] sm:$0xff] }
 0x2ba   :  { %18260 = vst [vmem:[#allocation82_spill] sm:$0xff] %v16815_v58  ;;  %v7198_v31 = vld [vmem:[#allocation3 + $0xac] sm:$0xf]  ;;  %v6319_v27 = vsel %vm14822_vm2, %v6311_v52, %v6318_v37  ;;  %v6485_v4 = vld [vmem:[#allocation3 + $0xb4] sm:$0xf]  ;;  %v16821_v57 = vadd.f32 %v18262_v49, %v18261_v9  ;;  %v16825_v16 = vadd.f32 %v18264_v46, %v18263_v26  ;;  %v16829_v39 = vadd.f32 %v18266_v21, %v18265_v41  ;;  %v18267_v26 = vld [vmem:[#allocation48_spill] sm:$0xff] }
 0x2bb   :  { %v6489_v50 = vld [vmem:[#allocation3 + $0xbc] sm:$0x1]  ;;  %v7351_v15 = vrot.slane %v7198_v31, 5  ;;  %v6486_v1 = vsel %vm14865_vm8, %v6310_v56, %v6485_v4  ;;  %6488 = vst [vmem:[#allocation3 + $0xb8] sm:$0xf] %v6319_v27  ;;  %v6698_v38 = vor.u32 %v6697_v12, %v6694_v0  ;;  %v6708_v11 = vor.u32 %v6707_v60, %v6703_v48  ;;  %v18268_v46 = vld [vmem:[#allocation49_spill] sm:$0xff] }
 0x2bc   :  { %v6490_v52 = vsel %vm14831_vm5, %v6320_v14, %v6489_v50  ;;  %v8757_v18 = vld [vmem:[#allocation3 + $0xc] sm:$0xe]  ;;  %v8758_v24 = vld [vmem:[#allocation3 + $0x10] sm:$0xf]  ;;  %v7197_v47 = vld [vmem:[#allocation3 + $0xa8] sm:$0xe]  ;;  %v16837_v31 = vadd.f32 %v18268_v46, %v18267_v26 }
 0x2bd   :  { %6487 = vst [vmem:[#allocation3 + $0xb4] sm:$0xf] %v6486_v1  ;;  %6491 = vst [vmem:[#allocation3 + $0xbc] sm:$0x1] %v6490_v52  ;;  %v6713_v37 = vrot.slane %v6711_v29, 5  ;;  %v12187_v49 = vrot.slane %v8757_v18, 9 }
 0x2be   :  { %v8759_v9 = vld [vmem:[#allocation3 + $0x14] sm:$0x1]  ;;  %v7199_v41 = vld [vmem:[#allocation3 + $0xb0] sm:$0x1]  ;;  %v12113_v56 = vrot.slane %v7197_v47, 9  ;;  %v7353_v27 = vrot.slane %v7351_v15, 4 }
 0x2bf   :  { %v6699_v4 = vrot.slane %v6698_v38, 4  ;;  %v8855_v21 = vrot.slane %v8758_v24, 5  ;;  %v7354_v14 = vrot.slane %v7199_v41, 5  ;;  %v6709_v0 = vrot.slane %v6708_v11, 4  ;;  %v14224_v12 = vld [vmem:[#allocation3] sm:$0xff]   ;;  %v14227_v58 = vld [vmem:[#allocation19 + $0x1c0] sm:$0xff]  }
 0x2c0   :  { %v8858_v50 = vrot.slane %v8759_v9, 5  ;;  %v18269_v1 = vld [vmem:[#allocation44_spill] sm:$0xff]  ;;  %v18270_v52 = vld [vmem:[#allocation45_spill] sm:$0xff]  ;;  %v7352_v29 = vsel %vm15470_vm14, %v12113_v56, %v7351_v15  ;;  %v12702_v24 = vpop.f32.mrb[56].mxu0  ;;  %v8760_v11 = vld [vmem:[#allocation3 + $0x18] sm:$0xe]  ;;  %13282 = vmatprep.subr.bf16.mxu1 %v14227_v58 }
 0x2c1   :  { %v16841_v60 = vadd.f32 %v18270_v52, %v18269_v1  ;;  %v6704_v18 = vsel %vm14914_vm11, %v6699_v4, %v6703_v48  ;;  %v16849_v47 = vsel %vm15470_vm14, %v12187_v49, %v8855_v21  ;;  %v8857_v38 = vrot.slane %v8855_v21, 4  ;;  %v14226_v46 = vld [vmem:[#allocation19 + $0xc0] sm:$0xff]   ;;  %v8762_v15 = vld [vmem:[#allocation3 + $0x20] sm:$0x1]  ;;  %v18271_v1 = vld [vmem:[#allocation50_spill] sm:$0xff]  ;;  %v12703_v2 = vpop.f32.mrb[57].mxu0 }
 0x2c2   :  { %v7355_v9 = vsel %vm15470_vm14, %v7353_v27, %v7354_v14  ;;  %v6714_v26 = vsel %vm14914_vm11, %v6709_v0, %v6713_v37  ;;  %v8761_v41 = vld [vmem:[#allocation3 + $0x1c] sm:$0xf]  ;;  %v12188_v56 = vrot.slane %v8760_v11, 9  ;;  %v18272_v48 = vld [vmem:[#allocation51_spill] sm:$0xff]  ;;  %v8865_v14 = vrot.slane %v8762_v15, 5  ;;  %v12705_v37 = vpop.f32.mrb[58].mxu0 }
 0x2c3   :  { %v16857_v4 = vadd.f32 %v18272_v48, %v18271_v1  ;;  %v12129_v49 = vcombine.low %v7352_v29, %v7355_v9  ;;  %v12083_v52 = vcombine.low %v6704_v18, %v6714_v26  ;;  %v8859_v21 = vsel %vm15470_vm14, %v8857_v38, %v8858_v50  ;;  %v7201_v27 = vld [vmem:[#allocation3 + $0xb8] sm:$0xf]  ;;  %v12838_v58 = vpop.f32.mrb[56].mxu1  ;;  %v18273_v0 = vld [vmem:[#allocation46_spill] sm:$0xff]  ;;  %v12706_v9 = vpop.f32.mrb[59].mxu0  ;;  %v18315_v34 = vld [vmem:[#allocation80_spill] sm:$0xff] }
 0x2c4   :  { %v8862_v23 = vrot.slane %v8761_v41, 5  ;;  %v16861_v61 = vadd.f32 %v12703_v2, %v12702_v24  ;;  %v16865_v11 = vadd.f32 %v18274_v45, %v18273_v0  ;;  %v7200_v1 = vld [vmem:[#allocation3 + $0xb4] sm:$0xe]  ;;  %v7202_v48 = vld [vmem:[#allocation3 + $0xbc] sm:$0x1]  ;;  %v7358_v29 = vrot.slane %v7201_v27, 5 }
 0x2c5   :  { %13606 = vmatprep.mubr.bf16.mxu1 %v12129_v49  ;;  %7715 = vmatprep.mubr.bf16.mxu0 %v12083_v52  ;;  %v12203_v18 = vcombine.low %v16849_v47, %v8859_v21  ;;  %v16870_v38 = vadd.f32 %v16155_v10, %v16141_v3  ;;  %v12114_v2 = vrot.slane %v7200_v1, 9  ;;  %v7361_v24 = vrot.slane %v7202_v48, 5  ;;  %v12839_v26 = vpop.f32.mrb[57].mxu1  ;;  %v6646_v41 = vld [vmem:[#allocation3 + $0xc] sm:$0xf] }
 0x2c6   :  { %v8864_v50 = vrot.slane %v8862_v23, 4  ;;  %7716 = vmatmul.mubr.bf16.vlgmr.msra.gmra.mrb[160].mxu0 %v14224_v12  ;;  %v16874_v45 = vadd.f32 %v16090_v5, %v16074_v6  ;;  %v16878_v15 = vadd.f32 %v16179_v53, %v16173_v40  ;;  %v7360_v47 = vrot.slane %v7358_v29, 4  ;;  %v6647_v49 = vld [vmem:[#allocation3 + $0x10] sm:$0xf]  ;;  %v6648_v52 = vld [vmem:[#allocation3 + $0x14] sm:$0x1] }
 0x2c7   :  { %13147 = vmatpush3.bf16.msra.mxu0 %v14226_v46  ;;  %v16882_v3 = vsel %vm15470_vm14, %v12188_v56, %v8862_v23  ;;  %v16884_v10 = vadd.f32 %v12706_v9, %v12705_v37  ;;  %v16886_v12 = vadd.f32 %v12839_v26, %v12838_v58  ;;  %v12841_v21 = vpop.f32.mrb[58].mxu1  ;;  %v7359_v6 = vsel %vm15470_vm14, %v12114_v2, %v7358_v29  ;;  %v8763_v58 = vld [vmem:[#allocation3 + $0x24] sm:$0xe]  ;;  %v8764_v29 = vld [vmem:[#allocation3 + $0x28] sm:$0xf] }
 0x2c8   :  { %v16892_v5 = vsel %vm15470_vm14, %v8864_v50, %v8865_v14  ;;  %v6716_v40 = vshrl.u32 %v6646_v41, 16  ;;  %v6719_v53 = vshll.u32 %v6646_v41, 16  ;;  %v7362_v23 = vsel %vm15470_vm14, %v7360_v47, %v7361_v24  ;;  %v12842_v37 = vpop.f32.mrb[59].mxu1  ;;  %v8765_v2 = vld [vmem:[#allocation3 + $0x2c] sm:$0x1]  ;;  %v12708_v47 = vpop.f32.mrb[60].mxu0 }
 0x2c9   :  { %18275 = vst [vmem:[#allocation36_spill] sm:$0xff] %v16884_v10  ;;  %18276 = vst [vmem:[#allocation37_spill] sm:$0xff] %v16886_v12  ;;  %v6725_v46 = vshll.u32 %v6647_v49, 16  ;;  %v6729_v56 = vshrl.u32 %v6647_v49, 16  ;;  %v6735_v27 = vshll.u32 %v6648_v52, 16  ;;  %v12130_v0 = vcombine.low %v7359_v6, %v7362_v23 }
 0x2ca   :  { %v6718_v1 = vrot.slane %v6716_v40, 4  ;;  %v6721_v48 = vrot.slane %v6719_v53, 5  ;;  %v16896_v9 = vadd.f32 %v12842_v37, %v12841_v21  ;;  %v12189_v12 = vrot.slane %v8763_v58, 9  ;;  %v8766_v6 = vld [vmem:[#allocation3 + $0x30] sm:$0xe] }
 0x2cb   :  { %v6727_v26 = vrot.slane %v6725_v46, 5  ;;  %v6731_v14 = vrot.slane %v6729_v56, 4  ;;  %v6737_v50 = vrot.slane %v6735_v27, 5  ;;  %13607 = vmatmul.mubr.bf16.gmra.mrb[92].mxu1 %v12130_v0  ;;  %v8869_v10 = vrot.slane %v8764_v29, 5  ;;  %v8767_v21 = vld [vmem:[#allocation3 + $0x34] sm:$0xf] }
 0x2cc   :  { %18277 = vst [vmem:[#allocation42_spill] sm:$0xff] %v16896_v9  ;;  %v6722_v41 = vor.u32 %v6721_v48, %v6718_v1  ;;  %v8872_v24 = vrot.slane %v8765_v2, 5  ;;  %v16900_v49 = vadd.f32 %v16118_v30, %v16107_v25  ;;  %13626 = vmatprep.mubr.bf16.mxu1 %v12203_v18  ;;  %v8768_v40 = vld [vmem:[#allocation3 + $0x38] sm:$0x1]  ;;  %v16904_v53 = vadd.f32 %v16319_v62, %v16306_v54  ;;  %v14229_v58 = vld [vmem:[#allocation3 + $0xc] sm:$0xff]   ;;  %v12709_v62 = vpop.f32.mrb[61].mxu0 }
 0x2cd   :  { %v6732_v52 = vor.u32 %v6731_v14, %v6727_v26  ;;  %v16908_v23 = vadd.f32 %v16262_v20, %v16240_v43  ;;  %v16912_v46 = vadd.f32 %v16339_v17, %v16325_v63  ;;  %v8870_v25 = vsel %vm15470_vm14, %v12189_v12, %v8869_v10  ;;  %v14228_v27 = vld [vmem:[#allocation19 + $0x180] sm:$0xff]   ;;  %v18278_v1 = vld [vmem:[#allocation61_spill] sm:$0xff]  ;;  %v12711_v12 = vpop.f32.mrb[62].mxu0  ;;  %v12844_v48 = vpop.f32.mrb[60].mxu1 }
 0x2ce   :  { %v6723_v56 = vrot.slane %v6722_v41, 4  ;;  %v8871_v30 = vrot.slane %v8869_v10, 4  ;;  %v12190_v18 = vrot.slane %v8766_v6, 9  ;;  %v8876_v0 = vrot.slane %v8767_v21, 5  ;;  %v6649_v29 = vld [vmem:[#allocation3 + $0x18] sm:$0xf] }
 0x2cf   :  { %v6733_v37 = vrot.slane %v6732_v52, 4  ;;  %v8879_v54 = vrot.slane %v8768_v40, 5  ;;  %v16918_v43 = vadd.f32 %v18278_v1, %v16273_v32  ;;  %v12204_v20 = vcombine.low %v16882_v3, %v16892_v5  ;;  %v6650_v2 = vld [vmem:[#allocation3 + $0x1c] sm:$0xf]  ;;  %v14230_v41 = vld [vmem:[#allocation19 + $0x1c8] sm:$0xff]   ;;  %v12712_v6 = vpop.f32.mrb[63].mxu0 }
 0x2d0   :  { %v6728_v63 = vsel %vm14914_vm11, %v6723_v56, %v6727_v26  ;;  %v8873_v17 = vsel %vm15470_vm14, %v8871_v30, %v8872_v24  ;;  %v16926_v10 = vadd.f32 %v12709_v62, %v12708_v47  ;;  %v8878_v52 = vrot.slane %v8876_v0, 4  ;;  %v12845_v3 = vpop.f32.mrb[61].mxu1  ;;  %v6651_v5 = vld [vmem:[#allocation3 + $0x20] sm:$0x1] }
 0x2d1   :  { %v6738_v14 = vsel %vm14914_vm11, %v6733_v37, %v6737_v50  ;;  %v12205_v32 = vcombine.low %v8870_v25, %v8873_v17  ;;  %v16930_v26 = vadd.f32 %v12712_v6, %v12711_v12  ;;  %v16932_v40 = vadd.f32 %v12845_v3, %v12844_v48  ;;  %v12847_v47 = vpop.f32.mrb[62].mxu1  ;;  %v14231_v56 = vld [vmem:[#allocation19 + $0x188] sm:$0xff]   ;;  %v8769_v3 = vld [vmem:[#allocation3 + $0x3c] sm:$0xe] }
 0x2d2   :  { %v12084_v21 = vcombine.low %v6728_v63, %v6738_v14  ;;  %v6740_v24 = vshrl.u32 %v6649_v29, 16  ;;  %v6743_v30 = vshll.u32 %v6649_v29, 16  ;;  %v6749_v62 = vshll.u32 %v6650_v2, 16  ;;  %v14233_v9 = vld [vmem:[#allocation19 + $0x108] sm:$0xff]   ;;  %v12848_v17 = vpop.f32.mrb[63].mxu1 }
 0x2d3   :  { %v6753_v1 = vshrl.u32 %v6650_v2, 16  ;;  %13627 = vmatmul.mubr.bf16.vlgmr.msra.gmra.mrb[64].mxu1 %v12204_v20  ;;  %v8877_v50 = vsel %vm15470_vm14, %v12190_v18, %v8876_v0  ;;  %v8880_v25 = vsel %vm15470_vm14, %v8878_v52, %v8879_v54  ;;  %v6759_v63 = vshll.u32 %v6651_v5, 16  ;;  %v14234_v12 = vld [vmem:[#allocation19 + $0xc8] sm:$0xff]   ;;  %v14235_v2 = vld [vmem:[#allocation19 + $0x1d0] sm:$0xff]   ;;  %v13436_v18 = vpop.f32.mrb[64].mxu0  ;;  %13148 = vmatprep.subr.bf16.mxu0 %v14233_v9 }
 0x2d4   :  { %7723 = vmatprep.mubr.bf16.mxu0 %v12084_v21  ;;  %v6742_v37 = vrot.slane %v6740_v24, 4  ;;  %13283 = vmatpush3.bf16.msra.mxu1 %v14228_v27  ;;  %v6745_v48 = vrot.slane %v6743_v30, 5  ;;  %v6751_v14 = vrot.slane %v6749_v62, 5  ;;  %v16938_v6 = vadd.f32 %v12848_v17, %v12847_v47  ;;  %v8770_v54 = vld [vmem:[#allocation3 + $0x40] sm:$0xf] }
 0x2d5   :  { %7724 = vmatmul.mubr.bf16.gmra.mrb[164].mxu0 %v14229_v58  ;;  %v6755_v29 = vrot.slane %v6753_v1, 4  ;;  %13630 = vmatprep.mubr.bf16.mxu1 %v12205_v32  ;;  %v6761_v20 = vrot.slane %v6759_v63, 5  ;;  %v8771_v52 = vld [vmem:[#allocation3 + $0x44] sm:$0x1]  ;;  %v12191_v5 = vrot.slane %v8769_v3, 9  ;;  %v2508_v27 = vadd.f32 %v13436_v18, %v16779_v28  ;;  %v14236_v58 = vld [vmem:[#allocation19 + $0x190] sm:$0xff]  }
 0x2d6   :  { %13284 = vmatprep.subr.bf16.mxu1 %v14230_v41  ;;  %v6746_v0 = vor.u32 %v6745_v48, %v6742_v37  ;;  %v12206_v24 = vcombine.low %v8877_v50, %v8880_v25  ;;  %13149 = vmatpush3.bf16.msra.mxu0 %v14234_v12  ;;  %v8883_v30 = vrot.slane %v8770_v54, 5  ;;  %v8886_v47 = vrot.slane %v8771_v52, 5  ;;  %v14232_v41 = vld [vmem:[#allocation3 + $0x18] sm:$0xff]   ;;  %v18279_v1 = vld [vmem:[#allocation54_spill] sm:$0xff]  ;;  %v8772_v37 = vld [vmem:[#allocation3 + $0x48] sm:$0xe] }
 0x2d7   :  { %v6756_v21 = vor.u32 %v6755_v29, %v6751_v14  ;;  %v16942_v63 = vadd.f32 %v18279_v1, %v2508_v27  ;;  %v8773_v17 = vld [vmem:[#allocation3 + $0x4c] sm:$0xf]  ;;  %v8774_v28 = vld [vmem:[#allocation3 + $0x50] sm:$0x1]  ;;  %v12192_v29 = vrot.slane %v8772_v37, 9  ;;  %v2499_v25 = vpop.f32.mrb[65].mxu0 }
 0x2d8   :  { %13285 = vmatpush3.bf16.msra.mxu1 %v14231_v56  ;;  %v6747_v62 = vrot.slane %v6746_v0, 4  ;;  %v8884_v9 = vsel %vm15470_vm14, %v12191_v5, %v8883_v30  ;;  %v8885_v48 = vrot.slane %v8883_v30, 4  ;;  %v8890_v50 = vrot.slane %v8773_v17, 5  ;;  %v13437_v0 = vpop.f32.mrb[66].mxu0  ;;  %v6652_v27 = vld [vmem:[#allocation3 + $0x24] sm:$0xf] }
 0x2d9   :  { %v6757_v32 = vrot.slane %v6756_v21, 4  ;;  %13286 = vmatprep.subr.bf16.mxu1 %v14235_v2  ;;  %v8893_v3 = vrot.slane %v8774_v28, 5  ;;  %v2500_v18 = vadd.f32 %v16821_v57, %v2499_v25  ;;  %v2502_v5 = vpop.f32.mrb[67].mxu0  ;;  %v6653_v30 = vld [vmem:[#allocation3 + $0x28] sm:$0xf]  ;;  %v2511_v57 = vadd.f32 %v13437_v0, %v16825_v16 }
 0x2da   :  { %v6752_v56 = vsel %vm14914_vm11, %v6747_v62, %v6751_v14  ;;  %v8887_v54 = vsel %vm15470_vm14, %v8885_v48, %v8886_v47  ;;  %v8891_v2 = vsel %vm15470_vm14, %v12192_v29, %v8890_v50  ;;  %v8892_v52 = vrot.slane %v8890_v50, 4  ;;  %v18280_v62 = vld [vmem:[#allocation52_spill] sm:$0xff]  ;;  %v8775_v48 = vld [vmem:[#allocation3 + $0x54] sm:$0xe]  ;;  %v18282_v29 = vld [vmem:[#allocation53_spill] sm:$0xff] }
 0x2db   :  { %v6762_v12 = vsel %vm14914_vm11, %v6757_v32, %v6761_v20  ;;  %13631 = vmatmul.mubr.bf16.gmra.mrb[68].mxu1 %v12206_v24  ;;  %v12207_v14 = vcombine.low %v8884_v9, %v8887_v54  ;;  %v16956_v20 = vadd.f32 %v18280_v62, %v2500_v18  ;;  %v2503_v24 = vadd.f32 %v16829_v39, %v2502_v5  ;;  %v6654_v32 = vld [vmem:[#allocation3 + $0x2c] sm:$0x1]  ;;  %v8776_v39 = vld [vmem:[#allocation3 + $0x58] sm:$0xf]  ;;  %v8777_v25 = vld [vmem:[#allocation3 + $0x5c] sm:$0x1] }
 0x2dc   :  { %v12085_v21 = vcombine.low %v6752_v56, %v6762_v12  ;;  %13287 = vmatpush3.bf16.msra.mxu1 %v14236_v58  ;;  %v8894_v47 = vsel %vm15470_vm14, %v8892_v52, %v8893_v3  ;;  %v6764_v1 = vshrl.u32 %v6652_v27, 16  ;;  %v6767_v37 = vshll.u32 %v6652_v27, 16  ;;  %v18281_v58 = vld [vmem:[#allocation55_spill] sm:$0xff]  ;;  %v13440_v27 = vpop.f32.mrb[68].mxu0  ;;  %v8779_v62 = vld [vmem:[#allocation3 + $0x64] sm:$0xf] }
 0x2dd   :  { %v6773_v17 = vshll.u32 %v6653_v30, 16  ;;  %13634 = vmatprep.mubr.bf16.mxu1 %v12207_v14  ;;  %v12208_v9 = vcombine.low %v8891_v2, %v8894_v47  ;;  %v16963_v28 = vadd.f32 %v18281_v58, %v2511_v57  ;;  %v16966_v50 = vadd.f32 %v18282_v29, %v2503_v24  ;;  %v14238_v56 = vld [vmem:[#allocation19 + $0x1d8] sm:$0xff]   ;;  %v8778_v14 = vld [vmem:[#allocation3 + $0x60] sm:$0xe] }
 0x2de   :  { %7731 = vmatprep.mubr.bf16.mxu0 %v12085_v21  ;;  %v6777_v16 = vshrl.u32 %v6653_v30, 16  ;;  %v6766_v12 = vrot.slane %v6764_v1, 4  ;;  %v6769_v18 = vrot.slane %v6767_v37, 5  ;;  %v6783_v0 = vshll.u32 %v6654_v32, 16  ;;  %13288 = vmatprep.subr.bf16.mxu1 %v14238_v56  ;;  %v8780_v1 = vld [vmem:[#allocation3 + $0x68] sm:$0x1] }
 0x2df   :  { %7732 = vmatmul.mubr.bf16.gmra.mrb[168].mxu0 %v14232_v41  ;;  %v6775_v3 = vrot.slane %v6773_v17, 5  ;;  %v12193_v54 = vrot.slane %v8775_v48, 9  ;;  %v8897_v52 = vrot.slane %v8776_v39, 5  ;;  %v8900_v41 = vrot.slane %v8777_v25, 5  ;;  %v14239_v37 = vld [vmem:[#allocation19 + $0x198] sm:$0xff]   ;;  %v2515_v56 = vpop.f32.mrb[69].mxu0 }
 0x2e0   :  { %v6779_v21 = vrot.slane %v6777_v16, 4  ;;  %v6770_v2 = vor.u32 %v6769_v18, %v6766_v12  ;;  %v6785_v5 = vrot.slane %v6783_v0, 5  ;;  %v2524_v47 = vadd.f32 %v13440_v27, %v16837_v31  ;;  %v18283_v39 = vld [vmem:[#allocation58_spill] sm:$0xff]  ;;  %13289 = vmatpush3.bf16.msra.mxu1 %v14239_v37  ;;  %v6656_v18 = vld [vmem:[#allocation3 + $0x34] sm:$0xf] }
 0x2e1   :  { %v8898_v30 = vsel %vm15470_vm14, %v12193_v54, %v8897_v52  ;;  %v8899_v24 = vrot.slane %v8897_v52, 4  ;;  %v12194_v17 = vrot.slane %v8778_v14, 9  ;;  %v8904_v48 = vrot.slane %v8779_v62, 5  ;;  %v6655_v12 = vld [vmem:[#allocation3 + $0x30] sm:$0xf]  ;;  %v13441_v54 = vpop.f32.mrb[70].mxu0 }
 0x2e2   :  { %v6780_v57 = vor.u32 %v6779_v21, %v6775_v3  ;;  %v6771_v32 = vrot.slane %v6770_v2, 4  ;;  %v8907_v58 = vrot.slane %v8780_v1, 5  ;;  %v16974_v25 = vadd.f32 %v18283_v39, %v2524_v47  ;;  %v6657_v52 = vld [vmem:[#allocation3 + $0x38] sm:$0x1]  ;;  %v14237_v2 = vld [vmem:[#allocation3 + $0x24] sm:$0xff]   ;;  %v2518_v62 = vpop.f32.mrb[71].mxu0 }
 0x2e3   :  { %13635 = vmatmul.mubr.bf16.gmra.mrb[72].mxu1 %v12208_v9  ;;  %v8901_v16 = vsel %vm15470_vm14, %v8899_v24, %v8900_v41  ;;  %v8905_v9 = vsel %vm15470_vm14, %v12194_v17, %v8904_v48  ;;  %v8906_v21 = vrot.slane %v8904_v48, 4  ;;  %v2516_v27 = vadd.f32 %v16841_v60, %v2515_v56  ;;  %v14241_v24 = vld [vmem:[#allocation19 + $0x110] sm:$0xff]   ;;  %v18284_v17 = vld [vmem:[#allocation56_spill] sm:$0xff]  ;;  %v18285_v48 = vld [vmem:[#allocation59_spill] sm:$0xff] }
 0x2e4   :  { %v6781_v29 = vrot.slane %v6780_v57, 4  ;;  %v6776_v31 = vsel %vm14914_vm11, %v6771_v32, %v6775_v3  ;;  %v12209_v0 = vcombine.low %v8898_v30, %v8901_v16  ;;  %v2527_v14 = vadd.f32 %v13441_v54, %v16857_v4  ;;  %v14242_v37 = vld [vmem:[#allocation19 + $0xd0] sm:$0xff]   ;;  %13150 = vmatprep.subr.bf16.mxu0 %v14241_v24  ;;  %v14244_v24 = vld [vmem:[#allocation19 + $0x1a0] sm:$0xff]  }
 0x2e5   :  { %v6788_v57 = vshrl.u32 %v6655_v12, 16  ;;  %v8908_v3 = vsel %vm15470_vm14, %v8906_v21, %v8907_v58  ;;  %v2519_v30 = vadd.f32 %v16865_v11, %v2518_v62  ;;  %v6791_v1 = vshll.u32 %v6655_v12, 16  ;;  %v18286_v16 = vld [vmem:[#allocation57_spill] sm:$0xff]  ;;  %13151 = vmatpush3.bf16.msra.mxu0 %v14242_v37  ;;  %v8781_v11 = vld [vmem:[#allocation3 + $0x6c] sm:$0xe]  ;;  %v13444_v12 = vpop.f32.mrb[72].mxu0 }
 0x2e6   :  { %v6786_v41 = vsel %vm14914_vm11, %v6781_v29, %v6785_v5  ;;  %13638 = vmatprep.mubr.bf16.mxu1 %v12209_v0  ;;  %v12210_v32 = vcombine.low %v8905_v9, %v8908_v3  ;;  %v16988_v5 = vadd.f32 %v18284_v17, %v2516_v27  ;;  %v16991_v60 = vadd.f32 %v18285_v48, %v2527_v14  ;;  %v14243_v29 = vld [vmem:[#allocation19 + $0x1e0] sm:$0xff]   ;;  %v8782_v9 = vld [vmem:[#allocation3 + $0x70] sm:$0xf]  ;;  %v8783_v21 = vld [vmem:[#allocation3 + $0x74] sm:$0x1] }
 0x2e7   :  { %v12086_v47 = vcombine.low %v6776_v31, %v6786_v41  ;;  %v6790_v4 = vrot.slane %v6788_v57, 4  ;;  %v16994_v39 = vadd.f32 %v18286_v16, %v2519_v30  ;;  %v6793_v56 = vrot.slane %v6791_v1, 5  ;;  %13290 = vmatprep.subr.bf16.mxu1 %v14243_v29  ;;  %v8784_v1 = vld [vmem:[#allocation3 + $0x78] sm:$0xe]  ;;  %v8785_v48 = vld [vmem:[#allocation3 + $0x7c] sm:$0xf] }
 0x2e8   :  { %v6797_v58 = vshll.u32 %v6656_v18, 16  ;;  %v6801_v31 = vshrl.u32 %v6656_v18, 16  ;;  %v6807_v0 = vshll.u32 %v6657_v52, 16  ;;  %v12195_v54 = vrot.slane %v8781_v11, 9  ;;  %v18287_v18 = vld [vmem:[#allocation63_spill] sm:$0xff]  ;;  %13291 = vmatpush3.bf16.msra.mxu1 %v14244_v24  ;;  %v2531_v16 = vpop.f32.mrb[73].mxu0 }
 0x2e9   :  { %7739 = vmatprep.mubr.bf16.mxu0 %v12086_v47  ;;  %v2540_v41 = vadd.f32 %v13444_v12, %v16870_v38  ;;  %v6794_v27 = vor.u32 %v6793_v56, %v6790_v4  ;;  %v8911_v57 = vrot.slane %v8782_v9, 5  ;;  %v8914_v3 = vrot.slane %v8783_v21, 5  ;;  %v8786_v38 = vld [vmem:[#allocation3 + $0x80] sm:$0x1]  ;;  %v13445_v12 = vpop.f32.mrb[74].mxu0  ;;  %v14240_v24 = vld [vmem:[#allocation3 + $0x30] sm:$0xff]  }
 0x2ea   :  { %7740 = vmatmul.mubr.bf16.gmra.mrb[172].mxu0 %v14237_v2  ;;  %v6799_v14 = vrot.slane %v6797_v58, 5  ;;  %v6803_v62 = vrot.slane %v6801_v31, 4  ;;  %v6809_v47 = vrot.slane %v6807_v0, 5  ;;  %v8918_v4 = vrot.slane %v8785_v48, 5  ;;  %v6658_v0 = vld [vmem:[#allocation3 + $0x3c] sm:$0xf] }
 0x2eb   :  { %13639 = vmatmul.mubr.bf16.gmra.mrb[76].mxu1 %v12210_v32  ;;  %v16998_v30 = vadd.f32 %v18287_v18, %v2540_v41  ;;  %v6795_v2 = vrot.slane %v6794_v27, 4  ;;  %v8912_v37 = vsel %vm15470_vm14, %v12195_v54, %v8911_v57  ;;  %v8913_v17 = vrot.slane %v8911_v57, 4  ;;  %v2534_v27 = vpop.f32.mrb[75].mxu0  ;;  %v6660_v57 = vld [vmem:[#allocation3 + $0x44] sm:$0x1]  ;;  %v18288_v18 = vld [vmem:[#allocation60_spill] sm:$0xff] }
 0x2ec   :  { %v6804_v52 = vor.u32 %v6803_v62, %v6799_v14  ;;  %v12196_v32 = vrot.slane %v8784_v1, 9  ;;  %v8921_v29 = vrot.slane %v8786_v38, 5  ;;  %v2532_v11 = vadd.f32 %v16874_v45, %v2531_v16  ;;  %v6659_v62 = vld [vmem:[#allocation3 + $0x40] sm:$0xf]  ;;  %v8787_v48 = vld [vmem:[#allocation3 + $0x84] sm:$0xe] }
 0x2ed   :  { %v6800_v56 = vsel %vm14914_vm11, %v6795_v2, %v6799_v14  ;;  %v8915_v31 = vsel %vm15470_vm14, %v8913_v17, %v8914_v3  ;;  %v8920_v54 = vrot.slane %v8918_v4, 4  ;;  %v2543_v41 = vadd.f32 %v13445_v12, %v16878_v15  ;;  %v8788_v38 = vld [vmem:[#allocation3 + $0x88] sm:$0xf] }
 0x2ee   :  { %v6805_v58 = vrot.slane %v6804_v52, 4  ;;  %v12211_v9 = vcombine.low %v8912_v37, %v8915_v31  ;;  %v8919_v21 = vsel %vm15470_vm14, %v12196_v32, %v8918_v4  ;;  %v17013_v3 = vadd.f32 %v18288_v18, %v2532_v11  ;;  %v18289_v37 = vld [vmem:[#allocation64_spill] sm:$0xff]  ;;  %v18290_v4 = vld [vmem:[#allocation62_spill] sm:$0xff] }
 0x2ef   :  { %v2535_v45 = vadd.f32 %v16900_v49, %v2534_v27  ;;  %v6812_v1 = vshrl.u32 %v6658_v0, 16  ;;  %v8922_v52 = vsel %vm15470_vm14, %v8920_v54, %v8921_v29  ;;  %v17019_v15 = vadd.f32 %v18289_v37, %v2543_v41  ;;  %v14246_v32 = vld [vmem:[#allocation19 + $0x1e8] sm:$0xff]   ;;  %v8789_v49 = vld [vmem:[#allocation3 + $0x8c] sm:$0x1]  ;;  %v13448_v41 = vpop.f32.mrb[76].mxu0 }
 0x2f0   :  { %v6810_v14 = vsel %vm14914_vm11, %v6805_v58, %v6809_v47  ;;  %13642 = vmatprep.mubr.bf16.mxu1 %v12211_v9  ;;  %v6815_v17 = vshll.u32 %v6658_v0, 16  ;;  %v12212_v47 = vcombine.low %v8919_v21, %v8922_v52  ;;  %v6821_v31 = vshll.u32 %v6659_v62, 16  ;;  %13292 = vmatprep.subr.bf16.mxu1 %v14246_v32  ;;  %v8790_v27 = vld [vmem:[#allocation3 + $0x90] sm:$0xe]  ;;  %v8792_v52 = vld [vmem:[#allocation3 + $0x98] sm:$0x1] }
 0x2f1   :  { %v12087_v2 = vcombine.low %v6800_v56, %v6810_v14  ;;  %v17022_v16 = vadd.f32 %v18290_v4, %v2535_v45  ;;  %v6814_v58 = vrot.slane %v6812_v1, 4  ;;  %v6825_v11 = vshrl.u32 %v6659_v62, 16  ;;  %v8791_v1 = vld [vmem:[#allocation3 + $0x94] sm:$0xf] }
 0x2f2   :  { %v6817_v56 = vrot.slane %v6815_v17, 5  ;;  %v6831_v12 = vshll.u32 %v6660_v57, 16  ;;  %v12197_v9 = vrot.slane %v8787_v48, 9  ;;  %v6823_v29 = vrot.slane %v6821_v31, 5 }
 0x2f3   :  { %7747 = vmatprep.mubr.bf16.mxu0 %v12087_v2  ;;  %13643 = vmatmul.mubr.bf16.gmra.mrb[80].mxu1 %v12212_v47  ;;  %v8925_v0 = vrot.slane %v8788_v38, 5  ;;  %v8928_v54 = vrot.slane %v8789_v49, 5  ;;  %v6827_v14 = vrot.slane %v6825_v11, 4  ;;  %v2556_v45 = vadd.f32 %v13448_v41, %v16904_v53  ;;  %v2547_v47 = vpop.f32.mrb[77].mxu0  ;;  %v6662_v11 = vld [vmem:[#allocation3 + $0x4c] sm:$0xf] }
 0x2f4   :  { %7748 = vmatmul.mubr.bf16.gmra.mrb[176].mxu0 %v14240_v24  ;;  %v6818_v21 = vor.u32 %v6817_v56, %v6814_v58  ;;  %v6833_v18 = vrot.slane %v6831_v12, 5  ;;  %v12198_v2 = vrot.slane %v8790_v27, 9  ;;  %v8932_v37 = vrot.slane %v8791_v1, 5  ;;  %v14247_v24 = vld [vmem:[#allocation19 + $0x1a8] sm:$0xff]   ;;  %v13449_v49 = vpop.f32.mrb[78].mxu0 }
 0x2f5   :  { %v8926_v62 = vsel %vm15470_vm14, %v12197_v9, %v8925_v0  ;;  %v8927_v57 = vrot.slane %v8925_v0, 4  ;;  %v6828_v48 = vor.u32 %v6827_v14, %v6823_v29  ;;  %v17028_v38 = vadd.f32 %v16439_v42, %v2556_v45  ;;  %13293 = vmatpush3.bf16.msra.mxu1 %v14247_v24  ;;  %v6661_v56 = vld [vmem:[#allocation3 + $0x48] sm:$0xf]  ;;  %v14245_v9 = vld [vmem:[#allocation3 + $0x3c] sm:$0xff]   ;;  %v2550_v27 = vpop.f32.mrb[79].mxu0  ;;  %v18291_v14 = vld [vmem:[#allocation67_spill] sm:$0xff] }
 0x2f6   :  { %v6819_v17 = vrot.slane %v6818_v21, 4  ;;  %v8935_v32 = vrot.slane %v8792_v52, 5  ;;  %v8933_v53 = vsel %vm15470_vm14, %v12198_v2, %v8932_v37  ;;  %v8934_v58 = vrot.slane %v8932_v37, 4  ;;  %v14249_v52 = vld [vmem:[#allocation19 + $0x118] sm:$0xff]  }
 0x2f7   :  { %v8929_v4 = vsel %vm15470_vm14, %v8927_v57, %v8928_v54  ;;  %v2548_v31 = vadd.f32 %v16908_v23, %v2547_v47  ;;  %v6829_v42 = vrot.slane %v6828_v48, 4  ;;  %v2559_v41 = vadd.f32 %v13449_v49, %v16912_v46  ;;  %v6663_v54 = vld [vmem:[#allocation3 + $0x50] sm:$0x1]  ;;  %13152 = vmatprep.subr.bf16.mxu0 %v14249_v52 }
 0x2f8   :  { %v6824_v12 = vsel %vm14914_vm11, %v6819_v17, %v6823_v29  ;;  %v12213_v0 = vcombine.low %v8926_v62, %v8929_v4  ;;  %v8936_v21 = vsel %vm15470_vm14, %v8934_v58, %v8935_v32  ;;  %v2551_v23 = vadd.f32 %v16918_v43, %v2550_v27  ;;  %v14250_v2 = vld [vmem:[#allocation19 + $0xd8] sm:$0xff]   ;;  %v8793_v43 = vld [vmem:[#allocation3 + $0x9c] sm:$0xe]  ;;  %v8795_v58 = vld [vmem:[#allocation3 + $0xa4] sm:$0x1]  ;;  %v13452_v27 = vpop.f32.mrb[80].mxu0 }
 0x2f9   :  { %v17041_v45 = vadd.f32 %v18291_v14, %v2548_v31  ;;  %v6836_v1 = vshrl.u32 %v6661_v56, 16  ;;  %v6834_v29 = vsel %vm14914_vm11, %v6829_v42, %v6833_v18  ;;  %v12214_v57 = vcombine.low %v8933_v53, %v8936_v21  ;;  %13153 = vmatpush3.bf16.msra.mxu0 %v14250_v2  ;;  %v8794_v18 = vld [vmem:[#allocation3 + $0xa0] sm:$0xf]  ;;  %v14251_v42 = vld [vmem:[#allocation19 + $0x1f0] sm:$0xff]   ;;  %v2563_v2 = vpop.f32.mrb[81].mxu0 }
 0x2fa   :  { %13646 = vmatprep.mubr.bf16.mxu1 %v12213_v0  ;;  %v17047_v62 = vadd.f32 %v16443_v7, %v2559_v41  ;;  %v6839_v46 = vshll.u32 %v6661_v56, 16  ;;  %v12088_v37 = vcombine.low %v6824_v12, %v6834_v29  ;;  %v17050_v24 = vadd.f32 %v16414_v8, %v2551_v23  ;;  %13294 = vmatprep.subr.bf16.mxu1 %v14251_v42 }
 0x2fb   :  { %v6838_v17 = vrot.slane %v6836_v1, 4  ;;  %v6845_v48 = vshll.u32 %v6662_v11, 16  ;;  %13647 = vmatmul.mubr.bf16.gmra.mrb[84].mxu1 %v12214_v57  ;;  %v6849_v47 = vshrl.u32 %v6662_v11, 16  ;;  %v6855_v4 = vshll.u32 %v6663_v54, 16  ;;  %v8796_v11 = vld [vmem:[#allocation3 + $0xa8] sm:$0xe] }
 0x2fc   :  { %v6841_v32 = vrot.slane %v6839_v46, 5  ;;  %v12199_v53 = vrot.slane %v8793_v43, 9  ;;  %7755 = vmatprep.mubr.bf16.mxu0 %v12088_v37  ;;  %v8939_v31 = vrot.slane %v8794_v18, 5  ;;  %v8942_v12 = vrot.slane %v8795_v58, 5  ;;  %v8797_v54 = vld [vmem:[#allocation3 + $0xac] sm:$0xf] }
 0x2fd   :  { %v6847_v7 = vrot.slane %v6845_v48, 5  ;;  %7756 = vmatmul.mubr.bf16.gmra.mrb[180].mxu0 %v14245_v9  ;;  %v6851_v56 = vrot.slane %v6849_v47, 4  ;;  %v6857_v8 = vrot.slane %v6855_v4, 5  ;;  %v2572_v23 = vadd.f32 %v13452_v27, %v16575_v55  ;;  %v8798_v1 = vld [vmem:[#allocation3 + $0xb0] sm:$0x1]  ;;  %v14252_v46 = vld [vmem:[#allocation19 + $0x1b0] sm:$0xff]  }
 0x2fe   :  { %v6842_v49 = vor.u32 %v6841_v32, %v6838_v17  ;;  %v8940_v0 = vsel %vm15470_vm14, %v12199_v53, %v8939_v31  ;;  %v8941_v41 = vrot.slane %v8939_v31, 4  ;;  %v12200_v52 = vrot.slane %v8796_v11, 9  ;;  %v13453_v32 = vpop.f32.mrb[82].mxu0  ;;  %v6664_v47 = vld [vmem:[#allocation3 + $0x54] sm:$0xf]  ;;  %13295 = vmatpush3.bf16.msra.mxu1 %v14252_v46 }
 0x2ff   :  { %v6852_v14 = vor.u32 %v6851_v56, %v6847_v7  ;;  %v8946_v29 = vrot.slane %v8797_v54, 5  ;;  %v8949_v57 = vrot.slane %v8798_v1, 5  ;;  %v17060_v43 = vadd.f32 %v16614_v22, %v2572_v23  ;;  %v6665_v55 = vld [vmem:[#allocation3 + $0x58] sm:$0xf]  ;;  %v2566_v31 = vpop.f32.mrb[83].mxu0  ;;  %v14248_v56 = vld [vmem:[#allocation3 + $0x48] sm:$0xff]  }
 0x300   :  { %v6843_v21 = vrot.slane %v6842_v49, 4  ;;  %v8943_v9 = vsel %vm15470_vm14, %v8941_v41, %v8942_v12  ;;  %v2564_v53 = vadd.f32 %v16445_v36, %v2563_v2  ;;  %v2575_v58 = vadd.f32 %v13453_v32, %v16579_v13  ;;  %v6666_v49 = vld [vmem:[#allocation3 + $0x5c] sm:$0x1]  ;;  %v14254_v41 = vld [vmem:[#allocation19 + $0x1f8] sm:$0xff]   ;;  %v18293_v54 = vld [vmem:[#allocation69_spill] sm:$0xff] }
 0x301   :  { %v6853_v17 = vrot.slane %v6852_v14, 4  ;;  %v12215_v48 = vcombine.low %v8940_v0, %v8943_v9  ;;  %v8947_v4 = vsel %vm15470_vm14, %v12200_v52, %v8946_v29  ;;  %v8948_v18 = vrot.slane %v8946_v29, 4  ;;  %v18292_v22 = vld [vmem:[#allocation68_spill] sm:$0xff]  ;;  %v18294_v13 = vld [vmem:[#allocation71_spill] sm:$0xff]  ;;  %v18295_v52 = vld [vmem:[#allocation70_spill] sm:$0xff]  ;;  %13296 = vmatprep.subr.bf16.mxu1 %v14254_v41 }
 0x302   :  { %v6848_v37 = vsel %vm14914_vm11, %v6843_v21, %v6847_v7  ;;  %v2567_v12 = vadd.f32 %v18292_v22, %v2566_v31  ;;  %v6860_v42 = vshrl.u32 %v6664_v47, 16  ;;  %v6863_v0 = vshll.u32 %v6664_v47, 16  ;;  %v8799_v14 = vld [vmem:[#allocation3 + $0xb4] sm:$0xe]  ;;  %v8800_v23 = vld [vmem:[#allocation3 + $0xb8] sm:$0xf] }
 0x303   :  { %v6858_v7 = vsel %vm14914_vm11, %v6853_v17, %v6857_v8  ;;  %13650 = vmatprep.mubr.bf16.mxu1 %v12215_v48  ;;  %v8950_v11 = vsel %vm15470_vm14, %v8948_v18, %v8949_v57  ;;  %v17072_v36 = vadd.f32 %v18293_v54, %v2564_v53  ;;  %v17075_v21 = vadd.f32 %v18294_v13, %v2575_v58  ;;  %v8801_v8 = vld [vmem:[#allocation3 + $0xbc] sm:$0x1]  ;;  %v13456_v48 = vpop.f32.mrb[84].mxu0  ;;  %v14255_v32 = vld [vmem:[#allocation19 + $0x1b8] sm:$0xff]   ;;  %v5893_v58 = vld [vmem:[#allocation15 + $0x78] sm:$0xf] }
 0x304   :  { %v12089_v27 = vcombine.low %v6848_v37, %v6858_v7  ;;  %v12216_v1 = vcombine.low %v8947_v4, %v8950_v11  ;;  %v17078_v9 = vadd.f32 %v18295_v52, %v2567_v12  ;;  %v6862_v29 = vrot.slane %v6860_v42, 4  ;;  %v5894_v31 = vld [vmem:[#allocation15 + $0x7c] sm:$0xf]  ;;  %v5951_v42 = vld [vmem:[#allocation3 + $0xc0] sm:$0x1]  ;;  %13297 = vmatpush3.bf16.msra.mxu1 %v14255_v32 }
 0x305   :  { %v6865_v46 = vrot.slane %v6863_v0, 5  ;;  %v6869_v2 = vshll.u32 %v6665_v55, 16  ;;  %v6873_v37 = vshrl.u32 %v6665_v55, 16  ;;  %v6879_v57 = vshll.u32 %v6666_v49, 16  ;;  %v6668_v32 = vld [vmem:[#allocation3 + $0x64] sm:$0xf] }
 0x306   :  { %7763 = vmatprep.mubr.bf16.mxu0 %v12089_v27  ;;  %v12201_v17 = vrot.slane %v8799_v14, 9  ;;  %13651 = vmatmul.mubr.bf16.gmra.mrb[88].mxu1 %v12216_v1  ;;  %v8953_v18 = vrot.slane %v8800_v23, 5  ;;  %v8956_v53 = vrot.slane %v8801_v8, 5  ;;  %v2588_v4 = vadd.f32 %v13456_v48, %v16693_v44  ;;  %v6005_v27 = vld [vmem:[#allocation3 + $0xc8] sm:$0x1]  ;;  %v2579_v14 = vpop.f32.mrb[85].mxu0 }
 0x307   :  { %7764 = vmatmul.mubr.bf16.gmra.mrb[184].mxu0 %v14248_v56  ;;  %v6866_v47 = vor.u32 %v6865_v46, %v6862_v29  ;;  %v6871_v7 = vrot.slane %v6869_v2, 5  ;;  %v6875_v22 = vrot.slane %v6873_v37, 4  ;;  %v6881_v12 = vrot.slane %v6879_v57, 5  ;;  %v13457_v52 = vpop.f32.mrb[86].mxu0  ;;  %v6667_v29 = vld [vmem:[#allocation3 + $0x60] sm:$0xf] }
 0x308   :  { %v6322_v0 = vshrl.u32 %v5893_v58, 16  ;;  %v8954_v49 = vsel %vm15470_vm14, %v12201_v17, %v8953_v18  ;;  %v8955_v41 = vrot.slane %v8953_v18, 4  ;;  %v17084_v56 = vadd.f32 %v16718_v33, %v2588_v4  ;;  %v14253_v2 = vld [vmem:[#allocation3 + $0x54] sm:$0xff]   ;;  %v2582_v48 = vpop.f32.mrb[87].mxu0 }
 0x309   :  { %v6867_v55 = vrot.slane %v6866_v47, 4  ;;  %v6876_v11 = vor.u32 %v6875_v22, %v6871_v7  ;;  %v5952_v44 = vsel %vm14831_vm5, 0, %v5951_v42  ;;  %v6006_v54 = vsel %vm14836_vm6, 0, %v6005_v27  ;;  %v14257_v42 = vld [vmem:[#allocation19 + $0x120] sm:$0xff]  }
 0x30a   :  { %18296 = vst [vmem:[#allocation43_spill] sm:$0xff] %v17084_v56  ;;  %v6324_v13 = vrot.slane %v6322_v0, 7  ;;  %v8957_v8 = vsel %vm15470_vm14, %v8955_v41, %v8956_v53  ;;  %5953 = vst [vmem:[#allocation3 + $0xc0] sm:$0x1] %v5952_v44  ;;  %v6325_v33 = vshll.u32 %v5893_v58, 16  ;;  %v6330_v1 = vshrl.u32 %v5894_v31, 16  ;;  %13154 = vmatprep.subr.bf16.mxu0 %v14257_v42 }
 0x30b   :  { %v6872_v23 = vsel %vm14914_vm11, %v6867_v55, %v6871_v7  ;;  %6007 = vst [vmem:[#allocation3 + $0xc8] sm:$0x1] %v6006_v54  ;;  %v6877_v46 = vrot.slane %v6876_v11, 4  ;;  %v12217_v37 = vcombine.low %v8954_v49, %v8957_v8  ;;  %v6333_v17 = vshll.u32 %v5894_v31, 16  ;;  %v18297_v7 = vld [vmem:[#allocation75_spill] sm:$0xff]  ;;  %v18298_v0 = vld [vmem:[#allocation72_spill] sm:$0xff] }
 0x30c   :  { %v6328_v57 = vrot.slane %v6324_v13, 4  ;;  %v6327_v47 = vor.u32 %v6325_v33, %v6324_v13  ;;  %v6332_v18 = vrot.slane %v6330_v1, 7  ;;  %v2580_v4 = vadd.f32 %v16652_v59, %v2579_v14  ;;  %v6669_v53 = vld [vmem:[#allocation3 + $0x68] sm:$0x1]  ;;  %v14258_v59 = vld [vmem:[#allocation19 + $0xe0] sm:$0xff]   ;;  %v18302_v8 = vld [vmem:[#allocation74_spill] sm:$0xff] }
 0x30d   :  { %v2591_v22 = vadd.f32 %v13457_v52, %v18297_v7  ;;  %v6882_v58 = vsel %vm14914_vm11, %v6877_v46, %v6881_v12  ;;  %13654 = vmatprep.mubr.bf16.mxu1 %v12217_v37  ;;  %v2583_v55 = vadd.f32 %v18298_v0, %v2582_v48  ;;  %v6884_v41 = vshrl.u32 %v6667_v29, 16  ;;  %v18299_v44 = vld [vmem:[#allocation73_spill] sm:$0xff]  ;;  %v18300_v13 = vld [vmem:[#allocation76_spill] sm:$0xff]  ;;  %v9848_v52 = vld [vmem:[#allocation3 + $0x18] sm:$0xf]  ;;  %13155 = vmatpush3.bf16.msra.mxu0 %v14258_v59 }
 0x30e   :  { %v6887_v49 = vshll.u32 %v6667_v29, 16  ;;  %v12090_v27 = vcombine.low %v6872_v23, %v6882_v58  ;;  %v6335_v31 = vor.u32 %v6333_v17, %v6332_v18  ;;  %v6337_v11 = vrot.slane %v6332_v18, 4  ;;  %v9849_v48 = vld [vmem:[#allocation3 + $0x1c] sm:$0xf]  ;;  %v9850_v42 = vld [vmem:[#allocation3 + $0x20] sm:$0x1] }
 0x30f   :  { %v17100_v54 = vadd.f32 %v18299_v44, %v2580_v4  ;;  %v17103_v14 = vadd.f32 %v18300_v13, %v2591_v22  ;;  %v17106_v33 = vadd.f32 %v18302_v8, %v2583_v55  ;;  %v6886_v12 = vrot.slane %v6884_v41, 4  ;;  %v17110_v18 = vld [vmem:[#allocation19 + $0x200] sm:$0xff]  }
 0x310   :  { %v6889_v1 = vrot.slane %v6887_v49, 5  ;;  %7771 = vmatprep.mubr.bf16.mxu0 %v12090_v27  ;;  %v6336_v23 = vsel %vm14822_vm2, %v6328_v57, %v6335_v31  ;;  %v6893_v29 = vshll.u32 %v6668_v32, 16  ;;  %v6897_v37 = vshrl.u32 %v6668_v32, 16  ;;  %13658 = vmatprep.subr.bf16.mxu1 %v17110_v18  ;;  %v13460_v27 = vpop.f32.mrb[88].mxu0 }
 0x311   :  { %18301 = vst [vmem:[#allocation38_spill] sm:$0xff] %v17103_v14  ;;  %v6903_v17 = vshll.u32 %v6669_v53, 16  ;;  %7772 = vmatmul.mubr.bf16.gmra.mrb[188].mxu0 %v14253_v2  ;;  %v6492_v4 = vld [vmem:[#allocation3 + $0xc0] sm:$0xf]  ;;  %6495 = vst [vmem:[#allocation3 + $0xc4] sm:$0xf] %v6336_v23 }
 0x312   :  { %v6496_v7 = vld [vmem:[#allocation3 + $0xc8] sm:$0x1]  ;;  %v6890_v22 = vor.u32 %v6889_v1, %v6886_v12  ;;  %v6493_v0 = vsel %vm14865_vm8, %v6327_v47, %v6492_v4  ;;  %v6895_v57 = vrot.slane %v6893_v29, 5  ;;  %v6899_v41 = vrot.slane %v6897_v37, 4  ;;  %v2595_v8 = vpop.f32.mrb[89].mxu0 }
 0x313   :  { %v6497_v55 = vsel %vm14831_vm5, %v6337_v11, %v6496_v7  ;;  %6494 = vst [vmem:[#allocation3 + $0xc0] sm:$0xf] %v6493_v0  ;;  %v6905_v53 = vrot.slane %v6903_v17, 5  ;;  %v9897_v2 = vshrl.u32 %v9848_v52, 16  ;;  %v9900_v49 = vshll.u32 %v9848_v52, 16  ;;  %v18305_v1 = vld [vmem:[#allocation81_spill] sm:$0xff] }
 0x314   :  { %6498 = vst [vmem:[#allocation3 + $0xc8] sm:$0x1] %v6497_v55  ;;  %v6891_v32 = vrot.slane %v6890_v22, 4  ;;  %v6900_v31 = vor.u32 %v6899_v41, %v6895_v57  ;;  %v9906_v44 = vshll.u32 %v9849_v48, 16  ;;  %v9910_v59 = vshrl.u32 %v9849_v48, 16  ;;  %v13461_v23 = vpop.f32.mrb[90].mxu0 }
 0x315   :  { %v9916_v13 = vshll.u32 %v9850_v42, 16  ;;  %v9899_v11 = vrot.slane %v9897_v2, 4  ;;  %v9902_v12 = vrot.slane %v9900_v49, 5  ;;  %v2604_v46 = vadd.f32 %v13460_v27, %v18305_v1  ;;  %v2598_v7 = vpop.f32.mrb[91].mxu0  ;;  %v14256_v52 = vld [vmem:[#allocation3 + $0x60] sm:$0xff]  }
 0x316   :  { %v6896_v47 = vsel %vm14914_vm11, %v6891_v32, %v6895_v57  ;;  %v6901_v29 = vrot.slane %v6900_v31, 4  ;;  %v9908_v37 = vrot.slane %v9906_v44, 5  ;;  %v9912_v4 = vrot.slane %v9910_v59, 4  ;;  %v18306_v0 = vld [vmem:[#allocation41_spill] sm:$0xff]  ;;  %v18309_v41 = vld [vmem:[#allocation40_spill] sm:$0xff]  ;;  %v18310_v31 = vld [vmem:[#allocation78_spill] sm:$0xff] }
 0x317   :  { %v9918_v17 = vrot.slane %v9916_v13, 5  ;;  %v9903_v22 = vor.u32 %v9902_v12, %v9899_v11  ;;  %v17121_v55 = vadd.f32 %v18306_v0, %v2604_v46  ;;  %v18308_v48 = vld [vmem:[#allocation77_spill] sm:$0xff]  ;;  %v2607_v58 = vadd.f32 %v13461_v23, %v18309_v41  ;;  %v6670_v57 = vld [vmem:[#allocation3 + $0x6c] sm:$0xf]  ;;  %v6671_v32 = vld [vmem:[#allocation3 + $0x70] sm:$0xf] }
 0x318   :  { %v2596_v42 = vadd.f32 %v18308_v48, %v2595_v8  ;;  %v8803_v2 = vld [vmem:[#allocation3 + $0xc4] sm:$0xf]  ;;  %v6906_v49 = vsel %vm14914_vm11, %v6901_v29, %v6905_v53  ;;  %v9913_v27 = vor.u32 %v9912_v4, %v9908_v37  ;;  %v2599_v44 = vadd.f32 %v18310_v31, %v2598_v7  ;;  %v13464_v13 = vpop.f32.mrb[92].mxu0  ;;  %v18311_v46 = vld [vmem:[#allocation79_spill] sm:$0xff] }
 0x319   :  { %18307 = vst [vmem:[#allocation39_spill] sm:$0xff] %v17121_v55  ;;  %v6908_v59 = vshrl.u32 %v6670_v57, 16  ;;  %v8960_v1 = vrot.slane %v8803_v2, 5  ;;  %v12091_v11 = vcombine.low %v6896_v47, %v6906_v49  ;;  %v9904_v12 = vrot.slane %v9903_v22, 4  ;;  %v6672_v8 = vld [vmem:[#allocation3 + $0x74] sm:$0x1] }
 0x31a   :  { %v17129_v0 = vadd.f32 %v18311_v46, %v2596_v42  ;;  %v8802_v48 = vld [vmem:[#allocation3 + $0xc0] sm:$0xe]  ;;  %v9914_v41 = vrot.slane %v9913_v27, 4  ;;  %v18313_v55 = vld [vmem:[#allocation82_spill] sm:$0xff]  ;;  %v17135_v53 = vadd.f32 %v18315_v34, %v2599_v44  ;;  %v9851_v4 = vld [vmem:[#allocation3 + $0x24] sm:$0xf] }
 0x31b   :  { %v8804_v23 = vld [vmem:[#allocation3 + $0xc8] sm:$0x1]  ;;  %v17132_v35 = vadd.f32 %v18313_v55, %v2607_v58  ;;  %v6910_v29 = vrot.slane %v6908_v59, 4  ;;  %v12202_v7 = vrot.slane %v8802_v48, 9  ;;  %v8962_v31 = vrot.slane %v8960_v1, 4  ;;  %7779 = vmatprep.mubr.bf16.mxu0 %v12091_v11  ;;  %v2611_v42 = vpop.f32.mrb[93].mxu0 }
 0x31c   :  { %18312 = vst [vmem:[#allocation48_spill] sm:$0xff] %v17129_v0  ;;  %18316 = vst [vmem:[#allocation44_spill] sm:$0xff] %v17135_v53  ;;  %v8963_v2 = vrot.slane %v8804_v23, 5  ;;  %v9909_v47 = vsel %vm14914_vm11, %v9904_v12, %v9908_v37  ;;  %v9852_v22 = vld [vmem:[#allocation3 + $0x28] sm:$0xf]  ;;  %7780 = vmatmul.mubr.bf16.gmra.mrb[192].mxu0 %v14256_v52  ;;  %v9919_v49 = vsel %vm14914_vm11, %v9914_v41, %v9918_v17  ;;  %v6911_v58 = vshll.u32 %v6670_v57, 16 }
 0x31d   :  { %18314 = vst [vmem:[#allocation49_spill] sm:$0xff] %v17132_v35  ;;  %v6917_v55 = vshll.u32 %v6671_v32, 16  ;;  %v6921_v27 = vshrl.u32 %v6671_v32, 16  ;;  %v9853_v34 = vld [vmem:[#allocation3 + $0x2c] sm:$0x1]  ;;  %v13465_v44 = vpop.f32.mrb[94].mxu0  ;;  %v8961_v59 = vsel %vm15470_vm14, %v12202_v7, %v8960_v1  ;;  %v12259_v46 = vcombine.low %v9909_v47, %v9919_v49 }
 0x31e   :  { %v8964_v11 = vsel %vm15470_vm14, %v8962_v31, %v8963_v2  ;;  %v6927_v48 = vshll.u32 %v6672_v8, 16  ;;  %v2614_v37 = vpop.f32.mrb[95].mxu0  ;;  %v6913_v23 = vrot.slane %v6911_v58, 5  ;;  %v9921_v17 = vshrl.u32 %v9851_v4, 16  ;;  %v6673_v2 = vld [vmem:[#allocation3 + $0x78] sm:$0xf] }
 0x31f   :  { %v12218_v12 = vcombine.low %v8961_v59, %v8964_v11  ;;  %v6919_v52 = vrot.slane %v6917_v55, 5  ;;  %v6923_v35 = vrot.slane %v6921_v27, 4  ;;  %v9924_v57 = vshll.u32 %v9851_v4, 16  ;;  %v14264_v47 = vld [vmem:[#allocation19 + $0x128] sm:$0xff]   ;;  %v14260_v49 = vld [vmem:[#allocation3 + $0x18] sm:$0xff]   ;;  %v14261_v27 = vld [vmem:[#allocation3 + $0x6c] sm:$0xff]  }
 0x320   :  { %v6929_v53 = vrot.slane %v6927_v48, 5  ;;  %v9930_v41 = vshll.u32 %v9852_v22, 16  ;;  %v6914_v32 = vor.u32 %v6913_v23, %v6910_v29  ;;  %v9934_v14 = vshrl.u32 %v9852_v22, 16  ;;  %v6674_v11 = vld [vmem:[#allocation3 + $0x7c] sm:$0xf]  ;;  %13156 = vmatprep.subr.bf16.mxu0 %v14264_v47  ;;  %v12890_v23 = vpop.f32.mrb[96].mxu0 }
 0x321   :  { %13655 = vmatmul.mubr.bf16.gmra.mrb[92].mxu1 %v12218_v12  ;;  %v6924_v0 = vor.u32 %v6923_v35, %v6919_v52  ;;  %v9940_v56 = vshll.u32 %v9853_v34, 16  ;;  %v9923_v1 = vrot.slane %v9921_v17, 4  ;;  %v9926_v7 = vrot.slane %v9924_v57, 5  ;;  %v18317_v34 = vld [vmem:[#allocation36_spill] sm:$0xff]  ;;  %v9854_v12 = vld [vmem:[#allocation3 + $0x30] sm:$0xf] }
 0x322   :  { %10920 = vmatprep.mubr.bf16.mxu1 %v12259_v46  ;;  %v9932_v31 = vrot.slane %v9930_v41, 5  ;;  %v2620_v8 = vadd.f32 %v13464_v13, %v16926_v10  ;;  %v6915_v58 = vrot.slane %v6914_v32, 4  ;;  %v9936_v59 = vrot.slane %v9934_v14, 4  ;;  %v14265_v46 = vld [vmem:[#allocation19 + $0xe8] sm:$0xff]  }
 0x323   :  { %v6925_v55 = vrot.slane %v6924_v0, 4  ;;  %v9942_v4 = vrot.slane %v9940_v56, 5  ;;  %v9927_v48 = vor.u32 %v9926_v7, %v9923_v1  ;;  %v2612_v29 = vadd.f32 %v16861_v61, %v2611_v42  ;;  %v6675_v56 = vld [vmem:[#allocation3 + $0x80] sm:$0x1]  ;;  %v18318_v57 = vld [vmem:[#allocation37_spill] sm:$0xff]  ;;  %13157 = vmatpush3.bf16.msra.mxu0 %v14265_v46 }
 0x324   :  { %v17147_v35 = vadd.f32 %v16932_v40, %v2620_v8  ;;  %v2623_v22 = vadd.f32 %v13465_v44, %v16930_v26  ;;  %v6920_v10 = vsel %vm14914_vm11, %v6915_v58, %v6919_v52  ;;  %v9937_v0 = vor.u32 %v9936_v59, %v9932_v31  ;;  %v9855_v42 = vld [vmem:[#allocation3 + $0x34] sm:$0xf]  ;;  %v18319_v52 = vld [vmem:[#allocation42_spill] sm:$0xff]  ;;  %v14266_v1 = vld [vmem:[#allocation19 + $0x208] sm:$0xff]  }
 0x325   :  { %v6930_v13 = vsel %vm14914_vm11, %v6925_v55, %v6929_v53  ;;  %v2615_v14 = vadd.f32 %v18317_v34, %v2614_v37  ;;  %v9928_v17 = vrot.slane %v9927_v48, 4  ;;  %v17157_v61 = vadd.f32 %v18318_v57, %v2612_v29  ;;  %v9856_v37 = vld [vmem:[#allocation3 + $0x38] sm:$0x1]  ;;  %v12891_v55 = vpop.f32.mrb[97].mxu0  ;;  %v14262_v34 = vld [vmem:[#allocation3 + $0x24] sm:$0xff]  }
 0x326   :  { %v12092_v40 = vcombine.low %v6920_v10, %v6930_v13  ;;  %v17160_v26 = vadd.f32 %v16938_v6, %v2623_v22  ;;  %v9938_v44 = vrot.slane %v9937_v0, 4  ;;  %v6932_v53 = vshrl.u32 %v6673_v2, 16  ;;  %v6677_v57 = vld [vmem:[#allocation3 + $0x88] sm:$0xf] }
 0x327   :  { %v17163_v41 = vadd.f32 %v18319_v52, %v2615_v14  ;;  %v6935_v32 = vshll.u32 %v6673_v2, 16  ;;  %v9933_v7 = vsel %vm14914_vm11, %v9928_v17, %v9932_v31  ;;  %v6941_v8 = vshll.u32 %v6674_v11, 16  ;;  %v12893_v2 = vpop.f32.mrb[98].mxu0 }
 0x328   :  { %7787 = vmatprep.mubr.bf16.mxu0 %v12092_v40  ;;  %v6945_v47 = vshrl.u32 %v6674_v11, 16  ;;  %v6951_v58 = vshll.u32 %v6675_v56, 16  ;;  %v9943_v6 = vsel %vm14914_vm11, %v9938_v44, %v9942_v4  ;;  %v6934_v59 = vrot.slane %v6932_v53, 4  ;;  %v12894_v31 = vpop.f32.mrb[99].mxu0 }
 0x329   :  { %10921 = vmatmul.mubr.bf16.vlgmr.msra.gmra.mrb[96].mxu1 %v14260_v49  ;;  %7788 = vmatmul.mubr.bf16.gmra.mrb[196].mxu0 %v14261_v27  ;;  %v6937_v48 = vrot.slane %v6935_v32, 5  ;;  %v9945_v29 = vshrl.u32 %v9854_v12, 16  ;;  %v12260_v22 = vcombine.low %v9933_v7, %v9943_v6  ;;  %v6943_v10 = vrot.slane %v6941_v8, 5  ;;  %v6676_v27 = vld [vmem:[#allocation3 + $0x84] sm:$0xf]  ;;  %v12896_v32 = vpop.f32.mrb[100].mxu0 }
 0x32a   :  { %13659 = vmatpush3.bf16.msra.mxu1 %v17110_v18  ;;  %v6947_v13 = vrot.slane %v6945_v47, 4  ;;  %v6953_v0 = vrot.slane %v6951_v58, 5  ;;  %v9948_v56 = vshll.u32 %v9854_v12, 16  ;;  %v9954_v49 = vshll.u32 %v9855_v42, 16  ;;  %v14263_v8 = vld [vmem:[#allocation3 + $0x78] sm:$0xff]  }
 0x32b   :  { %v6938_v11 = vor.u32 %v6937_v48, %v6934_v59  ;;  %v9947_v14 = vrot.slane %v9945_v29, 4  ;;  %13660 = vmatprep.subr.bf16.mxu1 %v14266_v1  ;;  %10928 = vmatprep.mubr.bf16.mxu1 %v12260_v22  ;;  %v9958_v46 = vshrl.u32 %v9855_v42, 16  ;;  %v9964_v40 = vshll.u32 %v9856_v37, 16  ;;  %v6678_v37 = vld [vmem:[#allocation3 + $0x8c] sm:$0x1]  ;;  %v12897_v48 = vpop.f32.mrb[101].mxu0 }
 0x32c   :  { %v6948_v4 = vor.u32 %v6947_v13, %v6943_v10  ;;  %v12892_v17 = vadd.f32 %v12891_v55, %v12890_v23  ;;  %v9950_v18 = vrot.slane %v9948_v56, 5  ;;  %v9956_v52 = vrot.slane %v9954_v49, 5  ;;  %v9857_v59 = vld [vmem:[#allocation3 + $0x3c] sm:$0xf] }
 0x32d   :  { %v6939_v44 = vrot.slane %v6938_v11, 4  ;;  %v12895_v53 = vadd.f32 %v12894_v31, %v12893_v2  ;;  %v9960_v47 = vrot.slane %v9958_v46, 4  ;;  %v9966_v58 = vrot.slane %v9964_v40, 5 }
 0x32e   :  { %v6949_v7 = vrot.slane %v6948_v4, 4  ;;  %13661 = vmatpush3.bf16.msra.mxu1 %v14266_v1  ;;  %v17171_v12 = vadd.f32 %v16956_v20, %v12892_v17  ;;  %v9951_v42 = vor.u32 %v9950_v18, %v9947_v14  ;;  %v6956_v55 = vshrl.u32 %v6676_v27, 16  ;;  %v12899_v14 = vpop.f32.mrb[102].mxu0  ;;  %v14271_v18 = vld [vmem:[#allocation19 + $0x130] sm:$0xff]  }
 0x32f   :  { %v6944_v6 = vsel %vm14914_vm11, %v6939_v44, %v6943_v10  ;;  %v17176_v23 = vadd.f32 %v16966_v50, %v12895_v53  ;;  %v9961_v2 = vor.u32 %v9960_v47, %v9956_v52  ;;  %v6959_v22 = vshll.u32 %v6676_v27, 16  ;;  %v9858_v10 = vld [vmem:[#allocation3 + $0x40] sm:$0xf]  ;;  %v12900_v46 = vpop.f32.mrb[103].mxu0  ;;  %v9859_v27 = vld [vmem:[#allocation3 + $0x44] sm:$0x1]  ;;  %13158 = vmatprep.subr.bf16.mxu0 %v14271_v18 }
 0x330   :  { %v6954_v29 = vsel %vm14914_vm11, %v6949_v7, %v6953_v0  ;;  %v6965_v1 = vshll.u32 %v6677_v57, 16  ;;  %v9952_v13 = vrot.slane %v9951_v42, 4  ;;  %v6958_v31 = vrot.slane %v6956_v55, 4  ;;  %v14267_v0 = vld [vmem:[#allocation3 + $0x30] sm:$0xff]  }
 0x331   :  { %10929 = vmatmul.mubr.bf16.gmra.mrb[100].mxu1 %v14262_v34  ;;  %v12093_v20 = vcombine.low %v6944_v6, %v6954_v29  ;;  %v6969_v11 = vshrl.u32 %v6677_v57, 16  ;;  %v9962_v56 = vrot.slane %v9961_v2, 4  ;;  %v6961_v50 = vrot.slane %v6959_v22, 5  ;;  %v6679_v6 = vld [vmem:[#allocation3 + $0x90] sm:$0xf] }
 0x332   :  { %v6967_v49 = vrot.slane %v6965_v1, 5  ;;  %v6975_v4 = vshll.u32 %v6678_v37, 16  ;;  %v9957_v40 = vsel %vm14914_vm11, %v9952_v13, %v9956_v52  ;;  %v9969_v44 = vshrl.u32 %v9857_v59, 16 }
 0x333   :  { %7795 = vmatprep.mubr.bf16.mxu0 %v12093_v20  ;;  %v6971_v17 = vrot.slane %v6969_v11, 4  ;;  %v9972_v34 = vshll.u32 %v9857_v59, 16  ;;  %v9967_v57 = vsel %vm14914_vm11, %v9962_v56, %v9966_v58  ;;  %v6962_v53 = vor.u32 %v6961_v50, %v6958_v31  ;;  %v6680_v20 = vld [vmem:[#allocation3 + $0x94] sm:$0xf]  ;;  %v14272_v31 = vld [vmem:[#allocation19 + $0xf0] sm:$0xff]  }
 0x334   :  { %7796 = vmatmul.mubr.bf16.gmra.mrb[200].mxu0 %v14263_v8  ;;  %v6977_v7 = vrot.slane %v6975_v4, 5  ;;  %v9978_v47 = vshll.u32 %v9858_v10, 16  ;;  %v12261_v42 = vcombine.low %v9957_v40, %v9967_v57  ;;  %v9971_v55 = vrot.slane %v9969_v44, 4  ;;  %v14268_v8 = vld [vmem:[#allocation3 + $0x84] sm:$0xff]   ;;  %v6681_v40 = vld [vmem:[#allocation3 + $0x98] sm:$0x1] }
 0x335   :  { %v6972_v37 = vor.u32 %v6971_v17, %v6967_v49  ;;  %v9974_v29 = vrot.slane %v9972_v34, 5  ;;  %v6963_v52 = vrot.slane %v6962_v53, 4  ;;  %v9982_v22 = vshrl.u32 %v9858_v10, 16  ;;  %v14273_v44 = vld [vmem:[#allocation19 + $0x210] sm:$0xff]   ;;  %13159 = vmatpush3.bf16.msra.mxu0 %v14272_v31 }
 0x336   :  { %v9980_v2 = vrot.slane %v9978_v47, 5  ;;  %v9988_v1 = vshll.u32 %v9859_v27, 16  ;;  %10936 = vmatprep.mubr.bf16.mxu1 %v12261_v42  ;;  %v12898_v11 = vadd.f32 %v12897_v48, %v12896_v32  ;;  %v12901_v58 = vadd.f32 %v12900_v46, %v12899_v14  ;;  %v9860_v48 = vld [vmem:[#allocation3 + $0x48] sm:$0xf]  ;;  %v9861_v14 = vld [vmem:[#allocation3 + $0x4c] sm:$0xf]  ;;  %13662 = vmatprep.subr.bf16.mxu1 %v14273_v44 }
 0x337   :  { %v6973_v59 = vrot.slane %v6972_v37, 4  ;;  %v9975_v13 = vor.u32 %v9974_v29, %v9971_v55  ;;  %v6968_v56 = vsel %vm14914_vm11, %v6963_v52, %v6967_v49  ;;  %v9984_v50 = vrot.slane %v9982_v22, 4  ;;  %v12902_v49 = vpop.f32.mrb[104].mxu0  ;;  %13663 = vmatpush3.bf16.msra.mxu1 %v14273_v44 }
 0x338   :  { %v9990_v4 = vrot.slane %v9988_v1, 5  ;;  %v6980_v17 = vshrl.u32 %v6679_v6, 16  ;;  %v17189_v34 = vadd.f32 %v16942_v63, %v12898_v11  ;;  %v17192_v32 = vadd.f32 %v16963_v28, %v12901_v58  ;;  %v9862_v63 = vld [vmem:[#allocation3 + $0x50] sm:$0x1] }
 0x339   :  { %10937 = vmatmul.mubr.bf16.gmra.mrb[104].mxu1 %v14267_v0  ;;  %v6978_v10 = vsel %vm14914_vm11, %v6973_v59, %v6977_v7  ;;  %v9976_v27 = vrot.slane %v9975_v13, 4  ;;  %v9985_v18 = vor.u32 %v9984_v50, %v9980_v2  ;;  %v6983_v53 = vshll.u32 %v6679_v6, 16  ;;  %v12903_v6 = vpop.f32.mrb[105].mxu0 }
 0x33a   :  { %v12094_v46 = vcombine.low %v6968_v56, %v6978_v10  ;;  %v6982_v57 = vrot.slane %v6980_v17, 4  ;;  %v6989_v7 = vshll.u32 %v6680_v20, 16  ;;  %v6993_v47 = vshrl.u32 %v6680_v20, 16  ;;  %v12905_v31 = vpop.f32.mrb[106].mxu0  ;;  %v6682_v56 = vld [vmem:[#allocation3 + $0x9c] sm:$0xf] }
 0x33b   :  { %v9981_v0 = vsel %vm14914_vm11, %v9976_v27, %v9980_v2  ;;  %v6999_v42 = vshll.u32 %v6681_v40, 16  ;;  %v9986_v28 = vrot.slane %v9985_v18, 4  ;;  %v6985_v37 = vrot.slane %v6983_v53, 5  ;;  %v14269_v2 = vld [vmem:[#allocation3 + $0x3c] sm:$0xff]   ;;  %v12906_v10 = vpop.f32.mrb[107].mxu0 }
 0x33c   :  { %7803 = vmatprep.mubr.bf16.mxu0 %v12094_v46  ;;  %v9993_v55 = vshrl.u32 %v9860_v48, 16  ;;  %v9996_v29 = vshll.u32 %v9860_v48, 16  ;;  %v6991_v52 = vrot.slane %v6989_v7, 5  ;;  %v6995_v22 = vrot.slane %v6993_v47, 4  ;;  %v6683_v18 = vld [vmem:[#allocation3 + $0xa0] sm:$0xf] }
 0x33d   :  { %7804 = vmatmul.mubr.bf16.gmra.mrb[204].mxu0 %v14268_v8  ;;  %v7001_v1 = vrot.slane %v6999_v42, 5  ;;  %v10002_v59 = vshll.u32 %v9861_v14, 16  ;;  %v9991_v13 = vsel %vm14914_vm11, %v9986_v28, %v9990_v4  ;;  %v6986_v11 = vor.u32 %v6985_v37, %v6982_v57  ;;  %v14270_v7 = vld [vmem:[#allocation3 + $0x90] sm:$0xff]   ;;  %v12908_v42 = vpop.f32.mrb[108].mxu0 }
 0x33e   :  { %v9995_v20 = vrot.slane %v9993_v55, 4  ;;  %v9998_v58 = vrot.slane %v9996_v29, 5  ;;  %v12262_v50 = vcombine.low %v9981_v0, %v9991_v13  ;;  %v6996_v40 = vor.u32 %v6995_v22, %v6991_v52  ;;  %v6684_v55 = vld [vmem:[#allocation3 + $0xa4] sm:$0x1]  ;;  %v12909_v13 = vpop.f32.mrb[109].mxu0 }
 0x33f   :  { %v10004_v17 = vrot.slane %v10002_v59, 5  ;;  %v10006_v44 = vshrl.u32 %v9861_v14, 16  ;;  %v6987_v8 = vrot.slane %v6986_v11, 4  ;;  %v10012_v48 = vshll.u32 %v9862_v63, 16  ;;  %v9863_v63 = vld [vmem:[#allocation3 + $0x54] sm:$0xf] }
 0x340   :  { %v9999_v27 = vor.u32 %v9998_v58, %v9995_v20  ;;  %v12904_v46 = vadd.f32 %v12903_v6, %v12902_v49  ;;  %10944 = vmatprep.mubr.bf16.mxu1 %v12262_v50  ;;  %v6997_v53 = vrot.slane %v6996_v40, 4  ;;  %v12907_v47 = vadd.f32 %v12906_v10, %v12905_v31  ;;  %v9864_v6 = vld [vmem:[#allocation3 + $0x58] sm:$0xf]  ;;  %v14278_v58 = vld [vmem:[#allocation19 + $0x138] sm:$0xff]   ;;  %v14274_v50 = vld [vmem:[#allocation3 + $0x48] sm:$0xff]  }
 0x341   :  { %v10008_v4 = vrot.slane %v10006_v44, 4  ;;  %v7004_v57 = vshrl.u32 %v6682_v56, 16  ;;  %10945 = vmatmul.mubr.bf16.gmra.mrb[108].mxu1 %v14269_v2  ;;  %v6992_v0 = vsel %vm14914_vm11, %v6987_v8, %v6991_v52  ;;  %v10014_v37 = vrot.slane %v10012_v48, 5  ;;  %v14279_v8 = vld [vmem:[#allocation19 + $0xf8] sm:$0xff]   ;;  %v9865_v48 = vld [vmem:[#allocation3 + $0x5c] sm:$0x1]  ;;  %13160 = vmatprep.subr.bf16.mxu0 %v14278_v58 }
 0x342   :  { %v10000_v28 = vrot.slane %v9999_v27, 4  ;;  %v17201_v14 = vadd.f32 %v16988_v5, %v12904_v46  ;;  %v7002_v49 = vsel %vm14914_vm11, %v6997_v53, %v7001_v1  ;;  %v17206_v22 = vadd.f32 %v16994_v39, %v12907_v47  ;;  %v12911_v5 = vpop.f32.mrb[110].mxu0  ;;  %13161 = vmatpush3.bf16.msra.mxu0 %v14279_v8  ;;  %v6687_v58 = vld [vmem:[#allocation3 + $0xb0] sm:$0x1] }
 0x343   :  { %v10009_v29 = vor.u32 %v10008_v4, %v10004_v17  ;;  %v7006_v59 = vrot.slane %v7004_v57, 4  ;;  %v12095_v2 = vcombine.low %v6992_v0, %v7002_v49  ;;  %v7007_v11 = vshll.u32 %v6682_v56, 16  ;;  %v12912_v10 = vpop.f32.mrb[111].mxu0  ;;  %v6685_v57 = vld [vmem:[#allocation3 + $0xa8] sm:$0xf] }
 0x344   :  { %v10005_v52 = vsel %vm14914_vm11, %v10000_v28, %v10004_v17  ;;  %v7013_v20 = vshll.u32 %v6683_v18, 16  ;;  %v7017_v40 = vshrl.u32 %v6683_v18, 16  ;;  %v7023_v44 = vshll.u32 %v6684_v55, 16  ;;  %v14280_v18 = vld [vmem:[#allocation19 + $0x218] sm:$0xff]   ;;  %v12914_v8 = vpop.f32.mrb[112].mxu0 }
 0x345   :  { %v10010_v31 = vrot.slane %v10009_v29, 4  ;;  %v10017_v1 = vshrl.u32 %v9863_v63, 16  ;;  %7811 = vmatprep.mubr.bf16.mxu0 %v12095_v2  ;;  %v7009_v39 = vrot.slane %v7007_v11, 5  ;;  %v10020_v46 = vshll.u32 %v9863_v63, 16  ;;  %v6686_v29 = vld [vmem:[#allocation3 + $0xac] sm:$0xf]  ;;  %13664 = vmatprep.subr.bf16.mxu1 %v14280_v18 }
 0x346   :  { %v7015_v27 = vrot.slane %v7013_v20, 5  ;;  %v10026_v53 = vshll.u32 %v9864_v6, 16  ;;  %7812 = vmatmul.mubr.bf16.gmra.mrb[208].mxu0 %v14270_v7  ;;  %v7019_v17 = vrot.slane %v7017_v40, 4  ;;  %v7025_v4 = vrot.slane %v7023_v44, 5  ;;  %13665 = vmatpush3.bf16.msra.mxu1 %v14280_v18  ;;  %v9868_v18 = vld [vmem:[#allocation3 + $0x68] sm:$0x1] }
 0x347   :  { %v10015_v56 = vsel %vm14914_vm11, %v10010_v31, %v10014_v37  ;;  %v10019_v47 = vrot.slane %v10017_v1, 4  ;;  %v7010_v28 = vor.u32 %v7009_v39, %v7006_v59  ;;  %v10022_v55 = vrot.slane %v10020_v46, 5 }
 0x348   :  { %v12263_v0 = vcombine.low %v10005_v52, %v10015_v56  ;;  %v10028_v49 = vrot.slane %v10026_v53, 5  ;;  %v7020_v2 = vor.u32 %v7019_v17, %v7015_v27  ;;  %v10030_v11 = vshrl.u32 %v9864_v6, 16  ;;  %v9867_v56 = vld [vmem:[#allocation3 + $0x64] sm:$0xf] }
 0x349   :  { %v10036_v63 = vshll.u32 %v9865_v48, 16  ;;  %v12910_v20 = vadd.f32 %v12909_v13, %v12908_v42  ;;  %v7011_v7 = vrot.slane %v7010_v28, 4  ;;  %v10023_v37 = vor.u32 %v10022_v55, %v10019_v47  ;;  %v14275_v42 = vld [vmem:[#allocation3 + $0x9c] sm:$0xff]  }
 0x34a   :  { %10952 = vmatprep.mubr.bf16.mxu1 %v12263_v0  ;;  %v12913_v31 = vadd.f32 %v12912_v10, %v12911_v5  ;;  %v7028_v40 = vshrl.u32 %v6685_v57, 16  ;;  %v7021_v44 = vrot.slane %v7020_v2, 4  ;;  %v10032_v52 = vrot.slane %v10030_v11, 4  ;;  %v9866_v5 = vld [vmem:[#allocation3 + $0x60] sm:$0xf] }
 0x34b   :  { %10953 = vmatmul.mubr.bf16.gmra.mrb[112].mxu1 %v14274_v50  ;;  %v10038_v59 = vrot.slane %v10036_v63, 5  ;;  %v17213_v1 = vadd.f32 %v16974_v25, %v12910_v20  ;;  %v7016_v6 = vsel %vm14914_vm11, %v7011_v7, %v7015_v27  ;;  %v10024_v13 = vrot.slane %v10023_v37, 4  ;;  %v12915_v20 = vpop.f32.mrb[113].mxu0  ;;  %v14276_v7 = vld [vmem:[#allocation3 + $0x54] sm:$0xff]  }
 0x34c   :  { %v17218_v39 = vadd.f32 %v16991_v60, %v12913_v31  ;;  %v7030_v48 = vrot.slane %v7028_v40, 4  ;;  %v7026_v50 = vsel %vm14914_vm11, %v7021_v44, %v7025_v4  ;;  %v10033_v10 = vor.u32 %v10032_v52, %v10028_v49  ;;  %v6688_v31 = vld [vmem:[#allocation3 + $0xb4] sm:$0xf] }
 0x34d   :  { %v7031_v46 = vshll.u32 %v6685_v57, 16  ;;  %v7037_v53 = vshll.u32 %v6686_v29, 16  ;;  %v12096_v25 = vcombine.low %v7016_v6, %v7026_v50  ;;  %v10029_v17 = vsel %vm14914_vm11, %v10024_v13, %v10028_v49 }
 0x34e   :  { %v7041_v47 = vshrl.u32 %v6686_v29, 16  ;;  %v7047_v27 = vshll.u32 %v6687_v58, 16  ;;  %v10034_v0 = vrot.slane %v10033_v10, 4  ;;  %v10041_v55 = vshrl.u32 %v9866_v5, 16  ;;  %v12917_v58 = vpop.f32.mrb[114].mxu0 }
 0x34f   :  { %v7033_v28 = vrot.slane %v7031_v46, 5  ;;  %v7039_v60 = vrot.slane %v7037_v53, 5  ;;  %7819 = vmatprep.mubr.bf16.mxu0 %v12096_v25  ;;  %v10044_v63 = vshll.u32 %v9866_v5, 16  ;;  %v10050_v4 = vshll.u32 %v9867_v56, 16  ;;  %v12918_v13 = vpop.f32.mrb[115].mxu0 }
 0x350   :  { %v7043_v2 = vrot.slane %v7041_v47, 4  ;;  %v7049_v11 = vrot.slane %v7047_v27, 5  ;;  %7820 = vmatmul.mubr.bf16.gmra.mrb[212].mxu0 %v14275_v42  ;;  %v10039_v57 = vsel %vm14914_vm11, %v10034_v0, %v10038_v59  ;;  %v10043_v49 = vrot.slane %v10041_v55, 4  ;;  %v6689_v53 = vld [vmem:[#allocation3 + $0xb8] sm:$0xf]  ;;  %v12920_v42 = vpop.f32.mrb[116].mxu0 }
 0x351   :  { %v7034_v37 = vor.u32 %v7033_v28, %v7030_v48  ;;  %v10054_v29 = vshrl.u32 %v9867_v56, 16  ;;  %v12264_v40 = vcombine.low %v10029_v17, %v10039_v57  ;;  %v10046_v52 = vrot.slane %v10044_v63, 5  ;;  %v6690_v28 = vld [vmem:[#allocation3 + $0xbc] sm:$0x1]  ;;  %v9869_v55 = vld [vmem:[#allocation3 + $0x6c] sm:$0xf] }
 0x352   :  { %v7044_v44 = vor.u32 %v7043_v2, %v7039_v60  ;;  %v10052_v6 = vrot.slane %v10050_v4, 5  ;;  %v10060_v5 = vshll.u32 %v9868_v18, 16  ;;  %v12916_v46 = vadd.f32 %v12915_v20, %v12914_v8  ;;  %v12921_v18 = vpop.f32.mrb[117].mxu0  ;;  %v14277_v2 = vld [vmem:[#allocation3 + $0xa8] sm:$0xff]  }
 0x353   :  { %v7035_v50 = vrot.slane %v7034_v37, 4  ;;  %v10056_v10 = vrot.slane %v10054_v29, 4  ;;  %10960 = vmatprep.mubr.bf16.mxu1 %v12264_v40  ;;  %v10047_v59 = vor.u32 %v10046_v52, %v10043_v49  ;;  %v12919_v47 = vadd.f32 %v12918_v13, %v12917_v58  ;;  %v12923_v49 = vpop.f32.mrb[118].mxu0  ;;  %v9870_v40 = vld [vmem:[#allocation3 + $0x70] sm:$0xf] }
 0x354   :  { %v7045_v25 = vrot.slane %v7044_v44, 4  ;;  %v7052_v48 = vshrl.u32 %v6688_v31, 16  ;;  %10961 = vmatmul.mubr.bf16.gmra.mrb[116].mxu1 %v14276_v7  ;;  %v10062_v27 = vrot.slane %v10060_v5, 5  ;;  %v17229_v0 = vadd.f32 %v17013_v3, %v12916_v46  ;;  %v12924_v52 = vpop.f32.mrb[119].mxu0 }
 0x355   :  { %v7040_v56 = vsel %vm14914_vm11, %v7035_v50, %v7039_v60  ;;  %v10057_v17 = vor.u32 %v10056_v10, %v10052_v6  ;;  %v10048_v63 = vrot.slane %v10047_v59, 4  ;;  %v17234_v4 = vadd.f32 %v17022_v16, %v12919_v47  ;;  %v14281_v16 = vld [vmem:[#allocation3 + $0x60] sm:$0xff]   ;;  %v9871_v10 = vld [vmem:[#allocation3 + $0x74] sm:$0x1] }
 0x356   :  { %v7050_v8 = vsel %vm14914_vm11, %v7045_v25, %v7049_v11  ;;  %v7054_v20 = vrot.slane %v7052_v48, 4  ;;  %v7055_v60 = vshll.u32 %v6688_v31, 16  ;;  %v7061_v37 = vshll.u32 %v6689_v53, 16 }
 0x357   :  { %v12097_v57 = vcombine.low %v7040_v56, %v7050_v8  ;;  %v10058_v7 = vrot.slane %v10057_v17, 4  ;;  %v10053_v3 = vsel %vm14914_vm11, %v10048_v63, %v10052_v6  ;;  %v7065_v29 = vshrl.u32 %v6689_v53, 16  ;;  %v8245_v6 = vld [vmem:[#allocation3 + $0xc] sm:$0xf]  ;;  %v14285_v53 = vld [vmem:[#allocation19 + $0x220] sm:$0xff]  }
 0x358   :  { %v7071_v58 = vshll.u32 %v6690_v28, 16  ;;  %v10065_v44 = vshrl.u32 %v9869_v55, 16  ;;  %v7057_v13 = vrot.slane %v7055_v60, 5  ;;  %v7063_v50 = vrot.slane %v7061_v37, 5  ;;  %v17240_v28 = vpop.f32.mrb[120].mxu0  ;;  %13666 = vmatprep.subr.bf16.mxu1 %v14285_v53 }
 0x359   :  { %7827 = vmatprep.mubr.bf16.mxu0 %v12097_v57  ;;  %v10063_v11 = vsel %vm14914_vm11, %v10058_v7, %v10062_v27  ;;  %v10068_v5 = vshll.u32 %v9869_v55, 16  ;;  %v7067_v46 = vrot.slane %v7065_v29, 4  ;;  %v10074_v56 = vshll.u32 %v9870_v40, 16  ;;  %v8246_v7 = vld [vmem:[#allocation3 + $0x10] sm:$0xf]  ;;  %v12927_v29 = vpop.f32.mrb[121].mxu0  ;;  %13667 = vmatpush3.bf16.msra.mxu1 %v14285_v53 }
 0x35a   :  { %7828 = vmatmul.mubr.bf16.gmra.mrb[216].mxu0 %v14277_v2  ;;  %v12265_v31 = vcombine.low %v10053_v3, %v10063_v11  ;;  %v7073_v25 = vrot.slane %v7071_v58, 5  ;;  %v10067_v59 = vrot.slane %v10065_v44, 4  ;;  %v7058_v47 = vor.u32 %v7057_v13, %v7054_v20  ;;  %v8247_v3 = vld [vmem:[#allocation3 + $0x14] sm:$0x1] }
 0x35b   :  { %v10070_v48 = vrot.slane %v10068_v5, 5  ;;  %v10078_v17 = vshrl.u32 %v9870_v40, 16  ;;  %v7068_v27 = vor.u32 %v7067_v46, %v7063_v50  ;;  %v10084_v8 = vshll.u32 %v9871_v10, 16  ;;  %v14282_v58 = vld [vmem:[#allocation3 + $0xb4] sm:$0xff]  }
 0x35c   :  { %10968 = vmatprep.mubr.bf16.mxu1 %v12265_v31  ;;  %v12922_v63 = vadd.f32 %v12921_v18, %v12920_v42  ;;  %v12925_v57 = vadd.f32 %v12924_v52, %v12923_v49  ;;  %v7059_v55 = vrot.slane %v7058_v47, 4  ;;  %v10076_v60 = vrot.slane %v10074_v56, 5  ;;  %v9872_v42 = vld [vmem:[#allocation3 + $0x78] sm:$0xf]  ;;  %v9873_v18 = vld [vmem:[#allocation3 + $0x7c] sm:$0xf] }
 0x35d   :  { %10969 = vmatmul.mubr.bf16.gmra.mrb[120].mxu1 %v14281_v16  ;;  %v10071_v2 = vor.u32 %v10070_v48, %v10067_v59  ;;  %v10080_v37 = vrot.slane %v10078_v17, 4  ;;  %v7069_v20 = vrot.slane %v7068_v27, 4  ;;  %v10086_v44 = vrot.slane %v10084_v8, 5  ;;  %v14283_v48 = vld [vmem:[#allocation3 + $0x6c] sm:$0xff]  }
 0x35e   :  { %v17243_v40 = vadd.f32 %v16998_v30, %v12922_v63  ;;  %v17246_v11 = vadd.f32 %v17019_v15, %v12925_v57  ;;  %v7064_v49 = vsel %vm14914_vm11, %v7059_v55, %v7063_v50  ;;  %v8294_v13 = vshrl.u32 %v8245_v6, 16  ;;  %v12929_v30 = vpop.f32.mrb[122].mxu0  ;;  %v9874_v63 = vld [vmem:[#allocation3 + $0x80] sm:$0x1]  ;;  %v8248_v55 = vld [vmem:[#allocation3 + $0x18] sm:$0xf] }
 0x35f   :  { %v10072_v52 = vrot.slane %v10071_v2, 4  ;;  %v10081_v16 = vor.u32 %v10080_v37, %v10076_v60  ;;  %v7074_v10 = vsel %vm14914_vm11, %v7069_v20, %v7073_v25  ;;  %v8297_v5 = vshll.u32 %v8245_v6, 16  ;;  %v12930_v56 = vpop.f32.mrb[123].mxu0 }
 0x360   :  { %v8303_v31 = vshll.u32 %v8246_v7, 16  ;;  %v8307_v46 = vshrl.u32 %v8246_v7, 16  ;;  %v12098_v59 = vcombine.low %v7064_v49, %v7074_v10  ;;  %v8296_v53 = vrot.slane %v8294_v13, 4  ;;  %v17256_v2 = vpop.f32.mrb[124].mxu0 }
 0x361   :  { %v10077_v15 = vsel %vm14914_vm11, %v10072_v52, %v10076_v60  ;;  %v10082_v47 = vrot.slane %v10081_v16, 4  ;;  %v8299_v17 = vrot.slane %v8297_v5, 5  ;;  %v8313_v8 = vshll.u32 %v8247_v3, 16 }
 0x362   :  { %v8305_v50 = vrot.slane %v8303_v31, 5  ;;  %v8309_v27 = vrot.slane %v8307_v46, 4  ;;  %7835 = vmatprep.mubr.bf16.mxu0 %v12098_v59  ;;  %v10089_v6 = vshrl.u32 %v9872_v42, 16  ;;  %v10092_v57 = vshll.u32 %v9872_v42, 16  ;;  %v14284_v31 = vld [vmem:[#allocation3 + $0xc] sm:$0xff]   ;;  %v12933_v59 = vpop.f32.mrb[125].mxu0 }
 0x363   :  { %v10087_v25 = vsel %vm14914_vm11, %v10082_v47, %v10086_v44  ;;  %v10098_v7 = vshll.u32 %v9873_v18, 16  ;;  %7836 = vmatmul.mubr.bf16.gmra.mrb[220].mxu0 %v14282_v58  ;;  %v8300_v37 = vor.u32 %v8299_v17, %v8296_v53  ;;  %v8315_v49 = vrot.slane %v8313_v8, 5  ;;  %v8249_v46 = vld [vmem:[#allocation3 + $0x1c] sm:$0xf]  ;;  %v8250_v53 = vld [vmem:[#allocation3 + $0x20] sm:$0x1] }
 0x364   :  { %v12266_v60 = vcombine.low %v10077_v15, %v10087_v25  ;;  %v8310_v20 = vor.u32 %v8309_v27, %v8305_v50  ;;  %v10091_v52 = vrot.slane %v10089_v6, 4  ;;  %v10094_v16 = vrot.slane %v10092_v57, 5 }
 0x365   :  { %v10100_v13 = vrot.slane %v10098_v7, 5  ;;  %v10102_v3 = vshrl.u32 %v9873_v18, 16  ;;  %v8301_v10 = vrot.slane %v8300_v37, 4  ;;  %v10108_v44 = vshll.u32 %v9874_v63, 16  ;;  %v9875_v63 = vld [vmem:[#allocation3 + $0x84] sm:$0xf] }
 0x366   :  { %10976 = vmatprep.mubr.bf16.mxu1 %v12266_v60  ;;  %v8311_v5 = vrot.slane %v8310_v20, 4  ;;  %v12928_v42 = vadd.f32 %v12927_v29, %v17240_v28  ;;  %v10095_v47 = vor.u32 %v10094_v16, %v10091_v52  ;;  %v12931_v15 = vadd.f32 %v12930_v56, %v12929_v30  ;;  %v12935_v28 = vpop.f32.mrb[126].mxu0  ;;  %v9876_v30 = vld [vmem:[#allocation3 + $0x88] sm:$0xf] }
 0x367   :  { %10977 = vmatmul.mubr.bf16.gmra.mrb[124].mxu1 %v14283_v48  ;;  %v10104_v58 = vrot.slane %v10102_v3, 4  ;;  %v8318_v17 = vshrl.u32 %v8248_v55, 16  ;;  %v8306_v27 = vsel %vm14914_vm11, %v8301_v10, %v8305_v50  ;;  %v10110_v8 = vrot.slane %v10108_v44, 5  ;;  %v12936_v56 = vpop.f32.mrb[127].mxu0 }
 0x368   :  { %v8316_v18 = vsel %vm14914_vm11, %v8311_v5, %v8315_v49  ;;  %v17264_v25 = vadd.f32 %v17041_v45, %v12928_v42  ;;  %v10096_v6 = vrot.slane %v10095_v47, 4  ;;  %v17267_v57 = vadd.f32 %v17050_v24, %v12931_v15  ;;  %v9877_v5 = vld [vmem:[#allocation3 + $0x8c] sm:$0x1]  ;;  %v14286_v42 = vld [vmem:[#allocation3 + $0x78] sm:$0xff]  }
 0x369   :  { %v12171_v29 = vcombine.low %v8306_v27, %v8316_v18  ;;  %v10105_v48 = vor.u32 %v10104_v58, %v10100_v13  ;;  %v8320_v7 = vrot.slane %v8318_v17, 4  ;;  %v8321_v60 = vshll.u32 %v8248_v55, 16  ;;  %v14290_v58 = vld [vmem:[#allocation19 + $0x228] sm:$0xff]   ;;  %v17273_v18 = vpop.f32.mrb[128].mxu0 }
 0x36a   :  { %v8327_v50 = vshll.u32 %v8249_v46, 16  ;;  %v8331_v37 = vshrl.u32 %v8249_v46, 16  ;;  %v10101_v20 = vsel %vm14914_vm11, %v10096_v6, %v10100_v13  ;;  %v8337_v49 = vshll.u32 %v8250_v53, 16  ;;  %v8251_v53 = vld [vmem:[#allocation3 + $0x24] sm:$0xf]  ;;  %13668 = vmatprep.subr.bf16.mxu1 %v14290_v58 }
 0x36b   :  { %9317 = vmatprep.mubr.bf16.mxu0 %v12171_v29  ;;  %v10106_v45 = vrot.slane %v10105_v48, 4  ;;  %v10113_v52 = vshrl.u32 %v9875_v63, 16  ;;  %v8323_v16 = vrot.slane %v8321_v60, 5  ;;  %v10116_v24 = vshll.u32 %v9875_v63, 16  ;;  %v8252_v48 = vld [vmem:[#allocation3 + $0x28] sm:$0xf]  ;;  %13669 = vmatpush3.bf16.msra.mxu1 %v14290_v58 }
 0x36c   :  { %9318 = vmatmul.mubr.bf16.vlgmr.msra.gmra.mrb[224].mxu0 %v14284_v31  ;;  %v8329_v3 = vrot.slane %v8327_v50, 5  ;;  %v8333_v10 = vrot.slane %v8331_v37, 4  ;;  %v8339_v55 = vrot.slane %v8337_v49, 5  ;;  %v10122_v46 = vshll.u32 %v9876_v30, 16  ;;  %v14287_v50 = vld [vmem:[#allocation3 + $0x18] sm:$0xff]  }
 0x36d   :  { %v10111_v44 = vsel %vm14914_vm11, %v10106_v45, %v10110_v8  ;;  %v10115_v47 = vrot.slane %v10113_v52, 4  ;;  %v8324_v17 = vor.u32 %v8323_v16, %v8320_v7  ;;  %v10118_v27 = vrot.slane %v10116_v24, 5  ;;  %v8253_v52 = vld [vmem:[#allocation3 + $0x2c] sm:$0x1]  ;;  %v12939_v16 = vpop.f32.mrb[129].mxu0 }
 0x36e   :  { %v12267_v15 = vcombine.low %v10101_v20, %v10111_v44  ;;  %v8334_v13 = vor.u32 %v8333_v10, %v8329_v3  ;;  %v10124_v31 = vrot.slane %v10122_v46, 5  ;;  %v10126_v29 = vshrl.u32 %v9876_v30, 16  ;;  %v12941_v24 = vpop.f32.mrb[130].mxu0 }
 0x36f   :  { %v10132_v6 = vshll.u32 %v9877_v5, 16  ;;  %v12934_v63 = vadd.f32 %v12933_v59, %v17256_v2  ;;  %v8325_v8 = vrot.slane %v8324_v17, 4  ;;  %v10119_v37 = vor.u32 %v10118_v27, %v10115_v47  ;;  %v12942_v46 = vpop.f32.mrb[131].mxu0 }
 0x370   :  { %10984 = vmatprep.mubr.bf16.mxu1 %v12267_v15  ;;  %v8335_v60 = vrot.slane %v8334_v13, 4  ;;  %v12937_v45 = vadd.f32 %v12936_v56, %v12935_v28  ;;  %v10128_v7 = vrot.slane %v10126_v29, 4  ;;  %v8342_v30 = vshrl.u32 %v8251_v53, 16  ;;  %v9878_v28 = vld [vmem:[#allocation3 + $0x90] sm:$0xf]  ;;  %v17288_v13 = vpop.f32.mrb[132].mxu0 }
 0x371   :  { %10985 = vmatmul.mubr.bf16.gmra.mrb[128].mxu1 %v14286_v42  ;;  %v10134_v20 = vrot.slane %v10132_v6, 5  ;;  %v17277_v49 = vadd.f32 %v17028_v38, %v12934_v63  ;;  %v8330_v2 = vsel %vm14914_vm11, %v8325_v8, %v8329_v3  ;;  %v10120_v10 = vrot.slane %v10119_v37, 4  ;;  %v9879_v56 = vld [vmem:[#allocation3 + $0x94] sm:$0xf] }
 0x372   :  { %v8340_v59 = vsel %vm14914_vm11, %v8335_v60, %v8339_v55  ;;  %v17284_v5 = vadd.f32 %v17047_v62, %v12937_v45  ;;  %v10129_v42 = vor.u32 %v10128_v7, %v10124_v31  ;;  %v8344_v38 = vrot.slane %v8342_v30, 4  ;;  %v14288_v62 = vld [vmem:[#allocation3 + $0x84] sm:$0xff]  }
 0x373   :  { %v12172_v44 = vcombine.low %v8330_v2, %v8340_v59  ;;  %v8345_v47 = vshll.u32 %v8251_v53, 16  ;;  %v10125_v58 = vsel %vm14914_vm11, %v10120_v10, %v10124_v31  ;;  %v8351_v15 = vshll.u32 %v8252_v48, 16  ;;  %v9880_v53 = vld [vmem:[#allocation3 + $0x98] sm:$0x1] }
 0x374   :  { %18320 = vst [vmem:[#allocation45_spill] sm:$0xff] %v17284_v5  ;;  %v8355_v3 = vshrl.u32 %v8252_v48, 16  ;;  %v8361_v17 = vshll.u32 %v8253_v52, 16  ;;  %v10130_v55 = vrot.slane %v10129_v42, 4  ;;  %v10137_v29 = vshrl.u32 %v9878_v28, 16  ;;  %v14289_v5 = vld [vmem:[#allocation3 + $0x24] sm:$0xff]  }
 0x375   :  { %9325 = vmatprep.mubr.bf16.mxu0 %v12172_v44  ;;  %v8347_v27 = vrot.slane %v8345_v47, 5  ;;  %v10140_v6 = vshll.u32 %v9878_v28, 16  ;;  %v8353_v63 = vrot.slane %v8351_v15, 5  ;;  %v10146_v37 = vshll.u32 %v9879_v56, 16  ;;  %v8254_v52 = vld [vmem:[#allocation3 + $0x30] sm:$0xf] }
 0x376   :  { %9326 = vmatmul.mubr.bf16.gmra.mrb[228].mxu0 %v14287_v50  ;;  %v8357_v8 = vrot.slane %v8355_v3, 4  ;;  %v8363_v60 = vrot.slane %v8361_v17, 5  ;;  %v10135_v31 = vsel %vm14914_vm11, %v10130_v55, %v10134_v20  ;;  %v10139_v48 = vrot.slane %v10137_v29, 4  ;;  %v12945_v44 = vpop.f32.mrb[133].mxu0  ;;  %v8255_v15 = vld [vmem:[#allocation3 + $0x34] sm:$0xf] }
 0x377   :  { %v8348_v45 = vor.u32 %v8347_v27, %v8344_v38  ;;  %v10142_v7 = vrot.slane %v10140_v6, 5  ;;  %v12268_v30 = vcombine.low %v10125_v58, %v10135_v31  ;;  %v10148_v59 = vrot.slane %v10146_v37, 5  ;;  %v12947_v3 = vpop.f32.mrb[134].mxu0  ;;  %v8256_v55 = vld [vmem:[#allocation3 + $0x38] sm:$0x1]  ;;  %v14295_v31 = vld [vmem:[#allocation19 + $0x230] sm:$0xff]  }
 0x378   :  { %v8358_v2 = vor.u32 %v8357_v8, %v8353_v63  ;;  %v10150_v10 = vshrl.u32 %v9879_v56, 16  ;;  %v10156_v50 = vshll.u32 %v9880_v53, 16  ;;  %v12940_v47 = vadd.f32 %v12939_v16, %v17273_v18  ;;  %v12948_v29 = vpop.f32.mrb[135].mxu0  ;;  %v9881_v18 = vld [vmem:[#allocation3 + $0x9c] sm:$0xf]  ;;  %13670 = vmatprep.subr.bf16.mxu1 %v14295_v31 }
 0x379   :  { %v8349_v42 = vrot.slane %v8348_v45, 4  ;;  %v10143_v28 = vor.u32 %v10142_v7, %v10139_v48  ;;  %10992 = vmatprep.mubr.bf16.mxu1 %v12268_v30  ;;  %v12943_v38 = vadd.f32 %v12942_v46, %v12941_v24  ;;  %v8366_v27 = vshrl.u32 %v8254_v52, 16  ;;  %v9882_v46 = vld [vmem:[#allocation3 + $0xa0] sm:$0xf]  ;;  %v9883_v7 = vld [vmem:[#allocation3 + $0xa4] sm:$0x1]  ;;  %13671 = vmatpush3.bf16.msra.mxu1 %v14295_v31 }
 0x37a   :  { %v8359_v17 = vrot.slane %v8358_v2, 4  ;;  %v10152_v20 = vrot.slane %v10150_v10, 4  ;;  %10993 = vmatmul.mubr.bf16.gmra.mrb[132].mxu1 %v14288_v62  ;;  %v10158_v6 = vrot.slane %v10156_v50, 5  ;;  %v17296_v8 = vadd.f32 %v17072_v36, %v12940_v47  ;;  %v14291_v30 = vld [vmem:[#allocation3 + $0x90] sm:$0xff]  }
 0x37b   :  { %v8354_v56 = vsel %vm14914_vm11, %v8349_v42, %v8353_v63  ;;  %v10144_v58 = vrot.slane %v10143_v28, 4  ;;  %v17301_v37 = vadd.f32 %v17078_v9, %v12943_v38  ;;  %v8368_v24 = vrot.slane %v8366_v27, 4  ;;  %v17307_v38 = vpop.f32.mrb[136].mxu0 }
 0x37c   :  { %v8364_v16 = vsel %vm14914_vm11, %v8359_v17, %v8363_v60  ;;  %v10153_v53 = vor.u32 %v10152_v20, %v10148_v59  ;;  %v8369_v45 = vshll.u32 %v8254_v52, 16  ;;  %v8375_v48 = vshll.u32 %v8255_v15, 16  ;;  %v8257_v60 = vld [vmem:[#allocation3 + $0x3c] sm:$0xf] }
 0x37d   :  { %v12173_v62 = vcombine.low %v8354_v56, %v8364_v16  ;;  %v10149_v63 = vsel %vm14914_vm11, %v10144_v58, %v10148_v59  ;;  %v8379_v2 = vshrl.u32 %v8255_v15, 16  ;;  %v8385_v10 = vshll.u32 %v8256_v55, 16  ;;  %v17309_v58 = vpop.f32.mrb[137].mxu0 }
 0x37e   :  { %v10154_v36 = vrot.slane %v10153_v53, 4  ;;  %v10161_v42 = vshrl.u32 %v9881_v18, 16  ;;  %v8371_v9 = vrot.slane %v8369_v45, 5  ;;  %v8377_v28 = vrot.slane %v8375_v48, 5 }
 0x37f   :  { %9333 = vmatprep.mubr.bf16.mxu0 %v12173_v62  ;;  %v10164_v50 = vshll.u32 %v9881_v18, 16  ;;  %v10170_v47 = vshll.u32 %v9882_v46, 16  ;;  %v8381_v52 = vrot.slane %v8379_v2, 4  ;;  %v8387_v17 = vrot.slane %v8385_v10, 5  ;;  %v17312_v62 = vpop.f32.mrb[138].mxu0 }
 0x380   :  { %9334 = vmatmul.mubr.bf16.gmra.mrb[232].mxu0 %v14289_v5  ;;  %v10159_v59 = vsel %vm14914_vm11, %v10154_v36, %v10158_v6  ;;  %v10163_v20 = vrot.slane %v10161_v42, 4  ;;  %v8372_v55 = vor.u32 %v8371_v9, %v8368_v24  ;;  %v10174_v53 = vshrl.u32 %v9882_v46, 16  ;;  %v8258_v5 = vld [vmem:[#allocation3 + $0x40] sm:$0xf]  ;;  %v8259_v36 = vld [vmem:[#allocation3 + $0x44] sm:$0x1] }
 0x381   :  { %v12269_v15 = vcombine.low %v10149_v63, %v10159_v59  ;;  %v10166_v27 = vrot.slane %v10164_v50, 5  ;;  %v10172_v56 = vrot.slane %v10170_v47, 5  ;;  %v8382_v16 = vor.u32 %v8381_v52, %v8377_v28  ;;  %v12954_v63 = vpop.f32.mrb[139].mxu0  ;;  %v9884_v46 = vld [vmem:[#allocation3 + $0xa8] sm:$0xf] }
 0x382   :  { %v10180_v18 = vshll.u32 %v9883_v7, 16  ;;  %v12946_v31 = vadd.f32 %v12945_v44, %v17288_v13  ;;  %v8373_v6 = vrot.slane %v8372_v55, 4  ;;  %v12949_v48 = vadd.f32 %v12948_v29, %v12947_v3  ;;  %v17317_v7 = vpop.f32.mrb[140].mxu0 }
 0x383   :  { %11000 = vmatprep.mubr.bf16.mxu1 %v12269_v15  ;;  %v10167_v45 = vor.u32 %v10166_v27, %v10163_v20  ;;  %v8390_v2 = vshrl.u32 %v8257_v60, 16  ;;  %v8383_v24 = vrot.slane %v8382_v16, 4  ;;  %v10176_v10 = vrot.slane %v10174_v53, 4 }
 0x384   :  { %11001 = vmatmul.mubr.bf16.gmra.mrb[136].mxu1 %v14291_v30  ;;  %v10182_v42 = vrot.slane %v10180_v18, 5  ;;  %v17315_v9 = vadd.f32 %v17060_v43, %v12946_v31  ;;  %v8378_v13 = vsel %vm14914_vm11, %v8373_v6, %v8377_v28  ;;  %v17322_v50 = vadd.f32 %v17075_v21, %v12949_v48  ;;  %v14292_v30 = vld [vmem:[#allocation3 + $0x30] sm:$0xff]   ;;  %v9885_v43 = vld [vmem:[#allocation3 + $0xac] sm:$0xf]  ;;  %v14293_v31 = vld [vmem:[#allocation3 + $0x9c] sm:$0xff]  }
 0x385   :  { %v10168_v44 = vrot.slane %v10167_v45, 4  ;;  %v8392_v3 = vrot.slane %v8390_v2, 4  ;;  %v8388_v29 = vsel %vm14914_vm11, %v8383_v24, %v8387_v17  ;;  %v10177_v47 = vor.u32 %v10176_v10, %v10172_v56  ;;  %v9886_v28 = vld [vmem:[#allocation3 + $0xb0] sm:$0x1]  ;;  %v8260_v24 = vld [vmem:[#allocation3 + $0x48] sm:$0xf] }
 0x386   :  { %18321 = vst [vmem:[#allocation50_spill] sm:$0xff] %v17315_v9  ;;  %18322 = vst [vmem:[#allocation51_spill] sm:$0xff] %v17322_v50  ;;  %v8393_v59 = vshll.u32 %v8257_v60, 16  ;;  %v8399_v52 = vshll.u32 %v8258_v5, 16  ;;  %v12174_v20 = vcombine.low %v8378_v13, %v8388_v29  ;;  %v8403_v55 = vshrl.u32 %v8258_v5, 16  ;;  %v17328_v60 = vpop.f32.mrb[141].mxu0 }
 0x387   :  { %v10173_v15 = vsel %vm14914_vm11, %v10168_v44, %v10172_v56  ;;  %v8409_v27 = vshll.u32 %v8259_v36, 16  ;;  %v10178_v16 = vrot.slane %v10177_v47, 4  ;;  %v10185_v18 = vshrl.u32 %v9884_v46, 16  ;;  %v17332_v10 = vpop.f32.mrb[142].mxu0  ;;  %v14300_v13 = vld [vmem:[#allocation19 + $0x238] sm:$0xff]  }
 0x388   :  { %v8395_v53 = vrot.slane %v8393_v59, 5  ;;  %v8401_v21 = vrot.slane %v8399_v52, 5  ;;  %9341 = vmatprep.mubr.bf16.mxu0 %v12174_v20  ;;  %v8405_v6 = vrot.slane %v8403_v55, 4  ;;  %v10188_v45 = vshll.u32 %v9884_v46, 16  ;;  %v12960_v52 = vpop.f32.mrb[143].mxu0  ;;  %13672 = vmatprep.subr.bf16.mxu1 %v14300_v13 }
 0x389   :  { %v8411_v17 = vrot.slane %v8409_v27, 5  ;;  %v10194_v48 = vshll.u32 %v9885_v43, 16  ;;  %9342 = vmatmul.mubr.bf16.gmra.mrb[236].mxu0 %v14292_v30  ;;  %v10183_v2 = vsel %vm14914_vm11, %v10178_v16, %v10182_v42  ;;  %v10187_v5 = vrot.slane %v10185_v18, 4  ;;  %v8261_v27 = vld [vmem:[#allocation3 + $0x4c] sm:$0xf]  ;;  %v17336_v42 = vpop.f32.mrb[144].mxu0  ;;  %13673 = vmatpush3.bf16.msra.mxu1 %v14300_v13 }
 0x38a   :  { %v8396_v56 = vor.u32 %v8395_v53, %v8392_v3  ;;  %v10198_v36 = vshrl.u32 %v9885_v43, 16  ;;  %v12270_v44 = vcombine.low %v10173_v15, %v10183_v2  ;;  %v8406_v29 = vor.u32 %v8405_v6, %v8401_v21  ;;  %v14294_v43 = vld [vmem:[#allocation3 + $0x3c] sm:$0xff]  }
 0x38b   :  { %v10190_v47 = vrot.slane %v10188_v45, 5  ;;  %v10196_v59 = vrot.slane %v10194_v48, 5  ;;  %v10204_v55 = vshll.u32 %v9886_v28, 16  ;;  %v12952_v30 = vadd.f32 %v17309_v58, %v17307_v38  ;;  %v8262_v58 = vld [vmem:[#allocation3 + $0x50] sm:$0x1]  ;;  %v17344_v48 = vpop.f32.mrb[145].mxu0 }
 0x38c   :  { %v8397_v46 = vrot.slane %v8396_v56, 4  ;;  %v10200_v20 = vrot.slane %v10198_v36, 4  ;;  %11008 = vmatprep.mubr.bf16.mxu1 %v12270_v44  ;;  %v8407_v3 = vrot.slane %v8406_v29, 4  ;;  %v12955_v15 = vadd.f32 %v12954_v63, %v17312_v62  ;;  %v9887_v45 = vld [vmem:[#allocation3 + $0xb4] sm:$0xf] }
 0x38d   :  { %v10191_v16 = vor.u32 %v10190_v47, %v10187_v5  ;;  %v8414_v53 = vshrl.u32 %v8260_v24, 16  ;;  %11009 = vmatmul.mubr.bf16.gmra.mrb[140].mxu1 %v14293_v31  ;;  %v10206_v6 = vrot.slane %v10204_v55, 5  ;;  %v17342_v38 = vadd.f32 %v17100_v54, %v12952_v30  ;;  %v9888_v31 = vld [vmem:[#allocation3 + $0xb8] sm:$0xf]  ;;  %v9889_v44 = vld [vmem:[#allocation3 + $0xbc] sm:$0x1] }
 0x38e   :  { %v8402_v18 = vsel %vm14914_vm11, %v8397_v46, %v8401_v21  ;;  %v10201_v28 = vor.u32 %v10200_v20, %v10196_v59  ;;  %v8412_v2 = vsel %vm14914_vm11, %v8407_v3, %v8411_v17  ;;  %v17349_v62 = vadd.f32 %v17106_v33, %v12955_v15  ;;  %v17351_v54 = vpop.f32.mrb[146].mxu0  ;;  %v14296_v55 = vld [vmem:[#allocation3 + $0xa8] sm:$0xff]   ;;  %v10362_v9 = vld [vmem:[#allocation3 + $0x20] sm:$0x1]  ;;  %v18351_v51 = vld [vmem:[#allocation51_spill] sm:$0xff] }
 0x38f   :  { %18323 = vst [vmem:[#allocation46_spill] sm:$0xff] %v17342_v38  ;;  %v10192_v56 = vrot.slane %v10191_v16, 4  ;;  %v8416_v63 = vrot.slane %v8414_v53, 4  ;;  %v12175_v5 = vcombine.low %v8402_v18, %v8412_v2  ;;  %v8417_v36 = vshll.u32 %v8260_v24, 16  ;;  %v17355_v17 = vpop.f32.mrb[147].mxu0 }
 0x390   :  { %18324 = vst [vmem:[#allocation47_spill] sm:$0xff] %v17349_v62  ;;  %v10202_v21 = vrot.slane %v10201_v28, 4  ;;  %v8423_v13 = vshll.u32 %v8261_v27, 16  ;;  %v8427_v47 = vshrl.u32 %v8261_v27, 16  ;;  %v8433_v46 = vshll.u32 %v8262_v58, 16  ;;  %v17359_v28 = vpop.f32.mrb[148].mxu0 }
 0x391   :  { %v10197_v29 = vsel %vm14914_vm11, %v10192_v56, %v10196_v59  ;;  %v10209_v20 = vshrl.u32 %v9887_v45, 16  ;;  %9349 = vmatprep.mubr.bf16.mxu0 %v12175_v5  ;;  %v8419_v30 = vrot.slane %v8417_v36, 5  ;;  %v10212_v24 = vshll.u32 %v9887_v45, 16  ;;  %v8263_v56 = vld [vmem:[#allocation3 + $0x54] sm:$0xf]  ;;  %v17361_v5 = vpop.f32.mrb[149].mxu0 }
 0x392   :  { %v10207_v33 = vsel %vm14914_vm11, %v10202_v21, %v10206_v6  ;;  %v8425_v3 = vrot.slane %v8423_v13, 5  ;;  %9350 = vmatmul.mubr.bf16.gmra.mrb[240].mxu0 %v14294_v43  ;;  %v8429_v15 = vrot.slane %v8427_v47, 4  ;;  %v8435_v53 = vrot.slane %v8433_v46, 5  ;;  %v8264_v36 = vld [vmem:[#allocation3 + $0x58] sm:$0xf]  ;;  %v17366_v13 = vpop.f32.mrb[150].mxu0 }
 0x393   :  { %v12271_v16 = vcombine.low %v10197_v29, %v10207_v33  ;;  %v10211_v18 = vrot.slane %v10209_v20, 4  ;;  %v8420_v59 = vor.u32 %v8419_v30, %v8416_v63  ;;  %v10214_v27 = vrot.slane %v10212_v24, 5  ;;  %v18325_v30 = vld [vmem:[#allocation43_spill] sm:$0xff] }
 0x394   :  { %v10218_v58 = vshll.u32 %v9888_v31, 16  ;;  %v10222_v2 = vshrl.u32 %v9888_v31, 16  ;;  %v8430_v6 = vor.u32 %v8429_v15, %v8425_v3  ;;  %v10228_v21 = vshll.u32 %v9889_v44, 16  ;;  %v17368_v31 = vpop.f32.mrb[151].mxu0  ;;  %v18327_v44 = vld [vmem:[#allocation38_spill] sm:$0xff] }
 0x395   :  { %11016 = vmatprep.mubr.bf16.mxu1 %v12271_v16  ;;  %v12958_v45 = vadd.f32 %v17328_v60, %v17317_v7  ;;  %v12961_v43 = vadd.f32 %v12960_v52, %v17332_v10  ;;  %v8421_v29 = vrot.slane %v8420_v59, 4  ;;  %v10215_v63 = vor.u32 %v10214_v27, %v10211_v18  ;;  %v8265_v7 = vld [vmem:[#allocation3 + $0x5c] sm:$0x1]  ;;  %v9890_v15 = vld [vmem:[#allocation3 + $0xc0] sm:$0xf]  ;;  %v14297_v59 = vld [vmem:[#allocation3 + $0x48] sm:$0xff]  }
 0x396   :  { %11017 = vmatmul.mubr.bf16.gmra.mrb[144].mxu1 %v14296_v55  ;;  %v10220_v47 = vrot.slane %v10218_v58, 5  ;;  %v10224_v46 = vrot.slane %v10222_v2, 4  ;;  %v8431_v20 = vrot.slane %v8430_v6, 4  ;;  %v10230_v33 = vrot.slane %v10228_v21, 5  ;;  %v9891_v6 = vld [vmem:[#allocation3 + $0xc4] sm:$0xf] }
 0x397   :  { %v17371_v24 = vadd.f32 %v18325_v30, %v12958_v45  ;;  %v17374_v16 = vadd.f32 %v18327_v44, %v12961_v43  ;;  %v8426_v60 = vsel %vm14914_vm11, %v8421_v29, %v8425_v3  ;;  %v10216_v10 = vrot.slane %v10215_v63, 4  ;;  %v14298_v30 = vld [vmem:[#allocation3 + $0xb4] sm:$0xff]   ;;  %v9892_v3 = vld [vmem:[#allocation3 + $0xc8] sm:$0x1] }
 0x398   :  { %v10225_v52 = vor.u32 %v10224_v46, %v10220_v47  ;;  %v8438_v55 = vshrl.u32 %v8263_v56, 16  ;;  %v8436_v18 = vsel %vm14914_vm11, %v8431_v20, %v8435_v53  ;;  %v8441_v27 = vshll.u32 %v8263_v56, 16 }
 0x399   :  { %18326 = vst [vmem:[#allocation61_spill] sm:$0xff] %v17371_v24  ;;  %18328 = vst [vmem:[#allocation54_spill] sm:$0xff] %v17374_v16  ;;  %v8447_v58 = vshll.u32 %v8264_v36, 16  ;;  %v8451_v2 = vshrl.u32 %v8264_v36, 16  ;;  %v12176_v21 = vcombine.low %v8426_v60, %v8436_v18  ;;  %v10221_v45 = vsel %vm14914_vm11, %v10216_v10, %v10220_v47  ;;  %v17384_v24 = vpop.f32.mrb[152].mxu0 }
 0x39a   :  { %v10226_v43 = vrot.slane %v10225_v52, 4  ;;  %v8440_v44 = vrot.slane %v8438_v55, 4  ;;  %v8443_v29 = vrot.slane %v8441_v27, 5  ;;  %v8457_v16 = vshll.u32 %v8265_v7, 16  ;;  %v8266_v55 = vld [vmem:[#allocation3 + $0x60] sm:$0xf] }
 0x39b   :  { %v8449_v63 = vrot.slane %v8447_v58, 5  ;;  %v8453_v46 = vrot.slane %v8451_v2, 4  ;;  %9357 = vmatprep.mubr.bf16.mxu0 %v12176_v21  ;;  %v10233_v56 = vshrl.u32 %v9890_v15, 16  ;;  %v10236_v20 = vshll.u32 %v9890_v15, 16  ;;  %v17386_v18 = vpop.f32.mrb[153].mxu0 }
 0x39c   :  { %v10231_v53 = vsel %vm14914_vm11, %v10226_v43, %v10230_v33  ;;  %v10242_v36 = vshll.u32 %v9891_v6, 16  ;;  %9358 = vmatmul.mubr.bf16.gmra.mrb[244].mxu0 %v14297_v59  ;;  %v8444_v47 = vor.u32 %v8443_v29, %v8440_v44  ;;  %v8459_v52 = vrot.slane %v8457_v16, 5  ;;  %v14299_v43 = vld [vmem:[#allocation3 + $0x54] sm:$0xff]   ;;  %v17390_v59 = vpop.f32.mrb[154].mxu0  ;;  %v8267_v29 = vld [vmem:[#allocation3 + $0x64] sm:$0xf] }
 0x39d   :  { %v12272_v60 = vcombine.low %v10221_v45, %v10231_v53  ;;  %v8454_v10 = vor.u32 %v8453_v46, %v8449_v63  ;;  %v10235_v27 = vrot.slane %v10233_v56, 4  ;;  %v10238_v58 = vrot.slane %v10236_v20, 5  ;;  %v8268_v46 = vld [vmem:[#allocation3 + $0x68] sm:$0x1]  ;;  %v18329_v20 = vld [vmem:[#allocation48_spill] sm:$0xff] }
 0x39e   :  { %v10244_v7 = vrot.slane %v10242_v36, 5  ;;  %v10246_v2 = vshrl.u32 %v9891_v6, 16  ;;  %v8445_v21 = vrot.slane %v8444_v47, 4  ;;  %v10252_v15 = vshll.u32 %v9892_v3, 16  ;;  %v17401_v36 = vpop.f32.mrb[155].mxu0 }
 0x39f   :  { %11024 = vmatprep.mubr.bf16.mxu1 %v12272_v60  ;;  %v8455_v33 = vrot.slane %v8454_v10, 4  ;;  %v12964_v62 = vadd.f32 %v17344_v48, %v17336_v42  ;;  %v10239_v45 = vor.u32 %v10238_v58, %v10235_v27  ;;  %v12967_v44 = vadd.f32 %v17355_v17, %v17351_v54  ;;  %v5954_v48 = vld [vmem:[#allocation3 + $0xcc] sm:$0x1]  ;;  %v18331_v17 = vld [vmem:[#allocation44_spill] sm:$0xff]  ;;  %v9894_v27 = vld [vmem:[#allocation3 + $0xd0] sm:$0xf] }
 0x3a0   :  { %11025 = vmatmul.mubr.bf16.gmra.mrb[148].mxu1 %v14298_v30  ;;  %v10248_v16 = vrot.slane %v10246_v2, 4  ;;  %v8462_v53 = vshrl.u32 %v8266_v55, 16  ;;  %v8450_v6 = vsel %vm14914_vm11, %v8445_v21, %v8449_v63  ;;  %v10254_v56 = vrot.slane %v10252_v15, 5  ;;  %v6008_v30 = vld [vmem:[#allocation3 + $0xd4] sm:$0x1] }
 0x3a1   :  { %v8460_v3 = vsel %vm14914_vm11, %v8455_v33, %v8459_v52  ;;  %v17399_v42 = vadd.f32 %v18329_v20, %v12964_v62  ;;  %v10240_v47 = vrot.slane %v10239_v45, 4  ;;  %v17404_v10 = vadd.f32 %v18331_v17, %v12967_v44 }
 0x3a2   :  { %v12177_v60 = vcombine.low %v8450_v6, %v8460_v3  ;;  %v10249_v54 = vor.u32 %v10248_v16, %v10244_v7  ;;  %v8464_v58 = vrot.slane %v8462_v53, 4  ;;  %v8465_v63 = vshll.u32 %v8266_v55, 16  ;;  %v17410_v6 = vpop.f32.mrb[156].mxu0 }
 0x3a3   :  { %18330 = vst [vmem:[#allocation52_spill] sm:$0xff] %v17399_v42  ;;  %18332 = vst [vmem:[#allocation55_spill] sm:$0xff] %v17404_v10  ;;  %v8471_v2 = vshll.u32 %v8267_v29, 16  ;;  %v8475_v21 = vshrl.u32 %v8267_v29, 16  ;;  %v10245_v62 = vsel %vm14914_vm11, %v10240_v47, %v10244_v7  ;;  %v8481_v33 = vshll.u32 %v8268_v46, 16  ;;  %v14301_v7 = vld [vmem:[#allocation3 + $0xc0] sm:$0xff]  }
 0x3a4   :  { %9365 = vmatprep.mubr.bf16.mxu0 %v12177_v60  ;;  %v10250_v52 = vrot.slane %v10249_v54, 4  ;;  %v5955_v20 = vsel %vm14831_vm5, 0, %v5954_v48  ;;  %v8467_v45 = vrot.slane %v8465_v63, 5  ;;  %v6009_v55 = vsel %vm14836_vm6, 0, %v6008_v30  ;;  %v8269_v29 = vld [vmem:[#allocation3 + $0x6c] sm:$0xf] }
 0x3a5   :  { %9366 = vmatmul.mubr.bf16.gmra.mrb[248].mxu0 %v14299_v43  ;;  %v8473_v16 = vrot.slane %v8471_v2, 5  ;;  %v8477_v44 = vrot.slane %v8475_v21, 4  ;;  %5956 = vst [vmem:[#allocation3 + $0xcc] sm:$0x1] %v5955_v20  ;;  %v8483_v60 = vrot.slane %v8481_v33, 5  ;;  %v10266_v46 = vshll.u32 %v9894_v27, 16 }
 0x3a6   :  { %v10255_v3 = vsel %vm14914_vm11, %v10250_v52, %v10254_v56  ;;  %6010 = vst [vmem:[#allocation3 + $0xd4] sm:$0x1] %v6009_v55  ;;  %v10270_v47 = vshrl.u32 %v9894_v27, 16  ;;  %v17416_v48 = vpop.f32.mrb[157].mxu0  ;;  %v8468_v43 = vor.u32 %v8467_v45, %v8464_v58  ;;  %v12970_v63 = vadd.f32 %v17361_v5, %v17359_v28  ;;  %v8270_v2 = vld [vmem:[#allocation3 + $0x70] sm:$0xf] }
 0x3a7   :  { %v12273_v54 = vcombine.low %v10245_v62, %v10255_v3  ;;  %v8478_v17 = vor.u32 %v8477_v44, %v8473_v16  ;;  %v17420_v21 = vrot.slane %v10266_v46, 5  ;;  %v12973_v56 = vadd.f32 %v17368_v31, %v17366_v13  ;;  %v8271_v52 = vld [vmem:[#allocation3 + $0x74] sm:$0x1]  ;;  %v17424_v20 = vpop.f32.mrb[158].mxu0  ;;  %v10360_v44 = vld [vmem:[#allocation3 + $0x18] sm:$0xe] }
 0x3a8   :  { %v10272_v30 = vrot.slane %v10270_v47, 4  ;;  %v8486_v33 = vshrl.u32 %v8269_v29, 16  ;;  %v8469_v27 = vrot.slane %v8468_v43, 4  ;;  %v18335_v62 = vld [vmem:[#allocation39_spill] sm:$0xff]  ;;  %v8489_v45 = vshll.u32 %v8269_v29, 16  ;;  %v17429_v5 = vpop.f32.mrb[159].mxu0 }
 0x3a9   :  { %11032 = vmatprep.mubr.bf16.mxu1 %v12273_v54  ;;  %v8479_v53 = vrot.slane %v8478_v17, 4  ;;  %v17427_v58 = vadd.f32 %v18335_v62, %v12970_v63  ;;  %v10361_v28 = vld [vmem:[#allocation3 + $0x1c] sm:$0xf]  ;;  %v18337_v55 = vld [vmem:[#allocation49_spill] sm:$0xff]  ;;  %v8495_v31 = vshll.u32 %v8270_v2, 16  ;;  %v8499_v63 = vshrl.u32 %v8270_v2, 16 }
 0x3aa   :  { %11033 = vmatmul.mubr.bf16.gmra.mrb[152].mxu1 %v14301_v7  ;;  %v17432_v3 = vadd.f32 %v18337_v55, %v12973_v56  ;;  %v8488_v13 = vrot.slane %v8486_v33, 4  ;;  %v10363_v46 = vld [vmem:[#allocation3 + $0x24] sm:$0xe]  ;;  %v10364_v47 = vld [vmem:[#allocation3 + $0x28] sm:$0xf]  ;;  %v8474_v54 = vsel %vm14914_vm11, %v8469_v27, %v8473_v16  ;;  %v8491_v29 = vrot.slane %v8489_v45, 5 }
 0x3ab   :  { %18336 = vst [vmem:[#allocation53_spill] sm:$0xff] %v17427_v58  ;;  %v8484_v43 = vsel %vm14914_vm11, %v8479_v53, %v8483_v60  ;;  %v14302_v17 = vld [vmem:[#allocation3 + $0x60] sm:$0xff]   ;;  %v13026_v62 = vpop.f32.mrb[160].mxu0  ;;  %v8497_v7 = vrot.slane %v8495_v31, 5  ;;  %v8505_v42 = vshll.u32 %v8271_v52, 16  ;;  %v10273_v50 = vor.u32 %v10272_v30, %v17420_v21  ;;  %v18341_v60 = vld [vmem:[#allocation66_spill] sm:$0xff] }
 0x3ac   :  { %18338 = vst [vmem:[#allocation58_spill] sm:$0xff] %v17432_v3  ;;  %v12178_v58 = vcombine.low %v8474_v54, %v8484_v43  ;;  %v6059_v10 = vld [vmem:[#allocation3 + $0xcc] sm:$0xf]  ;;  %v13027_v56 = vpop.f32.mrb[161].mxu0  ;;  %v18339_v55 = vld [vmem:[#allocation65_spill] sm:$0xff]  ;;  %v8492_v16 = vor.u32 %v8491_v29, %v8488_v13  ;;  %v8501_v27 = vrot.slane %v8499_v63, 4 }
 0x3ad   :  { %v6060_v3 = vsel %vm14865_vm8, %v18339_v55, %v6059_v10  ;;  %v6063_v38 = vld [vmem:[#allocation3 + $0xd4] sm:$0x1]  ;;  %v8507_v53 = vrot.slane %v8505_v42, 5  ;;  %v12275_v45 = vrot.slane %v10360_v44, 9  ;;  %v10458_v52 = vrot.slane %v10361_v28, 5  ;;  %v17447_v54 = vpop.f32.mrb[162].mxu0 }
 0x3ae   :  { %9373 = vmatprep.mubr.bf16.mxu0 %v12178_v58  ;;  %6061 = vst [vmem:[#allocation3 + $0xcc] sm:$0xf] %v6060_v3  ;;  %v6064_v2 = vsel %vm14831_vm5, %v18341_v60, %v6063_v38  ;;  %v17445_v31 = vld [vmem:[#allocation3 + $0x2c] sm:$0x1]  ;;  %v8493_v10 = vrot.slane %v8492_v16, 4  ;;  %v8502_v30 = vor.u32 %v8501_v27, %v8497_v7  ;;  %v12276_v13 = vrot.slane %v10363_v46, 9 }
 0x3af   :  { %9374 = vmatmul.mubr.bf16.gmra.mrb[252].mxu0 %v14302_v17  ;;  %6065 = vst [vmem:[#allocation3 + $0xd4] sm:$0x1] %v6064_v2  ;;  %v10465_v43 = vrot.slane %v10364_v47, 5  ;;  %v8272_v29 = vld [vmem:[#allocation3 + $0x78] sm:$0xf]  ;;  %v17449_v58 = vpop.f32.mrb[163].mxu0  ;;  %v12976_v38 = vadd.f32 %v17386_v18, %v17384_v24  ;;  %v12979_v47 = vadd.f32 %v17401_v36, %v17390_v59  ;;  %v17467_v24 = vsel %vm15470_vm14, %v12275_v45, %v10458_v52 }
 0x3b0   :  { %v10460_v3 = vrot.slane %v10458_v52, 4  ;;  %v10461_v63 = vrot.slane %v10362_v9, 5  ;;  %v17453_v42 = vrot.slane %v10273_v50, 4  ;;  %v8498_v15 = vsel %vm14914_vm11, %v8493_v10, %v8497_v7  ;;  %v14304_v28 = vld [vmem:[#allocation3 + $0x6c] sm:$0xff]   ;;  %v8273_v9 = vld [vmem:[#allocation3 + $0x7c] sm:$0xf] }
 0x3b1   :  { %v8503_v44 = vrot.slane %v8502_v30, 4  ;;  %v10468_v17 = vrot.slane %v17445_v31, 5  ;;  %v10467_v55 = vrot.slane %v10465_v43, 4  ;;  %v17459_v46 = vadd.f32 %v17157_v61, %v12976_v38  ;;  %v8274_v33 = vld [vmem:[#allocation3 + $0x80] sm:$0x1]  ;;  %v17473_v61 = vpop.f32.mrb[164].mxu0 }
 0x3b2   :  { %v8510_v16 = vshrl.u32 %v8272_v29, 16  ;;  %v17471_v18 = vsel %vm15470_vm14, %v12276_v13, %v10465_v43  ;;  %v8513_v7 = vshll.u32 %v8272_v29, 16  ;;  %v17477_v59 = vsel %vm15470_vm14, %v10460_v3, %v10461_v63  ;;  %v10366_v2 = vld [vmem:[#allocation3 + $0x30] sm:$0xe]  ;;  %v17482_v45 = vpop.f32.mrb[165].mxu0 }
 0x3b3   :  { %18342 = vst [vmem:[#allocation56_spill] sm:$0xff] %v17459_v46  ;;  %v8508_v50 = vsel %vm14914_vm11, %v8503_v44, %v8507_v53  ;;  %v17480_v36 = vadd.f32 %v17163_v41, %v12979_v47  ;;  %v10367_v53 = vld [vmem:[#allocation3 + $0x34] sm:$0xf]  ;;  %v10368_v10 = vld [vmem:[#allocation3 + $0x38] sm:$0x1]  ;;  %v12982_v30 = vadd.f32 %v17416_v48, %v17410_v6  ;;  %v12985_v13 = vadd.f32 %v17429_v5, %v17424_v20  ;;  %v17494_v6 = vpop.f32.mrb[166].mxu0 }
 0x3b4   :  { %v12179_v27 = vcombine.low %v8498_v15, %v8508_v50  ;;  %v8512_v60 = vrot.slane %v8510_v16, 4  ;;  %v8515_v31 = vrot.slane %v8513_v7, 5  ;;  %v17488_v43 = vadd.f32 %v13027_v56, %v13026_v62  ;;  %v17492_v50 = vld [vmem:[#allocation3 + $0x3c] sm:$0xe]  ;;  %v10370_v56 = vld [vmem:[#allocation3 + $0x40] sm:$0xf] }
 0x3b5   :  { %18343 = vst [vmem:[#allocation59_spill] sm:$0xff] %v17480_v36  ;;  %v9893_v52 = vld [vmem:[#allocation3 + $0xcc] sm:$0xf]  ;;  %v8519_v63 = vshll.u32 %v8273_v9, 16  ;;  %v8523_v38 = vshrl.u32 %v8273_v9, 16  ;;  %v8529_v16 = vshll.u32 %v8274_v33, 16 }
 0x3b6   :  { %v9895_v29 = vld [vmem:[#allocation3 + $0xd4] sm:$0x1]  ;;  %v10257_v3 = vshrl.u32 %v9893_v52, 16  ;;  %v10260_v41 = vshll.u32 %v9893_v52, 16  ;;  %9381 = vmatprep.mubr.bf16.mxu0 %v12179_v27  ;;  %v8516_v47 = vor.u32 %v8515_v31, %v8512_v60  ;;  %v12277_v52 = vrot.slane %v10366_v2, 9  ;;  %v17496_v33 = vpop.f32.mrb[167].mxu0 }
 0x3b7   :  { %v10276_v15 = vshll.u32 %v9895_v29, 16  ;;  %9382 = vmatmul.mubr.bf16.gmra.mrb[0].mxu0 %v14304_v28  ;;  %v8521_v5 = vrot.slane %v8519_v63, 5  ;;  %v8525_v62 = vrot.slane %v8523_v38, 4  ;;  %v10472_v9 = vrot.slane %v10367_v53, 5  ;;  %v10371_v29 = vld [vmem:[#allocation3 + $0x44] sm:$0x1] }
 0x3b8   :  { %v10259_v48 = vrot.slane %v10257_v3, 4  ;;  %v10262_v20 = vrot.slane %v10260_v41, 5  ;;  %v8517_v27 = vrot.slane %v8516_v47, 4  ;;  %v8531_v46 = vrot.slane %v8529_v16, 5  ;;  %v8275_v60 = vld [vmem:[#allocation3 + $0x84] sm:$0xf] }
 0x3b9   :  { %v10278_v7 = vrot.slane %v10276_v15, 5  ;;  %v8526_v36 = vor.u32 %v8525_v62, %v8521_v5  ;;  %v10475_v44 = vrot.slane %v10368_v10, 5  ;;  %v17503_v3 = vsel %vm15470_vm14, %v10467_v55, %v10468_v17  ;;  %v8276_v53 = vld [vmem:[#allocation3 + $0x88] sm:$0xf]  ;;  %v17506_v63 = vpop.f32.mrb[168].mxu0  ;;  %v14305_v47 = vld [vmem:[#allocation3 + $0x78] sm:$0xff]  }
 0x3ba   :  { %v10263_v28 = vor.u32 %v10262_v20, %v10259_v48  ;;  %v10474_v41 = vrot.slane %v10472_v9, 4  ;;  %v12278_v2 = vrot.slane %v17492_v50, 9  ;;  %v8522_v10 = vsel %vm14914_vm11, %v8517_v27, %v8521_v5  ;;  %v8277_v48 = vld [vmem:[#allocation3 + $0x8c] sm:$0x1]  ;;  %v17520_v20 = vpop.f32.mrb[169].mxu0 }
 0x3bb   :  { %v10279_v31 = vsel %vm14914_vm11, %v17453_v42, %v10278_v7  ;;  %v8527_v15 = vrot.slane %v8526_v36, 4  ;;  %v10479_v16 = vrot.slane %v10370_v56, 5  ;;  %v17512_v42 = vsel %vm15470_vm14, %v12277_v52, %v10472_v9  ;;  %v14303_v5 = vld [vmem:[#allocation3 + $0xcc] sm:$0xff]  }
 0x3bc   :  { %v10264_v38 = vrot.slane %v10263_v28, 4  ;;  %v17515_v17 = vadd.f32 %v17147_v35, %v12982_v30  ;;  %v17518_v55 = vadd.f32 %v17160_v26, %v12985_v13  ;;  %v8534_v50 = vshrl.u32 %v8275_v60, 16  ;;  %v10372_v30 = vld [vmem:[#allocation3 + $0x48] sm:$0xe]  ;;  %v10373_v7 = vld [vmem:[#allocation3 + $0x4c] sm:$0xf] }
 0x3bd   :  { %v8532_v62 = vsel %vm14914_vm11, %v8527_v15, %v8531_v46  ;;  %v17529_v56 = vsel %vm15470_vm14, %v10474_v41, %v10475_v44  ;;  %v10482_v35 = vrot.slane %v10371_v29, 5  ;;  %v10481_v27 = vrot.slane %v10479_v16, 4  ;;  %v17531_v15 = vpop.f32.mrb[170].mxu0 }
 0x3be   :  { %18344 = vst [vmem:[#allocation57_spill] sm:$0xff] %v17515_v17  ;;  %18345 = vst [vmem:[#allocation63_spill] sm:$0xff] %v17518_v55  ;;  %v10269_v36 = vsel %vm14914_vm11, %v10264_v38, %v17420_v21  ;;  %v12180_v13 = vcombine.low %v8522_v10, %v8532_v62  ;;  %v8536_v52 = vrot.slane %v8534_v50, 4  ;;  %v8537_v9 = vshll.u32 %v8275_v60, 16  ;;  %v10374_v21 = vld [vmem:[#allocation3 + $0x50] sm:$0x1] }
 0x3bf   :  { %v12274_v26 = vcombine.low %v10269_v36, %v10279_v31  ;;  %v8543_v28 = vshll.u32 %v8276_v53, 16  ;;  %v8547_v55 = vshrl.u32 %v8276_v53, 16  ;;  %v8553_v17 = vshll.u32 %v8277_v48, 16  ;;  %v8278_v10 = vld [vmem:[#allocation3 + $0x90] sm:$0xf]  ;;  %v17535_v60 = vpop.f32.mrb[171].mxu0 }
 0x3c0   :  { %9389 = vmatprep.mubr.bf16.mxu0 %v12180_v13  ;;  %v12279_v38 = vrot.slane %v10372_v30, 9  ;;  %v10486_v46 = vrot.slane %v10373_v7, 5  ;;  %v12292_v44 = vcombine.low %v17471_v18, %v17503_v3  ;;  %v8539_v29 = vrot.slane %v8537_v9, 5  ;;  %v10375_v3 = vld [vmem:[#allocation3 + $0x54] sm:$0xe]  ;;  %v17560_v7 = vpop.f32.mrb[172].mxu0 }
 0x3c1   :  { %11040 = vmatprep.mubr.bf16.mxu1 %v12274_v26  ;;  %9390 = vmatmul.mubr.bf16.gmra.mrb[4].mxu0 %v14305_v47  ;;  %v8545_v31 = vrot.slane %v8543_v28, 5  ;;  %v8549_v41 = vrot.slane %v8547_v55, 4  ;;  %v18346_v53 = vcombine.low %v17467_v24, %v17477_v59  ;;  %v12293_v48 = vcombine.low %v17512_v42, %v17529_v56  ;;  %v10376_v47 = vld [vmem:[#allocation3 + $0x58] sm:$0xf]  ;;  %v10377_v59 = vld [vmem:[#allocation3 + $0x5c] sm:$0x1] }
 0x3c2   :  { %11041 = vmatmul.mubr.bf16.gmra.mrb[156].mxu1 %v14303_v5  ;;  %v17544_v50 = vsel %vm15470_vm14, %v12278_v2, %v10479_v16  ;;  %v10488_v36 = vrot.slane %v10486_v46, 4  ;;  %v10489_v18 = vrot.slane %v10374_v21, 5  ;;  %v17548_v55 = vsel %vm15470_vm14, %v10481_v27, %v10482_v35  ;;  %v8279_v42 = vld [vmem:[#allocation3 + $0x94] sm:$0xf]  ;;  %v8280_v27 = vld [vmem:[#allocation3 + $0x98] sm:$0x1] }
 0x3c3   :  { %13674 = vmatprep.mubr.bf16.mxu1 %v18346_v53  ;;  %v8540_v5 = vor.u32 %v8539_v29, %v8536_v52  ;;  %v8550_v62 = vor.u32 %v8549_v41, %v8545_v31  ;;  %v8555_v30 = vrot.slane %v8553_v17, 5  ;;  %v17552_v24 = vsel %vm15470_vm14, %v12279_v38, %v10486_v46  ;;  %v10378_v28 = vld [vmem:[#allocation3 + $0x60] sm:$0xe]  ;;  %v14306_v46 = vld [vmem:[#allocation3 + $0x84] sm:$0xff]  }
 0x3c4   :  { %v17556_v2 = vadd.f32 %v17171_v12, %v17488_v43  ;;  %v13031_v16 = vadd.f32 %v17449_v58, %v17447_v54  ;;  %v8558_v56 = vshrl.u32 %v8278_v10, 16  ;;  %v12280_v13 = vrot.slane %v10375_v3, 9  ;;  %v10379_v54 = vld [vmem:[#allocation3 + $0x64] sm:$0xf]  ;;  %v17569_v58 = vpop.f32.mrb[173].mxu0 }
 0x3c5   :  { %v8541_v35 = vrot.slane %v8540_v5, 4  ;;  %v8551_v26 = vrot.slane %v8550_v62, 4  ;;  %v10493_v17 = vrot.slane %v10376_v47, 5  ;;  %v17564_v52 = vsel %vm15470_vm14, %v10488_v36, %v10489_v18  ;;  %v10380_v53 = vld [vmem:[#allocation3 + $0x68] sm:$0x1]  ;;  %v17575_v36 = vpop.f32.mrb[174].mxu0 }
 0x3c6   :  { %v17567_v9 = vadd.f32 %v17176_v23, %v13031_v16  ;;  %v8560_v12 = vrot.slane %v8558_v56, 4  ;;  %v8561_v43 = vshll.u32 %v8278_v10, 16  ;;  %v8567_v29 = vshll.u32 %v8279_v42, 16  ;;  %v10381_v47 = vld [vmem:[#allocation3 + $0x6c] sm:$0xe]  ;;  %v17579_v62 = vpop.f32.mrb[175].mxu0 }
 0x3c7   :  { %v8546_v21 = vsel %vm14914_vm11, %v8541_v35, %v8545_v31  ;;  %v8556_v38 = vsel %vm14914_vm11, %v8551_v26, %v8555_v30  ;;  %v8571_v41 = vshrl.u32 %v8279_v42, 16  ;;  %v12294_v23 = vcombine.low %v17544_v50, %v17548_v55  ;;  %v10382_v5 = vld [vmem:[#allocation3 + $0x70] sm:$0xf]  ;;  %v17581_v35 = vpop.f32.mrb[176].mxu0 }
 0x3c8   :  { %v12181_v10 = vcombine.low %v8546_v21, %v8556_v38  ;;  %v8563_v18 = vrot.slane %v8561_v43, 5  ;;  %v8577_v3 = vshll.u32 %v8280_v27, 16  ;;  %v10495_v31 = vrot.slane %v10493_v17, 4  ;;  %v10383_v27 = vld [vmem:[#allocation3 + $0x74] sm:$0x1] }
 0x3c9   :  { %v10496_v16 = vrot.slane %v10377_v59, 5  ;;  %v8569_v30 = vrot.slane %v8567_v29, 5  ;;  %v8573_v56 = vrot.slane %v8571_v41, 4  ;;  %v12295_v42 = vcombine.low %v17552_v24, %v17564_v52  ;;  %v8281_v43 = vld [vmem:[#allocation3 + $0x9c] sm:$0xf] }
 0x3ca   :  { %13675 = vmatmul.mubr.bf16.vlgmr.msra.gmra.mrb[64].mxu1 %v12292_v44  ;;  %9397 = vmatprep.mubr.bf16.mxu0 %v12181_v10  ;;  %v17587_v50 = vsel %vm15470_vm14, %v12280_v13, %v10493_v17  ;;  %v8564_v55 = vor.u32 %v8563_v18, %v8560_v12  ;;  %v10500_v26 = vrot.slane %v10379_v54, 5  ;;  %v17589_v44 = vpop.f32.mrb[177].mxu0  ;;  %v8579_v21 = vrot.slane %v8577_v3, 5 }
 0x3cb   :  { %13678 = vmatprep.mubr.bf16.mxu1 %v12293_v48  ;;  %9398 = vmatmul.mubr.bf16.gmra.mrb[8].mxu0 %v14306_v46  ;;  %v8574_v59 = vor.u32 %v8573_v56, %v8569_v30  ;;  %v12281_v38 = vrot.slane %v10378_v28, 9  ;;  %v10507_v29 = vrot.slane %v10382_v5, 5  ;;  %v17591_v48 = vpop.f32.mrb[178].mxu0  ;;  %v10503_v24 = vrot.slane %v10380_v53, 5  ;;  %v8282_v46 = vld [vmem:[#allocation3 + $0xa0] sm:$0xf] }
 0x3cc   :  { %v8565_v41 = vrot.slane %v8564_v55, 4  ;;  %v10502_v10 = vrot.slane %v10500_v26, 4  ;;  %v13034_v13 = vadd.f32 %v17482_v45, %v17473_v61  ;;  %v17597_v17 = vsel %vm15470_vm14, %v10495_v31, %v10496_v16  ;;  %v8283_v28 = vld [vmem:[#allocation3 + $0xa4] sm:$0x1]  ;;  %v10384_v61 = vld [vmem:[#allocation3 + $0x78] sm:$0xe] }
 0x3cd   :  { %v8575_v52 = vrot.slane %v8574_v59, 4  ;;  %v12282_v12 = vrot.slane %v10381_v47, 9  ;;  %v13037_v54 = vadd.f32 %v17496_v33, %v17494_v6  ;;  %v10510_v3 = vrot.slane %v10383_v27, 5  ;;  %v17606_v45 = vpop.f32.mrb[179].mxu0  ;;  %v14307_v47 = vld [vmem:[#allocation3 + $0x90] sm:$0xff]  }
 0x3ce   :  { %v8570_v18 = vsel %vm14914_vm11, %v8565_v41, %v8569_v30  ;;  %v17604_v53 = vadd.f32 %v17189_v34, %v13034_v13  ;;  %v8582_v5 = vshrl.u32 %v8281_v43, 16  ;;  %v17612_v6 = vsel %vm15470_vm14, %v12281_v38, %v10500_v26  ;;  %v10385_v30 = vld [vmem:[#allocation3 + $0x7c] sm:$0xf]  ;;  %v10386_v56 = vld [vmem:[#allocation3 + $0x80] sm:$0x1] }
 0x3cf   :  { %v8580_v31 = vsel %vm14914_vm11, %v8575_v52, %v8579_v21  ;;  %v10509_v33 = vrot.slane %v10507_v29, 4  ;;  %v17615_v16 = vadd.f32 %v17192_v32, %v13037_v54  ;;  %v10504_v55 = vsel %vm15470_vm14, %v10502_v10, %v10503_v24  ;;  %v17619_v41 = vld [vmem:[#allocation3 + $0x84] sm:$0xe]  ;;  %v17621_v21 = vld [vmem:[#allocation3 + $0x88] sm:$0xf] }
 0x3d0   :  { %v12182_v34 = vcombine.low %v8570_v18, %v8580_v31  ;;  %v8584_v27 = vrot.slane %v8582_v5, 4  ;;  %v8585_v59 = vshll.u32 %v8281_v43, 16  ;;  %v12296_v26 = vcombine.low %v17587_v50, %v17597_v17  ;;  %v17629_v54 = vld [vmem:[#allocation3 + $0x8c] sm:$0x1]  ;;  %v8284_v17 = vld [vmem:[#allocation3 + $0xa8] sm:$0xf] }
 0x3d1   :  { %18347 = vst [vmem:[#allocation60_spill] sm:$0xff] %v17615_v16  ;;  %v8591_v38 = vshll.u32 %v8282_v46, 16  ;;  %v8595_v13 = vshrl.u32 %v8282_v46, 16  ;;  %v8601_v32 = vshll.u32 %v8283_v28, 16  ;;  %v17627_v52 = vsel %vm15470_vm14, %v12282_v12, %v10507_v29  ;;  %v8285_v28 = vld [vmem:[#allocation3 + $0xac] sm:$0xf] }
 0x3d2   :  { %13679 = vmatmul.mubr.bf16.gmra.mrb[68].mxu1 %v12294_v23  ;;  %9405 = vmatprep.mubr.bf16.mxu0 %v12182_v34  ;;  %v8587_v10 = vrot.slane %v8585_v59, 5  ;;  %v12283_v24 = vrot.slane %v10384_v61, 9  ;;  %v10514_v43 = vrot.slane %v10385_v30, 5  ;;  %v12297_v23 = vcombine.low %v17612_v6, %v10504_v55  ;;  %v17637_v61 = vpop.f32.mrb[180].mxu0  ;;  %v8286_v34 = vld [vmem:[#allocation3 + $0xb0] sm:$0x1] }
 0x3d3   :  { %13682 = vmatprep.mubr.bf16.mxu1 %v12295_v42  ;;  %9406 = vmatmul.mubr.bf16.gmra.mrb[12].mxu0 %v14307_v47  ;;  %v8593_v18 = vrot.slane %v8591_v38, 5  ;;  %v8597_v5 = vrot.slane %v8595_v13, 4  ;;  %v10521_v50 = vrot.slane %v17621_v21, 5  ;;  %v17635_v42 = vsel %vm15470_vm14, %v10509_v33, %v10510_v3  ;;  %v17642_v55 = vpop.f32.mrb[181].mxu0 }
 0x3d4   :  { %v8588_v46 = vor.u32 %v8587_v10, %v8584_v27  ;;  %v10516_v29 = vrot.slane %v10514_v43, 4  ;;  %v10517_v12 = vrot.slane %v10386_v56, 5  ;;  %v8603_v30 = vrot.slane %v8601_v32, 5  ;;  %v10390_v27 = vld [vmem:[#allocation3 + $0x90] sm:$0xe]  ;;  %v17650_v21 = vpop.f32.mrb[182].mxu0 }
 0x3d5   :  { %v8598_v31 = vor.u32 %v8597_v5, %v8593_v18  ;;  %v12284_v47 = vrot.slane %v17619_v41, 9  ;;  %v13040_v6 = vadd.f32 %v17520_v20, %v17506_v63  ;;  %v17646_v3 = vsel %vm15470_vm14, %v12283_v24, %v10514_v43  ;;  %v10391_v20 = vld [vmem:[#allocation3 + $0x94] sm:$0xf]  ;;  %v17656_v32 = vpop.f32.mrb[183].mxu0  ;;  %v14308_v24 = vld [vmem:[#allocation3 + $0x9c] sm:$0xff]  }
 0x3d6   :  { %v8589_v59 = vrot.slane %v8588_v46, 4  ;;  %v13043_v33 = vadd.f32 %v17535_v60, %v17531_v15  ;;  %v8606_v56 = vshrl.u32 %v8284_v17, 16  ;;  %v10523_v41 = vrot.slane %v10521_v50, 4 }
 0x3d7   :  { %v8599_v38 = vrot.slane %v8598_v31, 4  ;;  %v10524_v13 = vrot.slane %v17629_v54, 5  ;;  %v17654_v63 = vadd.f32 %v17201_v14, %v13040_v6  ;;  %v10518_v15 = vsel %vm15470_vm14, %v10516_v29, %v10517_v12  ;;  %v10392_v31 = vld [vmem:[#allocation3 + $0x98] sm:$0x1]  ;;  %v10393_v29 = vld [vmem:[#allocation3 + $0x9c] sm:$0xe] }
 0x3d8   :  { %v8594_v10 = vsel %vm14914_vm11, %v8589_v59, %v8593_v18  ;;  %v17663_v60 = vadd.f32 %v17206_v22, %v13043_v33  ;;  %v8608_v43 = vrot.slane %v8606_v56, 4  ;;  %v8609_v14 = vshll.u32 %v8284_v17, 16  ;;  %v8287_v17 = vld [vmem:[#allocation3 + $0xb4] sm:$0xf] }
 0x3d9   :  { %18348 = vst [vmem:[#allocation64_spill] sm:$0xff] %v17654_v63  ;;  %v8604_v54 = vsel %vm14914_vm11, %v8599_v38, %v8603_v30  ;;  %v8615_v5 = vshll.u32 %v8285_v28, 16  ;;  %v8619_v46 = vshrl.u32 %v8285_v28, 16  ;;  %v8625_v59 = vshll.u32 %v8286_v34, 16  ;;  %v10394_v38 = vld [vmem:[#allocation3 + $0xa0] sm:$0xf] }
 0x3da   :  { %13683 = vmatmul.mubr.bf16.gmra.mrb[72].mxu1 %v12296_v26  ;;  %v17667_v6 = vpop.f32.mrb[184].mxu0  ;;  %v12183_v18 = vcombine.low %v8594_v10, %v8604_v54  ;;  %v12285_v63 = vrot.slane %v10390_v27, 9  ;;  %v10528_v16 = vrot.slane %v10391_v20, 5  ;;  %v12298_v22 = vcombine.low %v17627_v52, %v17635_v42 }
 0x3db   :  { %13686 = vmatprep.mubr.bf16.mxu1 %v12297_v23  ;;  %v17669_v12 = vpop.f32.mrb[185].mxu0  ;;  %v8611_v26 = vrot.slane %v8609_v14, 5  ;;  %v8617_v33 = vrot.slane %v8615_v5, 5  ;;  %v8621_v30 = vrot.slane %v8619_v46, 4  ;;  %v12299_v28 = vcombine.low %v17646_v3, %v10518_v15  ;;  %v8288_v15 = vld [vmem:[#allocation3 + $0xb8] sm:$0xf] }
 0x3dc   :  { %v17673_v56 = vpop.f32.mrb[186].mxu0  ;;  %9413 = vmatprep.mubr.bf16.mxu0 %v12183_v18  ;;  %v17678_v23 = vsel %vm15470_vm14, %v12284_v47, %v10521_v50  ;;  %v10530_v34 = vrot.slane %v10528_v16, 4  ;;  %v10531_v27 = vrot.slane %v10392_v31, 5  ;;  %v17684_v52 = vsel %vm15470_vm14, %v10523_v41, %v10524_v13  ;;  %v8289_v13 = vld [vmem:[#allocation3 + $0xbc] sm:$0x1] }
 0x3dd   :  { %v17680_v20 = vpop.f32.mrb[187].mxu0  ;;  %9414 = vmatmul.mubr.bf16.gmra.mrb[16].mxu0 %v14308_v24  ;;  %v8612_v42 = vor.u32 %v8611_v26, %v8608_v43  ;;  %v8622_v10 = vor.u32 %v8621_v30, %v8617_v33  ;;  %v8627_v54 = vrot.slane %v8625_v59, 5  ;;  %v17688_v3 = vsel %vm15470_vm14, %v12285_v63, %v10528_v16  ;;  %v14309_v43 = vld [vmem:[#allocation3 + $0xa8] sm:$0xff]   ;;  %v10395_v18 = vld [vmem:[#allocation3 + $0xa4] sm:$0x1] }
 0x3de   :  { %v13046_v50 = vadd.f32 %v17569_v58, %v17560_v7  ;;  %v13049_v47 = vadd.f32 %v17579_v62, %v17575_v36  ;;  %v8630_v14 = vshrl.u32 %v8287_v17, 16  ;;  %v12286_v46 = vrot.slane %v10393_v29, 9  ;;  %v10396_v29 = vld [vmem:[#allocation3 + $0xa8] sm:$0xe]  ;;  %v10397_v26 = vld [vmem:[#allocation3 + $0xac] sm:$0xf] }
 0x3df   :  { %v8613_v24 = vrot.slane %v8612_v42, 4  ;;  %v8623_v5 = vrot.slane %v8622_v10, 4  ;;  %v10535_v41 = vrot.slane %v10394_v38, 5  ;;  %v10532_v31 = vsel %vm15470_vm14, %v10530_v34, %v10531_v27  ;;  %v10398_v27 = vld [vmem:[#allocation3 + $0xb0] sm:$0x1] }
 0x3e0   :  { %v17697_v16 = vadd.f32 %v17213_v1, %v13046_v50  ;;  %v17700_v7 = vadd.f32 %v17218_v39, %v13049_v47  ;;  %v8632_v58 = vrot.slane %v8630_v14, 4  ;;  %v8633_v63 = vshll.u32 %v8287_v17, 16  ;;  %v10400_v38 = vld [vmem:[#allocation3 + $0xb8] sm:$0xf]  ;;  %v10399_v50 = vld [vmem:[#allocation3 + $0xb4] sm:$0xe] }
 0x3e1   :  { %v8618_v36 = vsel %vm14914_vm11, %v8613_v24, %v8617_v33  ;;  %v8628_v62 = vsel %vm14914_vm11, %v8623_v5, %v8627_v54  ;;  %v8639_v59 = vshll.u32 %v8288_v15, 16  ;;  %v12300_v1 = vcombine.low %v17678_v23, %v17684_v52  ;;  %v10401_v23 = vld [vmem:[#allocation3 + $0xbc] sm:$0x1] }
 0x3e2   :  { %13687 = vmatmul.mubr.bf16.gmra.mrb[76].mxu1 %v12298_v22  ;;  %v12184_v30 = vcombine.low %v8618_v36, %v8628_v62  ;;  %v8643_v34 = vshrl.u32 %v8288_v15, 16  ;;  %v8649_v39 = vshll.u32 %v8289_v13, 16  ;;  %v10537_v22 = vrot.slane %v10535_v41, 4  ;;  %v8290_v13 = vld [vmem:[#allocation3 + $0xc0] sm:$0xf] }
 0x3e3   :  { %13690 = vmatprep.mubr.bf16.mxu1 %v12299_v28  ;;  %v10538_v42 = vrot.slane %v10395_v18, 5  ;;  %v8635_v10 = vrot.slane %v8633_v63, 5  ;;  %v8641_v33 = vrot.slane %v8639_v59, 5  ;;  %v12301_v17 = vcombine.low %v17688_v3, %v10532_v31  ;;  %v8291_v59 = vld [vmem:[#allocation3 + $0xc4] sm:$0xf] }
 0x3e4   :  { %9421 = vmatprep.mubr.bf16.mxu0 %v12184_v30  ;;  %v17711_v54 = vsel %vm15470_vm14, %v12286_v46, %v10535_v41  ;;  %v8645_v28 = vrot.slane %v8643_v34, 4  ;;  %v10542_v47 = vrot.slane %v10397_v26, 5  ;;  %v17713_v52 = vpop.f32.mrb[188].mxu0  ;;  %v8651_v14 = vrot.slane %v8649_v39, 5  ;;  %v8292_v39 = vld [vmem:[#allocation3 + $0xc8] sm:$0x1] }
 0x3e5   :  { %9422 = vmatmul.mubr.bf16.gmra.mrb[20].mxu0 %v14309_v43  ;;  %v8636_v15 = vor.u32 %v8635_v10, %v8632_v58  ;;  %v12287_v24 = vrot.slane %v10396_v29, 9  ;;  %v10549_v5 = vrot.slane %v10400_v38, 5  ;;  %v17715_v18 = vpop.f32.mrb[189].mxu0  ;;  %v10545_v3 = vrot.slane %v10398_v27, 5 }
 0x3e6   :  { %v8646_v36 = vor.u32 %v8645_v28, %v8641_v33  ;;  %v10544_v62 = vrot.slane %v10542_v47, 4  ;;  %v13052_v46 = vadd.f32 %v17589_v44, %v17581_v35  ;;  %v17719_v41 = vpop.f32.mrb[190].mxu0  ;;  %v10539_v31 = vsel %vm15470_vm14, %v10537_v22, %v10538_v42 }
 0x3e7   :  { %v8637_v63 = vrot.slane %v8636_v15, 4  ;;  %v12288_v43 = vrot.slane %v10399_v50, 9  ;;  %v13055_v58 = vadd.f32 %v17606_v45, %v17591_v48  ;;  %v17725_v29 = vpop.f32.mrb[191].mxu0  ;;  %v10552_v30 = vrot.slane %v10401_v23, 5  ;;  %v10403_v45 = vld [vmem:[#allocation3 + $0xc4] sm:$0xf] }
 0x3e8   :  { %v8647_v26 = vrot.slane %v8646_v36, 4  ;;  %v17728_v34 = vadd.f32 %v17229_v0, %v13052_v46  ;;  %v8654_v35 = vshrl.u32 %v8290_v13, 16  ;;  %v10543_v27 = vsel %vm15470_vm14, %v12287_v24, %v10542_v47  ;;  %v14310_v0 = vld [vmem:[#allocation3 + $0xb4] sm:$0xff]   ;;  %v10402_v50 = vld [vmem:[#allocation3 + $0xc0] sm:$0xe] }
 0x3e9   :  { %v8642_v44 = vsel %vm14914_vm11, %v8637_v63, %v8641_v33  ;;  %v10551_v38 = vrot.slane %v10549_v5, 4  ;;  %v17735_v48 = vadd.f32 %v17234_v4, %v13055_v58  ;;  %v10546_v42 = vsel %vm15470_vm14, %v10544_v62, %v10545_v3  ;;  %v10404_v15 = vld [vmem:[#allocation3 + $0xc8] sm:$0x1] }
 0x3ea   :  { %13691 = vmatmul.mubr.bf16.gmra.mrb[80].mxu1 %v12300_v1  ;;  %v8652_v22 = vsel %vm14914_vm11, %v8647_v26, %v8651_v14  ;;  %v8656_v1 = vrot.slane %v8654_v35, 4  ;;  %v8657_v10 = vshll.u32 %v8290_v13, 16  ;;  %v8663_v28 = vshll.u32 %v8291_v59, 16 }
 0x3eb   :  { %13694 = vmatprep.mubr.bf16.mxu1 %v12301_v17  ;;  %v12185_v33 = vcombine.low %v8642_v44, %v8652_v22  ;;  %v8667_v23 = vshrl.u32 %v8291_v59, 16  ;;  %v8673_v47 = vshll.u32 %v8292_v39, 16  ;;  %v12302_v4 = vcombine.low %v17711_v54, %v10539_v31  ;;  %v10406_v54 = vld [vmem:[#allocation3 + $0xd0] sm:$0xf] }
 0x3ec   :  { %v10550_v17 = vsel %vm15470_vm14, %v12288_v43, %v10549_v5  ;;  %v8659_v24 = vrot.slane %v8657_v10, 5  ;;  %v10556_v36 = vrot.slane %v10403_v45, 5  ;;  %v10553_v14 = vsel %vm15470_vm14, %v10551_v38, %v10552_v30  ;;  %v14311_v10 = vld [vmem:[#allocation3 + $0xc0] sm:$0xff]  }
 0x3ed   :  { %9429 = vmatprep.mubr.bf16.mxu0 %v12185_v33  ;;  %v8665_v62 = vrot.slane %v8663_v28, 5  ;;  %v8669_v3 = vrot.slane %v8667_v23, 4  ;;  %v12289_v13 = vrot.slane %v10402_v50, 9  ;;  %v12303_v46 = vcombine.low %v10543_v27, %v10546_v42  ;;  %v10407_v50 = vld [vmem:[#allocation3 + $0xd4] sm:$0x1] }
 0x3ee   :  { %9430 = vmatmul.mubr.bf16.gmra.mrb[24].mxu0 %v14310_v0  ;;  %v8660_v63 = vor.u32 %v8659_v24, %v8656_v1  ;;  %v8675_v58 = vrot.slane %v8673_v47, 5  ;;  %v10559_v59 = vrot.slane %v10404_v15, 5  ;;  %v10558_v39 = vrot.slane %v10556_v36, 4  ;;  %v18349_v47 = vld [vmem:[#allocation45_spill] sm:$0xff] }
 0x3ef   :  { %v8670_v26 = vor.u32 %v8669_v3, %v8665_v62  ;;  %v13058_v5 = vadd.f32 %v17642_v55, %v17637_v61  ;;  %v13061_v31 = vadd.f32 %v17656_v32, %v17650_v21  ;;  %v13074_v43 = vpop.f32.mrb[192].mxu0  ;;  %v12304_v35 = vcombine.low %v10550_v17, %v10553_v14  ;;  %v10405_v55 = vld [vmem:[#allocation3 + $0xcc] sm:$0xe] }
 0x3f0   :  { %v8661_v30 = vrot.slane %v8660_v63, 4  ;;  %v13075_v44 = vpop.f32.mrb[193].mxu0  ;;  %v10557_v27 = vsel %vm15470_vm14, %v12289_v13, %v10556_v36  ;;  %v10563_v21 = vrot.slane %v10406_v54, 5  ;;  %v13064_v32 = vadd.f32 %v17669_v12, %v17667_v6 }
 0x3f1   :  { %v8671_v38 = vrot.slane %v8670_v26, 4  ;;  %v17753_v45 = vadd.f32 %v17243_v40, %v13058_v5  ;;  %v17756_v22 = vadd.f32 %v17246_v11, %v13061_v31  ;;  %v13077_v0 = vpop.f32.mrb[194].mxu0  ;;  %v13067_v42 = vadd.f32 %v17680_v20, %v17673_v56 }
 0x3f2   :  { %13695 = vmatmul.mubr.bf16.gmra.mrb[84].mxu1 %v12302_v4  ;;  %v8666_v61 = vsel %vm14914_vm11, %v8661_v30, %v8665_v62  ;;  %v13078_v1 = vpop.f32.mrb[195].mxu0  ;;  %v10560_v11 = vsel %vm15470_vm14, %v10558_v39, %v10559_v59  ;;  %v13070_v33 = vadd.f32 %v17715_v18, %v17713_v52  ;;  %v13073_v28 = vadd.f32 %v17725_v29, %v17719_v41  ;;  %v18350_v59 = vld [vmem:[#allocation50_spill] sm:$0xff] }
 0x3f3   :  { %13698 = vmatprep.mubr.bf16.mxu1 %v12303_v46  ;;  %v8676_v40 = vsel %vm14914_vm11, %v8671_v38, %v8675_v58  ;;  %v17773_v6 = vadd.f32 %v17264_v25, %v13064_v32  ;;  %v17776_v12 = vadd.f32 %v17267_v57, %v13067_v42  ;;  %v13076_v19 = vadd.f32 %v13075_v44, %v13074_v43 }
 0x3f4   :  { %v12186_v23 = vcombine.low %v8666_v61, %v8676_v40  ;;  %v12290_v56 = vrot.slane %v10405_v55, 9  ;;  %v17779_v20 = vadd.f32 %v17277_v49, %v13070_v33  ;;  %v17782_v15 = vadd.f32 %v18349_v47, %v13073_v28  ;;  %v18353_v40 = vld [vmem:[#allocation47_spill] sm:$0xff] }
 0x3f5   :  { %v13079_v4 = vadd.f32 %v13078_v1, %v13077_v0  ;;  %v12305_v52 = vcombine.low %v10557_v27, %v10560_v11  ;;  %v10565_v18 = vrot.slane %v10563_v21, 4  ;;  %v10566_v41 = vrot.slane %v10407_v50, 5 }
 0x3f6   :  { %9437 = vmatprep.mubr.bf16.mxu0 %v12186_v23  ;;  %v17785_v29 = vadd.f32 %v17296_v8, %v13076_v19  ;;  %v10564_v57 = vsel %vm15470_vm14, %v12290_v56, %v10563_v21  ;;  %v18352_v21 = vld [vmem:[#allocation46_spill] sm:$0xff] }
 0x3f7   :  { %9438 = vmatmul.mubr.bf16.gmra.mrb[28].mxu0 %v14311_v10  ;;  %v17788_v25 = vadd.f32 %v17301_v37, %v13079_v4  ;;  %v10567_v49 = vsel %vm15470_vm14, %v10565_v18, %v10566_v41  ;;  %v18354_v18 = vld [vmem:[#allocation61_spill] sm:$0xff] }
 0x3f8   :  { %v12306_v62 = vcombine.low %v10564_v57, %v10567_v49 }
 0x3fa   :  { %13699 = vmatmul.mubr.bf16.gmra.mrb[88].mxu1 %v12304_v35 }
 0x3fb   :  { %13702 = vmatprep.mubr.bf16.mxu1 %v12305_v52 }
 0x3fc   :  { %v13298_v17 = vpop.f32.mrb[96].mxu1  ;;  %v13080_v24 = vpop.f32.mrb[196].mxu0 }
 0x3fd   :  { %v13299_v36 = vpop.f32.mrb[97].mxu1  ;;  %v13081_v14 = vpop.f32.mrb[197].mxu0 }
 0x3fe   :  { %v17794_v3 = vadd.f32 %v13299_v36, %v13298_v17  ;;  %v13301_v8 = vpop.f32.mrb[98].mxu1  ;;  %v13082_v13 = vadd.f32 %v13081_v14, %v13080_v24  ;;  %v13083_v46 = vpop.f32.mrb[198].mxu0  ;;  %v18355_v17 = vld [vmem:[#allocation54_spill] sm:$0xff] }
 0x3ff   :  { %v13302_v37 = vpop.f32.mrb[99].mxu1  ;;  %v13084_v63 = vpop.f32.mrb[199].mxu0 }
 0x400   :  { %v17796_v58 = vadd.f32 %v13302_v37, %v13301_v8  ;;  %v17799_v26 = vadd.f32 %v18350_v59, %v13082_v13  ;;  %v13085_v39 = vadd.f32 %v13084_v63, %v13083_v46 }
 0x402   :  { %13703 = vmatmul.mubr.bf16.gmra.mrb[92].mxu1 %v12306_v62  ;;  %v17802_v54 = vadd.f32 %v18351_v51, %v13085_v39  ;;  %v18356_v51 = vld [vmem:[#allocation52_spill] sm:$0xff] }
 0x404   :  { %v13304_v5 = vpop.f32.mrb[100].mxu1 }
 0x405   :  { %v13305_v31 = vpop.f32.mrb[101].mxu1 }
 0x406   :  { %v17804_v43 = vadd.f32 %v13305_v31, %v13304_v5  ;;  %v13307_v35 = vpop.f32.mrb[102].mxu1 }
 0x407   :  { %v13308_v30 = vpop.f32.mrb[103].mxu1  ;;  %v13086_v44 = vpop.f32.mrb[200].mxu0 }
 0x408   :  { %v17806_v38 = vadd.f32 %v13308_v30, %v13307_v35  ;;  %v13087_v27 = vpop.f32.mrb[201].mxu0 }
 0x409   :  { %v13088_v0 = vadd.f32 %v13087_v27, %v13086_v44  ;;  %v13089_v61 = vpop.f32.mrb[202].mxu0  ;;  %v18357_v44 = vld [vmem:[#allocation55_spill] sm:$0xff] }
 0x40a   :  { %v13090_v55 = vpop.f32.mrb[203].mxu0 }
 0x40b   :  { %v17809_v32 = vadd.f32 %v18352_v21, %v13088_v0  ;;  %v13091_v42 = vadd.f32 %v13090_v55, %v13089_v61 }
 0x40c   :  { %v13310_v1 = vpop.f32.mrb[104].mxu1 }
 0x40d   :  { %v17812_v10 = vadd.f32 %v18353_v40, %v13091_v42  ;;  %v13311_v11 = vpop.f32.mrb[105].mxu1 }
 0x40e   :  { %v17814_v50 = vadd.f32 %v13311_v11, %v13310_v1  ;;  %v13313_v33 = vpop.f32.mrb[106].mxu1 }
 0x40f   :  { %v13314_v28 = vpop.f32.mrb[107].mxu1 }
 0x410   :  { %v17816_v23 = vadd.f32 %v13314_v28, %v13313_v33  ;;  %v13092_v19 = vpop.f32.mrb[204].mxu0  ;;  %v18358_v28 = vld [vmem:[#allocation53_spill] sm:$0xff] }
 0x411   :  { %v13093_v56 = vpop.f32.mrb[205].mxu0 }
 0x412   :  { %v13094_v47 = vadd.f32 %v13093_v56, %v13092_v19  ;;  %v13095_v4 = vpop.f32.mrb[206].mxu0 }
 0x413   :  { %v13096_v52 = vpop.f32.mrb[207].mxu0 }
 0x414   :  { %v17819_v41 = vadd.f32 %v18354_v18, %v13094_v47  ;;  %v13097_v57 = vadd.f32 %v13096_v52, %v13095_v4  ;;  %v13316_v49 = vpop.f32.mrb[108].mxu1  ;;  %v18359_v52 = vld [vmem:[#allocation58_spill] sm:$0xff] }
 0x415   :  { %v13317_v36 = vpop.f32.mrb[109].mxu1 }
 0x416   :  { %v17822_v24 = vadd.f32 %v18355_v17, %v13097_v57  ;;  %v17824_v14 = vadd.f32 %v13317_v36, %v13316_v49  ;;  %v13319_v62 = vpop.f32.mrb[110].mxu1 }
 0x417   :  { %v13320_v8 = vpop.f32.mrb[111].mxu1 }
 0x418   :  { %v17826_v13 = vadd.f32 %v13320_v8, %v13319_v62 }
 0x419   :  { %v13098_v46 = vpop.f32.mrb[208].mxu0 }
 0x41a   :  { %v13099_v37 = vpop.f32.mrb[209].mxu0 }
 0x41b   :  { %v13100_v63 = vadd.f32 %v13099_v37, %v13098_v46  ;;  %v13101_v59 = vpop.f32.mrb[210].mxu0 }
 0x41c   :  { %v13102_v39 = vpop.f32.mrb[211].mxu0 }
 0x41d   :  { %v17829_v5 = vadd.f32 %v18356_v51, %v13100_v63  ;;  %v13103_v31 = vadd.f32 %v13102_v39, %v13101_v59  ;;  %v18360_v39 = vld [vmem:[#allocation56_spill] sm:$0xff] }
 0x41e   :  { %v13322_v35 = vpop.f32.mrb[112].mxu1 }
 0x41f   :  { %v13323_v30 = vpop.f32.mrb[113].mxu1  ;;  %v17832_v27 = vadd.f32 %v18357_v44, %v13103_v31 }
 0x420   :  { %v17834_v0 = vadd.f32 %v13323_v30, %v13322_v35  ;;  %v13325_v61 = vpop.f32.mrb[114].mxu1 }
 0x421   :  { %v13326_v55 = vpop.f32.mrb[115].mxu1 }
 0x422   :  { %v17836_v21 = vadd.f32 %v13326_v55, %v13325_v61  ;;  %v18361_v61 = vld [vmem:[#allocation59_spill] sm:$0xff] }
 0x423   :  { %v13104_v42 = vpop.f32.mrb[212].mxu0 }
 0x424   :  { %v13105_v1 = vpop.f32.mrb[213].mxu0 }
 0x425   :  { %v13106_v40 = vadd.f32 %v13105_v1, %v13104_v42  ;;  %v13107_v11 = vpop.f32.mrb[214].mxu0 }
 0x426   :  { %v13108_v33 = vpop.f32.mrb[215].mxu0 }
 0x427   :  { %v17839_v19 = vadd.f32 %v18358_v28, %v13106_v40  ;;  %v13109_v56 = vadd.f32 %v13108_v33, %v13107_v11  ;;  %v13328_v47 = vpop.f32.mrb[116].mxu1 }
 0x428   :  { %v13329_v4 = vpop.f32.mrb[117].mxu1 }
 0x429   :  { %v17842_v18 = vadd.f32 %v18359_v52, %v13109_v56  ;;  %v17844_v57 = vadd.f32 %v13329_v4, %v13328_v47  ;;  %v13331_v49 = vpop.f32.mrb[118].mxu1  ;;  %v18362_v4 = vld [vmem:[#allocation57_spill] sm:$0xff] }
 0x42a   :  { %v13332_v17 = vpop.f32.mrb[119].mxu1 }
 0x42b   :  { %v17846_v36 = vadd.f32 %v13332_v17, %v13331_v49 }
 0x42d   :  { %v13110_v62 = vpop.f32.mrb[216].mxu0 }
 0x42e   :  { %v13111_v8 = vpop.f32.mrb[217].mxu0 }
 0x42f   :  { %v13112_v46 = vadd.f32 %v13111_v8, %v13110_v62  ;;  %v13113_v37 = vpop.f32.mrb[218].mxu0 }
 0x430   :  { %v13114_v63 = vpop.f32.mrb[219].mxu0  ;;  %v13334_v59 = vpop.f32.mrb[120].mxu1 }
 0x431   :  { %v17849_v51 = vadd.f32 %v18360_v39, %v13112_v46  ;;  %v13115_v31 = vadd.f32 %v13114_v63, %v13113_v37  ;;  %v13335_v35 = vpop.f32.mrb[121].mxu1  ;;  %v18363_v46 = vld [vmem:[#allocation63_spill] sm:$0xff] }
 0x432   :  { %v17851_v30 = vadd.f32 %v13335_v35, %v13334_v59  ;;  %v13337_v44 = vpop.f32.mrb[122].mxu1 }
 0x433   :  { %v17854_v55 = vadd.f32 %v18361_v61, %v13115_v31  ;;  %v13338_v42 = vpop.f32.mrb[123].mxu1 }
 0x434   :  { %v17856_v1 = vadd.f32 %v13338_v42, %v13337_v44 }
 0x436   :  { %v13116_v40 = vpop.f32.mrb[220].mxu0 }
 0x437   :  { %v13117_v11 = vpop.f32.mrb[221].mxu0 }
 0x438   :  { %v13118_v33 = vadd.f32 %v13117_v11, %v13116_v40  ;;  %v13119_v28 = vpop.f32.mrb[222].mxu0 }
 0x439   :  { %v13120_v56 = vpop.f32.mrb[223].mxu0 }
 0x43a   :  { %v13340_v47 = vpop.f32.mrb[124].mxu1  ;;  %v17859_v52 = vadd.f32 %v18362_v4, %v13118_v33  ;;  %v13121_v49 = vadd.f32 %v13120_v56, %v13119_v28 }
 0x43b   :  { %v13341_v17 = vpop.f32.mrb[125].mxu1 }
 0x43c   :  { %v17861_v62 = vadd.f32 %v13341_v17, %v13340_v47  ;;  %v13343_v8 = vpop.f32.mrb[126].mxu1  ;;  %v17864_v37 = vadd.f32 %v18363_v46, %v13121_v49 }
 0x43d   :  { %v13344_v63 = vpop.f32.mrb[127].mxu1 }
 0x43e   :  { %18364 = vst [vmem:[#allocation62_spill] sm:$0xff] %v17864_v37  ;;  %v17866_v59 = vadd.f32 %v13344_v63, %v13343_v8 }
 0x43f   :  { %v13162_v39 = vpop.f32.mrb[224].mxu0 }
 0x440   :  { %v13163_v31 = vpop.f32.mrb[225].mxu0 }
 0x441   :  { %v13164_v35 = vadd.f32 %v13163_v31, %v13162_v39  ;;  %v13165_v44 = vpop.f32.mrb[226].mxu0 }
 0x442   :  { %v13166_v61 = vpop.f32.mrb[227].mxu0 }
 0x443   :  { %v13717_v42 = vadd.f32 %v17556_v2, %v13164_v35  ;;  %v13167_v40 = vadd.f32 %v13166_v61, %v13165_v44 }
 0x444   :  { %v13346_v11 = vpop.f32.mrb[128].mxu1 }
 0x445   :  { %v13731_v33 = vadd.f32 %v17567_v9, %v13167_v40  ;;  %v13347_v28 = vpop.f32.mrb[129].mxu1  ;;  %v17871_v56 = vadd.f32 %v13717_v42, %v17794_v3  ;;  %v18365_v3 = vld [vmem:[#allocation60_spill] sm:$0xff] }
 0x446   :  { %v17873_v47 = vadd.f32 %v13347_v28, %v13346_v11  ;;  %v13349_v4 = vpop.f32.mrb[130].mxu1 }
 0x447   :  { %v13350_v49 = vpop.f32.mrb[131].mxu1  ;;  %v17876_v17 = vadd.f32 %v13731_v33, %v17796_v58 }
 0x448   :  { %v17878_v8 = vadd.f32 %v13350_v49, %v13349_v4 }
 0x449   :  { %v13168_v46 = vpop.f32.mrb[228].mxu0 }
 0x44a   :  { %v13169_v63 = vpop.f32.mrb[229].mxu0 }
 0x44b   :  { %v13170_v2 = vadd.f32 %v13169_v63, %v13168_v46  ;;  %v13171_v39 = vpop.f32.mrb[230].mxu0 }
 0x44c   :  { %v13172_v31 = vpop.f32.mrb[231].mxu0 }
 0x44d   :  { %v13710_v9 = vadd.f32 %v17604_v53, %v13170_v2  ;;  %v13173_v35 = vadd.f32 %v13172_v31, %v13171_v39  ;;  %v13352_v44 = vpop.f32.mrb[132].mxu1  ;;  %v18366_v39 = vld [vmem:[#allocation64_spill] sm:$0xff] }
 0x44e   :  { %v13353_v42 = vpop.f32.mrb[133].mxu1 }
 0x44f   :  { %v13724_v61 = vadd.f32 %v18365_v3, %v13173_v35  ;;  %v17883_v40 = vadd.f32 %v13710_v9, %v17804_v43  ;;  %v17885_v11 = vadd.f32 %v13353_v42, %v13352_v44  ;;  %v13355_v58 = vpop.f32.mrb[134].mxu1 }
 0x450   :  { %v13356_v33 = vpop.f32.mrb[135].mxu1 }
 0x451   :  { %v17888_v28 = vadd.f32 %v13724_v61, %v17806_v38  ;;  %v17890_v4 = vadd.f32 %v13356_v33, %v13355_v58 }
 0x453   :  { %v13174_v49 = vpop.f32.mrb[232].mxu0 }
 0x454   :  { %v13175_v46 = vpop.f32.mrb[233].mxu0 }
 0x455   :  { %v13176_v53 = vadd.f32 %v13175_v46, %v13174_v49  ;;  %v13177_v63 = vpop.f32.mrb[234].mxu0 }
 0x456   :  { %v13178_v2 = vpop.f32.mrb[235].mxu0 }
 0x457   :  { %v13745_v31 = vadd.f32 %v18366_v39, %v13176_v53  ;;  %v13179_v35 = vadd.f32 %v13178_v2, %v13177_v63  ;;  %v13358_v3 = vpop.f32.mrb[136].mxu1 }
 0x458   :  { %v13359_v43 = vpop.f32.mrb[137].mxu1 }
 0x459   :  { %v13759_v9 = vadd.f32 %v17663_v60, %v13179_v35  ;;  %v17894_v44 = vadd.f32 %v13359_v43, %v13358_v3  ;;  %v13361_v42 = vpop.f32.mrb[138].mxu1  ;;  %v17897_v38 = vadd.f32 %v13745_v31, %v17814_v50 }
 0x45a   :  { %v13362_v61 = vpop.f32.mrb[139].mxu1 }
 0x45b   :  { %v17899_v58 = vadd.f32 %v13362_v61, %v13361_v42  ;;  %v17902_v33 = vadd.f32 %v13759_v9, %v17816_v23 }
 0x45c   :  { %v13180_v49 = vpop.f32.mrb[236].mxu0 }
 0x45d   :  { %v13181_v46 = vpop.f32.mrb[237].mxu0 }
 0x45e   :  { %v13182_v53 = vadd.f32 %v13181_v46, %v13180_v49  ;;  %v13183_v63 = vpop.f32.mrb[238].mxu0 }
 0x45f   :  { %v13184_v2 = vpop.f32.mrb[239].mxu0 }
 0x460   :  { %v13738_v39 = vadd.f32 %v17697_v16, %v13182_v53  ;;  %v13185_v60 = vadd.f32 %v13184_v2, %v13183_v63  ;;  %v13364_v35 = vpop.f32.mrb[140].mxu1 }
 0x461   :  { %v13365_v3 = vpop.f32.mrb[141].mxu1 }
 0x462   :  { %v13752_v43 = vadd.f32 %v17700_v7, %v13185_v60  ;;  %v17906_v50 = vadd.f32 %v13365_v3, %v13364_v35  ;;  %v13367_v31 = vpop.f32.mrb[142].mxu1  ;;  %v17909_v42 = vadd.f32 %v13738_v39, %v17824_v14 }
 0x463   :  { %v13368_v23 = vpop.f32.mrb[143].mxu1 }
 0x464   :  { %v17911_v9 = vadd.f32 %v13368_v23, %v13367_v31  ;;  %v17914_v61 = vadd.f32 %v13752_v43, %v17826_v13 }
 0x465   :  { %v13186_v49 = vpop.f32.mrb[240].mxu0 }
 0x466   :  { %v13187_v46 = vpop.f32.mrb[241].mxu0 }
 0x467   :  { %v13188_v16 = vadd.f32 %v13187_v46, %v13186_v49  ;;  %v13189_v53 = vpop.f32.mrb[242].mxu0 }
 0x468   :  { %v13190_v63 = vpop.f32.mrb[243].mxu0 }
 0x469   :  { %v13370_v2 = vpop.f32.mrb[144].mxu1  ;;  %v13773_v7 = vadd.f32 %v17728_v34, %v13188_v16  ;;  %v13191_v60 = vadd.f32 %v13190_v63, %v13189_v53 }
 0x46a   :  { %v13371_v35 = vpop.f32.mrb[145].mxu1 }
 0x46b   :  { %v17917_v3 = vadd.f32 %v13371_v35, %v13370_v2  ;;  %v13373_v14 = vpop.f32.mrb[146].mxu1  ;;  %v13787_v39 = vadd.f32 %v17735_v48, %v13191_v60  ;;  %v17921_v23 = vadd.f32 %v13773_v7, %v17834_v0 }
 0x46c   :  { %v13374_v31 = vpop.f32.mrb[147].mxu1 }
 0x46d   :  { %v17923_v13 = vadd.f32 %v13374_v31, %v13373_v14  ;;  %v17926_v43 = vadd.f32 %v13787_v39, %v17836_v21 }
 0x46f   :  { %v13192_v49 = vpop.f32.mrb[244].mxu0 }
 0x470   :  { %v13193_v46 = vpop.f32.mrb[245].mxu0 }
 0x471   :  { %v13194_v37 = vadd.f32 %v13193_v46, %v13192_v49  ;;  %v13195_v34 = vpop.f32.mrb[246].mxu0 }
 0x472   :  { %v13196_v16 = vpop.f32.mrb[247].mxu0 }
 0x473   :  { %v13376_v53 = vpop.f32.mrb[148].mxu1  ;;  %v13766_v63 = vadd.f32 %v17753_v45, %v13194_v37  ;;  %v13197_v2 = vadd.f32 %v13196_v16, %v13195_v34 }
 0x474   :  { %v13377_v35 = vpop.f32.mrb[149].mxu1 }
 0x475   :  { %v17929_v48 = vadd.f32 %v13377_v35, %v13376_v53  ;;  %v13379_v60 = vpop.f32.mrb[150].mxu1  ;;  %v13780_v0 = vadd.f32 %v17756_v22, %v13197_v2  ;;  %v17933_v14 = vadd.f32 %v13766_v63, %v17844_v57 }
 0x476   :  { %v13380_v7 = vpop.f32.mrb[151].mxu1 }
 0x477   :  { %v17935_v21 = vadd.f32 %v13380_v7, %v13379_v60  ;;  %v17938_v31 = vadd.f32 %v13780_v0, %v17846_v36 }
 0x478   :  { %v13198_v39 = vpop.f32.mrb[248].mxu0 }
 0x479   :  { %v13199_v49 = vpop.f32.mrb[249].mxu0 }
 0x47a   :  { %v13200_v46 = vadd.f32 %v13199_v49, %v13198_v39  ;;  %v13201_v45 = vpop.f32.mrb[250].mxu0 }
 0x47b   :  { %v13202_v37 = vpop.f32.mrb[251].mxu0 }
 0x47c   :  { %v13801_v34 = vadd.f32 %v17773_v6, %v13200_v46  ;;  %v13203_v16 = vadd.f32 %v13202_v37, %v13201_v45 }
 0x47d   :  { %v13382_v53 = vpop.f32.mrb[152].mxu1 }
 0x47e   :  { %v13815_v22 = vadd.f32 %v17776_v12, %v13203_v16  ;;  %v13383_v2 = vpop.f32.mrb[153].mxu1  ;;  %v17943_v57 = vadd.f32 %v13801_v34, %v17851_v30 }
 0x47f   :  { %v17945_v63 = vadd.f32 %v13383_v2, %v13382_v53  ;;  %v13385_v35 = vpop.f32.mrb[154].mxu1 }
 0x480   :  { %v13386_v60 = vpop.f32.mrb[155].mxu1  ;;  %v17948_v36 = vadd.f32 %v13815_v22, %v17856_v1 }
 0x481   :  { %v17950_v0 = vadd.f32 %v13386_v60, %v13385_v35 }
 0x482   :  { %v13204_v7 = vpop.f32.mrb[252].mxu0 }
 0x483   :  { %v13205_v39 = vpop.f32.mrb[253].mxu0 }
 0x484   :  { %v13206_v6 = vadd.f32 %v13205_v39, %v13204_v7  ;;  %v13207_v49 = vpop.f32.mrb[254].mxu0 }
 0x485   :  { %v13208_v46 = vpop.f32.mrb[255].mxu0 }
 0x486   :  { %v13794_v12 = vadd.f32 %v17779_v20, %v13206_v6  ;;  %v13209_v45 = vadd.f32 %v13208_v46, %v13207_v49 }
 0x488   :  { %v13808_v30 = vadd.f32 %v17782_v15, %v13209_v45  ;;  %v17955_v37 = vadd.f32 %v13794_v12, %v17861_v62 }
 0x48a   :  { %v13210_v34 = vpop.f32.mrb[0].mxu0  ;;  %v17958_v16 = vadd.f32 %v13808_v30, %v17866_v59 }
 0x48b   :  { %v13211_v1 = vpop.f32.mrb[1].mxu0 }
 0x48c   :  { %v13212_v53 = vadd.f32 %v13211_v1, %v13210_v34  ;;  %v13213_v22 = vpop.f32.mrb[2].mxu0 }
 0x48d   :  { %v13214_v2 = vpop.f32.mrb[3].mxu0 }
 0x48e   :  { %v13829_v35 = vadd.f32 %v17785_v29, %v13212_v53  ;;  %v13215_v60 = vadd.f32 %v13214_v2, %v13213_v22 }
 0x490   :  { %v13843_v7 = vadd.f32 %v17788_v25, %v13215_v60  ;;  %v17963_v20 = vadd.f32 %v13829_v35, %v17873_v47  ;;  %v17984_v35 = vld [vmem:[%s18145_s10] ss:$0 sm:$0xff]  ;;  %s14590_s10 = smov [#allocation21]  }
 0x491   :  { %s11714_s6 = sshll.u32 %s14590_s10, 4  ;;  %s11715_s6 = int_to_ptr.vmem [resolvable:$true] %s11714_s6 }
 0x492   :  { %v17966_v15 = vadd.f32 %v13843_v7, %v17878_v8  ;;  %s14499_s26 = scalar_lea.vmem %s11715_s6, 2048  ;;  %p14504_p7 = scmp.lt.s32.totalorder %s11715_s6, %s11715_s6 }
 0x493   :  { %p14500_p6 = scmp.ne.s32.totalorder %s11715_s6, %s14499_s26  ;;  %p14505_p8 = scmp.lt.s32.totalorder %s14499_s26, %s14499_s26 }
 0x494   :  { %v13216_v39 = vpop.f32.mrb[4].mxu0 }
 0x495   :  { %v13388_v62 = vpop.f32.mrb[156].mxu1  ;;  %v13217_v59 = vpop.f32.mrb[5].mxu0  ;;  %p14506_p9 = por %p14505_p8, %p14504_p7 }
 0x496   :  { %v13389_v6 = vpop.f32.mrb[157].mxu1  ;;  %v13218_v12 = vadd.f32 %v13217_v59, %v13216_v39  ;;  %v13219_v45 = vpop.f32.mrb[6].mxu0 }
 0x497   :  { %v17968_v49 = vadd.f32 %v13389_v6, %v13388_v62  ;;  %v13391_v46 = vpop.f32.mrb[158].mxu1  ;;  %v13220_v29 = vpop.f32.mrb[7].mxu0  ;;  %p14507_p10 = pnand %p14506_p9, %p14500_p6 }
 0x498   :  { %v13392_v30 = vpop.f32.mrb[159].mxu1  ;;  %v13822_v25 = vadd.f32 %v17799_v26, %v13218_v12  ;;  %v13221_v47 = vadd.f32 %v13220_v29, %v13219_v45 }
 0x499   :  { %v17970_v34 = vadd.f32 %v13392_v30, %v13391_v46 }
 0x49a   :  { %v13836_v1 = vadd.f32 %v17802_v54, %v13221_v47  ;;  %v17975_v8 = vadd.f32 %v13822_v25, %v17885_v11 }
 0x49c   :  { %v17978_v22 = vadd.f32 %v13836_v1, %v17890_v4 }
 0x49d   :  { %v13676_v53 = vpop.f32.mrb[64].mxu1 }
 0x49e   :  { %v13712_v2 = vadd.f32 %v17883_v40, %v13676_v53  ;;  %v11083_v60 = vpop.f32.mrb[65].mxu1  ;;  %v13222_v62 = vpop.f32.mrb[8].mxu0 }
 0x49f   :  { %v13719_v26 = vadd.f32 %v17871_v56, %v11083_v60  ;;  %v13677_v7 = vpop.f32.mrb[66].mxu1  ;;  %v13223_v39 = vpop.f32.mrb[9].mxu0 }
 0x4a0   :  { %v13726_v54 = vadd.f32 %v17888_v28, %v13677_v7  ;;  %v11086_v11 = vpop.f32.mrb[67].mxu1  ;;  %v13224_v59 = vadd.f32 %v13223_v39, %v13222_v62  ;;  %v13225_v40 = vpop.f32.mrb[10].mxu0  ;;  %v11347_v46 = vadd.f32 %v13712_v2, %v17984_v35 }
 0x4a1   :  { %v11345_v6 = vadd.f32 %v13719_v26, %v17984_v35  ;;  %v13733_v4 = vadd.f32 %v17876_v17, %v11086_v11  ;;  %v13226_v45 = vpop.f32.mrb[11].mxu0 }
 0x4a2   :  { %v11348_v12 = vadd.f32 %v13726_v54, %v17984_v35  ;;  %v13857_v56 = vadd.f32 %v17809_v32, %v13224_v59  ;;  %v13227_v29 = vadd.f32 %v13226_v45, %v13225_v40  ;;  %v11481_v26 = vmul.f32 %v11347_v46, %v11347_v46 }
 0x4a3   :  { %v11346_v30 = vadd.f32 %v13733_v4, %v17984_v35  ;;  %v11479_v25 = vmul.f32 %v11345_v6, %v11345_v6 }
 0x4a4   :  { %v12500_v28 = vpack.c.bf16 %v11348_v12, %v11347_v46  ;;  %v13871_v17 = vadd.f32 %v17812_v10, %v13227_v29  ;;  %v17997_v62 = vadd.f32 %v13857_v56, %v17894_v44  ;;  %v11482_v59 = vmul.f32 %v11348_v12, %v11348_v12 }
 0x4a5   :  { %v11441_v47 = vadd.f32 %v11346_v30, %v11345_v6  ;;  %v11480_v1 = vmul.f32 %v11346_v30, %v11346_v30  ;;  %v12495_v53 = vpack.c.bf16 %v11346_v30, %v11345_v6  ;;  %v13680_v60 = vpop.f32.mrb[68].mxu1 }
 0x4a6   :  { %12587 = vst [vmem:[#allocation21 + $0x8] sm:$0xff] %v12500_v28   ;;  %v13740_v2 = vadd.f32 %v17909_v42, %v13680_v60  ;;  %v11099_v7 = vpop.f32.mrb[69].mxu1  ;;  %v13228_v4 = vpop.f32.mrb[12].mxu0  ;;  %v18001_v6 = vadd.f32 %v13871_v17, %v17899_v58 }
 0x4a7   :  { %v11442_v54 = vadd.f32 %v11441_v47, %v11347_v46  ;;  %v11511_v11 = vadd.f32 %v11480_v1, %v11479_v25  ;;  %12496 = vst [vmem:[#allocation21] sm:$0xff] %v12495_v53   ;;  %v13747_v32 = vadd.f32 %v17897_v38, %v11099_v7  ;;  %v13681_v39 = vpop.f32.mrb[70].mxu1  ;;  %v13229_v45 = vpop.f32.mrb[13].mxu0 }
 0x4a8   :  { %v13754_v10 = vadd.f32 %v17914_v61, %v13681_v39  ;;  %v11102_v40 = vpop.f32.mrb[71].mxu1  ;;  %v13231_v56 = vpop.f32.mrb[14].mxu0  ;;  %v11351_v29 = vadd.f32 %v13740_v2, %v17984_v35  ;;  %v13230_v25 = vadd.f32 %v13229_v45, %v13228_v4 }
 0x4a9   :  { %v11512_v42 = vadd.f32 %v11511_v11, %v11481_v26  ;;  %v11349_v30 = vadd.f32 %v13747_v32, %v17984_v35  ;;  %v11443_v44 = vadd.f32 %v11442_v54, %v11348_v12  ;;  %v13761_v46 = vadd.f32 %v17902_v33, %v11102_v40  ;;  %v13232_v28 = vpop.f32.mrb[15].mxu0 }
 0x4aa   :  { %v11352_v38 = vadd.f32 %v13754_v10, %v17984_v35  ;;  %v13850_v60 = vadd.f32 %v17819_v41, %v13230_v25  ;;  %v13233_v17 = vadd.f32 %v13232_v28, %v13231_v56  ;;  %v11485_v4 = vmul.f32 %v11351_v29, %v11351_v29 }
 0x4ab   :  { %v11444_v58 = vadd.f32 %v11443_v44, %v11349_v30  ;;  %v11483_v47 = vmul.f32 %v11349_v30, %v11349_v30  ;;  %v11513_v1 = vadd.f32 %v11512_v42, %v11482_v59  ;;  %v11350_v61 = vadd.f32 %v13761_v46, %v17984_v35 }
 0x4ac   :  { %v12510_v53 = vpack.c.bf16 %v11352_v38, %v11351_v29  ;;  %v13864_v32 = vadd.f32 %v17822_v24, %v13233_v17  ;;  %v18013_v39 = vadd.f32 %v13850_v60, %v17906_v50  ;;  %v11486_v45 = vmul.f32 %v11352_v38, %v11352_v38 }
 0x4ad   :  { %v11514_v26 = vadd.f32 %v11513_v1, %v11483_v47  ;;  %v11445_v12 = vadd.f32 %v11444_v58, %v11350_v61  ;;  %v11484_v7 = vmul.f32 %v11350_v61, %v11350_v61  ;;  %v12505_v33 = vpack.c.bf16 %v11350_v61, %v11349_v30  ;;  %v13684_v54 = vpop.f32.mrb[72].mxu1 }
 0x4ae   :  { %12589 = vst [vmem:[#allocation21 + $0x18] sm:$0xff] %v12510_v53   ;;  %v13768_v2 = vadd.f32 %v17933_v14, %v13684_v54  ;;  %v11115_v11 = vpop.f32.mrb[73].mxu1  ;;  %v18018_v44 = vadd.f32 %v13864_v32, %v17911_v9 }
 0x4af   :  { %v11446_v59 = vadd.f32 %v11445_v12, %v11351_v29  ;;  %v11515_v10 = vadd.f32 %v11514_v26, %v11484_v7  ;;  %12588 = vst [vmem:[#allocation21 + $0x10] sm:$0xff] %v12505_v33   ;;  %v13775_v41 = vadd.f32 %v17921_v23, %v11115_v11  ;;  %v13685_v40 = vpop.f32.mrb[74].mxu1 }
 0x4b0   :  { %v13782_v42 = vadd.f32 %v17938_v31, %v13685_v40  ;;  %v11118_v30 = vpop.f32.mrb[75].mxu1  ;;  %v13234_v56 = vpop.f32.mrb[16].mxu0  ;;  %v11355_v29 = vadd.f32 %v13768_v2, %v17984_v35 }
 0x4b1   :  { %v11516_v14 = vadd.f32 %v11515_v10, %v11485_v4  ;;  %v11353_v24 = vadd.f32 %v13775_v41, %v17984_v35  ;;  %v11447_v46 = vadd.f32 %v11446_v59, %v11352_v38  ;;  %v13789_v50 = vadd.f32 %v17926_v43, %v11118_v30  ;;  %v13235_v23 = vpop.f32.mrb[17].mxu0 }
 0x4b2   :  { %v11356_v25 = vadd.f32 %v13782_v42, %v17984_v35  ;;  %v13237_v1 = vpop.f32.mrb[18].mxu0  ;;  %v13236_v61 = vadd.f32 %v13235_v23, %v13234_v56  ;;  %v11489_v2 = vmul.f32 %v11355_v29, %v11355_v29 }
 0x4b3   :  { %v11448_v28 = vadd.f32 %v11447_v46, %v11353_v24  ;;  %v11487_v58 = vmul.f32 %v11353_v24, %v11353_v24  ;;  %v11517_v47 = vadd.f32 %v11516_v14, %v11486_v45  ;;  %v11354_v31 = vadd.f32 %v13789_v50, %v17984_v35  ;;  %v13238_v53 = vpop.f32.mrb[19].mxu0 }
 0x4b4   :  { %v12520_v9 = vpack.c.bf16 %v11356_v25, %v11355_v29  ;;  %v13885_v33 = vadd.f32 %v17829_v5, %v13236_v61  ;;  %v13239_v54 = vadd.f32 %v13238_v53, %v13237_v1  ;;  %v11490_v10 = vmul.f32 %v11356_v25, %v11356_v25 }
 0x4b5   :  { %v11518_v60 = vadd.f32 %v11517_v47, %v11487_v58  ;;  %v11449_v17 = vadd.f32 %v11448_v28, %v11354_v31  ;;  %v11488_v38 = vmul.f32 %v11354_v31, %v11354_v31  ;;  %v12515_v26 = vpack.c.bf16 %v11354_v31, %v11353_v24  ;;  %v13688_v43 = vpop.f32.mrb[76].mxu1 }
 0x4b6   :  { %12591 = vst [vmem:[#allocation21 + $0x28] sm:$0xff] %v12520_v9   ;;  %v13796_v12 = vadd.f32 %v17955_v37, %v13688_v43  ;;  %v11131_v7 = vpop.f32.mrb[77].mxu1  ;;  %v13899_v45 = vadd.f32 %v17832_v27, %v13239_v54  ;;  %v18031_v42 = vadd.f32 %v13885_v33, %v17917_v3 }
 0x4b7   :  { %v11450_v11 = vadd.f32 %v11449_v17, %v11355_v29  ;;  %v11519_v32 = vadd.f32 %v11518_v60, %v11488_v38  ;;  %12590 = vst [vmem:[#allocation21 + $0x20] sm:$0xff] %v12515_v26   ;;  %v13803_v4 = vadd.f32 %v17943_v57, %v11131_v7  ;;  %v13689_v59 = vpop.f32.mrb[78].mxu1 }
 0x4b8   :  { %v13810_v41 = vadd.f32 %v17958_v16, %v13689_v59  ;;  %v11134_v40 = vpop.f32.mrb[79].mxu1  ;;  %v13240_v24 = vpop.f32.mrb[20].mxu0  ;;  %v11359_v46 = vadd.f32 %v13796_v12, %v17984_v35  ;;  %v18038_v16 = vadd.f32 %v13899_v45, %v17923_v13 }
 0x4b9   :  { %v11520_v37 = vadd.f32 %v11519_v32, %v11489_v2  ;;  %v11357_v5 = vadd.f32 %v13803_v4, %v17984_v35  ;;  %v11451_v30 = vadd.f32 %v11450_v11, %v11356_v25  ;;  %v13817_v14 = vadd.f32 %v17948_v36, %v11134_v40  ;;  %v13241_v50 = vpop.f32.mrb[21].mxu0 }
 0x4ba   :  { %v11360_v57 = vadd.f32 %v13810_v41, %v17984_v35  ;;  %v13243_v23 = vpop.f32.mrb[22].mxu0  ;;  %v13242_v58 = vadd.f32 %v13241_v50, %v13240_v24  ;;  %v11493_v17 = vmul.f32 %v11359_v46, %v11359_v46 }
 0x4bb   :  { %v11452_v56 = vadd.f32 %v11451_v30, %v11357_v5  ;;  %v11491_v27 = vmul.f32 %v11357_v5, %v11357_v5  ;;  %v11521_v29 = vadd.f32 %v11520_v37, %v11490_v10  ;;  %v11358_v3 = vadd.f32 %v13817_v14, %v17984_v35  ;;  %v13244_v25 = vpop.f32.mrb[23].mxu0 }
 0x4bc   :  { %v12530_v28 = vpack.c.bf16 %v11360_v57, %v11359_v46  ;;  %v13878_v13 = vadd.f32 %v17839_v19, %v13242_v58  ;;  %v13245_v60 = vadd.f32 %v13244_v25, %v13243_v23  ;;  %v11494_v7 = vmul.f32 %v11360_v57, %v11360_v57 }
 0x4bd   :  { %v11522_v47 = vadd.f32 %v11521_v29, %v11491_v27  ;;  %v11453_v36 = vadd.f32 %v11452_v56, %v11358_v3  ;;  %v11492_v31 = vmul.f32 %v11358_v3, %v11358_v3  ;;  %v12525_v1 = vpack.c.bf16 %v11358_v3, %v11357_v5  ;;  %v13692_v9 = vpop.f32.mrb[80].mxu1 }
 0x4be   :  { %12593 = vst [vmem:[#allocation21 + $0x38] sm:$0xff] %v12530_v28   ;;  %v13824_v61 = vadd.f32 %v17975_v8, %v13692_v9  ;;  %v11147_v53 = vpop.f32.mrb[81].mxu1  ;;  %v13892_v2 = vadd.f32 %v17842_v18, %v13245_v60  ;;  %v13879_v11 = vadd.f32 %v13878_v13, %v17929_v48 }
 0x4bf   :  { %v11454_v38 = vadd.f32 %v11453_v36, %v11359_v46  ;;  %v11523_v26 = vadd.f32 %v11522_v47, %v11492_v31  ;;  %12592 = vst [vmem:[#allocation21 + $0x30] sm:$0xff] %v12525_v1   ;;  %v13831_v43 = vadd.f32 %v17963_v20, %v11147_v53  ;;  %v13693_v12 = vpop.f32.mrb[82].mxu1 }
 0x4c0   :  { %v13838_v33 = vadd.f32 %v17978_v22, %v13693_v12  ;;  %v11150_v54 = vpop.f32.mrb[83].mxu1  ;;  %v11363_v59 = vadd.f32 %v13824_v61, %v17984_v35  ;;  %v18052_v41 = vadd.f32 %v13892_v2, %v17935_v21 }
 0x4c1   :  { %v11524_v8 = vadd.f32 %v11523_v26, %v11493_v17  ;;  %v11361_v32 = vadd.f32 %v13831_v43, %v17984_v35  ;;  %v11455_v19 = vadd.f32 %v11454_v38, %v11360_v57  ;;  %v13845_v4 = vadd.f32 %v17966_v15, %v11150_v54  ;;  %v13246_v20 = vpop.f32.mrb[24].mxu0 }
 0x4c2   :  { %v11364_v10 = vadd.f32 %v13838_v33, %v17984_v35  ;;  %v13247_v48 = vpop.f32.mrb[25].mxu0  ;;  %v11497_v3 = vmul.f32 %v11363_v59, %v11363_v59 }
 0x4c3   :  { %v11456_v22 = vadd.f32 %v11455_v19, %v11361_v32  ;;  %v11495_v40 = vmul.f32 %v11361_v32, %v11361_v32  ;;  %v11525_v45 = vadd.f32 %v11524_v8, %v11494_v7  ;;  %v11362_v18 = vadd.f32 %v13845_v4, %v17984_v35  ;;  %v13249_v30 = vpop.f32.mrb[26].mxu0 }
 0x4c4   :  { %v12540_v37 = vpack.c.bf16 %v11364_v10, %v11363_v59  ;;  %v13248_v5 = vadd.f32 %v13247_v48, %v13246_v20  ;;  %v13250_v50 = vpop.f32.mrb[27].mxu0  ;;  %v11498_v47 = vmul.f32 %v11364_v10, %v11364_v10 }
 0x4c5   :  { %v11526_v14 = vadd.f32 %v11525_v45, %v11495_v40  ;;  %v11457_v24 = vadd.f32 %v11456_v22, %v11362_v18  ;;  %v11496_v15 = vmul.f32 %v11362_v18, %v11362_v18  ;;  %v12535_v46 = vpack.c.bf16 %v11362_v18, %v11361_v32  ;;  %v13696_v57 = vpop.f32.mrb[84].mxu1 }
 0x4c6   :  { %12595 = vst [vmem:[#allocation21 + $0x48] sm:$0xff] %v12540_v37   ;;  %v13852_v56 = vadd.f32 %v18013_v39, %v13696_v57  ;;  %v11163_v21 = vpop.f32.mrb[85].mxu1  ;;  %v13913_v27 = vadd.f32 %v17849_v51, %v13248_v5  ;;  %v13251_v29 = vadd.f32 %v13250_v50, %v13249_v30 }
 0x4c7   :  { %v11458_v23 = vadd.f32 %v11457_v24, %v11363_v59  ;;  %v11527_v28 = vadd.f32 %v11526_v14, %v11496_v15  ;;  %12594 = vst [vmem:[#allocation21 + $0x40] sm:$0xff] %v12535_v46   ;;  %v13859_v58 = vadd.f32 %v17997_v62, %v11163_v21  ;;  %v13697_v25 = vpop.f32.mrb[86].mxu1  ;;  %v18367_v46 = vld [vmem:[#allocation62_spill] sm:$0xff] }
 0x4c8   :  { %v13866_v36 = vadd.f32 %v18018_v44, %v13697_v25  ;;  %v11166_v31 = vpop.f32.mrb[87].mxu1  ;;  %v13927_v1 = vadd.f32 %v17854_v55, %v13251_v29  ;;  %v18061_v9 = vadd.f32 %v13913_v27, %v17945_v63  ;;  %v11367_v13 = vadd.f32 %v13852_v56, %v17984_v35 }
 0x4c9   :  { %v11528_v39 = vadd.f32 %v11527_v28, %v11497_v3  ;;  %v11365_v51 = vadd.f32 %v13859_v58, %v17984_v35  ;;  %v11459_v61 = vadd.f32 %v11458_v23, %v11364_v10  ;;  %v13873_v53 = vadd.f32 %v18001_v6, %v11166_v31 }
 0x4ca   :  { %v11368_v62 = vadd.f32 %v13866_v36, %v17984_v35  ;;  %v18068_v60 = vadd.f32 %v13927_v1, %v17950_v0  ;;  %v13252_v63 = vpop.f32.mrb[28].mxu0  ;;  %v11501_v8 = vmul.f32 %v11367_v13, %v11367_v13 }
 0x4cb   :  { %v11460_v44 = vadd.f32 %v11459_v61, %v11365_v51  ;;  %v11499_v17 = vmul.f32 %v11365_v51, %v11365_v51  ;;  %v11529_v38 = vadd.f32 %v11528_v39, %v11498_v47  ;;  %v11366_v55 = vadd.f32 %v13873_v53, %v17984_v35  ;;  %v13253_v43 = vpop.f32.mrb[29].mxu0 }
 0x4cc   :  { %v12550_v26 = vpack.c.bf16 %v11368_v62, %v11367_v13  ;;  %v13255_v2 = vpop.f32.mrb[30].mxu0  ;;  %v13254_v0 = vadd.f32 %v13253_v43, %v13252_v63  ;;  %v11502_v45 = vmul.f32 %v11368_v62, %v11368_v62 }
 0x4cd   :  { %v11530_v12 = vadd.f32 %v11529_v38, %v11499_v17  ;;  %v11461_v7 = vadd.f32 %v11460_v44, %v11366_v55  ;;  %v11500_v33 = vmul.f32 %v11366_v55, %v11366_v55  ;;  %v12545_v54 = vpack.c.bf16 %v11366_v55, %v11365_v51  ;;  %v13700_v6 = vpop.f32.mrb[88].mxu1  ;;  %v13256_v4 = vpop.f32.mrb[31].mxu0 }
 0x4ce   :  { %12597 = vst [vmem:[#allocation21 + $0x58] sm:$0xff] %v12550_v26   ;;  %v13880_v32 = vadd.f32 %v13879_v11, %v13700_v6  ;;  %v11179_v19 = vpop.f32.mrb[89].mxu1  ;;  %v13257_v40 = vadd.f32 %v13256_v4, %v13255_v2  ;;  %v13906_v37 = vadd.f32 %v17859_v52, %v13254_v0 }
 0x4cf   :  { %v11462_v59 = vadd.f32 %v11461_v7, %v11367_v13  ;;  %v11531_v10 = vadd.f32 %v11530_v12, %v11500_v33  ;;  %12596 = vst [vmem:[#allocation21 + $0x50] sm:$0xff] %v12545_v54   ;;  %v13887_v20 = vadd.f32 %v18031_v42, %v11179_v19  ;;  %v13701_v22 = vpop.f32.mrb[90].mxu1 }
 0x4d0   :  { %v13894_v18 = vadd.f32 %v18052_v41, %v13701_v22  ;;  %v11182_v48 = vpop.f32.mrb[91].mxu1  ;;  %v11371_v24 = vadd.f32 %v13880_v32, %v17984_v35  ;;  %v13920_v42 = vadd.f32 %v18367_v46, %v13257_v40  ;;  %v13907_v57 = vadd.f32 %v13906_v37, %v17968_v49 }
 0x4d1   :  { %v11532_v5 = vadd.f32 %v11531_v10, %v11501_v8  ;;  %v11369_v30 = vadd.f32 %v13887_v20, %v17984_v35  ;;  %v11463_v11 = vadd.f32 %v11462_v59, %v11368_v62  ;;  %v13901_v14 = vadd.f32 %v18038_v16, %v11182_v48 }
 0x4d2   :  { %v11372_v15 = vadd.f32 %v13894_v18, %v17984_v35  ;;  %v13921_v27 = vadd.f32 %v13920_v42, %v17970_v34  ;;  %v11505_v47 = vmul.f32 %v11371_v24, %v11371_v24 }
 0x4d3   :  { %v11464_v50 = vadd.f32 %v11463_v11, %v11369_v30  ;;  %v11503_v56 = vmul.f32 %v11369_v30, %v11369_v30  ;;  %v11533_v41 = vadd.f32 %v11532_v5, %v11502_v45  ;;  %v11370_v21 = vadd.f32 %v13901_v14, %v17984_v35 }
 0x4d4   :  { %v12560_v52 = vpack.c.bf16 %v11372_v15, %v11371_v24  ;;  %v11506_v39 = vmul.f32 %v11372_v15, %v11372_v15 }
 0x4d5   :  { %v11534_v29 = vadd.f32 %v11533_v41, %v11503_v56  ;;  %v11465_v3 = vadd.f32 %v11464_v50, %v11370_v21  ;;  %v11504_v23 = vmul.f32 %v11370_v21, %v11370_v21  ;;  %v12555_v16 = vpack.c.bf16 %v11370_v21, %v11369_v30  ;;  %v13704_v28 = vpop.f32.mrb[92].mxu1 }
 0x4d6   :  { %12599 = vst [vmem:[#allocation21 + $0x68] sm:$0xff] %v12560_v52   ;;  %v13908_v58 = vadd.f32 %v13907_v57, %v13704_v28  ;;  %v11195_v25 = vpop.f32.mrb[93].mxu1 }
 0x4d7   :  { %v11466_v36 = vadd.f32 %v11465_v3, %v11371_v24  ;;  %v11535_v31 = vadd.f32 %v11534_v29, %v11504_v23  ;;  %12598 = vst [vmem:[#allocation21 + $0x60] sm:$0xff] %v12555_v16   ;;  %v13915_v49 = vadd.f32 %v18061_v9, %v11195_v25  ;;  %v13705_v1 = vpop.f32.mrb[94].mxu1 }
 0x4d8   :  { %v13922_v51 = vadd.f32 %v13921_v27, %v13705_v1  ;;  %v11198_v61 = vpop.f32.mrb[95].mxu1  ;;  %v11375_v44 = vadd.f32 %v13908_v58, %v17984_v35 }
 0x4d9   :  { %v11536_v53 = vadd.f32 %v11535_v31, %v11505_v47  ;;  %v11373_v34 = vadd.f32 %v13915_v49, %v17984_v35  ;;  %v11467_v13 = vadd.f32 %v11466_v36, %v11372_v15  ;;  %v13929_v62 = vadd.f32 %v18068_v60, %v11198_v61 }
 0x4da   :  { %v11376_v17 = vadd.f32 %v13922_v51, %v17984_v35  ;;  %v11509_v54 = vmul.f32 %v11375_v44, %v11375_v44 }
 0x4db   :  { %v11468_v38 = vadd.f32 %v11467_v13, %v11373_v34  ;;  %v11507_v55 = vmul.f32 %v11373_v34, %v11373_v34  ;;  %v11537_v63 = vadd.f32 %v11536_v53, %v11506_v39  ;;  %v11374_v9 = vadd.f32 %v13929_v62, %v17984_v35 }
 0x4dc   :  { %v12570_v26 = vpack.c.bf16 %v11376_v17, %v11375_v44 }
 0x4dd   :  { %v11538_v43 = vadd.f32 %v11537_v63, %v11507_v55  ;;  %v11469_v12 = vadd.f32 %v11468_v38, %v11374_v9  ;;  %v11508_v7 = vmul.f32 %v11374_v9, %v11374_v9  ;;  %v12565_v33 = vpack.c.bf16 %v11374_v9, %v11373_v34 }
 0x4de   :  { %12601 = vst [vmem:[#allocation21 + $0x78] sm:$0xff] %v12570_v26  }
 0x4df   :  { %v11470_v60 = vadd.f32 %v11469_v12, %v11375_v44  ;;  %v11539_v6 = vadd.f32 %v11538_v43, %v11508_v7  ;;  %12600 = vst [vmem:[#allocation21 + $0x70] sm:$0xff] %v12565_v33  }
 0x4e0   :  { %14510 = shalt.err (!%p14507_p10)
}
 0x4e1   :  { %s14511_s7 = scalar_lea.hbm %s18146_s11, 2048 }
 0x4e2   :  { %p14512_p11 = scmp.ne.s32.totalorder %s18146_s11, %s14511_s7  ;;  %p14515_p12 = scmp.lt.u32.totalorder %s14511_s7, %s18146_s11 }
 0x4e4   :  { %p14517_p13 = pnand %p14515_p12, %p14512_p11 }
 0x4e6   :  { %14520 = shalt.err (!%p14517_p13)
}
 0x4e7   :  { %11720 = dma.vmem_to_hbm [thread:$0]  %s11715_s6, 2048, %s18146_s11, [#allocation9], %s14581_s23, %s14581_s23, %s14582_s24   ;;  %v11510_v35 = vmul.f32 %v11376_v17, %v11376_v17  ;;  %v11540_v2 = vadd.f32 %v11539_v6, %v11509_v54  ;;  %v11471_v8 = vadd.f32 %v11470_v60, %v11376_v17 }
 0x4e8   :  { %s14591_s9 = smov [#allocation22]   ;;  %s14592_s1 = smov [#allocation24]  }
 0x4e9   :  { %v11472_v32 = vrot.slane %v11471_v8, 4  ;;  %v11541_v19 = vadd.f32 %v11540_v2, %v11510_v35  ;;  %s11727_s19 = sshll.u32 %s14591_s9, 4  ;;  %s11737_s20 = sshll.u32 %s14592_s1, 4  ;;  %s11728_s19 = int_to_ptr.vmem [resolvable:$true] %s11727_s19  ;;  %s18103_s20 = int_to_ptr.vmem [resolvable:$true] %s11737_s20 }
 0x4ea   :  { %s14521_s11 = scalar_lea.vmem %s11728_s19, 16  ;;  %s14525_s23 = scalar_lea.vmem %s11728_s19, 32 }
 0x4eb   :  { %v11473_v0 = vadd.f32 %v11472_v32, %v11471_v8  ;;  %v11542_v4 = vrot.slane %v11541_v19, 4  ;;  %p14522_p0 = scmp.ne.s32.totalorder %s11728_s19, %s14521_s11  ;;  %p14526_p1 = scmp.lt.s32.totalorder %s11728_s19, %s11728_s19 }
 0x4ec   :  { %p14527_p2 = scmp.lt.s32.totalorder %s14525_s23, %s14521_s11 }
 0x4ed   :  { %v11474_v59 = vrot.slane %v11473_v0, 2  ;;  %v11543_v10 = vadd.f32 %v11542_v4, %v11541_v19 }
 0x4ee   :  { %p14528_p3 = por %p14527_p2, %p14526_p1 }
 0x4ef   :  { %v11475_v20 = vadd.f32 %v11474_v59, %v11473_v0  ;;  %v11544_v22 = vrot.slane %v11543_v10, 2 }
 0x4f0   :  { %p14529_p4 = pnand %p14528_p3, %p14522_p0 }
 0x4f1   :  { %v11476_v40 = vrot.slane %v11475_v20, 1  ;;  %v11545_v45 = vadd.f32 %v11544_v22, %v11543_v10 }
 0x4f3   :  { %v11477_v18 = vadd.f32 %v11476_v40, %v11475_v20  ;;  %v11546_v48 = vrot.slane %v11545_v45, 1 }
 0x4f5   :  { %11478 = vst [vmem:[#allocation22] sm:$0x1] %v11477_v18  ;;  %v11547_v37 = vadd.f32 %v11546_v48, %v11545_v45 }
 0x4f6   :  { %14532 = shalt.err (!%p14529_p4)
}
 0x4f7   :  { %s14533_s27 = scalar_lea.hbm %s18147_s12, 16 }
 0x4f8   :  { %p14534_p5 = scmp.ne.s32.totalorder %s18147_s12, %s14533_s27  ;;  %p14537_p6 = scmp.lt.u32.totalorder %s14533_s27, %s18147_s12 }
 0x4fa   :  { %p14539_p7 = pnand %p14537_p6, %p14534_p5 }
 0x4fc   :  { %14542 = shalt.err (!%p14539_p7)
}
 0x4fd   :  { %11730 = dma.vmem_to_hbm [thread:$0]  %s11728_s19, 16, %s18147_s12, [#allocation23]   ;;  %11548 = vst [vmem:[#allocation24] sm:$0x1] %v11547_v37 }
 0x4fe   :  { %s14543_s4 = scalar_lea.vmem %s18103_s20, 16  ;;  %s14547_s15 = scalar_lea.vmem %s18103_s20, 32 }
 0x4ff   :  { %p14544_p8 = scmp.ne.s32.totalorder %s18103_s20, %s14543_s4  ;;  %p14548_p9 = scmp.lt.s32.totalorder %s18103_s20, %s18103_s20 }
 0x500   :  { %p14549_p10 = scmp.lt.s32.totalorder %s14547_s15, %s14543_s4 }
 0x502   :  { %p14550_p11 = por %p14549_p10, %p14548_p9 }
 0x504   :  { %p14551_p12 = pnand %p14550_p11, %p14544_p8 }
 0x506   :  { %14554 = shalt.err (!%p14551_p12)
}
 0x507   :  { %s14555_s26 = scalar_lea.hbm %s18148_s13, 16 }
 0x508   :  { %p14556_p13 = scmp.ne.s32.totalorder %s18148_s13, %s14555_s26  ;;  %p14559_p0 = scmp.lt.u32.totalorder %s14555_s26, %s18148_s13 }
 0x50a   :  { %p14561_p1 = pnand %p14559_p0, %p14556_p13 }
 0x50c   :  { %14564 = shalt.err (!%p14561_p1)
}
 0x50d   :  { %11740 = dma.vmem_to_hbm [thread:$0]  %s18103_s20, 16, %s18148_s13, [#allocation23]  }
 0x50e   :  { %14575 = dma.done.wait [#allocation9], 2048  }
 0x50f   :  { %14576 = vsyncadd [#allocation9], 4294965248 }
 0x510   :  { %14577 = dma.done.wait [#allocation23], 32  }
 0x511   :  { %14578 = vsyncadd [#allocation23], 4294967264 }
 0x512   :  { %11750 = vsyncpa [#allocation8], 1 }
 0x513   :  { %11751 = vsyncpa [#allocation11], 1 }
 0x514   :  { %11752 = vsyncpa [#allocation14], 1 }
 0x515   :  { %11753 = vsyncpa [#allocation17], 1 }
 0x516   :  { %11754 = vsyncpa [#allocation20], 1 }
 0x517   :  { %11755 = vsyncpa [#allocation9], 1 }
 0x518   :  { %11756 = vsyncpa [#allocation23], 1 }

</bundles_post_ra>
